<compile_context>
chip_gen: v7x
topology: tpu7x:2x2x1
jax: 0.10.0
libtpu: 0.0.40
codegen_flags: <defaults>
</compile_context>

<pallas_src>
import jax
import jax.numpy as jnp
import numpy as np
from jax.experimental import pallas as pl
from jax.experimental.pallas import tpu as pltpu

_NPAD = 128   # fc5 logits padded to one full 128-lane register (lane-dense store)
_BT = 8       # batch tile per grid step (= sublane width -> layout-trivial reshapes)


# ----------------------------------------------------------------------------
# Fused forward kernel: conv1 -> conv2 -> conv3 -> fc4 -> fc5, all in VMEM.
# ----------------------------------------------------------------------------
def _fused_forward_kernel(xb_ref, w1_ref, b1_ref, w2_ref, b2_ref,
                          w3_ref, b3_ref, w4_ref, b4_ref, w5_ref, b5_ref,
                          out_ref):
    """Whole network for one batch tile of _BT samples.

    Every conv/fc layer is ONE im2col GEMM: the patch matrix is assembled with
    static leading-dim slices + a lane-dim concat, cast to bf16, and multiplied
    against a prep-time-reshaped (T*Cin, Cout) bf16 weight with f32 accumulation.
    """
    bt = xb_ref.shape[2]

    def conv(a, w_ref, b_ref, k, stride, oh, ow):
        h, w, _, cin = a.shape
        if stride > 1:
            # Free reshape (leading dims only, minor (bt, cin) untouched):
            # a[s*y + ti, ...] == a.reshape(h//s, s, ...)[y + ti//s, ti%s, ...]
            asp = a.reshape(h // stride, stride, w, bt, cin)
        cols = []
        for ti in range(k):
            for tj in range(k):
                if stride == 1:
                    p = a[ti:ti + oh, tj:tj + ow]
                else:
                    v = asp[ti // stride:ti // stride + oh, ti % stride]
                    v = v.reshape(oh, w // stride, stride, bt, cin)
                    p = v[:, tj // stride:tj // stride + ow, tj % stride]
                cols.append(p)                                   # (oh, ow, bt, cin)
        patches = jnp.concatenate(cols, axis=-1)                 # (oh, ow, bt, k*k*cin)
        patches = patches.reshape(oh * ow * bt, k * k * cin)     # lane dim unchanged
        acc = jnp.dot(patches.astype(jnp.bfloat16), w_ref[...],
                      preferred_element_type=jnp.float32)
        acc = jnp.maximum(acc + b_ref[...], 0.0)                 # bias + ReLU in f32
        return acc.reshape(oh, ow, bt, w_ref.shape[1])

    a0 = xb_ref[...]                               # (15, 15, bt, 16) f32
    a1 = conv(a0, w1_ref, b1_ref, 2, 1, 14, 14)    # conv1 (2x2/s1 over 4x4 blocks)
    a2 = conv(a1, w2_ref, b2_ref, 4, 2, 6, 6)      # conv2 4x4/s2
    a3 = conv(a2, w3_ref, b3_ref, 3, 1, 4, 4)      # conv3 3x3/s1
    a4 = conv(a3, w4_ref, b4_ref, 4, 1, 1, 1)      # fc4 as a 4x4 "conv" (+ReLU)
    a4 = a4.reshape(bt, w4_ref.shape[1])           # (bt, 512)
    logits = jnp.dot(a4.astype(jnp.bfloat16), w5_ref[...],
                     preferred_element_type=jnp.float32)
    out_ref[...] = logits + b5_ref[...]            # (bt, 128) lane-dense store


# ----------------------------------------------------------------------------
# Parameter preparation (all weight reshapes/transposes hoisted, done once)
# ----------------------------------------------------------------------------
def prepare_params(p):
    """Convert torch-layout params into kernel-ready bf16 GEMM layouts.

    Folds x/255 - 0.5 into conv1 (exact), rewrites conv1's 8x8/s4 kernel as a
    2x2/s1 kernel over 4x4 input blocks, flattens every conv kernel to a
    (kh*kw*Cin, Cout) im2col weight, re-orders fc4 columns to match torch's
    (C,H,W) flatten, and pads fc5 to 128 output lanes.
    """
    f32, bf16 = jnp.float32, jnp.bfloat16
    kp = {}

    w1 = p["conv1_w"][:, 0] / 255.0                               # (32, 8, 8)
    w1 = w1.reshape(32, 2, 4, 2, 4).transpose(1, 3, 2, 4, 0)      # (ti,tj,bi,bj,co)
    kp["w1"] = w1.reshape(64, 32).astype(bf16)
    kp["b1"] = (p["conv1_b"]
                - 0.5 * jnp.sum(p["conv1_w"][:, 0], axis=(1, 2))
                ).reshape(1, 32).astype(f32)

    def conv_w(w):                                                # (Co,Ci,kh,kw)
        co, ci, kh, kw = w.shape
        return jnp.transpose(w, (2, 3, 1, 0)).reshape(kh * kw * ci, co).astype(bf16)

    kp["w2"] = conv_w(p["conv2_w"])                               # (512, 64)
    kp["b2"] = p["conv2_b"].reshape(1, 64).astype(f32)
    kp["w3"] = conv_w(p["conv3_w"])                               # (576, 64)
    kp["b3"] = p["conv3_b"].reshape(1, 64).astype(f32)

    # fc4 as a 4x4x64 "conv": torch flattens (C,H,W); our im2col order is (H,W,C).
    w4 = p["fc4_w"].reshape(512, 64, 4, 4).transpose(2, 3, 1, 0).reshape(1024, 512)
    kp["w4"] = w4.astype(bf16)
    kp["b4"] = p["fc4_b"].reshape(1, 512).astype(f32)

    n_actions = p["fc5_w"].shape[0]
    w5 = jnp.zeros((512, _NPAD), f32).at[:, :n_actions].set(p["fc5_w"].T)
    kp["w5"] = w5.astype(bf16)
    kp["b5"] = jnp.zeros((1, _NPAD), f32).at[0, :n_actions].set(p["fc5_b"])
    return kp


def _full_spec(a):
    shp = tuple(int(s) for s in a.shape)
    # Constant index_map -> block never changes -> weights DMA'd once, stay resident.
    return pl.BlockSpec(shp, lambda i, _n=len(shp): (0,) * _n)


def _forward_impl(kp, x, n_actions):
    """x: (B, C, 60, 60) float32 NCHW with raw [0, 255] pixel values."""
    B, _, H, W = x.shape
    assert H == 60 and W == 60, "Network expects 60x60 inputs (fc4 = 4*4*64)."

    # Tiny XLA glue: channel mean + 4x4 space-to-depth into the kernel's
    # (H, W, B, 16) layout.  The /255 - 0.5 norm is folded into conv1, so only
    # this one cheap transpose sits outside the kernel (fine at small/medium B).
    xm = jnp.mean(x, axis=1)                                       # (B, 60, 60)
    xb = xm.reshape(B, 15, 4, 15, 4).transpose(1, 3, 0, 2, 4)      # (15,15,B,4,4)
    xb = xb.reshape(15, 15, B, 16).astype(jnp.float32)

    bp = ((B + _BT - 1) // _BT) * _BT            # pad batch to a multiple of _BT
    if bp != B:
        xb = jnp.pad(xb, ((0, 0), (0, 0), (0, bp - B), (0, 0)))
    nb = bp // _BT

    weights = (kp["w1"], kp["b1"], kp["w2"], kp["b2"], kp["w3"], kp["b3"],
               kp["w4"], kp["b4"], kp["w5"], kp["b5"])

    # Advisory cost estimate computed from the actual GEMM shapes (fn of batch).
    m1, m2, m3 = 14 * 14 * bp, 6 * 6 * bp, 4 * 4 * bp
    flops = 2 * (m1 * 64 * 32 + m2 * 512 * 64 + m3 * 576 * 64
                 + bp * 1024 * 512 + bp * 512 * _NPAD)
    bytes_accessed = (xb.size * xb.dtype.itemsize + bp * _NPAD * 4
                      + sum(v.size * v.dtype.itemsize for v in weights))

    out = pl.pallas_call(
        _fused_forward_kernel,
        out_shape=jax.ShapeDtypeStruct((bp, _NPAD), jnp.float32),
        grid=(nb,),
        in_specs=[pl.BlockSpec((15, 15, _BT, 16), lambda i: (0, 0, i, 0))]
                 + [_full_spec(w) for w in weights],
        out_specs=pl.BlockSpec((_BT, _NPAD), lambda i: (i, 0)),
        compiler_params=pltpu.CompilerParams(
            dimension_semantics=("parallel",),      # v7x: batch tiles across both TCs
            vmem_limit_bytes=32 * 1024 * 1024,      # deliberate; per-step use is ~4 MB
        ),
        cost_estimate=pl.CostEstimate(
            flops=int(flops), transcendentals=0,
            bytes_accessed=int(bytes_accessed)),
    )(xb, *weights)

    return out[:B, :n_actions]


network_forward = jax.jit(_forward_impl, static_argnums=(2,))


# ----------------------------------------------------------------------------
# Torch-layout parameter init + pure-XLA reference (for the self-check)
# ----------------------------------------------------------------------------
def init_params(key, n_actions):
    """Weights in the original torch layouts with torch-default uniform init."""
    ks = jax.random.split(key, 10)

    def u(k, shape, fan_in):
        bound = 1.0 / float(np.sqrt(fan_in))
        return jax.random.uniform(k, shape, jnp.float32, -bound, bound)

    return {
        "conv1_w": u(ks[0], (32, 1, 8, 8), 1 * 8 * 8),
        "conv1_b": u(ks[1], (32,), 1 * 8 * 8),
        "conv2_w": u(ks[2], (64, 32, 4, 4), 32 * 4 * 4),
        "conv2_b": u(ks[3], (64,), 32 * 4 * 4),
        "conv3_w": u(ks[4], (64, 64, 3, 3), 64 * 3 * 3),
        "conv3_b": u(ks[5], (64,), 64 * 3 * 3),
        "fc4_w": u(ks[6], (512, 4 * 4 * 64), 4 * 4 * 64),
        "fc4_b": u(ks[7], (512,), 4 * 4 * 64),
        "fc5_w": u(ks[8], (n_actions, 512), 512),
        "fc5_b": u(ks[9], (n_actions,), 512),
    }


def reference_forward(p, x):
    """Plain-XLA f32 implementation of the original torch module (NCHW)."""
    hi = jax.lax.Precision.HIGHEST
    dn = ("NCHW", "OIHW", "NCHW")
    h = jnp.mean(x, axis=1, keepdims=True) / 255.0 - 0.5
    h = jax.lax.conv_general_dilated(h, p["conv1_w"], (4, 4), "VALID",
                                     dimension_numbers=dn, precision=hi)
    h = jnp.maximum(h + p["conv1_b"][None, :, None, None], 0.0)
    h = jax.lax.conv_general_dilated(h, p["conv2_w"], (2, 2), "VALID",
                                     dimension_numbers=dn, precision=hi)
    h = jnp.maximum(h + p["conv2_b"][None, :, None, None], 0.0)
    h = jax.lax.conv_general_dilated(h, p["conv3_w"], (1, 1), "VALID",
                                     dimension_numbers=dn, precision=hi)
    h = jnp.maximum(h + p["conv3_b"][None, :, None, None], 0.0)
    h = h.reshape(h.shape[0], -1)
    h = jnp.maximum(jnp.dot(h, p["fc4_w"].T, precision=hi) + p["fc4_b"], 0.0)
    return jnp.dot(h, p["fc5_w"].T, precision=hi) + p["fc5_b"]


# ----------------------------------------------------------------------------
# Demo
# ----------------------------------------------------------------------------
if __name__ == "__main__":
    n_actions = 6
    key = jax.random.PRNGKey(0)
    k_param, k_x = jax.random.split(key)

    torch_params = init_params(k_param, n_actions)
    kparams = prepare_params(torch_params)       # one-time weight prep (hoisted)

    # Spatial size must be 60x60 so conv3's output is 4x4 (fc4 expects 4*4*64).
    # Batch 10 -> padded to 16 -> exercises a 2-step "parallel" batch grid.
    x = jax.random.uniform(k_x, (10, 4, 60, 60), jnp.float32, 0.0, 255.0)

    out = network_forward(kparams, x, n_actions)
    out = jax.block_until_ready(out)
    assert out.shape == (10, n_actions), out.shape

    # Cross-check the fused Pallas kernel (bf16 MXU operands, f32 accumulation)
    # against the plain-XLA f32 reference of the original torch module.
    ref = reference_forward(torch_params, x)
    err = float(jnp.max(jnp.abs(out - ref)))
    scale = float(jnp.max(jnp.abs(ref)))
    assert err <= 5e-2 * scale + 2e-3, f"max|diff|={err}, max|ref|={scale}"

    print("KERNEL_OK")
</pallas_src>

<mosaic_0001>
module attributes {stable_mosaic.version = 11 : i64} {
  func.func @_fused_forward_kernel(%arg0: i32, %arg1: memref<15x15x8x16xf32, #tpu.memory_space<vmem>>, %arg2: memref<64x32xbf16, #tpu.memory_space<vmem>>, %arg3: memref<1x32xf32, #tpu.memory_space<vmem>>, %arg4: memref<512x64xbf16, #tpu.memory_space<vmem>>, %arg5: memref<1x64xf32, #tpu.memory_space<vmem>>, %arg6: memref<576x64xbf16, #tpu.memory_space<vmem>>, %arg7: memref<1x64xf32, #tpu.memory_space<vmem>>, %arg8: memref<1024x512xbf16, #tpu.memory_space<vmem>>, %arg9: memref<1x512xf32, #tpu.memory_space<vmem>>, %arg10: memref<512x128xbf16, #tpu.memory_space<vmem>>, %arg11: memref<1x128xf32, #tpu.memory_space<vmem>>, %arg12: memref<8x128xf32, #tpu.memory_space<vmem>>) attributes {dimension_semantics = [#tpu.dimension_semantics<parallel>], iteration_bounds = array<i64: 2>, scalar_prefetch = 0 : i64, scratch_operands = 0 : i64, tpu.core_type = #tpu.core_type<tc>, window_params = [{transform_indices = @transform_0, window_bounds = array<i64: 15, 15, 8, 16>}, {pipeline_mode = #tpu.pipeline_mode<synchronous>, transform_indices = @transform_1, window_bounds = array<i64: 64, 32>}, {pipeline_mode = #tpu.pipeline_mode<synchronous>, transform_indices = @transform_2, window_bounds = array<i64: 1, 32>}, {pipeline_mode = #tpu.pipeline_mode<synchronous>, transform_indices = @transform_3, window_bounds = array<i64: 512, 64>}, {pipeline_mode = #tpu.pipeline_mode<synchronous>, transform_indices = @transform_4, window_bounds = array<i64: 1, 64>}, {pipeline_mode = #tpu.pipeline_mode<synchronous>, transform_indices = @transform_5, window_bounds = array<i64: 576, 64>}, {pipeline_mode = #tpu.pipeline_mode<synchronous>, transform_indices = @transform_6, window_bounds = array<i64: 1, 64>}, {pipeline_mode = #tpu.pipeline_mode<synchronous>, transform_indices = @transform_7, window_bounds = array<i64: 1024, 512>}, {pipeline_mode = #tpu.pipeline_mode<synchronous>, transform_indices = @transform_8, window_bounds = array<i64: 1, 512>}, {pipeline_mode = #tpu.pipeline_mode<synchronous>, transform_indices = @transform_9, window_bounds = array<i64: 512, 128>}, {pipeline_mode = #tpu.pipeline_mode<synchronous>, transform_indices = @transform_10, window_bounds = array<i64: 1, 128>}, {transform_indices = @transform_11, window_bounds = array<i64: 8, 128>}]} {
    %c0 = arith.constant 0 : index
    %c0_0 = arith.constant 0 : index
    %c0_1 = arith.constant 0 : index
    %c0_2 = arith.constant 0 : index
    %0 = vector.load %arg1[%c0, %c0_0, %c0_1, %c0_2] : memref<15x15x8x16xf32, #tpu.memory_space<vmem>>, vector<15x15x8x16xf32>
    %1 = vector.extract_strided_slice %0 {offsets = [0, 0, 0, 0], sizes = [14, 14, 8, 16], strides = [1, 1, 1, 1]} : vector<15x15x8x16xf32> to vector<14x14x8x16xf32>
    %2 = vector.extract_strided_slice %0 {offsets = [0, 1, 0, 0], sizes = [14, 14, 8, 16], strides = [1, 1, 1, 1]} : vector<15x15x8x16xf32> to vector<14x14x8x16xf32>
    %3 = vector.extract_strided_slice %0 {offsets = [1, 0, 0, 0], sizes = [14, 14, 8, 16], strides = [1, 1, 1, 1]} : vector<15x15x8x16xf32> to vector<14x14x8x16xf32>
    %4 = vector.extract_strided_slice %0 {offsets = [1, 1, 0, 0], sizes = [14, 14, 8, 16], strides = [1, 1, 1, 1]} : vector<15x15x8x16xf32> to vector<14x14x8x16xf32>
    %5 = tpu.concatenate %1, %2, %3, %4 in 3 : vector<14x14x8x16xf32>, vector<14x14x8x16xf32>, vector<14x14x8x16xf32>, vector<14x14x8x16xf32> -> vector<14x14x8x64xf32>
    %6 = vector.shape_cast %5 : vector<14x14x8x64xf32> to vector<1568x64xf32>
    %7 = arith.truncf %6 : vector<1568x64xf32> to vector<1568x64xbf16>
    %c0_3 = arith.constant 0 : index
    %c0_4 = arith.constant 0 : index
    %8 = vector.load %arg2[%c0_3, %c0_4] : memref<64x32xbf16, #tpu.memory_space<vmem>>, vector<64x32xbf16>
    %cst = arith.constant dense<0.000000e+00> : vector<1568x32xf32>
    %9 = tpu.matmul %7, %8, %cst {dimension_numbers = #tpu.dot_dimension_numbers<[1], [0], [0], [1], [0, 0, 1, 1], [], []>} : vector<1568x64xbf16>, vector<64x32xbf16>, vector<1568x32xf32> -> vector<1568x32xf32>
    %c0_5 = arith.constant 0 : index
    %c0_6 = arith.constant 0 : index
    %10 = vector.load %arg3[%c0_5, %c0_6] : memref<1x32xf32, #tpu.memory_space<vmem>>, vector<1x32xf32>
    %11 = vector.broadcast %10 : vector<1x32xf32> to vector<1568x32xf32>
    %12 = arith.addf %9, %11 : vector<1568x32xf32>
    %cst_7 = arith.constant 0.000000e+00 : f32
    %13 = vector.broadcast %cst_7 : f32 to vector<1568x32xf32>
    %14 = arith.maximumf %12, %13 : vector<1568x32xf32>
    %15 = vector.shape_cast %14 : vector<1568x32xf32> to vector<14x14x8x32xf32>
    %16 = vector.shape_cast %15 : vector<14x14x8x32xf32> to vector<7x2x14x8x32xf32>
    %17 = vector.extract_strided_slice %16 {offsets = [0, 0, 0, 0, 0], sizes = [6, 1, 14, 8, 32], strides = [1, 1, 1, 1, 1]} : vector<7x2x14x8x32xf32> to vector<6x1x14x8x32xf32>
    %18 = vector.shape_cast %17 : vector<6x1x14x8x32xf32> to vector<6x14x8x32xf32>
    %19 = vector.shape_cast %18 : vector<6x14x8x32xf32> to vector<6x7x2x8x32xf32>
    %20 = vector.extract_strided_slice %19 {offsets = [0, 0, 0, 0, 0], sizes = [6, 6, 1, 8, 32], strides = [1, 1, 1, 1, 1]} : vector<6x7x2x8x32xf32> to vector<6x6x1x8x32xf32>
    %21 = vector.shape_cast %20 : vector<6x6x1x8x32xf32> to vector<6x6x8x32xf32>
    %22 = vector.extract_strided_slice %16 {offsets = [0, 0, 0, 0, 0], sizes = [6, 1, 14, 8, 32], strides = [1, 1, 1, 1, 1]} : vector<7x2x14x8x32xf32> to vector<6x1x14x8x32xf32>
    %23 = vector.shape_cast %22 : vector<6x1x14x8x32xf32> to vector<6x14x8x32xf32>
    %24 = vector.shape_cast %23 : vector<6x14x8x32xf32> to vector<6x7x2x8x32xf32>
    %25 = vector.extract_strided_slice %24 {offsets = [0, 0, 1, 0, 0], sizes = [6, 6, 1, 8, 32], strides = [1, 1, 1, 1, 1]} : vector<6x7x2x8x32xf32> to vector<6x6x1x8x32xf32>
    %26 = vector.shape_cast %25 : vector<6x6x1x8x32xf32> to vector<6x6x8x32xf32>
    %27 = vector.extract_strided_slice %16 {offsets = [0, 0, 0, 0, 0], sizes = [6, 1, 14, 8, 32], strides = [1, 1, 1, 1, 1]} : vector<7x2x14x8x32xf32> to vector<6x1x14x8x32xf32>
    %28 = vector.shape_cast %27 : vector<6x1x14x8x32xf32> to vector<6x14x8x32xf32>
    %29 = vector.shape_cast %28 : vector<6x14x8x32xf32> to vector<6x7x2x8x32xf32>
    %30 = vector.extract_strided_slice %29 {offsets = [0, 1, 0, 0, 0], sizes = [6, 6, 1, 8, 32], strides = [1, 1, 1, 1, 1]} : vector<6x7x2x8x32xf32> to vector<6x6x1x8x32xf32>
    %31 = vector.shape_cast %30 : vector<6x6x1x8x32xf32> to vector<6x6x8x32xf32>
    %32 = vector.extract_strided_slice %16 {offsets = [0, 0, 0, 0, 0], sizes = [6, 1, 14, 8, 32], strides = [1, 1, 1, 1, 1]} : vector<7x2x14x8x32xf32> to vector<6x1x14x8x32xf32>
    %33 = vector.shape_cast %32 : vector<6x1x14x8x32xf32> to vector<6x14x8x32xf32>
    %34 = vector.shape_cast %33 : vector<6x14x8x32xf32> to vector<6x7x2x8x32xf32>
    %35 = vector.extract_strided_slice %34 {offsets = [0, 1, 1, 0, 0], sizes = [6, 6, 1, 8, 32], strides = [1, 1, 1, 1, 1]} : vector<6x7x2x8x32xf32> to vector<6x6x1x8x32xf32>
    %36 = vector.shape_cast %35 : vector<6x6x1x8x32xf32> to vector<6x6x8x32xf32>
    %37 = vector.extract_strided_slice %16 {offsets = [0, 1, 0, 0, 0], sizes = [6, 1, 14, 8, 32], strides = [1, 1, 1, 1, 1]} : vector<7x2x14x8x32xf32> to vector<6x1x14x8x32xf32>
    %38 = vector.shape_cast %37 : vector<6x1x14x8x32xf32> to vector<6x14x8x32xf32>
    %39 = vector.shape_cast %38 : vector<6x14x8x32xf32> to vector<6x7x2x8x32xf32>
    %40 = vector.extract_strided_slice %39 {offsets = [0, 0, 0, 0, 0], sizes = [6, 6, 1, 8, 32], strides = [1, 1, 1, 1, 1]} : vector<6x7x2x8x32xf32> to vector<6x6x1x8x32xf32>
    %41 = vector.shape_cast %40 : vector<6x6x1x8x32xf32> to vector<6x6x8x32xf32>
    %42 = vector.extract_strided_slice %16 {offsets = [0, 1, 0, 0, 0], sizes = [6, 1, 14, 8, 32], strides = [1, 1, 1, 1, 1]} : vector<7x2x14x8x32xf32> to vector<6x1x14x8x32xf32>
    %43 = vector.shape_cast %42 : vector<6x1x14x8x32xf32> to vector<6x14x8x32xf32>
    %44 = vector.shape_cast %43 : vector<6x14x8x32xf32> to vector<6x7x2x8x32xf32>
    %45 = vector.extract_strided_slice %44 {offsets = [0, 0, 1, 0, 0], sizes = [6, 6, 1, 8, 32], strides = [1, 1, 1, 1, 1]} : vector<6x7x2x8x32xf32> to vector<6x6x1x8x32xf32>
    %46 = vector.shape_cast %45 : vector<6x6x1x8x32xf32> to vector<6x6x8x32xf32>
    %47 = vector.extract_strided_slice %16 {offsets = [0, 1, 0, 0, 0], sizes = [6, 1, 14, 8, 32], strides = [1, 1, 1, 1, 1]} : vector<7x2x14x8x32xf32> to vector<6x1x14x8x32xf32>
    %48 = vector.shape_cast %47 : vector<6x1x14x8x32xf32> to vector<6x14x8x32xf32>
    %49 = vector.shape_cast %48 : vector<6x14x8x32xf32> to vector<6x7x2x8x32xf32>
    %50 = vector.extract_strided_slice %49 {offsets = [0, 1, 0, 0, 0], sizes = [6, 6, 1, 8, 32], strides = [1, 1, 1, 1, 1]} : vector<6x7x2x8x32xf32> to vector<6x6x1x8x32xf32>
    %51 = vector.shape_cast %50 : vector<6x6x1x8x32xf32> to vector<6x6x8x32xf32>
    %52 = vector.extract_strided_slice %16 {offsets = [0, 1, 0, 0, 0], sizes = [6, 1, 14, 8, 32], strides = [1, 1, 1, 1, 1]} : vector<7x2x14x8x32xf32> to vector<6x1x14x8x32xf32>
    %53 = vector.shape_cast %52 : vector<6x1x14x8x32xf32> to vector<6x14x8x32xf32>
    %54 = vector.shape_cast %53 : vector<6x14x8x32xf32> to vector<6x7x2x8x32xf32>
    %55 = vector.extract_strided_slice %54 {offsets = [0, 1, 1, 0, 0], sizes = [6, 6, 1, 8, 32], strides = [1, 1, 1, 1, 1]} : vector<6x7x2x8x32xf32> to vector<6x6x1x8x32xf32>
    %56 = vector.shape_cast %55 : vector<6x6x1x8x32xf32> to vector<6x6x8x32xf32>
    %57 = vector.extract_strided_slice %16 {offsets = [1, 0, 0, 0, 0], sizes = [6, 1, 14, 8, 32], strides = [1, 1, 1, 1, 1]} : vector<7x2x14x8x32xf32> to vector<6x1x14x8x32xf32>
    %58 = vector.shape_cast %57 : vector<6x1x14x8x32xf32> to vector<6x14x8x32xf32>
    %59 = vector.shape_cast %58 : vector<6x14x8x32xf32> to vector<6x7x2x8x32xf32>
    %60 = vector.extract_strided_slice %59 {offsets = [0, 0, 0, 0, 0], sizes = [6, 6, 1, 8, 32], strides = [1, 1, 1, 1, 1]} : vector<6x7x2x8x32xf32> to vector<6x6x1x8x32xf32>
    %61 = vector.shape_cast %60 : vector<6x6x1x8x32xf32> to vector<6x6x8x32xf32>
    %62 = vector.extract_strided_slice %16 {offsets = [1, 0, 0, 0, 0], sizes = [6, 1, 14, 8, 32], strides = [1, 1, 1, 1, 1]} : vector<7x2x14x8x32xf32> to vector<6x1x14x8x32xf32>
    %63 = vector.shape_cast %62 : vector<6x1x14x8x32xf32> to vector<6x14x8x32xf32>
    %64 = vector.shape_cast %63 : vector<6x14x8x32xf32> to vector<6x7x2x8x32xf32>
    %65 = vector.extract_strided_slice %64 {offsets = [0, 0, 1, 0, 0], sizes = [6, 6, 1, 8, 32], strides = [1, 1, 1, 1, 1]} : vector<6x7x2x8x32xf32> to vector<6x6x1x8x32xf32>
    %66 = vector.shape_cast %65 : vector<6x6x1x8x32xf32> to vector<6x6x8x32xf32>
    %67 = vector.extract_strided_slice %16 {offsets = [1, 0, 0, 0, 0], sizes = [6, 1, 14, 8, 32], strides = [1, 1, 1, 1, 1]} : vector<7x2x14x8x32xf32> to vector<6x1x14x8x32xf32>
    %68 = vector.shape_cast %67 : vector<6x1x14x8x32xf32> to vector<6x14x8x32xf32>
    %69 = vector.shape_cast %68 : vector<6x14x8x32xf32> to vector<6x7x2x8x32xf32>
    %70 = vector.extract_strided_slice %69 {offsets = [0, 1, 0, 0, 0], sizes = [6, 6, 1, 8, 32], strides = [1, 1, 1, 1, 1]} : vector<6x7x2x8x32xf32> to vector<6x6x1x8x32xf32>
    %71 = vector.shape_cast %70 : vector<6x6x1x8x32xf32> to vector<6x6x8x32xf32>
    %72 = vector.extract_strided_slice %16 {offsets = [1, 0, 0, 0, 0], sizes = [6, 1, 14, 8, 32], strides = [1, 1, 1, 1, 1]} : vector<7x2x14x8x32xf32> to vector<6x1x14x8x32xf32>
    %73 = vector.shape_cast %72 : vector<6x1x14x8x32xf32> to vector<6x14x8x32xf32>
    %74 = vector.shape_cast %73 : vector<6x14x8x32xf32> to vector<6x7x2x8x32xf32>
    %75 = vector.extract_strided_slice %74 {offsets = [0, 1, 1, 0, 0], sizes = [6, 6, 1, 8, 32], strides = [1, 1, 1, 1, 1]} : vector<6x7x2x8x32xf32> to vector<6x6x1x8x32xf32>
    %76 = vector.shape_cast %75 : vector<6x6x1x8x32xf32> to vector<6x6x8x32xf32>
    %77 = vector.extract_strided_slice %16 {offsets = [1, 1, 0, 0, 0], sizes = [6, 1, 14, 8, 32], strides = [1, 1, 1, 1, 1]} : vector<7x2x14x8x32xf32> to vector<6x1x14x8x32xf32>
    %78 = vector.shape_cast %77 : vector<6x1x14x8x32xf32> to vector<6x14x8x32xf32>
    %79 = vector.shape_cast %78 : vector<6x14x8x32xf32> to vector<6x7x2x8x32xf32>
    %80 = vector.extract_strided_slice %79 {offsets = [0, 0, 0, 0, 0], sizes = [6, 6, 1, 8, 32], strides = [1, 1, 1, 1, 1]} : vector<6x7x2x8x32xf32> to vector<6x6x1x8x32xf32>
    %81 = vector.shape_cast %80 : vector<6x6x1x8x32xf32> to vector<6x6x8x32xf32>
    %82 = vector.extract_strided_slice %16 {offsets = [1, 1, 0, 0, 0], sizes = [6, 1, 14, 8, 32], strides = [1, 1, 1, 1, 1]} : vector<7x2x14x8x32xf32> to vector<6x1x14x8x32xf32>
    %83 = vector.shape_cast %82 : vector<6x1x14x8x32xf32> to vector<6x14x8x32xf32>
    %84 = vector.shape_cast %83 : vector<6x14x8x32xf32> to vector<6x7x2x8x32xf32>
    %85 = vector.extract_strided_slice %84 {offsets = [0, 0, 1, 0, 0], sizes = [6, 6, 1, 8, 32], strides = [1, 1, 1, 1, 1]} : vector<6x7x2x8x32xf32> to vector<6x6x1x8x32xf32>
    %86 = vector.shape_cast %85 : vector<6x6x1x8x32xf32> to vector<6x6x8x32xf32>
    %87 = vector.extract_strided_slice %16 {offsets = [1, 1, 0, 0, 0], sizes = [6, 1, 14, 8, 32], strides = [1, 1, 1, 1, 1]} : vector<7x2x14x8x32xf32> to vector<6x1x14x8x32xf32>
    %88 = vector.shape_cast %87 : vector<6x1x14x8x32xf32> to vector<6x14x8x32xf32>
    %89 = vector.shape_cast %88 : vector<6x14x8x32xf32> to vector<6x7x2x8x32xf32>
    %90 = vector.extract_strided_slice %89 {offsets = [0, 1, 0, 0, 0], sizes = [6, 6, 1, 8, 32], strides = [1, 1, 1, 1, 1]} : vector<6x7x2x8x32xf32> to vector<6x6x1x8x32xf32>
    %91 = vector.shape_cast %90 : vector<6x6x1x8x32xf32> to vector<6x6x8x32xf32>
    %92 = vector.extract_strided_slice %16 {offsets = [1, 1, 0, 0, 0], sizes = [6, 1, 14, 8, 32], strides = [1, 1, 1, 1, 1]} : vector<7x2x14x8x32xf32> to vector<6x1x14x8x32xf32>
    %93 = vector.shape_cast %92 : vector<6x1x14x8x32xf32> to vector<6x14x8x32xf32>
    %94 = vector.shape_cast %93 : vector<6x14x8x32xf32> to vector<6x7x2x8x32xf32>
    %95 = vector.extract_strided_slice %94 {offsets = [0, 1, 1, 0, 0], sizes = [6, 6, 1, 8, 32], strides = [1, 1, 1, 1, 1]} : vector<6x7x2x8x32xf32> to vector<6x6x1x8x32xf32>
    %96 = vector.shape_cast %95 : vector<6x6x1x8x32xf32> to vector<6x6x8x32xf32>
    %97 = tpu.concatenate %21, %26, %31, %36, %41, %46, %51, %56, %61, %66, %71, %76, %81, %86, %91, %96 in 3 : vector<6x6x8x32xf32>, vector<6x6x8x32xf32>, vector<6x6x8x32xf32>, vector<6x6x8x32xf32>, vector<6x6x8x32xf32>, vector<6x6x8x32xf32>, vector<6x6x8x32xf32>, vector<6x6x8x32xf32>, vector<6x6x8x32xf32>, vector<6x6x8x32xf32>, vector<6x6x8x32xf32>, vector<6x6x8x32xf32>, vector<6x6x8x32xf32>, vector<6x6x8x32xf32>, vector<6x6x8x32xf32>, vector<6x6x8x32xf32> -> vector<6x6x8x512xf32>
    %98 = vector.shape_cast %97 : vector<6x6x8x512xf32> to vector<288x512xf32>
    %99 = arith.truncf %98 : vector<288x512xf32> to vector<288x512xbf16>
    %c0_8 = arith.constant 0 : index
    %c0_9 = arith.constant 0 : index
    %100 = vector.load %arg4[%c0_8, %c0_9] : memref<512x64xbf16, #tpu.memory_space<vmem>>, vector<512x64xbf16>
    %cst_10 = arith.constant dense<0.000000e+00> : vector<288x64xf32>
    %101 = tpu.matmul %99, %100, %cst_10 {dimension_numbers = #tpu.dot_dimension_numbers<[1], [0], [0], [1], [0, 0, 1, 1], [], []>} : vector<288x512xbf16>, vector<512x64xbf16>, vector<288x64xf32> -> vector<288x64xf32>
    %c0_11 = arith.constant 0 : index
    %c0_12 = arith.constant 0 : index
    %102 = vector.load %arg5[%c0_11, %c0_12] : memref<1x64xf32, #tpu.memory_space<vmem>>, vector<1x64xf32>
    %103 = vector.broadcast %102 : vector<1x64xf32> to vector<288x64xf32>
    %104 = arith.addf %101, %103 : vector<288x64xf32>
    %cst_13 = arith.constant 0.000000e+00 : f32
    %105 = vector.broadcast %cst_13 : f32 to vector<288x64xf32>
    %106 = arith.maximumf %104, %105 : vector<288x64xf32>
    %107 = vector.shape_cast %106 : vector<288x64xf32> to vector<6x6x8x64xf32>
    %108 = vector.extract_strided_slice %107 {offsets = [0, 0, 0, 0], sizes = [4, 4, 8, 64], strides = [1, 1, 1, 1]} : vector<6x6x8x64xf32> to vector<4x4x8x64xf32>
    %109 = vector.extract_strided_slice %107 {offsets = [0, 1, 0, 0], sizes = [4, 4, 8, 64], strides = [1, 1, 1, 1]} : vector<6x6x8x64xf32> to vector<4x4x8x64xf32>
    %110 = vector.extract_strided_slice %107 {offsets = [0, 2, 0, 0], sizes = [4, 4, 8, 64], strides = [1, 1, 1, 1]} : vector<6x6x8x64xf32> to vector<4x4x8x64xf32>
    %111 = vector.extract_strided_slice %107 {offsets = [1, 0, 0, 0], sizes = [4, 4, 8, 64], strides = [1, 1, 1, 1]} : vector<6x6x8x64xf32> to vector<4x4x8x64xf32>
    %112 = vector.extract_strided_slice %107 {offsets = [1, 1, 0, 0], sizes = [4, 4, 8, 64], strides = [1, 1, 1, 1]} : vector<6x6x8x64xf32> to vector<4x4x8x64xf32>
    %113 = vector.extract_strided_slice %107 {offsets = [1, 2, 0, 0], sizes = [4, 4, 8, 64], strides = [1, 1, 1, 1]} : vector<6x6x8x64xf32> to vector<4x4x8x64xf32>
    %114 = vector.extract_strided_slice %107 {offsets = [2, 0, 0, 0], sizes = [4, 4, 8, 64], strides = [1, 1, 1, 1]} : vector<6x6x8x64xf32> to vector<4x4x8x64xf32>
    %115 = vector.extract_strided_slice %107 {offsets = [2, 1, 0, 0], sizes = [4, 4, 8, 64], strides = [1, 1, 1, 1]} : vector<6x6x8x64xf32> to vector<4x4x8x64xf32>
    %116 = vector.extract_strided_slice %107 {offsets = [2, 2, 0, 0], sizes = [4, 4, 8, 64], strides = [1, 1, 1, 1]} : vector<6x6x8x64xf32> to vector<4x4x8x64xf32>
    %117 = tpu.concatenate %108, %109, %110, %111, %112, %113, %114, %115, %116 in 3 : vector<4x4x8x64xf32>, vector<4x4x8x64xf32>, vector<4x4x8x64xf32>, vector<4x4x8x64xf32>, vector<4x4x8x64xf32>, vector<4x4x8x64xf32>, vector<4x4x8x64xf32>, vector<4x4x8x64xf32>, vector<4x4x8x64xf32> -> vector<4x4x8x576xf32>
    %118 = vector.shape_cast %117 : vector<4x4x8x576xf32> to vector<128x576xf32>
    %119 = arith.truncf %118 : vector<128x576xf32> to vector<128x576xbf16>
    %c0_14 = arith.constant 0 : index
    %c0_15 = arith.constant 0 : index
    %120 = vector.load %arg6[%c0_14, %c0_15] : memref<576x64xbf16, #tpu.memory_space<vmem>>, vector<576x64xbf16>
    %cst_16 = arith.constant dense<0.000000e+00> : vector<128x64xf32>
    %121 = tpu.matmul %119, %120, %cst_16 {dimension_numbers = #tpu.dot_dimension_numbers<[1], [0], [0], [1], [0, 0, 1, 1], [], []>} : vector<128x576xbf16>, vector<576x64xbf16>, vector<128x64xf32> -> vector<128x64xf32>
    %c0_17 = arith.constant 0 : index
    %c0_18 = arith.constant 0 : index
    %122 = vector.load %arg7[%c0_17, %c0_18] : memref<1x64xf32, #tpu.memory_space<vmem>>, vector<1x64xf32>
    %123 = vector.broadcast %122 : vector<1x64xf32> to vector<128x64xf32>
    %124 = arith.addf %121, %123 : vector<128x64xf32>
    %cst_19 = arith.constant 0.000000e+00 : f32
    %125 = vector.broadcast %cst_19 : f32 to vector<128x64xf32>
    %126 = arith.maximumf %124, %125 : vector<128x64xf32>
    %127 = vector.shape_cast %126 : vector<128x64xf32> to vector<4x4x8x64xf32>
    %128 = vector.extract_strided_slice %127 {offsets = [0, 0, 0, 0], sizes = [1, 1, 8, 64], strides = [1, 1, 1, 1]} : vector<4x4x8x64xf32> to vector<1x1x8x64xf32>
    %129 = vector.extract_strided_slice %127 {offsets = [0, 1, 0, 0], sizes = [1, 1, 8, 64], strides = [1, 1, 1, 1]} : vector<4x4x8x64xf32> to vector<1x1x8x64xf32>
    %130 = vector.extract_strided_slice %127 {offsets = [0, 2, 0, 0], sizes = [1, 1, 8, 64], strides = [1, 1, 1, 1]} : vector<4x4x8x64xf32> to vector<1x1x8x64xf32>
    %131 = vector.extract_strided_slice %127 {offsets = [0, 3, 0, 0], sizes = [1, 1, 8, 64], strides = [1, 1, 1, 1]} : vector<4x4x8x64xf32> to vector<1x1x8x64xf32>
    %132 = vector.extract_strided_slice %127 {offsets = [1, 0, 0, 0], sizes = [1, 1, 8, 64], strides = [1, 1, 1, 1]} : vector<4x4x8x64xf32> to vector<1x1x8x64xf32>
    %133 = vector.extract_strided_slice %127 {offsets = [1, 1, 0, 0], sizes = [1, 1, 8, 64], strides = [1, 1, 1, 1]} : vector<4x4x8x64xf32> to vector<1x1x8x64xf32>
    %134 = vector.extract_strided_slice %127 {offsets = [1, 2, 0, 0], sizes = [1, 1, 8, 64], strides = [1, 1, 1, 1]} : vector<4x4x8x64xf32> to vector<1x1x8x64xf32>
    %135 = vector.extract_strided_slice %127 {offsets = [1, 3, 0, 0], sizes = [1, 1, 8, 64], strides = [1, 1, 1, 1]} : vector<4x4x8x64xf32> to vector<1x1x8x64xf32>
    %136 = vector.extract_strided_slice %127 {offsets = [2, 0, 0, 0], sizes = [1, 1, 8, 64], strides = [1, 1, 1, 1]} : vector<4x4x8x64xf32> to vector<1x1x8x64xf32>
    %137 = vector.extract_strided_slice %127 {offsets = [2, 1, 0, 0], sizes = [1, 1, 8, 64], strides = [1, 1, 1, 1]} : vector<4x4x8x64xf32> to vector<1x1x8x64xf32>
    %138 = vector.extract_strided_slice %127 {offsets = [2, 2, 0, 0], sizes = [1, 1, 8, 64], strides = [1, 1, 1, 1]} : vector<4x4x8x64xf32> to vector<1x1x8x64xf32>
    %139 = vector.extract_strided_slice %127 {offsets = [2, 3, 0, 0], sizes = [1, 1, 8, 64], strides = [1, 1, 1, 1]} : vector<4x4x8x64xf32> to vector<1x1x8x64xf32>
    %140 = vector.extract_strided_slice %127 {offsets = [3, 0, 0, 0], sizes = [1, 1, 8, 64], strides = [1, 1, 1, 1]} : vector<4x4x8x64xf32> to vector<1x1x8x64xf32>
    %141 = vector.extract_strided_slice %127 {offsets = [3, 1, 0, 0], sizes = [1, 1, 8, 64], strides = [1, 1, 1, 1]} : vector<4x4x8x64xf32> to vector<1x1x8x64xf32>
    %142 = vector.extract_strided_slice %127 {offsets = [3, 2, 0, 0], sizes = [1, 1, 8, 64], strides = [1, 1, 1, 1]} : vector<4x4x8x64xf32> to vector<1x1x8x64xf32>
    %143 = vector.extract_strided_slice %127 {offsets = [3, 3, 0, 0], sizes = [1, 1, 8, 64], strides = [1, 1, 1, 1]} : vector<4x4x8x64xf32> to vector<1x1x8x64xf32>
    %144 = tpu.concatenate %128, %129, %130, %131, %132, %133, %134, %135, %136, %137, %138, %139, %140, %141, %142, %143 in 3 : vector<1x1x8x64xf32>, vector<1x1x8x64xf32>, vector<1x1x8x64xf32>, vector<1x1x8x64xf32>, vector<1x1x8x64xf32>, vector<1x1x8x64xf32>, vector<1x1x8x64xf32>, vector<1x1x8x64xf32>, vector<1x1x8x64xf32>, vector<1x1x8x64xf32>, vector<1x1x8x64xf32>, vector<1x1x8x64xf32>, vector<1x1x8x64xf32>, vector<1x1x8x64xf32>, vector<1x1x8x64xf32>, vector<1x1x8x64xf32> -> vector<1x1x8x1024xf32>
    %145 = vector.shape_cast %144 : vector<1x1x8x1024xf32> to vector<8x1024xf32>
    %146 = arith.truncf %145 : vector<8x1024xf32> to vector<8x1024xbf16>
    %c0_20 = arith.constant 0 : index
    %c0_21 = arith.constant 0 : index
    %147 = vector.load %arg8[%c0_20, %c0_21] : memref<1024x512xbf16, #tpu.memory_space<vmem>>, vector<1024x512xbf16>
    %cst_22 = arith.constant dense<0.000000e+00> : vector<8x512xf32>
    %148 = tpu.matmul %146, %147, %cst_22 {dimension_numbers = #tpu.dot_dimension_numbers<[1], [0], [0], [1], [0, 0, 1, 1], [], []>} : vector<8x1024xbf16>, vector<1024x512xbf16>, vector<8x512xf32> -> vector<8x512xf32>
    %c0_23 = arith.constant 0 : index
    %c0_24 = arith.constant 0 : index
    %149 = vector.load %arg9[%c0_23, %c0_24] : memref<1x512xf32, #tpu.memory_space<vmem>>, vector<1x512xf32>
    %150 = vector.broadcast %149 : vector<1x512xf32> to vector<8x512xf32>
    %151 = arith.addf %148, %150 : vector<8x512xf32>
    %cst_25 = arith.constant 0.000000e+00 : f32
    %152 = vector.broadcast %cst_25 : f32 to vector<8x512xf32>
    %153 = arith.maximumf %151, %152 : vector<8x512xf32>
    %154 = vector.shape_cast %153 : vector<8x512xf32> to vector<1x1x8x512xf32>
    %155 = vector.shape_cast %154 : vector<1x1x8x512xf32> to vector<8x512xf32>
    %156 = arith.truncf %155 : vector<8x512xf32> to vector<8x512xbf16>
    %c0_26 = arith.constant 0 : index
    %c0_27 = arith.constant 0 : index
    %157 = vector.load %arg10[%c0_26, %c0_27] : memref<512x128xbf16, #tpu.memory_space<vmem>>, vector<512x128xbf16>
    %cst_28 = arith.constant dense<0.000000e+00> : vector<8x128xf32>
    %158 = tpu.matmul %156, %157, %cst_28 {dimension_numbers = #tpu.dot_dimension_numbers<[1], [0], [0], [1], [0, 0, 1, 1], [], []>} : vector<8x512xbf16>, vector<512x128xbf16>, vector<8x128xf32> -> vector<8x128xf32>
    %c0_29 = arith.constant 0 : index
    %c0_30 = arith.constant 0 : index
    %159 = vector.load %arg11[%c0_29, %c0_30] : memref<1x128xf32, #tpu.memory_space<vmem>>, vector<1x128xf32>
    %160 = vector.broadcast %159 : vector<1x128xf32> to vector<8x128xf32>
    %161 = arith.addf %158, %160 : vector<8x128xf32>
    %c0_31 = arith.constant 0 : index
    %c0_32 = arith.constant 0 : index
    %162 = vector.load %arg12[%c0_31, %c0_32] : memref<8x128xf32, #tpu.memory_space<vmem>>, vector<8x128xf32>
    tpu.vector_store %arg12[%c0_31, %c0_32], %161 {strides = array<i32>} : memref<8x128xf32, #tpu.memory_space<vmem>>, vector<8x128xf32>,
    return
  }
  func.func @transform_0(%arg0: i32) -> (i32, i32, i32, i32) {
    %c0_i32 = arith.constant 0 : i32
    %c0_i32_0 = arith.constant 0 : i32
    %c0_i32_1 = arith.constant 0 : i32
    %c0_i32_2 = arith.constant 0 : i32
    return %c0_i32, %c0_i32_0, %arg0, %c0_i32_1 : i32, i32, i32, i32
  }
  func.func @transform_1(%arg0: i32) -> (i32, i32) {
    %c0_i32 = arith.constant 0 : i32
    %c0_i32_0 = arith.constant 0 : i32
    %c0_i32_1 = arith.constant 0 : i32
    return %c0_i32, %c0_i32_0 : i32, i32
  }
  func.func @transform_2(%arg0: i32) -> (i32, i32) {
    %c0_i32 = arith.constant 0 : i32
    %c0_i32_0 = arith.constant 0 : i32
    %c0_i32_1 = arith.constant 0 : i32
    return %c0_i32, %c0_i32_0 : i32, i32
  }
  func.func @transform_3(%arg0: i32) -> (i32, i32) {
    %c0_i32 = arith.constant 0 : i32
    %c0_i32_0 = arith.constant 0 : i32
    %c0_i32_1 = arith.constant 0 : i32
    return %c0_i32, %c0_i32_0 : i32, i32
  }
  func.func @transform_4(%arg0: i32) -> (i32, i32) {
    %c0_i32 = arith.constant 0 : i32
    %c0_i32_0 = arith.constant 0 : i32
    %c0_i32_1 = arith.constant 0 : i32
    return %c0_i32, %c0_i32_0 : i32, i32
  }
  func.func @transform_5(%arg0: i32) -> (i32, i32) {
    %c0_i32 = arith.constant 0 : i32
    %c0_i32_0 = arith.constant 0 : i32
    %c0_i32_1 = arith.constant 0 : i32
    return %c0_i32, %c0_i32_0 : i32, i32
  }
  func.func @transform_6(%arg0: i32) -> (i32, i32) {
    %c0_i32 = arith.constant 0 : i32
    %c0_i32_0 = arith.constant 0 : i32
    %c0_i32_1 = arith.constant 0 : i32
    return %c0_i32, %c0_i32_0 : i32, i32
  }
  func.func @transform_7(%arg0: i32) -> (i32, i32) {
    %c0_i32 = arith.constant 0 : i32
    %c0_i32_0 = arith.constant 0 : i32
    %c0_i32_1 = arith.constant 0 : i32
    return %c0_i32, %c0_i32_0 : i32, i32
  }
  func.func @transform_8(%arg0: i32) -> (i32, i32) {
    %c0_i32 = arith.constant 0 : i32
    %c0_i32_0 = arith.constant 0 : i32
    %c0_i32_1 = arith.constant 0 : i32
    return %c0_i32, %c0_i32_0 : i32, i32
  }
  func.func @transform_9(%arg0: i32) -> (i32, i32) {
    %c0_i32 = arith.constant 0 : i32
    %c0_i32_0 = arith.constant 0 : i32
    %c0_i32_1 = arith.constant 0 : i32
    return %c0_i32, %c0_i32_0 : i32, i32
  }
  func.func @transform_10(%arg0: i32) -> (i32, i32) {
    %c0_i32 = arith.constant 0 : i32
    %c0_i32_0 = arith.constant 0 : i32
    %c0_i32_1 = arith.constant 0 : i32
    return %c0_i32, %c0_i32_0 : i32, i32
  }
  func.func @transform_11(%arg0: i32) -> (i32, i32) {
    %c0_i32 = arith.constant 0 : i32
    %c0_i32_0 = arith.constant 0 : i32
    return %arg0, %c0_i32 : i32, i32
  }
}

</mosaic_0001>

<bundles_post_ra>
// kernel: _forward_impl.1
= control target key start
LH: loop header
LB: loop body
LE: loop exit
PB: predicated region body
PF: predicated region fallthrough
CT: control target
= control target key end

     0   :  { %s14756_s17 = smov 0   ;;  %s14758_s18 = smov 0   ;;  %s20514_s0 = inlined_call_operand.vmem [shape: f32[15,15,16,16], index: 0, kind: input, shape index: {}]   ;;  %s20515_s1 = inlined_call_operand.vmem [shape: bf16[64,32], index: 1, kind: input, shape index: {}]   ;;  %s20516_s2 = inlined_call_operand.vmem [shape: f32[1,32], index: 2, kind: input, shape index: {}]   ;;  %s20517_s3 = inlined_call_operand.vmem [shape: bf16[512,64], index: 3, kind: input, shape index: {}]   ;;  %s20518_s4 = inlined_call_operand.vmem [shape: f32[1,64], index: 4, kind: input, shape index: {}]   ;;  %s20519_s5 = inlined_call_operand.vmem [shape: bf16[576,64], index: 5, kind: input, shape index: {}]   ;;  %s20520_s6 = inlined_call_operand.vmem [shape: f32[1,64], index: 6, kind: input, shape index: {}]   ;;  %s20521_s7 = inlined_call_operand.vmem [shape: bf16[1024,512], index: 7, kind: input, shape index: {}]   ;;  %s20522_s8 = inlined_call_operand.vmem [shape: f32[1,512], index: 8, kind: input, shape index: {}]   ;;  %s20523_s9 = inlined_call_operand.vmem [shape: bf16[512,128], index: 9, kind: input, shape index: {}]   ;;  %s20524_s10 = inlined_call_operand.vmem [shape: f32[1,128], index: 10, kind: input, shape index: {}]   ;;  %s20525_s11 = inlined_call_operand.vmem [shape: f32[16,128], index: 11, kind: output, shape index: {}]  }
   0x1   :  { %s14760_s19 = smov 0  }
   0x2 LB: > { %s10630_s20 = sadd.s32 4294967295, %s14688_s19   ;;  %s14773_s21 = sadd.s32 1, %s14688_s19   ;;  %s14688_s19 = sphi %s14760_s19, %s20819_s19   ;;  %s14684_s18 = sphi %s14758_s18, %s20818_s18   ;;  %s14680_s17 = sphi %s14756_s17, %s20817_s17  }
   0x3   : > { %s25_s22 = ssub.s32 %s14688_s19, %s14773_s21  ;;  %s28_s23 = sadd.s32 1, %s14684_s18 }
   0x4   : > { %p26_p0 = scmp.eq.s32.totalorder %s25_s22, 0  ;;  %p35_p1 = scmp.ne.s32.totalorder %s14684_s18, %s14680_s17 }
   0x5   : > { %p36_p2 = scmp.eq.s32.totalorder %s14688_s19, 0  ;;  %p10633_p4 = scmp.ge.s32.totalorder %s14688_s19, 2 }
   0x6   : > { %s14782_s24 = scalar_select %p26_p0, %s14684_s18, %s28_s23  }
   0x7   : > { %p37_p3 = por %p36_p2, %p35_p1  ;;  %327 = sbr.rel (%p10633_p4) target bundleno = 131 (0x83), region = 56 }
   0xe   : > { %330 = sbr.rel (!%p37_p3) target bundleno = 131 (0x83), region = 60  ;;  %s332_s25 = sand.u32 (%p37_p3), 1, %s14684_s18  }
   0xf   : > { %s10634_s26 = sshll.u32 (%p37_p3), %s14688_s19, 3  ;;  %s11759_s27 = smul.u32 (%p37_p3), 1800, %s332_s25 }
  0x10   : > { %s14790_s30 = scalar_lea.vmem (%p37_p3), %s20514_s0, %s10634_s26 }
  0x11   : > { %v812_v0 = vld [vmem:[%s14790_s30] sm:$0xff] (%p37_p3)  ;;  %v814_v1 = vld [vmem:[%s14790_s30 + $0x10] sm:$0xff] (%p37_p3)  ;;  %s14798_s12 = scalar_lea.vmem (%p37_p3), [#allocation2], %s11759_s27 }
  0x12   : > { %v816_v2 = vld [vmem:[%s14790_s30 + $0x20] sm:$0xff] (%p37_p3)  ;;  %v818_v3 = vld [vmem:[%s14790_s30 + $0x30] sm:$0xff] (%p37_p3)  ;;  %813 = vst [vmem:[%s14798_s12] sm:$0xff] (%p37_p3), %v812_v0  ;;  %815 = vst [vmem:[%s14798_s12 + $0x8] sm:$0xff] (%p37_p3), %v814_v1 }
  0x13   : > { %v820_v4 = vld [vmem:[%s14790_s30 + $0x40] sm:$0xff] (%p37_p3)  ;;  %v822_v5 = vld [vmem:[%s14790_s30 + $0x50] sm:$0xff] (%p37_p3)  ;;  %817 = vst [vmem:[%s14798_s12 + $0x10] sm:$0xff] (%p37_p3), %v816_v2  ;;  %819 = vst [vmem:[%s14798_s12 + $0x18] sm:$0xff] (%p37_p3), %v818_v3 }
  0x14   : > { %821 = vst [vmem:[%s14798_s12 + $0x20] sm:$0xff] (%p37_p3), %v820_v4  ;;  %823 = vst [vmem:[%s14798_s12 + $0x28] sm:$0xff] (%p37_p3), %v822_v5  ;;  %v824_v6 = vld [vmem:[%s14790_s30 + $0x60] sm:$0xff] (%p37_p3)  ;;  %v826_v7 = vld [vmem:[%s14790_s30 + $0x70] sm:$0xff] (%p37_p3) }
  0x15   : > { %v828_v8 = vld [vmem:[%s14790_s30 + $0x80] sm:$0xff]  ;;  %825 = vst [vmem:[%s14798_s12 + $0x30] sm:$0xff] %v824_v6  ;;  %827 = vst [vmem:[%s14798_s12 + $0x38] sm:$0xff] %v826_v7  ;;  %v830_v9 = vld [vmem:[%s14790_s30 + $0x90] sm:$0xff] }
  0x16   : > { %829 = vst [vmem:[%s14798_s12 + $0x40] sm:$0xff] %v828_v8  ;;  %v832_v10 = vld [vmem:[%s14790_s30 + $0xa0] sm:$0xff]  ;;  %v834_v11 = vld [vmem:[%s14790_s30 + $0xb0] sm:$0xff]  ;;  %831 = vst [vmem:[%s14798_s12 + $0x48] sm:$0xff] %v830_v9 }
  0x17   : > { %833 = vst [vmem:[%s14798_s12 + $0x50] sm:$0xff] %v832_v10  ;;  %835 = vst [vmem:[%s14798_s12 + $0x58] sm:$0xff] %v834_v11  ;;  %v836_v12 = vld [vmem:[%s14790_s30 + $0xc0] sm:$0xff]  ;;  %v838_v13 = vld [vmem:[%s14790_s30 + $0xd0] sm:$0xff] }
  0x18   : > { %v840_v14 = vld [vmem:[%s14790_s30 + $0xe0] sm:$0xff]  ;;  %837 = vst [vmem:[%s14798_s12 + $0x60] sm:$0xff] %v836_v12  ;;  %839 = vst [vmem:[%s14798_s12 + $0x68] sm:$0xff] %v838_v13  ;;  %v842_v15 = vld [vmem:[%s14790_s30 + $0xf0] sm:$0xff] }
  0x19   : > { %841 = vst [vmem:[%s14798_s12 + $0x70] sm:$0xff] %v840_v14  ;;  %v844_v16 = vld [vmem:[%s14790_s30 + $0x100] sm:$0xff]  ;;  %v846_v17 = vld [vmem:[%s14790_s30 + $0x110] sm:$0xff]  ;;  %843 = vst [vmem:[%s14798_s12 + $0x78] sm:$0xff] %v842_v15 }
  0x1a   : > { %845 = vst [vmem:[%s14798_s12 + $0x80] sm:$0xff] %v844_v16  ;;  %847 = vst [vmem:[%s14798_s12 + $0x88] sm:$0xff] %v846_v17  ;;  %v848_v18 = vld [vmem:[%s14790_s30 + $0x120] sm:$0xff]  ;;  %v850_v19 = vld [vmem:[%s14790_s30 + $0x130] sm:$0xff] }
  0x1b   : > { %v852_v20 = vld [vmem:[%s14790_s30 + $0x140] sm:$0xff]  ;;  %849 = vst [vmem:[%s14798_s12 + $0x90] sm:$0xff] %v848_v18  ;;  %851 = vst [vmem:[%s14798_s12 + $0x98] sm:$0xff] %v850_v19  ;;  %v854_v21 = vld [vmem:[%s14790_s30 + $0x150] sm:$0xff] }
  0x1c   : > { %853 = vst [vmem:[%s14798_s12 + $0xa0] sm:$0xff] %v852_v20  ;;  %v856_v22 = vld [vmem:[%s14790_s30 + $0x160] sm:$0xff]  ;;  %v858_v23 = vld [vmem:[%s14790_s30 + $0x170] sm:$0xff]  ;;  %855 = vst [vmem:[%s14798_s12 + $0xa8] sm:$0xff] %v854_v21 }
  0x1d   : > { %857 = vst [vmem:[%s14798_s12 + $0xb0] sm:$0xff] %v856_v22  ;;  %859 = vst [vmem:[%s14798_s12 + $0xb8] sm:$0xff] %v858_v23  ;;  %v860_v24 = vld [vmem:[%s14790_s30 + $0x180] sm:$0xff]  ;;  %v862_v25 = vld [vmem:[%s14790_s30 + $0x190] sm:$0xff] }
  0x1e   : > { %v864_v26 = vld [vmem:[%s14790_s30 + $0x1a0] sm:$0xff]  ;;  %861 = vst [vmem:[%s14798_s12 + $0xc0] sm:$0xff] %v860_v24  ;;  %863 = vst [vmem:[%s14798_s12 + $0xc8] sm:$0xff] %v862_v25  ;;  %v866_v27 = vld [vmem:[%s14790_s30 + $0x1b0] sm:$0xff] }
  0x1f   : > { %865 = vst [vmem:[%s14798_s12 + $0xd0] sm:$0xff] %v864_v26  ;;  %v868_v28 = vld [vmem:[%s14790_s30 + $0x1c0] sm:$0xff]  ;;  %v870_v29 = vld [vmem:[%s14790_s30 + $0x1d0] sm:$0xff]  ;;  %867 = vst [vmem:[%s14798_s12 + $0xd8] sm:$0xff] %v866_v27 }
  0x20   : > { %869 = vst [vmem:[%s14798_s12 + $0xe0] sm:$0xff] %v868_v28  ;;  %871 = vst [vmem:[%s14798_s12 + $0xe8] sm:$0xff] %v870_v29  ;;  %v872_v30 = vld [vmem:[%s14790_s30 + $0x1e0] sm:$0xff]  ;;  %v874_v31 = vld [vmem:[%s14790_s30 + $0x1f0] sm:$0xff] }
  0x21   : > { %v876_v32 = vld [vmem:[%s14790_s30 + $0x200] sm:$0xff]  ;;  %873 = vst [vmem:[%s14798_s12 + $0xf0] sm:$0xff] %v872_v30  ;;  %875 = vst [vmem:[%s14798_s12 + $0xf8] sm:$0xff] %v874_v31  ;;  %v878_v33 = vld [vmem:[%s14790_s30 + $0x210] sm:$0xff] }
  0x22   : > { %877 = vst [vmem:[%s14798_s12 + $0x100] sm:$0xff] %v876_v32  ;;  %v880_v34 = vld [vmem:[%s14790_s30 + $0x220] sm:$0xff]  ;;  %v882_v35 = vld [vmem:[%s14790_s30 + $0x230] sm:$0xff]  ;;  %879 = vst [vmem:[%s14798_s12 + $0x108] sm:$0xff] %v878_v33 }
  0x23   : > { %881 = vst [vmem:[%s14798_s12 + $0x110] sm:$0xff] %v880_v34  ;;  %883 = vst [vmem:[%s14798_s12 + $0x118] sm:$0xff] %v882_v35  ;;  %v884_v36 = vld [vmem:[%s14790_s30 + $0x240] sm:$0xff]  ;;  %v886_v37 = vld [vmem:[%s14790_s30 + $0x250] sm:$0xff] }
  0x24   : > { %v888_v38 = vld [vmem:[%s14790_s30 + $0x260] sm:$0xff]  ;;  %885 = vst [vmem:[%s14798_s12 + $0x120] sm:$0xff] %v884_v36  ;;  %887 = vst [vmem:[%s14798_s12 + $0x128] sm:$0xff] %v886_v37  ;;  %v890_v39 = vld [vmem:[%s14790_s30 + $0x270] sm:$0xff] }
  0x25   : > { %889 = vst [vmem:[%s14798_s12 + $0x130] sm:$0xff] %v888_v38  ;;  %v892_v40 = vld [vmem:[%s14790_s30 + $0x280] sm:$0xff]  ;;  %v894_v41 = vld [vmem:[%s14790_s30 + $0x290] sm:$0xff]  ;;  %891 = vst [vmem:[%s14798_s12 + $0x138] sm:$0xff] %v890_v39 }
  0x26   : > { %893 = vst [vmem:[%s14798_s12 + $0x140] sm:$0xff] %v892_v40  ;;  %895 = vst [vmem:[%s14798_s12 + $0x148] sm:$0xff] %v894_v41  ;;  %v896_v42 = vld [vmem:[%s14790_s30 + $0x2a0] sm:$0xff]  ;;  %v898_v43 = vld [vmem:[%s14790_s30 + $0x2b0] sm:$0xff] }
  0x27   : > { %v900_v44 = vld [vmem:[%s14790_s30 + $0x2c0] sm:$0xff]  ;;  %897 = vst [vmem:[%s14798_s12 + $0x150] sm:$0xff] %v896_v42  ;;  %899 = vst [vmem:[%s14798_s12 + $0x158] sm:$0xff] %v898_v43  ;;  %v902_v45 = vld [vmem:[%s14790_s30 + $0x2d0] sm:$0xff] }
  0x28   : > { %901 = vst [vmem:[%s14798_s12 + $0x160] sm:$0xff] %v900_v44  ;;  %v904_v46 = vld [vmem:[%s14790_s30 + $0x2e0] sm:$0xff]  ;;  %v906_v47 = vld [vmem:[%s14790_s30 + $0x2f0] sm:$0xff]  ;;  %903 = vst [vmem:[%s14798_s12 + $0x168] sm:$0xff] %v902_v45 }
  0x29   : > { %905 = vst [vmem:[%s14798_s12 + $0x170] sm:$0xff] %v904_v46  ;;  %907 = vst [vmem:[%s14798_s12 + $0x178] sm:$0xff] %v906_v47  ;;  %v908_v48 = vld [vmem:[%s14790_s30 + $0x300] sm:$0xff]  ;;  %v910_v49 = vld [vmem:[%s14790_s30 + $0x310] sm:$0xff] }
  0x2a   : > { %v912_v50 = vld [vmem:[%s14790_s30 + $0x320] sm:$0xff]  ;;  %909 = vst [vmem:[%s14798_s12 + $0x180] sm:$0xff] %v908_v48  ;;  %911 = vst [vmem:[%s14798_s12 + $0x188] sm:$0xff] %v910_v49  ;;  %v914_v51 = vld [vmem:[%s14790_s30 + $0x330] sm:$0xff] }
  0x2b   : > { %913 = vst [vmem:[%s14798_s12 + $0x190] sm:$0xff] %v912_v50  ;;  %v916_v52 = vld [vmem:[%s14790_s30 + $0x340] sm:$0xff]  ;;  %v918_v53 = vld [vmem:[%s14790_s30 + $0x350] sm:$0xff]  ;;  %915 = vst [vmem:[%s14798_s12 + $0x198] sm:$0xff] %v914_v51 }
  0x2c   : > { %917 = vst [vmem:[%s14798_s12 + $0x1a0] sm:$0xff] %v916_v52  ;;  %919 = vst [vmem:[%s14798_s12 + $0x1a8] sm:$0xff] %v918_v53  ;;  %v920_v54 = vld [vmem:[%s14790_s30 + $0x360] sm:$0xff]  ;;  %v922_v55 = vld [vmem:[%s14790_s30 + $0x370] sm:$0xff] }
  0x2d   : > { %v924_v56 = vld [vmem:[%s14790_s30 + $0x380] sm:$0xff]  ;;  %921 = vst [vmem:[%s14798_s12 + $0x1b0] sm:$0xff] %v920_v54  ;;  %923 = vst [vmem:[%s14798_s12 + $0x1b8] sm:$0xff] %v922_v55  ;;  %v926_v57 = vld [vmem:[%s14790_s30 + $0x390] sm:$0xff] }
  0x2e   : > { %925 = vst [vmem:[%s14798_s12 + $0x1c0] sm:$0xff] %v924_v56  ;;  %v928_v58 = vld [vmem:[%s14790_s30 + $0x3a0] sm:$0xff]  ;;  %v930_v59 = vld [vmem:[%s14790_s30 + $0x3b0] sm:$0xff]  ;;  %927 = vst [vmem:[%s14798_s12 + $0x1c8] sm:$0xff] %v926_v57 }
  0x2f   : > { %929 = vst [vmem:[%s14798_s12 + $0x1d0] sm:$0xff] %v928_v58  ;;  %931 = vst [vmem:[%s14798_s12 + $0x1d8] sm:$0xff] %v930_v59  ;;  %v932_v60 = vld [vmem:[%s14790_s30 + $0x3c0] sm:$0xff]  ;;  %v934_v61 = vld [vmem:[%s14790_s30 + $0x3d0] sm:$0xff] }
  0x30   : > { %v936_v62 = vld [vmem:[%s14790_s30 + $0x3e0] sm:$0xff]  ;;  %933 = vst [vmem:[%s14798_s12 + $0x1e0] sm:$0xff] %v932_v60  ;;  %935 = vst [vmem:[%s14798_s12 + $0x1e8] sm:$0xff] %v934_v61  ;;  %v938_v63 = vld [vmem:[%s14790_s30 + $0x3f0] sm:$0xff] }
  0x31   : > { %937 = vst [vmem:[%s14798_s12 + $0x1f0] sm:$0xff] %v936_v62  ;;  %v940_v0 = vld [vmem:[%s14790_s30 + $0x400] sm:$0xff]  ;;  %v942_v1 = vld [vmem:[%s14790_s30 + $0x410] sm:$0xff]  ;;  %939 = vst [vmem:[%s14798_s12 + $0x1f8] sm:$0xff] %v938_v63 }
  0x32   : > { %941 = vst [vmem:[%s14798_s12 + $0x200] sm:$0xff] %v940_v0  ;;  %943 = vst [vmem:[%s14798_s12 + $0x208] sm:$0xff] %v942_v1  ;;  %v944_v2 = vld [vmem:[%s14790_s30 + $0x420] sm:$0xff]  ;;  %v946_v3 = vld [vmem:[%s14790_s30 + $0x430] sm:$0xff] }
  0x33   : > { %v948_v4 = vld [vmem:[%s14790_s30 + $0x440] sm:$0xff]  ;;  %945 = vst [vmem:[%s14798_s12 + $0x210] sm:$0xff] %v944_v2  ;;  %947 = vst [vmem:[%s14798_s12 + $0x218] sm:$0xff] %v946_v3  ;;  %v950_v5 = vld [vmem:[%s14790_s30 + $0x450] sm:$0xff] }
  0x34   : > { %949 = vst [vmem:[%s14798_s12 + $0x220] sm:$0xff] %v948_v4  ;;  %v952_v6 = vld [vmem:[%s14790_s30 + $0x460] sm:$0xff]  ;;  %v954_v7 = vld [vmem:[%s14790_s30 + $0x470] sm:$0xff]  ;;  %951 = vst [vmem:[%s14798_s12 + $0x228] sm:$0xff] %v950_v5 }
  0x35   : > { %953 = vst [vmem:[%s14798_s12 + $0x230] sm:$0xff] %v952_v6  ;;  %955 = vst [vmem:[%s14798_s12 + $0x238] sm:$0xff] %v954_v7  ;;  %v956_v8 = vld [vmem:[%s14790_s30 + $0x480] sm:$0xff]  ;;  %v958_v9 = vld [vmem:[%s14790_s30 + $0x490] sm:$0xff] }
  0x36   : > { %v960_v10 = vld [vmem:[%s14790_s30 + $0x4a0] sm:$0xff]  ;;  %957 = vst [vmem:[%s14798_s12 + $0x240] sm:$0xff] %v956_v8  ;;  %959 = vst [vmem:[%s14798_s12 + $0x248] sm:$0xff] %v958_v9  ;;  %v962_v11 = vld [vmem:[%s14790_s30 + $0x4b0] sm:$0xff] }
  0x37   : > { %961 = vst [vmem:[%s14798_s12 + $0x250] sm:$0xff] %v960_v10  ;;  %v964_v12 = vld [vmem:[%s14790_s30 + $0x4c0] sm:$0xff]  ;;  %v966_v13 = vld [vmem:[%s14790_s30 + $0x4d0] sm:$0xff]  ;;  %963 = vst [vmem:[%s14798_s12 + $0x258] sm:$0xff] %v962_v11 }
  0x38   : > { %965 = vst [vmem:[%s14798_s12 + $0x260] sm:$0xff] %v964_v12  ;;  %967 = vst [vmem:[%s14798_s12 + $0x268] sm:$0xff] %v966_v13  ;;  %v968_v14 = vld [vmem:[%s14790_s30 + $0x4e0] sm:$0xff]  ;;  %v970_v15 = vld [vmem:[%s14790_s30 + $0x4f0] sm:$0xff] }
  0x39   : > { %v972_v16 = vld [vmem:[%s14790_s30 + $0x500] sm:$0xff]  ;;  %969 = vst [vmem:[%s14798_s12 + $0x270] sm:$0xff] %v968_v14  ;;  %971 = vst [vmem:[%s14798_s12 + $0x278] sm:$0xff] %v970_v15  ;;  %v974_v17 = vld [vmem:[%s14790_s30 + $0x510] sm:$0xff] }
  0x3a   : > { %973 = vst [vmem:[%s14798_s12 + $0x280] sm:$0xff] %v972_v16  ;;  %v976_v18 = vld [vmem:[%s14790_s30 + $0x520] sm:$0xff]  ;;  %v978_v19 = vld [vmem:[%s14790_s30 + $0x530] sm:$0xff]  ;;  %975 = vst [vmem:[%s14798_s12 + $0x288] sm:$0xff] %v974_v17 }
  0x3b   : > { %977 = vst [vmem:[%s14798_s12 + $0x290] sm:$0xff] %v976_v18  ;;  %979 = vst [vmem:[%s14798_s12 + $0x298] sm:$0xff] %v978_v19  ;;  %v980_v20 = vld [vmem:[%s14790_s30 + $0x540] sm:$0xff]  ;;  %v982_v21 = vld [vmem:[%s14790_s30 + $0x550] sm:$0xff] }
  0x3c   : > { %v984_v22 = vld [vmem:[%s14790_s30 + $0x560] sm:$0xff]  ;;  %981 = vst [vmem:[%s14798_s12 + $0x2a0] sm:$0xff] %v980_v20  ;;  %983 = vst [vmem:[%s14798_s12 + $0x2a8] sm:$0xff] %v982_v21  ;;  %v986_v23 = vld [vmem:[%s14790_s30 + $0x570] sm:$0xff] }
  0x3d   : > { %985 = vst [vmem:[%s14798_s12 + $0x2b0] sm:$0xff] %v984_v22  ;;  %v988_v24 = vld [vmem:[%s14790_s30 + $0x580] sm:$0xff]  ;;  %v990_v25 = vld [vmem:[%s14790_s30 + $0x590] sm:$0xff]  ;;  %987 = vst [vmem:[%s14798_s12 + $0x2b8] sm:$0xff] %v986_v23 }
  0x3e   : > { %989 = vst [vmem:[%s14798_s12 + $0x2c0] sm:$0xff] %v988_v24  ;;  %991 = vst [vmem:[%s14798_s12 + $0x2c8] sm:$0xff] %v990_v25  ;;  %v992_v26 = vld [vmem:[%s14790_s30 + $0x5a0] sm:$0xff]  ;;  %v994_v27 = vld [vmem:[%s14790_s30 + $0x5b0] sm:$0xff] }
  0x3f   : > { %v996_v28 = vld [vmem:[%s14790_s30 + $0x5c0] sm:$0xff]  ;;  %993 = vst [vmem:[%s14798_s12 + $0x2d0] sm:$0xff] %v992_v26  ;;  %995 = vst [vmem:[%s14798_s12 + $0x2d8] sm:$0xff] %v994_v27  ;;  %v998_v29 = vld [vmem:[%s14790_s30 + $0x5d0] sm:$0xff] }
  0x40   : > { %997 = vst [vmem:[%s14798_s12 + $0x2e0] sm:$0xff] %v996_v28  ;;  %v1000_v30 = vld [vmem:[%s14790_s30 + $0x5e0] sm:$0xff]  ;;  %v1002_v31 = vld [vmem:[%s14790_s30 + $0x5f0] sm:$0xff]  ;;  %999 = vst [vmem:[%s14798_s12 + $0x2e8] sm:$0xff] %v998_v29 }
  0x41   : > { %1001 = vst [vmem:[%s14798_s12 + $0x2f0] sm:$0xff] %v1000_v30  ;;  %1003 = vst [vmem:[%s14798_s12 + $0x2f8] sm:$0xff] %v1002_v31  ;;  %v1004_v32 = vld [vmem:[%s14790_s30 + $0x600] sm:$0xff]  ;;  %v1006_v33 = vld [vmem:[%s14790_s30 + $0x610] sm:$0xff] }
  0x42   : > { %v1008_v34 = vld [vmem:[%s14790_s30 + $0x620] sm:$0xff]  ;;  %1005 = vst [vmem:[%s14798_s12 + $0x300] sm:$0xff] %v1004_v32  ;;  %1007 = vst [vmem:[%s14798_s12 + $0x308] sm:$0xff] %v1006_v33  ;;  %v1010_v35 = vld [vmem:[%s14790_s30 + $0x630] sm:$0xff] }
  0x43   : > { %1009 = vst [vmem:[%s14798_s12 + $0x310] sm:$0xff] %v1008_v34  ;;  %v1012_v36 = vld [vmem:[%s14790_s30 + $0x640] sm:$0xff]  ;;  %v1014_v37 = vld [vmem:[%s14790_s30 + $0x650] sm:$0xff]  ;;  %1011 = vst [vmem:[%s14798_s12 + $0x318] sm:$0xff] %v1010_v35 }
  0x44   : > { %1013 = vst [vmem:[%s14798_s12 + $0x320] sm:$0xff] %v1012_v36  ;;  %1015 = vst [vmem:[%s14798_s12 + $0x328] sm:$0xff] %v1014_v37  ;;  %v1016_v38 = vld [vmem:[%s14790_s30 + $0x660] sm:$0xff]  ;;  %v1018_v39 = vld [vmem:[%s14790_s30 + $0x670] sm:$0xff] }
  0x45   : > { %v1020_v40 = vld [vmem:[%s14790_s30 + $0x680] sm:$0xff]  ;;  %1017 = vst [vmem:[%s14798_s12 + $0x330] sm:$0xff] %v1016_v38  ;;  %1019 = vst [vmem:[%s14798_s12 + $0x338] sm:$0xff] %v1018_v39  ;;  %v1022_v41 = vld [vmem:[%s14790_s30 + $0x690] sm:$0xff] }
  0x46   : > { %1021 = vst [vmem:[%s14798_s12 + $0x340] sm:$0xff] %v1020_v40  ;;  %v1024_v42 = vld [vmem:[%s14790_s30 + $0x6a0] sm:$0xff]  ;;  %v1026_v43 = vld [vmem:[%s14790_s30 + $0x6b0] sm:$0xff]  ;;  %1023 = vst [vmem:[%s14798_s12 + $0x348] sm:$0xff] %v1022_v41 }
  0x47   : > { %1025 = vst [vmem:[%s14798_s12 + $0x350] sm:$0xff] %v1024_v42  ;;  %1027 = vst [vmem:[%s14798_s12 + $0x358] sm:$0xff] %v1026_v43  ;;  %v1028_v44 = vld [vmem:[%s14790_s30 + $0x6c0] sm:$0xff]  ;;  %v1030_v45 = vld [vmem:[%s14790_s30 + $0x6d0] sm:$0xff] }
  0x48   : > { %v1032_v46 = vld [vmem:[%s14790_s30 + $0x6e0] sm:$0xff]  ;;  %1029 = vst [vmem:[%s14798_s12 + $0x360] sm:$0xff] %v1028_v44  ;;  %1031 = vst [vmem:[%s14798_s12 + $0x368] sm:$0xff] %v1030_v45  ;;  %v1034_v47 = vld [vmem:[%s14790_s30 + $0x6f0] sm:$0xff] }
  0x49   : > { %1033 = vst [vmem:[%s14798_s12 + $0x370] sm:$0xff] %v1032_v46  ;;  %v1036_v48 = vld [vmem:[%s14790_s30 + $0x700] sm:$0xff]  ;;  %v1038_v49 = vld [vmem:[%s14790_s30 + $0x710] sm:$0xff]  ;;  %1035 = vst [vmem:[%s14798_s12 + $0x378] sm:$0xff] %v1034_v47 }
  0x4a   : > { %1037 = vst [vmem:[%s14798_s12 + $0x380] sm:$0xff] %v1036_v48  ;;  %1039 = vst [vmem:[%s14798_s12 + $0x388] sm:$0xff] %v1038_v49  ;;  %v1040_v50 = vld [vmem:[%s14790_s30 + $0x720] sm:$0xff]  ;;  %v1042_v51 = vld [vmem:[%s14790_s30 + $0x730] sm:$0xff] }
  0x4b   : > { %v1044_v52 = vld [vmem:[%s14790_s30 + $0x740] sm:$0xff]  ;;  %1041 = vst [vmem:[%s14798_s12 + $0x390] sm:$0xff] %v1040_v50  ;;  %1043 = vst [vmem:[%s14798_s12 + $0x398] sm:$0xff] %v1042_v51  ;;  %v1046_v53 = vld [vmem:[%s14790_s30 + $0x750] sm:$0xff] }
  0x4c   : > { %1045 = vst [vmem:[%s14798_s12 + $0x3a0] sm:$0xff] %v1044_v52  ;;  %v1048_v54 = vld [vmem:[%s14790_s30 + $0x760] sm:$0xff]  ;;  %v1050_v55 = vld [vmem:[%s14790_s30 + $0x770] sm:$0xff]  ;;  %1047 = vst [vmem:[%s14798_s12 + $0x3a8] sm:$0xff] %v1046_v53 }
  0x4d   : > { %1049 = vst [vmem:[%s14798_s12 + $0x3b0] sm:$0xff] %v1048_v54  ;;  %1051 = vst [vmem:[%s14798_s12 + $0x3b8] sm:$0xff] %v1050_v55  ;;  %v1052_v56 = vld [vmem:[%s14790_s30 + $0x780] sm:$0xff]  ;;  %v1054_v57 = vld [vmem:[%s14790_s30 + $0x790] sm:$0xff] }
  0x4e   : > { %v1056_v58 = vld [vmem:[%s14790_s30 + $0x7a0] sm:$0xff]  ;;  %1053 = vst [vmem:[%s14798_s12 + $0x3c0] sm:$0xff] %v1052_v56  ;;  %1055 = vst [vmem:[%s14798_s12 + $0x3c8] sm:$0xff] %v1054_v57  ;;  %v1058_v59 = vld [vmem:[%s14790_s30 + $0x7b0] sm:$0xff] }
  0x4f   : > { %1057 = vst [vmem:[%s14798_s12 + $0x3d0] sm:$0xff] %v1056_v58  ;;  %v1060_v60 = vld [vmem:[%s14790_s30 + $0x7c0] sm:$0xff]  ;;  %v1062_v61 = vld [vmem:[%s14790_s30 + $0x7d0] sm:$0xff]  ;;  %1059 = vst [vmem:[%s14798_s12 + $0x3d8] sm:$0xff] %v1058_v59 }
  0x50   : > { %1061 = vst [vmem:[%s14798_s12 + $0x3e0] sm:$0xff] %v1060_v60  ;;  %1063 = vst [vmem:[%s14798_s12 + $0x3e8] sm:$0xff] %v1062_v61  ;;  %v1064_v62 = vld [vmem:[%s14790_s30 + $0x7e0] sm:$0xff]  ;;  %v1066_v63 = vld [vmem:[%s14790_s30 + $0x7f0] sm:$0xff] }
  0x51   : > { %v1068_v0 = vld [vmem:[%s14790_s30 + $0x800] sm:$0xff]  ;;  %1065 = vst [vmem:[%s14798_s12 + $0x3f0] sm:$0xff] %v1064_v62  ;;  %1067 = vst [vmem:[%s14798_s12 + $0x3f8] sm:$0xff] %v1066_v63  ;;  %v1070_v1 = vld [vmem:[%s14790_s30 + $0x810] sm:$0xff] }
  0x52   : > { %1069 = vst [vmem:[%s14798_s12 + $0x400] sm:$0xff] %v1068_v0  ;;  %v1072_v2 = vld [vmem:[%s14790_s30 + $0x820] sm:$0xff]  ;;  %v1074_v3 = vld [vmem:[%s14790_s30 + $0x830] sm:$0xff]  ;;  %1071 = vst [vmem:[%s14798_s12 + $0x408] sm:$0xff] %v1070_v1 }
  0x53   : > { %1073 = vst [vmem:[%s14798_s12 + $0x410] sm:$0xff] %v1072_v2  ;;  %1075 = vst [vmem:[%s14798_s12 + $0x418] sm:$0xff] %v1074_v3  ;;  %v1076_v4 = vld [vmem:[%s14790_s30 + $0x840] sm:$0xff]  ;;  %v1078_v5 = vld [vmem:[%s14790_s30 + $0x850] sm:$0xff] }
  0x54   : > { %v1080_v6 = vld [vmem:[%s14790_s30 + $0x860] sm:$0xff]  ;;  %1077 = vst [vmem:[%s14798_s12 + $0x420] sm:$0xff] %v1076_v4  ;;  %1079 = vst [vmem:[%s14798_s12 + $0x428] sm:$0xff] %v1078_v5  ;;  %v1082_v7 = vld [vmem:[%s14790_s30 + $0x870] sm:$0xff] }
  0x55   : > { %1081 = vst [vmem:[%s14798_s12 + $0x430] sm:$0xff] %v1080_v6  ;;  %v1084_v8 = vld [vmem:[%s14790_s30 + $0x880] sm:$0xff]  ;;  %v1086_v9 = vld [vmem:[%s14790_s30 + $0x890] sm:$0xff]  ;;  %1083 = vst [vmem:[%s14798_s12 + $0x438] sm:$0xff] %v1082_v7 }
  0x56   : > { %1085 = vst [vmem:[%s14798_s12 + $0x440] sm:$0xff] %v1084_v8  ;;  %1087 = vst [vmem:[%s14798_s12 + $0x448] sm:$0xff] %v1086_v9  ;;  %v1088_v10 = vld [vmem:[%s14790_s30 + $0x8a0] sm:$0xff]  ;;  %v1090_v11 = vld [vmem:[%s14790_s30 + $0x8b0] sm:$0xff] }
  0x57   : > { %v1092_v12 = vld [vmem:[%s14790_s30 + $0x8c0] sm:$0xff]  ;;  %1089 = vst [vmem:[%s14798_s12 + $0x450] sm:$0xff] %v1088_v10  ;;  %1091 = vst [vmem:[%s14798_s12 + $0x458] sm:$0xff] %v1090_v11  ;;  %v1094_v13 = vld [vmem:[%s14790_s30 + $0x8d0] sm:$0xff] }
  0x58   : > { %1093 = vst [vmem:[%s14798_s12 + $0x460] sm:$0xff] %v1092_v12  ;;  %v1096_v14 = vld [vmem:[%s14790_s30 + $0x8e0] sm:$0xff]  ;;  %v1098_v15 = vld [vmem:[%s14790_s30 + $0x8f0] sm:$0xff]  ;;  %1095 = vst [vmem:[%s14798_s12 + $0x468] sm:$0xff] %v1094_v13 }
  0x59   : > { %1097 = vst [vmem:[%s14798_s12 + $0x470] sm:$0xff] %v1096_v14  ;;  %1099 = vst [vmem:[%s14798_s12 + $0x478] sm:$0xff] %v1098_v15  ;;  %v1100_v16 = vld [vmem:[%s14790_s30 + $0x900] sm:$0xff]  ;;  %v1102_v17 = vld [vmem:[%s14790_s30 + $0x910] sm:$0xff] }
  0x5a   : > { %v1104_v18 = vld [vmem:[%s14790_s30 + $0x920] sm:$0xff]  ;;  %1101 = vst [vmem:[%s14798_s12 + $0x480] sm:$0xff] %v1100_v16  ;;  %1103 = vst [vmem:[%s14798_s12 + $0x488] sm:$0xff] %v1102_v17  ;;  %v1106_v19 = vld [vmem:[%s14790_s30 + $0x930] sm:$0xff] }
  0x5b   : > { %1105 = vst [vmem:[%s14798_s12 + $0x490] sm:$0xff] %v1104_v18  ;;  %v1108_v20 = vld [vmem:[%s14790_s30 + $0x940] sm:$0xff]  ;;  %v1110_v21 = vld [vmem:[%s14790_s30 + $0x950] sm:$0xff]  ;;  %1107 = vst [vmem:[%s14798_s12 + $0x498] sm:$0xff] %v1106_v19 }
  0x5c   : > { %1109 = vst [vmem:[%s14798_s12 + $0x4a0] sm:$0xff] %v1108_v20  ;;  %1111 = vst [vmem:[%s14798_s12 + $0x4a8] sm:$0xff] %v1110_v21  ;;  %v1112_v22 = vld [vmem:[%s14790_s30 + $0x960] sm:$0xff]  ;;  %v1114_v23 = vld [vmem:[%s14790_s30 + $0x970] sm:$0xff] }
  0x5d   : > { %v1116_v24 = vld [vmem:[%s14790_s30 + $0x980] sm:$0xff]  ;;  %1113 = vst [vmem:[%s14798_s12 + $0x4b0] sm:$0xff] %v1112_v22  ;;  %1115 = vst [vmem:[%s14798_s12 + $0x4b8] sm:$0xff] %v1114_v23  ;;  %v1118_v25 = vld [vmem:[%s14790_s30 + $0x990] sm:$0xff] }
  0x5e   : > { %1117 = vst [vmem:[%s14798_s12 + $0x4c0] sm:$0xff] %v1116_v24  ;;  %v1120_v26 = vld [vmem:[%s14790_s30 + $0x9a0] sm:$0xff]  ;;  %v1122_v27 = vld [vmem:[%s14790_s30 + $0x9b0] sm:$0xff]  ;;  %1119 = vst [vmem:[%s14798_s12 + $0x4c8] sm:$0xff] %v1118_v25 }
  0x5f   : > { %1121 = vst [vmem:[%s14798_s12 + $0x4d0] sm:$0xff] %v1120_v26  ;;  %1123 = vst [vmem:[%s14798_s12 + $0x4d8] sm:$0xff] %v1122_v27  ;;  %v1124_v28 = vld [vmem:[%s14790_s30 + $0x9c0] sm:$0xff]  ;;  %v1126_v29 = vld [vmem:[%s14790_s30 + $0x9d0] sm:$0xff] }
  0x60   : > { %v1128_v30 = vld [vmem:[%s14790_s30 + $0x9e0] sm:$0xff]  ;;  %1125 = vst [vmem:[%s14798_s12 + $0x4e0] sm:$0xff] %v1124_v28  ;;  %1127 = vst [vmem:[%s14798_s12 + $0x4e8] sm:$0xff] %v1126_v29  ;;  %v1130_v31 = vld [vmem:[%s14790_s30 + $0x9f0] sm:$0xff] }
  0x61   : > { %1129 = vst [vmem:[%s14798_s12 + $0x4f0] sm:$0xff] %v1128_v30  ;;  %v1132_v32 = vld [vmem:[%s14790_s30 + $0xa00] sm:$0xff]  ;;  %v1134_v33 = vld [vmem:[%s14790_s30 + $0xa10] sm:$0xff]  ;;  %1131 = vst [vmem:[%s14798_s12 + $0x4f8] sm:$0xff] %v1130_v31 }
  0x62   : > { %1133 = vst [vmem:[%s14798_s12 + $0x500] sm:$0xff] %v1132_v32  ;;  %1135 = vst [vmem:[%s14798_s12 + $0x508] sm:$0xff] %v1134_v33  ;;  %v1136_v34 = vld [vmem:[%s14790_s30 + $0xa20] sm:$0xff]  ;;  %v1138_v35 = vld [vmem:[%s14790_s30 + $0xa30] sm:$0xff] }
  0x63   : > { %v1140_v36 = vld [vmem:[%s14790_s30 + $0xa40] sm:$0xff]  ;;  %1137 = vst [vmem:[%s14798_s12 + $0x510] sm:$0xff] %v1136_v34  ;;  %1139 = vst [vmem:[%s14798_s12 + $0x518] sm:$0xff] %v1138_v35  ;;  %v1142_v37 = vld [vmem:[%s14790_s30 + $0xa50] sm:$0xff] }
  0x64   : > { %1141 = vst [vmem:[%s14798_s12 + $0x520] sm:$0xff] %v1140_v36  ;;  %v1144_v38 = vld [vmem:[%s14790_s30 + $0xa60] sm:$0xff]  ;;  %v1146_v39 = vld [vmem:[%s14790_s30 + $0xa70] sm:$0xff]  ;;  %1143 = vst [vmem:[%s14798_s12 + $0x528] sm:$0xff] %v1142_v37 }
  0x65   : > { %1145 = vst [vmem:[%s14798_s12 + $0x530] sm:$0xff] %v1144_v38  ;;  %1147 = vst [vmem:[%s14798_s12 + $0x538] sm:$0xff] %v1146_v39  ;;  %v1148_v40 = vld [vmem:[%s14790_s30 + $0xa80] sm:$0xff]  ;;  %v1150_v41 = vld [vmem:[%s14790_s30 + $0xa90] sm:$0xff] }
  0x66   : > { %v1152_v42 = vld [vmem:[%s14790_s30 + $0xaa0] sm:$0xff]  ;;  %1149 = vst [vmem:[%s14798_s12 + $0x540] sm:$0xff] %v1148_v40  ;;  %1151 = vst [vmem:[%s14798_s12 + $0x548] sm:$0xff] %v1150_v41  ;;  %v1154_v43 = vld [vmem:[%s14790_s30 + $0xab0] sm:$0xff] }
  0x67   : > { %1153 = vst [vmem:[%s14798_s12 + $0x550] sm:$0xff] %v1152_v42  ;;  %v1156_v44 = vld [vmem:[%s14790_s30 + $0xac0] sm:$0xff]  ;;  %v1158_v45 = vld [vmem:[%s14790_s30 + $0xad0] sm:$0xff]  ;;  %1155 = vst [vmem:[%s14798_s12 + $0x558] sm:$0xff] %v1154_v43 }
  0x68   : > { %1157 = vst [vmem:[%s14798_s12 + $0x560] sm:$0xff] %v1156_v44  ;;  %1159 = vst [vmem:[%s14798_s12 + $0x568] sm:$0xff] %v1158_v45  ;;  %v1160_v46 = vld [vmem:[%s14790_s30 + $0xae0] sm:$0xff]  ;;  %v1162_v47 = vld [vmem:[%s14790_s30 + $0xaf0] sm:$0xff] }
  0x69   : > { %v1164_v48 = vld [vmem:[%s14790_s30 + $0xb00] sm:$0xff]  ;;  %1161 = vst [vmem:[%s14798_s12 + $0x570] sm:$0xff] %v1160_v46  ;;  %1163 = vst [vmem:[%s14798_s12 + $0x578] sm:$0xff] %v1162_v47  ;;  %v1166_v49 = vld [vmem:[%s14790_s30 + $0xb10] sm:$0xff] }
  0x6a   : > { %1165 = vst [vmem:[%s14798_s12 + $0x580] sm:$0xff] %v1164_v48  ;;  %v1168_v50 = vld [vmem:[%s14790_s30 + $0xb20] sm:$0xff]  ;;  %v1170_v51 = vld [vmem:[%s14790_s30 + $0xb30] sm:$0xff]  ;;  %1167 = vst [vmem:[%s14798_s12 + $0x588] sm:$0xff] %v1166_v49 }
  0x6b   : > { %1169 = vst [vmem:[%s14798_s12 + $0x590] sm:$0xff] %v1168_v50  ;;  %1171 = vst [vmem:[%s14798_s12 + $0x598] sm:$0xff] %v1170_v51  ;;  %v1172_v52 = vld [vmem:[%s14790_s30 + $0xb40] sm:$0xff]  ;;  %v1174_v53 = vld [vmem:[%s14790_s30 + $0xb50] sm:$0xff] }
  0x6c   : > { %v1176_v54 = vld [vmem:[%s14790_s30 + $0xb60] sm:$0xff]  ;;  %1173 = vst [vmem:[%s14798_s12 + $0x5a0] sm:$0xff] %v1172_v52  ;;  %1175 = vst [vmem:[%s14798_s12 + $0x5a8] sm:$0xff] %v1174_v53  ;;  %v1178_v55 = vld [vmem:[%s14790_s30 + $0xb70] sm:$0xff] }
  0x6d   : > { %1177 = vst [vmem:[%s14798_s12 + $0x5b0] sm:$0xff] %v1176_v54  ;;  %v1180_v56 = vld [vmem:[%s14790_s30 + $0xb80] sm:$0xff]  ;;  %v1182_v57 = vld [vmem:[%s14790_s30 + $0xb90] sm:$0xff]  ;;  %1179 = vst [vmem:[%s14798_s12 + $0x5b8] sm:$0xff] %v1178_v55 }
  0x6e   : > { %1181 = vst [vmem:[%s14798_s12 + $0x5c0] sm:$0xff] %v1180_v56  ;;  %1183 = vst [vmem:[%s14798_s12 + $0x5c8] sm:$0xff] %v1182_v57  ;;  %v1184_v58 = vld [vmem:[%s14790_s30 + $0xba0] sm:$0xff]  ;;  %v1186_v59 = vld [vmem:[%s14790_s30 + $0xbb0] sm:$0xff] }
  0x6f   : > { %v1188_v60 = vld [vmem:[%s14790_s30 + $0xbc0] sm:$0xff]  ;;  %1185 = vst [vmem:[%s14798_s12 + $0x5d0] sm:$0xff] %v1184_v58  ;;  %1187 = vst [vmem:[%s14798_s12 + $0x5d8] sm:$0xff] %v1186_v59  ;;  %v1190_v61 = vld [vmem:[%s14790_s30 + $0xbd0] sm:$0xff] }
  0x70   : > { %1189 = vst [vmem:[%s14798_s12 + $0x5e0] sm:$0xff] %v1188_v60  ;;  %v1192_v62 = vld [vmem:[%s14790_s30 + $0xbe0] sm:$0xff]  ;;  %v1194_v63 = vld [vmem:[%s14790_s30 + $0xbf0] sm:$0xff]  ;;  %1191 = vst [vmem:[%s14798_s12 + $0x5e8] sm:$0xff] %v1190_v61 }
  0x71   : > { %1193 = vst [vmem:[%s14798_s12 + $0x5f0] sm:$0xff] %v1192_v62  ;;  %1195 = vst [vmem:[%s14798_s12 + $0x5f8] sm:$0xff] %v1194_v63  ;;  %v1196_v0 = vld [vmem:[%s14790_s30 + $0xc00] sm:$0xff]  ;;  %v1198_v1 = vld [vmem:[%s14790_s30 + $0xc10] sm:$0xff] }
  0x72   : > { %v1200_v2 = vld [vmem:[%s14790_s30 + $0xc20] sm:$0xff]  ;;  %1197 = vst [vmem:[%s14798_s12 + $0x600] sm:$0xff] %v1196_v0  ;;  %1199 = vst [vmem:[%s14798_s12 + $0x608] sm:$0xff] %v1198_v1  ;;  %v1202_v3 = vld [vmem:[%s14790_s30 + $0xc30] sm:$0xff] }
  0x73   : > { %1201 = vst [vmem:[%s14798_s12 + $0x610] sm:$0xff] %v1200_v2  ;;  %v1204_v4 = vld [vmem:[%s14790_s30 + $0xc40] sm:$0xff]  ;;  %v1206_v5 = vld [vmem:[%s14790_s30 + $0xc50] sm:$0xff]  ;;  %1203 = vst [vmem:[%s14798_s12 + $0x618] sm:$0xff] %v1202_v3 }
  0x74   : > { %1205 = vst [vmem:[%s14798_s12 + $0x620] sm:$0xff] %v1204_v4  ;;  %1207 = vst [vmem:[%s14798_s12 + $0x628] sm:$0xff] %v1206_v5  ;;  %v1208_v6 = vld [vmem:[%s14790_s30 + $0xc60] sm:$0xff]  ;;  %v1210_v7 = vld [vmem:[%s14790_s30 + $0xc70] sm:$0xff] }
  0x75   : > { %v1212_v8 = vld [vmem:[%s14790_s30 + $0xc80] sm:$0xff]  ;;  %1209 = vst [vmem:[%s14798_s12 + $0x630] sm:$0xff] %v1208_v6  ;;  %1211 = vst [vmem:[%s14798_s12 + $0x638] sm:$0xff] %v1210_v7  ;;  %v1214_v9 = vld [vmem:[%s14790_s30 + $0xc90] sm:$0xff] }
  0x76   : > { %1213 = vst [vmem:[%s14798_s12 + $0x640] sm:$0xff] %v1212_v8  ;;  %v1216_v10 = vld [vmem:[%s14790_s30 + $0xca0] sm:$0xff]  ;;  %v1218_v11 = vld [vmem:[%s14790_s30 + $0xcb0] sm:$0xff]  ;;  %1215 = vst [vmem:[%s14798_s12 + $0x648] sm:$0xff] %v1214_v9 }
  0x77   : > { %1217 = vst [vmem:[%s14798_s12 + $0x650] sm:$0xff] %v1216_v10  ;;  %1219 = vst [vmem:[%s14798_s12 + $0x658] sm:$0xff] %v1218_v11  ;;  %v1220_v12 = vld [vmem:[%s14790_s30 + $0xcc0] sm:$0xff]  ;;  %v1222_v13 = vld [vmem:[%s14790_s30 + $0xcd0] sm:$0xff] }
  0x78   : > { %v1224_v14 = vld [vmem:[%s14790_s30 + $0xce0] sm:$0xff]  ;;  %1221 = vst [vmem:[%s14798_s12 + $0x660] sm:$0xff] %v1220_v12  ;;  %1223 = vst [vmem:[%s14798_s12 + $0x668] sm:$0xff] %v1222_v13  ;;  %v1226_v15 = vld [vmem:[%s14790_s30 + $0xcf0] sm:$0xff] }
  0x79   : > { %1225 = vst [vmem:[%s14798_s12 + $0x670] sm:$0xff] %v1224_v14  ;;  %v1228_v16 = vld [vmem:[%s14790_s30 + $0xd00] sm:$0xff]  ;;  %v1230_v17 = vld [vmem:[%s14790_s30 + $0xd10] sm:$0xff]  ;;  %1227 = vst [vmem:[%s14798_s12 + $0x678] sm:$0xff] %v1226_v15 }
  0x7a   : > { %1229 = vst [vmem:[%s14798_s12 + $0x680] sm:$0xff] %v1228_v16  ;;  %1231 = vst [vmem:[%s14798_s12 + $0x688] sm:$0xff] %v1230_v17  ;;  %v1232_v18 = vld [vmem:[%s14790_s30 + $0xd20] sm:$0xff]  ;;  %v1234_v19 = vld [vmem:[%s14790_s30 + $0xd30] sm:$0xff] }
  0x7b   : > { %v1236_v20 = vld [vmem:[%s14790_s30 + $0xd40] sm:$0xff]  ;;  %1233 = vst [vmem:[%s14798_s12 + $0x690] sm:$0xff] %v1232_v18  ;;  %1235 = vst [vmem:[%s14798_s12 + $0x698] sm:$0xff] %v1234_v19  ;;  %v1238_v21 = vld [vmem:[%s14790_s30 + $0xd50] sm:$0xff] }
  0x7c   : > { %1237 = vst [vmem:[%s14798_s12 + $0x6a0] sm:$0xff] %v1236_v20  ;;  %v1240_v22 = vld [vmem:[%s14790_s30 + $0xd60] sm:$0xff]  ;;  %v1242_v23 = vld [vmem:[%s14790_s30 + $0xd70] sm:$0xff]  ;;  %1239 = vst [vmem:[%s14798_s12 + $0x6a8] sm:$0xff] %v1238_v21 }
  0x7d   : > { %1241 = vst [vmem:[%s14798_s12 + $0x6b0] sm:$0xff] %v1240_v22  ;;  %1243 = vst [vmem:[%s14798_s12 + $0x6b8] sm:$0xff] %v1242_v23  ;;  %v1244_v24 = vld [vmem:[%s14790_s30 + $0xd80] sm:$0xff]  ;;  %v1246_v25 = vld [vmem:[%s14790_s30 + $0xd90] sm:$0xff] }
  0x7e   : > { %v1248_v26 = vld [vmem:[%s14790_s30 + $0xda0] sm:$0xff]  ;;  %1245 = vst [vmem:[%s14798_s12 + $0x6c0] sm:$0xff] %v1244_v24  ;;  %1247 = vst [vmem:[%s14798_s12 + $0x6c8] sm:$0xff] %v1246_v25  ;;  %v1250_v27 = vld [vmem:[%s14790_s30 + $0xdb0] sm:$0xff] }
  0x7f   : > { %1249 = vst [vmem:[%s14798_s12 + $0x6d0] sm:$0xff] %v1248_v26  ;;  %v1252_v28 = vld [vmem:[%s14790_s30 + $0xdc0] sm:$0xff]  ;;  %v1254_v29 = vld [vmem:[%s14790_s30 + $0xdd0] sm:$0xff]  ;;  %1251 = vst [vmem:[%s14798_s12 + $0x6d8] sm:$0xff] %v1250_v27 }
  0x80   : > { %1253 = vst [vmem:[%s14798_s12 + $0x6e0] sm:$0xff] %v1252_v28  ;;  %1255 = vst [vmem:[%s14798_s12 + $0x6e8] sm:$0xff] %v1254_v29  ;;  %v1256_v30 = vld [vmem:[%s14790_s30 + $0xde0] sm:$0xff]  ;;  %v1258_v31 = vld [vmem:[%s14790_s30 + $0xdf0] sm:$0xff] }
  0x81   : > { %v1260_v32 = vld [vmem:[%s14790_s30 + $0xe00] sm:$0xff]  ;;  %1257 = vst [vmem:[%s14798_s12 + $0x6f0] sm:$0xff] %v1256_v30  ;;  %1259 = vst [vmem:[%s14798_s12 + $0x6f8] sm:$0xff] %v1258_v31 }
  0x82   : > { %1261 = vst [vmem:[%s14798_s12 + $0x700] sm:$0xff] %v1260_v32 }
  0x83 PF: > { %p10635_p5 = scmp.ge.s32.totalorder %s14688_s19, 1  ;;  %p1266_p6 = scmp.lt.s32.totalorder %s14688_s19, 3 }
  0x85   : > { %p1267_p7 = pnand %p10635_p5, %p1266_p6 }
  0x87   : > { %1270 = sbr.rel (%p1267_p7) target bundleno = 2668 (0xa6c), region = 98 }
  0x8e   : > { %s1273_s13 = sand.u32 1, %s14680_s17   ;;  %v13976_v33 = vld [vmem:[%s20515_s1] sm:$0xff]   ;;  %v13977_v34 = vld [vmem:[%s20515_s1 + $0x8] sm:$0xff]   ;;  %v13978_v35 = vld [vmem:[%s20515_s1 + $0x10] sm:$0xff]   ;;  %s14690_s17 = smov 32   ;;  %vm3529_vm0 = vcmask 130048  }
  0x8f   : > { %s11760_s14 = smul.u32 1800, %s1273_s13  ;;  %11395 = vmatprep.subr.bf16.mxu0 %v13976_v33  ;;  %s14691_s28 = smov 16   ;;  %v13979_v3 = vld [vmem:[%s20515_s1 + $0x18] sm:$0xff]   ;;  %vm3726_vm1 = vcmask 261120   ;;  %vm3923_vm2 = vcmask 392192   ;;  %vm4257_vm3 = vcmask 523264  }
  0x90   : > { %11396 = vmatpush3.bf16.msra.mxu0 %v13976_v33  ;;  %s14692_s29 = smov 48   ;;  %s14694_s25 = smov 64   ;;  %vm6575_vm4 = vcmask 785408  }
  0x91   : > { %s15256_s27 = scalar_lea.vmem [#allocation2], %s11760_s14  ;;  %11397 = vmatprep.subr.bf16.mxu0 %v13977_v34  ;;  %s14695_s26 = smov 96  }
  0x92   : > { %v1331_v36 = vld [vmem:[%s15256_s27 + $0x78] sm:$0xff]  ;;  %v1332_v37 = vld [vmem:[%s15256_s27 + $0x80] sm:$0xff]  ;;  %v15261_v38 = vld [vmem:[%s15256_s27 + $0x8] sm:$0xff]  ;;  %p1311_p8 = scmp.lt.s32.totalorder %s10630_s20, 1 }
  0x93   : > { %v11801_v39 = vpack.i.bf16 %v1332_v37, %v1331_v36  ;;  %v15264_v40 = vld [vmem:[%s15256_s27 + $0x10] sm:$0xff]  ;;  %v1333_v41 = vld [vmem:[%s15256_s27 + $0x88] sm:$0xff]  ;;  %v15271_v44 = vld [vmem:[%s15256_s27 + $0x18] sm:$0xff] }
  0x94   : > { %v1334_v42 = vld [vmem:[%s15256_s27 + $0x90] sm:$0xff]  ;;  %v11791_v43 = vpack.i.bf16 %v15264_v40, %v15261_v38  ;;  %v1320_v45 = vld [vmem:[%s15256_s27 + $0x20] sm:$0xff]  ;;  %v1335_v48 = vld [vmem:[%s15256_s27 + $0x98] sm:$0xff]  ;;  %11398 = vmatpush3.bf16.msra.mxu0 %v13977_v34  ;;  %v11811_v50 = vpack.i.bf16 %v1333_v41, %v1332_v37  ;;  %s20821_s20 = smov (!%p1311_p8, %s10630_s20), 1 }
  0x95   : > { %11802 = vrot.lane.b32.xlu1 %v11801_v39, %s14690_s17  ;;  %v11806_v46 = vpack.i.bf16 %v1334_v42, %v1333_v41  ;;  %v11796_v47 = vpack.i.bf16 %v1320_v45, %v15271_v44  ;;  %11399 = vmatprep.subr.bf16.mxu0 %v13978_v35  ;;  %v15279_v49 = vpack.i.bf16 %v1335_v48, %v1334_v42  ;;  %v1323_v51 = vld [vmem:[%s15256_s27 + $0x38] sm:$0xff]  ;;  %v1324_v52 = vld [vmem:[%s15256_s27 + $0x40] sm:$0xff]  ;;  %v1321_v53 = vld [vmem:[%s15256_s27 + $0x28] sm:$0xff]  ;;  %s10636_s14 = sshll.u32 %s20821_s20, 3 }
  0x96   : > { %11792 = vrot.lane.b32.xlu0 %v11791_v43, %s14691_s28  ;;  %v1322_v54 = vld [vmem:[%s15256_s27 + $0x30] sm:$0xff]  ;;  %v11826_v55 = vpack.i.bf16 %v1324_v52, %v1323_v51  ;;  %v1337_v57 = vld [vmem:[%s15256_s27 + $0xa8] sm:$0xff]  ;;  %v1336_v59 = vld [vmem:[%s15256_s27 + $0xa0] sm:$0xff]  ;;  %s1314_s19 = scalar_lea.vmem %s20525_s11, %s10636_s14 }
  0x97   : > { %v11821_v56 = vpack.i.bf16 %v1322_v54, %v1321_v53  ;;  %v1338_v58 = vld [vmem:[%s15256_s27 + $0xb0] sm:$0xff]  ;;  %v11831_v61 = vpack.i.bf16 %v1336_v59, %v1335_v48  ;;  %v1339_v62 = vld [vmem:[%s15256_s27 + $0xb8] sm:$0xff]  ;;  %v1328_v1 = vld [vmem:[%s15256_s27 + $0x60] sm:$0xff]  ;;  %v11841_v2 = vpack.i.bf16 %v1337_v57, %v1336_v59 }
  0x98   : > { %11400 = vmatpush3.bf16.msra.mxu0 %v13978_v35  ;;  %v11836_v60 = vpack.i.bf16 %v1338_v58, %v1337_v57  ;;  %v15296_v63 = vpack.i.bf16 %v1339_v62, %v1338_v58  ;;  %v1327_v0 = vld [vmem:[%s15256_s27 + $0x58] sm:$0xff]  ;;  %v1325_v4 = vld [vmem:[%s15256_s27 + $0x48] sm:$0xff]  ;;  %v1326_v5 = vld [vmem:[%s15256_s27 + $0x50] sm:$0xff] }
  0x99   : > { %11807 = vrot.lane.b32.xlu1 %v11806_v46, %s14690_s17  ;;  %11401 = vmatprep.subr.bf16.mxu0 %v13979_v3  ;;  %v11856_v6 = vpack.i.bf16 %v1328_v1, %v1327_v0  ;;  %v1341_v7 = vld [vmem:[%s15256_s27 + $0xc8] sm:$0xff]  ;;  %v11851_v8 = vpack.i.bf16 %v1326_v5, %v1325_v4  ;;  %v1342_v9 = vld [vmem:[%s15256_s27 + $0xd0] sm:$0xff]  ;;  %v1340_v10 = vld [vmem:[%s15256_s27 + $0xc0] sm:$0xff] }
  0x9a   : > { %11797 = vrot.lane.b32.xlu0 %v11796_v47, %s14691_s28  ;;  %v1343_v11 = vld [vmem:[%s15256_s27 + $0xd8] sm:$0xff]  ;;  %v11866_v12 = vpack.i.bf16 %v1342_v9, %v1341_v7  ;;  %v11861_v13 = vpack.i.bf16 %v1340_v10, %v1339_v62  ;;  %v11871_v15 = vpack.i.bf16 %v1341_v7, %v1340_v10  ;;  %v1329_v16 = vld [vmem:[%s15256_s27 + $0x68] sm:$0xff]  ;;  %v1330_v17 = vld [vmem:[%s15256_s27 + $0x70] sm:$0xff] }
  0x9b   : > { %v11876_v14 = vpack.i.bf16 %v1343_v11, %v1342_v9  ;;  %v1346_v18 = vld [vmem:[%s15256_s27 + $0xf0] sm:$0xff]  ;;  %v1347_v19 = vld [vmem:[%s15256_s27 + $0xf8] sm:$0xff]  ;;  %v11881_v20 = vpack.i.bf16 %v1330_v17, %v1329_v16  ;;  %v1344_v21 = vld [vmem:[%s15256_s27 + $0xe0] sm:$0xff] }
  0x9c   : > { %11402 = vmatpush3.bf16.msra.mxu0 %v13979_v3  ;;  %v1348_v22 = vld [vmem:[%s15256_s27 + $0x100] sm:$0xff]  ;;  %v11896_v23 = vpack.i.bf16 %v1347_v19, %v1346_v18  ;;  %v1345_v24 = vld [vmem:[%s15256_s27 + $0xe8] sm:$0xff]  ;;  %v11891_v25 = vpack.i.bf16 %v1344_v21, %v1343_v11  ;;  %v1350_v28 = vld [vmem:[%s15256_s27 + $0x110] sm:$0xff] }
  0x9d   : > { %11817 = vrot.lane.b32.xlu1 %v15279_v49, %s14692_s29  ;;  %v11906_v26 = vpack.i.bf16 %v1348_v22, %v1347_v19  ;;  %v11901_v27 = vpack.i.bf16 %v1345_v24, %v1344_v21  ;;  %v1351_v29 = vld [vmem:[%s15256_s27 + $0x118] sm:$0xff]  ;;  %v1349_v30 = vld [vmem:[%s15256_s27 + $0x108] sm:$0xff]  ;;  %v1352_v31 = vld [vmem:[%s15256_s27 + $0x120] sm:$0xff] }
  0x9e   : > { %11812 = vrot.lane.b32.xlu0 %v11811_v50, %s14692_s29  ;;  %v11926_v32 = vpack.i.bf16 %v1351_v29, %v1350_v28  ;;  %v11921_v33 = vpack.i.bf16 %v1349_v30, %v1348_v22  ;;  %v11936_v34 = vpack.i.bf16 %v1352_v31, %v1351_v29  ;;  %v11931_v35 = vpack.i.bf16 %v1350_v28, %v1349_v30  ;;  %v1354_v36 = vld [vmem:[%s15256_s27 + $0x130] sm:$0xff]  ;;  %v1355_v37 = vld [vmem:[%s15256_s27 + $0x138] sm:$0xff]  ;;  %v1353_v39 = vld [vmem:[%s15256_s27 + $0x128] sm:$0xff] }
  0x9f   : > { %v1356_v41 = vld [vmem:[%s15256_s27 + $0x140] sm:$0xff]  ;;  %v11956_v42 = vpack.i.bf16 %v1355_v37, %v1354_v36  ;;  %v11951_v43 = vpack.i.bf16 %v1353_v39, %v1352_v31  ;;  %v11961_v46 = vpack.i.bf16 %v1354_v36, %v1353_v39  ;;  %v1358_v47 = vld [vmem:[%s15256_s27 + $0x150] sm:$0xff]  ;;  %v1359_v48 = vld [vmem:[%s15256_s27 + $0x158] sm:$0xff] }
  0xa0   : > { %v11966_v45 = vpack.i.bf16 %v1356_v41, %v1355_v37  ;;  %v11986_v51 = vpack.i.bf16 %v1359_v48, %v1358_v47  ;;  %v1361_v57 = vld [vmem:[%s15256_s27 + $0x168] sm:$0xff]  ;;  %v1362_v58 = vld [vmem:[%s15256_s27 + $0x170] sm:$0xff]  ;;  %v1367_v0 = vld [vmem:[%s15256_s27 + $0x198] sm:$0xff] }
  0xa1   : > { %11827 = vrot.lane.b32.xlu1 %v11826_v55, %s14691_s28  ;;  %v1363_v55 = vld [vmem:[%s15256_s27 + $0x178] sm:$0xff]  ;;  %v1365_v59 = vld [vmem:[%s15256_s27 + $0x188] sm:$0xff]  ;;  %v1368_v1 = vld [vmem:[%s15256_s27 + $0x1a0] sm:$0xff] }
  0xa2   : > { %11822 = vrot.lane.b32.xlu0 %v11821_v56, %s14691_s28  ;;  %v1364_v56 = vld [vmem:[%s15256_s27 + $0x180] sm:$0xff]  ;;  %v1369_v3 = vld [vmem:[%s15256_s27 + $0x1a8] sm:$0xff]  ;;  %v12046_v4 = vpack.i.bf16 %v1368_v1, %v1367_v0  ;;  %v1370_v10 = vld [vmem:[%s15256_s27 + $0x1b0] sm:$0xff] }
  0xa3   : > { %v15375_v62 = vpack.i.bf16 %v1365_v59, %v1364_v56  ;;  %v1372_v9 = vld [vmem:[%s15256_s27 + $0x1c0] sm:$0xff]  ;;  %v1373_v11 = vld [vmem:[%s15256_s27 + $0x1c8] sm:$0xff]  ;;  %v15417_v24 = vld [vmem:[%s15256_s27 + $0x1f0] sm:$0xff] }
  0xa4   : > { %v1376_v17 = vld [vmem:[%s15256_s27 + $0x1e0] sm:$0xff]  ;;  %v1377_v18 = vld [vmem:[%s15256_s27 + $0x1e8] sm:$0xff] }
  0xa5   : > { %11837 = vrot.lane.b32.xlu1 %v11836_v60, %s14690_s17  ;;  %v12016_v60 = vpack.i.bf16 %v1364_v56, %v1363_v55  ;;  %v12106_v28 = vpack.i.bf16 %v1377_v18, %v1376_v17  ;;  %v14464_v17 = vld [vmem:[%s15256_s27 + $0x38] sm:$0xff] }
  0xa6   : > { %11832 = vrot.lane.b32.xlu0 %v11831_v61, %s14690_s17  ;;  %v12011_v61 = vpack.i.bf16 %v1362_v58, %v1361_v57 }
  0xa9   : > { %11847 = vrot.lane.b32.xlu1 %v15296_v63, %s14692_s29 }
  0xaa   : > { %11842 = vrot.lane.b32.xlu0 %v11841_v2, %s14692_s29 }
  0xad   : > { %11857 = vrot.lane.b32.xlu1 %v11856_v6, %s14691_s28  ;;  %v15388_v6 = vpack.i.bf16 %v1369_v3, %v1368_v1 }
  0xae   : > { %11852 = vrot.lane.b32.xlu0 %v11851_v8, %s14691_s28  ;;  %v1371_v8 = vld [vmem:[%s15256_s27 + $0x1b8] sm:$0xff] }
  0xb1   : > { %11867 = vrot.lane.b32.xlu1 %v11866_v12, %s14690_s17  ;;  %v12076_v12 = vpack.i.bf16 %v1372_v9, %v1371_v8 }
  0xb2   : > { %11862 = vrot.lane.b32.xlu0 %v11861_v13, %s14690_s17  ;;  %v12071_v13 = vpack.i.bf16 %v1370_v10, %v1369_v3  ;;  %v15456_v3 = vld [vmem:[%s15256_s27 + $0x210] sm:$0xff] }
  0xb5   : > { %11877 = vrot.lane.b32.xlu1 %v11876_v14, %s14692_s29 }
  0xb6   : > { %11872 = vrot.lane.b32.xlu0 %v11871_v15, %s14692_s29 }
  0xb9   : > { %11887 = vrot.lane.b32.xlu1 %v11811_v50, %s14691_s28  ;;  %v1360_v50 = vld [vmem:[%s15256_s27 + $0x160] sm:$0xff] }
  0xba   : > { %11882 = vrot.lane.b32.xlu0 %v11881_v20, %s14691_s28  ;;  %v15361_v53 = vpack.i.bf16 %v1360_v50, %v1359_v48  ;;  %v1374_v20 = vld [vmem:[%s15256_s27 + $0x1d0] sm:$0xff] }
  0xbd   : > { %11897 = vrot.lane.b32.xlu1 %v11896_v23, %s14690_s17 }
  0xbe   : > { %11892 = vrot.lane.b32.xlu0 %v11891_v25, %s14690_s17  ;;  %v1375_v25 = vld [vmem:[%s15256_s27 + $0x1d8] sm:$0xff] }
  0xbf   : > { %v15434_v48 = vpack.i.bf16 %v1375_v25, %v1374_v20 }
  0xc1   : > { %11907 = vrot.lane.b32.xlu1 %v11906_v26, %s14692_s29 }
  0xc2   : > { %11902 = vrot.lane.b32.xlu0 %v11901_v27, %s14692_s29 }
  0xc5   : > { %11917 = vrot.lane.b32.xlu1 %v11841_v2, %s14691_s28  ;;  %v1366_v2 = vld [vmem:[%s15256_s27 + $0x190] sm:$0xff] }
  0xc6   : > { %11912 = vrot.lane.b32.xlu0 %v15279_v49, %s14691_s28  ;;  %v1357_v49 = vld [vmem:[%s15256_s27 + $0x148] sm:$0xff]  ;;  %v12041_v5 = vpack.i.bf16 %v1366_v2, %v1365_v59  ;;  %v15391_v7 = vpack.i.bf16 %v1367_v0, %v1366_v2 }
  0xc7   : > { %v11981_v52 = vpack.i.bf16 %v1357_v49, %v1356_v41  ;;  %v11991_v54 = vpack.i.bf16 %v1358_v47, %v1357_v49  ;;  %v15432_v47 = vpack.i.bf16 %v15417_v24, %v1377_v18 }
  0xc9   : > { %11927 = vrot.lane.b32.xlu1 %v11926_v32, %s14690_s17 }
  0xca   : > { %11922 = vrot.lane.b32.xlu0 %v11921_v33, %s14690_s17 }
  0xcd   : > { %11937 = vrot.lane.b32.xlu1 %v11936_v34, %s14692_s29 }
  0xce   : > { %11932 = vrot.lane.b32.xlu0 %v11931_v35, %s14692_s29 }
  0xd1   : > { %11947 = vrot.lane.b32.xlu1 %v11871_v15, %s14691_s28  ;;  %v15407_v15 = vpack.i.bf16 %v1371_v8, %v1370_v10 }
  0xd2   : > { %11942 = vrot.lane.b32.xlu0 %v15296_v63, %s14691_s28  ;;  %v12021_v63 = vpack.i.bf16 %v1363_v55, %v1362_v58 }
  0xd5   : > { %11957 = vrot.lane.b32.xlu1 %v11956_v42, %s14690_s17 }
  0xd6   : > { %11952 = vrot.lane.b32.xlu0 %v11951_v43, %s14690_s17 }
  0xd9   : > { %11967 = vrot.lane.b32.xlu1 %v11966_v45, %s14692_s29 }
  0xda   : > { %11962 = vrot.lane.b32.xlu0 %v11961_v46, %s14692_s29 }
  0xdd   : > { %11977 = vrot.lane.b32.xlu1 %v11901_v27, %s14691_s28 }
  0xde   : > { %11972 = vrot.lane.b32.xlu0 %v11876_v14, %s14691_s28  ;;  %v15404_v14 = vpack.i.bf16 %v1373_v11, %v1372_v9 }
  0xe1   : > { %11987 = vrot.lane.b32.xlu1 %v11986_v51, %s14690_s17 }
  0xe2   : > { %11982 = vrot.lane.b32.xlu0 %v11981_v52, %s14690_s17 }
  0xe5   : > { %11997 = vrot.lane.b32.xlu1 %v15361_v53, %s14692_s29 }
  0xe6   : > { %11992 = vrot.lane.b32.xlu0 %v11991_v54, %s14692_s29 }
  0xe9   : > { %12007 = vrot.lane.b32.xlu1 %v11931_v35, %s14691_s28  ;;  %v12101_v35 = vpack.i.bf16 %v1374_v20, %v1373_v11 }
  0xea   : > { %12002 = vrot.lane.b32.xlu0 %v11906_v26, %s14691_s28  ;;  %v1316_v26 = vld [vmem:[%s15256_s27] sm:$0xff] }
  0xed   : > { %12017 = vrot.lane.b32.xlu1 %v12016_v60, %s14690_s17  ;;  %v1380_v60 = vld [vmem:[%s15256_s27 + $0x200] sm:$0xff] }
  0xee   : > { %12012 = vrot.lane.b32.xlu0 %v12011_v61, %s14690_s17  ;;  %v1381_v61 = vld [vmem:[%s15256_s27 + $0x208] sm:$0xff] }
  0xef   : > { %v12136_v11 = vpack.i.bf16 %v1381_v61, %v1380_v60 }
  0xf1   : > { %12027 = vrot.lane.b32.xlu1 %v15375_v62, %s14692_s29 }
  0xf2   : > { %12022 = vrot.lane.b32.xlu0 %v12021_v63, %s14692_s29 }
  0xf5   : > { %12037 = vrot.lane.b32.xlu1 %v11961_v46, %s14691_s28 }
  0xf6   : > { %12032 = vrot.lane.b32.xlu0 %v11936_v34, %s14691_s28 }
  0xf9   : > { %12047 = vrot.lane.b32.xlu1 %v12046_v4, %s14690_s17 }
  0xfa   : > { %12042 = vrot.lane.b32.xlu0 %v12041_v5, %s14690_s17 }
  0xfd   : > { %12057 = vrot.lane.b32.xlu1 %v15388_v6, %s14692_s29 }
  0xfe   : > { %12052 = vrot.lane.b32.xlu0 %v15391_v7, %s14692_s29 }
 0x101   : > { %12067 = vrot.lane.b32.xlu1 %v11991_v54, %s14691_s28 }
 0x102   : > { %12062 = vrot.lane.b32.xlu0 %v11966_v45, %s14691_s28 }
 0x105   : > { %12077 = vrot.lane.b32.xlu1 %v12076_v12, %s14690_s17 }
 0x106   : > { %12072 = vrot.lane.b32.xlu0 %v12071_v13, %s14690_s17 }
 0x107   : > { %v11803_v16 = vpop.permute.xlu1 %11802 }
 0x108   : > { %v11793_v19 = vpop.permute.xlu0 %11792  ;;  %v11805_v33 = vunpack.i.h.bf16 %v11803_v16  ;;  %v11804_v34 = vunpack.i.l.bf16 %v11803_v16 }
 0x109   : > { %12087 = vrot.lane.b32.xlu1 %v15404_v14, %s14692_s29  ;;  %v11795_v21 = vunpack.i.h.bf16 %v11793_v19  ;;  %v11794_v22 = vunpack.i.l.bf16 %v11793_v19  ;;  %v14465_v19 = vld [vmem:[%s15256_s27 + $0x30] sm:$0xff] }
 0x10a   : > { %12082 = vrot.lane.b32.xlu0 %v15407_v15, %s14692_s29 }
 0x10b   : > { %v11808_v23 = vpop.permute.xlu1 %11807  ;;  %v3530_v41 = vsel %vm3529_vm0, %v1316_v26, %v11794_v22  ;;  %v3531_v42 = vsel %vm3529_vm0, %v15261_v38, %v11795_v21  ;;  %v15468_v22 = vpack.i.bf16 %v15456_v3, %v1381_v61  ;;  %v14467_v26 = vld [vmem:[%s15256_s27 + $0x20] sm:$0xff]  ;;  %v14468_v61 = vld [vmem:[%s15256_s27 + $0x58] sm:$0xff] }
 0x10c   : > { %v11798_v27 = vpop.permute.xlu0 %11797  ;;  %v11810_v29 = vunpack.i.h.bf16 %v11808_v23  ;;  %v11809_v30 = vunpack.i.l.bf16 %v11808_v23  ;;  %v3727_v52 = vsel %vm3726_vm1, %v3530_v41, %v11804_v34 }
 0x10d   : > { %v11800_v31 = vunpack.i.h.bf16 %v11798_v27  ;;  %v11799_v32 = vunpack.i.l.bf16 %v11798_v27  ;;  %12097 = vrot.lane.b32.xlu1 %v12021_v63, %s14691_s28  ;;  %v1379_v63 = vld [vmem:[%s15256_s27 + $0x1f8] sm:$0xff] }
 0x10e   : > { %12092 = vrot.lane.b32.xlu0 %v15361_v53, %s14691_s28  ;;  %v3728_v53 = vsel %vm3726_vm1, %v3531_v42, %v11805_v33  ;;  %v12131_v16 = vpack.i.bf16 %v1379_v63, %v15417_v24  ;;  %v15470_v23 = vpack.i.bf16 %v1380_v60, %v1379_v63 }
 0x10f   : > { %v3533_v36 = vsel %vm3529_vm0, %v15271_v44, %v11800_v31  ;;  %v3532_v37 = vsel %vm3529_vm0, %v15264_v40, %v11799_v32  ;;  %v11818_v39 = vpop.permute.xlu1 %11817 }
 0x110   : > { %v11820_v43 = vunpack.i.h.bf16 %v11818_v39  ;;  %v11819_v45 = vunpack.i.l.bf16 %v11818_v39  ;;  %v11813_v46 = vpop.permute.xlu0 %11812  ;;  %v3729_v49 = vsel %vm3726_vm1, %v3532_v37, %v11809_v30  ;;  %v3730_v44 = vsel %vm3726_vm1, %v3533_v36, %v11810_v29 }
 0x111   : > { %v11815_v40 = vunpack.i.h.bf16 %v11813_v46  ;;  %v11814_v50 = vunpack.i.l.bf16 %v11813_v46  ;;  %12107 = vrot.lane.b32.xlu1 %v12106_v28, %s14690_s17  ;;  %v1384_v46 = vld [vmem:[%s15256_s27 + $0x220] sm:$0xff] }
 0x112   : > { %v3926_v38 = vsel %vm3923_vm2, %v3729_v49, %v11819_v45  ;;  %v3927_v51 = vsel %vm3923_vm2, %v3730_v44, %v11820_v43  ;;  %12102 = vrot.lane.b32.xlu0 %v12101_v35, %s14690_s17  ;;  %v1385_v49 = vld [vmem:[%s15256_s27 + $0x228] sm:$0xff]  ;;  %v1383_v44 = vld [vmem:[%s15256_s27 + $0x218] sm:$0xff] }
 0x113   : > { %v11828_v54 = vpop.permute.xlu1 %11827  ;;  %v3924_v55 = vsel %vm3923_vm2, %v3727_v52, %v11814_v50  ;;  %v3925_v56 = vsel %vm3923_vm2, %v3728_v53, %v11815_v40  ;;  %v4121_v57 = vpack.c.bf16 %v3927_v51, %v3926_v38  ;;  %v15496_v51 = vld [vmem:[%s15256_s27 + $0x230] sm:$0xff]  ;;  %v12161_v60 = vpack.i.bf16 %v1383_v44, %v15456_v3 }
 0x114   : > { %v11823_v58 = vpop.permute.xlu0 %11822  ;;  %v4120_v59 = vpack.c.bf16 %v3925_v56, %v3924_v55  ;;  %v11830_v0 = vunpack.i.h.bf16 %v11828_v54  ;;  %v11829_v1 = vunpack.i.l.bf16 %v11828_v54 }
 0x115   : > { %12117 = vrot.lane.b32.xlu1 %v15432_v47, %s14692_s29  ;;  %v11825_v4 = vunpack.i.h.bf16 %v11823_v58  ;;  %v11824_v5 = vunpack.i.l.bf16 %v11823_v58 }
 0x116   : > { %12112 = vrot.lane.b32.xlu0 %v15434_v48, %s14692_s29  ;;  %11403 = vmatprep.mubr.msk.bf16.mxu0 %vm4257_vm3, %v4120_v59  ;;  %v3537_v18 = vsel %vm3529_vm0, %v14464_v17, %v11830_v0  ;;  %v3536_v20 = vsel %vm3529_vm0, %v14465_v19, %v11829_v1  ;;  %v14469_v0 = vld [vmem:[%s15256_s27 + $0x50] sm:$0xff] }
 0x117   : > { %11404 = vmatmul.mubr.msk.bf16.vlgmr.msra.gmra.mrb[0].mxu0 %vm4257_vm3, %v4121_v57  ;;  %v11838_v2 = vpop.permute.xlu1 %11837  ;;  %v12166_v57 = vpack.i.bf16 %v1385_v49, %v1384_v46 }
 0x118   : > { %v11833_v8 = vpop.permute.xlu0 %11832  ;;  %v11840_v9 = vunpack.i.h.bf16 %v11838_v2  ;;  %v11839_v10 = vunpack.i.l.bf16 %v11838_v2 }
 0x119   : > { %12127 = vrot.lane.b32.xlu1 %v15391_v7, %s14691_s28  ;;  %v11835_v12 = vunpack.i.h.bf16 %v11833_v8  ;;  %v11834_v13 = vunpack.i.l.bf16 %v11833_v8  ;;  %v14466_v7 = vld [vmem:[%s15256_s27 + $0x28] sm:$0xff] }
 0x11a   : > { %12122 = vrot.lane.b32.xlu0 %v15375_v62, %s14691_s28  ;;  %v3535_v25 = vsel %vm3529_vm0, %v14466_v7, %v11825_v4  ;;  %v3534_v62 = vsel %vm3529_vm0, %v14467_v26, %v11824_v5  ;;  %v3733_v29 = vsel %vm3726_vm1, %v3536_v20, %v11839_v10  ;;  %v3734_v30 = vsel %vm3726_vm1, %v3537_v18, %v11840_v9  ;;  %v14471_v9 = vld [vmem:[%s15256_s27 + $0x40] sm:$0xff] }
 0x11b   : > { %v11848_v21 = vpop.permute.xlu1 %11847  ;;  %v3731_v33 = vsel %vm3726_vm1, %v3534_v62, %v11834_v13  ;;  %v3732_v34 = vsel %vm3726_vm1, %v3535_v25, %v11835_v12  ;;  %v15508_v4 = vpack.i.bf16 %v15496_v51, %v1385_v49  ;;  %v15510_v5 = vpack.i.bf16 %v1384_v46, %v1383_v44  ;;  %v14472_v49 = vld [vmem:[%s15256_s27 + $0x80] sm:$0xff] }
 0x11c   : > { %v11850_v27 = vunpack.i.h.bf16 %v11848_v21  ;;  %v11849_v24 = vunpack.i.l.bf16 %v11848_v21  ;;  %v11843_v28 = vpop.permute.xlu0 %11842 }
 0x11d   : > { %v11845_v31 = vunpack.i.h.bf16 %v11843_v28  ;;  %v11844_v32 = vunpack.i.l.bf16 %v11843_v28  ;;  %12137 = vrot.lane.b32.xlu1 %v12136_v11, %s14690_s17  ;;  %v1388_v28 = vld [vmem:[%s15256_s27 + $0x240] sm:$0xff] }
 0x11e   : > { %v3930_v35 = vsel %vm3923_vm2, %v3733_v29, %v11849_v24  ;;  %v3931_v36 = vsel %vm3923_vm2, %v3734_v30, %v11850_v27  ;;  %12132 = vrot.lane.b32.xlu0 %v12131_v16, %s14690_s17  ;;  %v1389_v29 = vld [vmem:[%s15256_s27 + $0x248] sm:$0xff]  ;;  %v1387_v30 = vld [vmem:[%s15256_s27 + $0x238] sm:$0xff] }
 0x11f   : > { %v3928_v37 = vsel %vm3923_vm2, %v3731_v33, %v11844_v32  ;;  %v3929_v39 = vsel %vm3923_vm2, %v3732_v34, %v11845_v31  ;;  %v11858_v41 = vpop.permute.xlu1 %11857  ;;  %v4123_v42 = vpack.c.bf16 %v3931_v36, %v3930_v35  ;;  %v1390_v34 = vld [vmem:[%s15256_s27 + $0x250] sm:$0xff]  ;;  %v12191_v46 = vpack.i.bf16 %v1387_v30, %v15496_v51 }
 0x120   : > { %v11853_v43 = vpop.permute.xlu0 %11852  ;;  %v4122_v45 = vpack.c.bf16 %v3929_v39, %v3928_v37  ;;  %v11860_v40 = vunpack.i.h.bf16 %v11858_v41  ;;  %v11859_v50 = vunpack.i.l.bf16 %v11858_v41 }
 0x121   : > { %12147 = vrot.lane.b32.xlu1 %v15468_v22, %s14692_s29  ;;  %v11855_v52 = vunpack.i.h.bf16 %v11853_v43  ;;  %v11854_v53 = vunpack.i.l.bf16 %v11853_v43 }
 0x122   : > { %12142 = vrot.lane.b32.xlu0 %v15470_v23, %s14692_s29  ;;  %11407 = vmatprep.mubr.msk.bf16.mxu0 %vm4257_vm3, %v4122_v45  ;;  %v3541_v63 = vsel %vm3529_vm0, %v14468_v61, %v11860_v40  ;;  %v3540_v1 = vsel %vm3529_vm0, %v14469_v0, %v11859_v50  ;;  %v14473_v40 = vld [vmem:[%s15256_s27 + $0x78] sm:$0xff] }
 0x123   : > { %11408 = vmatmul.mubr.msk.bf16.gmra.mrb[4].mxu0 %vm4257_vm3, %v4123_v42  ;;  %v11868_v38 = vpop.permute.xlu1 %11867  ;;  %v12196_v42 = vpack.i.bf16 %v1389_v29, %v1388_v28 }
 0x124   : > { %v11863_v54 = vpop.permute.xlu0 %11862  ;;  %v11870_v55 = vunpack.i.h.bf16 %v11868_v38  ;;  %v11869_v56 = vunpack.i.l.bf16 %v11868_v38 }
 0x125   : > { %12157 = vrot.lane.b32.xlu1 %v15407_v15, %s14691_s28  ;;  %v11865_v58 = vunpack.i.h.bf16 %v11863_v54  ;;  %v11864_v59 = vunpack.i.l.bf16 %v11863_v54  ;;  %v14470_v15 = vld [vmem:[%s15256_s27 + $0x48] sm:$0xff] }
 0x126   : > { %12152 = vrot.lane.b32.xlu0 %v15388_v6, %s14691_s28  ;;  %v3539_v8 = vsel %vm3529_vm0, %v14470_v15, %v11855_v52  ;;  %v3538_v6 = vsel %vm3529_vm0, %v14471_v9, %v11854_v53  ;;  %v3737_v12 = vsel %vm3726_vm1, %v3540_v1, %v11869_v56  ;;  %v3738_v13 = vsel %vm3726_vm1, %v3541_v63, %v11870_v55  ;;  %v14475_v55 = vld [vmem:[%s15256_s27 + $0x60] sm:$0xff] }
 0x127   : > { %v11878_v2 = vpop.permute.xlu1 %11877  ;;  %v3735_v18 = vsel %vm3726_vm1, %v3538_v6, %v11864_v59  ;;  %v3736_v19 = vsel %vm3726_vm1, %v3539_v8, %v11865_v58  ;;  %v15545_v52 = vpack.i.bf16 %v1390_v34, %v1389_v29  ;;  %v15547_v53 = vpack.i.bf16 %v1388_v28, %v1387_v30  ;;  %v14476_v30 = vld [vmem:[%s15256_s27 + $0xa0] sm:$0xff] }
 0x128   : > { %v11880_v10 = vunpack.i.h.bf16 %v11878_v2  ;;  %v11879_v3 = vunpack.i.l.bf16 %v11878_v2  ;;  %v11873_v11 = vpop.permute.xlu0 %11872 }
 0x129   : > { %v11875_v16 = vunpack.i.h.bf16 %v11873_v11  ;;  %v11874_v17 = vunpack.i.l.bf16 %v11873_v11  ;;  %12167 = vrot.lane.b32.xlu1 %v12166_v57, %s14690_s17  ;;  %v1393_v11 = vld [vmem:[%s15256_s27 + $0x268] sm:$0xff] }
 0x12a   : > { %v3934_v20 = vsel %vm3923_vm2, %v3737_v12, %v11879_v3  ;;  %v3935_v21 = vsel %vm3923_vm2, %v3738_v13, %v11880_v10  ;;  %12162 = vrot.lane.b32.xlu0 %v12161_v60, %s14690_s17  ;;  %v1394_v12 = vld [vmem:[%s15256_s27 + $0x270] sm:$0xff]  ;;  %v1391_v13 = vld [vmem:[%s15256_s27 + $0x258] sm:$0xff] }
 0x12b   : > { %v3932_v7 = vsel %vm3923_vm2, %v3735_v18, %v11874_v17  ;;  %v3933_v25 = vsel %vm3923_vm2, %v3736_v19, %v11875_v16  ;;  %v11888_v26 = vpop.permute.xlu1 %11887  ;;  %v4125_v62 = vpack.c.bf16 %v3935_v21, %v3934_v20  ;;  %v1392_v19 = vld [vmem:[%s15256_s27 + $0x260] sm:$0xff]  ;;  %v15574_v20 = vld [vmem:[%s15256_s27 + $0x278] sm:$0xff] }
 0x12c   : > { %v11883_v27 = vpop.permute.xlu0 %11882  ;;  %v4124_v24 = vpack.c.bf16 %v3933_v25, %v3932_v7  ;;  %v11890_v31 = vunpack.i.h.bf16 %v11888_v26  ;;  %v11889_v32 = vunpack.i.l.bf16 %v11888_v26  ;;  %v12221_v29 = vpack.i.bf16 %v1392_v19, %v1391_v13  ;;  %v14480_v13 = vld [vmem:[%s15256_s27 + $0xc0] sm:$0xff] }
 0x12d   : > { %12177 = vrot.lane.b32.xlu1 %v15508_v4, %s14692_s29  ;;  %v11885_v35 = vunpack.i.h.bf16 %v11883_v27  ;;  %v11884_v36 = vunpack.i.l.bf16 %v11883_v27  ;;  %v12226_v27 = vpack.i.bf16 %v1394_v12, %v1393_v11 }
 0x12e   : > { %12172 = vrot.lane.b32.xlu0 %v15510_v5, %s14692_s29  ;;  %11411 = vmatprep.mubr.msk.bf16.mxu0 %vm4257_vm3, %v4124_v24  ;;  %v3545_v44 = vsel %vm3529_vm0, %v14472_v49, %v11890_v31  ;;  %v3544_v50 = vsel %vm3529_vm0, %v14473_v40, %v11889_v32  ;;  %v14477_v32 = vld [vmem:[%s15256_s27 + $0x98] sm:$0xff] }
 0x12f   : > { %11412 = vmatmul.mubr.msk.bf16.gmra.mrb[8].mxu0 %vm4257_vm3, %v4125_v62  ;;  %v11898_v33 = vpop.permute.xlu1 %11897  ;;  %v3542_v56 = vsel %vm3529_vm0, %v14475_v55, %v11884_v36  ;;  %v15587_v36 = vpack.i.bf16 %v1393_v11, %v1392_v19 }
 0x130   : > { %v11893_v37 = vpop.permute.xlu0 %11892  ;;  %v11900_v39 = vunpack.i.h.bf16 %v11898_v33  ;;  %v11899_v41 = vunpack.i.l.bf16 %v11898_v33 }
 0x131   : > { %12187 = vrot.lane.b32.xlu1 %v15434_v48, %s14691_s28  ;;  %v11895_v43 = vunpack.i.h.bf16 %v11893_v37  ;;  %v11894_v45 = vunpack.i.l.bf16 %v11893_v37  ;;  %v14474_v48 = vld [vmem:[%s15256_s27 + $0x68] sm:$0xff] }
 0x132   : > { %12182 = vrot.lane.b32.xlu0 %v15404_v14, %s14691_s28  ;;  %v3543_v54 = vsel %vm3529_vm0, %v14474_v48, %v11885_v35  ;;  %v3741_v58 = vsel %vm3726_vm1, %v3544_v50, %v11899_v41  ;;  %v3742_v59 = vsel %vm3726_vm1, %v3545_v44, %v11900_v39  ;;  %v15585_v35 = vpack.i.bf16 %v15574_v20, %v1394_v12  ;;  %v14479_v39 = vld [vmem:[%s15256_s27 + $0x88] sm:$0xff] }
 0x133   : > { %v11908_v38 = vpop.permute.xlu1 %11907  ;;  %v3739_v63 = vsel %vm3726_vm1, %v3542_v56, %v11894_v45  ;;  %v3740_v0 = vsel %vm3726_vm1, %v3543_v54, %v11895_v43 }
 0x134   : > { %v11910_v14 = vunpack.i.h.bf16 %v11908_v38  ;;  %v11909_v57 = vunpack.i.l.bf16 %v11908_v38  ;;  %v11903_v51 = vpop.permute.xlu0 %11902 }
 0x135   : > { %v11905_v60 = vunpack.i.h.bf16 %v11903_v51  ;;  %v11904_v61 = vunpack.i.l.bf16 %v11903_v51  ;;  %12197 = vrot.lane.b32.xlu1 %v12196_v42, %s14690_s17 }
 0x136   : > { %v3938_v1 = vsel %vm3923_vm2, %v3741_v58, %v11909_v57  ;;  %v3939_v2 = vsel %vm3923_vm2, %v3742_v59, %v11910_v14  ;;  %12192 = vrot.lane.b32.xlu0 %v12191_v46, %s14690_s17  ;;  %v1397_v58 = vld [vmem:[%s15256_s27 + $0x288] sm:$0xff]  ;;  %v1398_v59 = vld [vmem:[%s15256_s27 + $0x290] sm:$0xff] }
 0x137   : > { %v3936_v15 = vsel %vm3923_vm2, %v3739_v63, %v11904_v61  ;;  %v3937_v8 = vsel %vm3923_vm2, %v3740_v0, %v11905_v60  ;;  %v11918_v9 = vpop.permute.xlu1 %11917  ;;  %v4127_v6 = vpack.c.bf16 %v3939_v2, %v3938_v1  ;;  %v1396_v60 = vld [vmem:[%s15256_s27 + $0x280] sm:$0xff]  ;;  %v15613_v1 = vld [vmem:[%s15256_s27 + $0x298] sm:$0xff] }
 0x138   : > { %v11913_v10 = vpop.permute.xlu0 %11912  ;;  %v4126_v3 = vpack.c.bf16 %v3937_v8, %v3936_v15  ;;  %v11920_v16 = vunpack.i.h.bf16 %v11918_v9  ;;  %v11919_v17 = vunpack.i.l.bf16 %v11918_v9  ;;  %v12251_v12 = vpack.i.bf16 %v1396_v60, %v15574_v20 }
 0x139   : > { %12207 = vrot.lane.b32.xlu1 %v15545_v52, %s14692_s29  ;;  %v11915_v21 = vunpack.i.h.bf16 %v11913_v10  ;;  %v11914_v7 = vunpack.i.l.bf16 %v11913_v10  ;;  %v12256_v10 = vpack.i.bf16 %v1398_v59, %v1397_v58 }
 0x13a   : > { %12202 = vrot.lane.b32.xlu0 %v15547_v53, %s14692_s29  ;;  %11415 = vmatprep.mubr.msk.bf16.mxu0 %vm4257_vm3, %v4126_v3  ;;  %v3549_v31 = vsel %vm3529_vm0, %v14476_v30, %v11920_v16  ;;  %v3548_v33 = vsel %vm3529_vm0, %v14477_v32, %v11919_v17  ;;  %v14481_v17 = vld [vmem:[%s15256_s27 + $0xb8] sm:$0xff] }
 0x13b   : > { %11416 = vmatmul.mubr.msk.bf16.gmra.mrb[12].mxu0 %vm4257_vm3, %v4127_v6  ;;  %v11928_v18 = vpop.permute.xlu1 %11927  ;;  %v3546_v41 = vsel %vm3529_vm0, %v14479_v39, %v11914_v7  ;;  %v15627_v7 = vpack.i.bf16 %v1397_v58, %v1396_v60 }
 0x13c   : > { %v11923_v25 = vpop.permute.xlu0 %11922  ;;  %v11930_v26 = vunpack.i.h.bf16 %v11928_v18  ;;  %v11929_v62 = vunpack.i.l.bf16 %v11928_v18 }
 0x13d   : > { %12217 = vrot.lane.b32.xlu1 %v15470_v23, %s14691_s28  ;;  %v11925_v24 = vunpack.i.h.bf16 %v11923_v25  ;;  %v11924_v28 = vunpack.i.l.bf16 %v11923_v25  ;;  %v14478_v23 = vld [vmem:[%s15256_s27 + $0x90] sm:$0xff] }
 0x13e   : > { %12212 = vrot.lane.b32.xlu0 %v15432_v47, %s14691_s28  ;;  %v3547_v37 = vsel %vm3529_vm0, %v14478_v23, %v11915_v21  ;;  %v3745_v45 = vsel %vm3726_vm1, %v3548_v33, %v11929_v62  ;;  %v3746_v46 = vsel %vm3726_vm1, %v3549_v31, %v11930_v26  ;;  %v15625_v21 = vpack.i.bf16 %v15613_v1, %v1398_v59  ;;  %v14483_v26 = vld [vmem:[%s15256_s27 + $0xa8] sm:$0xff]  ;;  %v14484_v59 = vld [vmem:[%s15256_s27 + $0xe0] sm:$0xff] }
 0x13f   : > { %v11938_v34 = vpop.permute.xlu1 %11937  ;;  %v3743_v40 = vsel %vm3726_vm1, %v3546_v41, %v11924_v28  ;;  %v3744_v50 = vsel %vm3726_vm1, %v3547_v37, %v11925_v24 }
 0x140   : > { %v11940_v47 = vunpack.i.h.bf16 %v11938_v34  ;;  %v11939_v42 = vunpack.i.l.bf16 %v11938_v34  ;;  %v11933_v43 = vpop.permute.xlu0 %11932 }
 0x141   : > { %v11935_v49 = vunpack.i.h.bf16 %v11933_v43  ;;  %v11934_v44 = vunpack.i.l.bf16 %v11933_v43  ;;  %12227 = vrot.lane.b32.xlu1 %v12226_v27, %s14690_s17  ;;  %v1401_v43 = vld [vmem:[%s15256_s27 + $0x2a8] sm:$0xff] }
 0x142   : > { %v3942_v38 = vsel %vm3923_vm2, %v3745_v45, %v11939_v42  ;;  %v3943_v48 = vsel %vm3923_vm2, %v3746_v46, %v11940_v47  ;;  %12222 = vrot.lane.b32.xlu0 %v12221_v29, %s14690_s17  ;;  %v1402_v45 = vld [vmem:[%s15256_s27 + $0x2b0] sm:$0xff]  ;;  %v1400_v46 = vld [vmem:[%s15256_s27 + $0x2a0] sm:$0xff] }
 0x143   : > { %v3940_v54 = vsel %vm3923_vm2, %v3743_v40, %v11934_v44  ;;  %v3941_v55 = vsel %vm3923_vm2, %v3744_v50, %v11935_v49  ;;  %v11948_v56 = vpop.permute.xlu1 %11947  ;;  %v4129_v14 = vpack.c.bf16 %v3943_v48, %v3942_v38  ;;  %v15653_v50 = vld [vmem:[%s15256_s27 + $0x2b8] sm:$0xff]  ;;  %v12281_v58 = vpack.i.bf16 %v1400_v46, %v15613_v1 }
 0x144   : > { %v11943_v57 = vpop.permute.xlu0 %11942  ;;  %v4128_v51 = vpack.c.bf16 %v3941_v55, %v3940_v54  ;;  %v11950_v61 = vunpack.i.h.bf16 %v11948_v56  ;;  %v11949_v63 = vunpack.i.l.bf16 %v11948_v56 }
 0x145   : > { %12237 = vrot.lane.b32.xlu1 %v15585_v35, %s14692_s29  ;;  %v11945_v2 = vunpack.i.h.bf16 %v11943_v57  ;;  %v11944_v15 = vunpack.i.l.bf16 %v11943_v57 }
 0x146   : > { %12232 = vrot.lane.b32.xlu0 %v15587_v36, %s14692_s29  ;;  %11419 = vmatprep.mubr.msk.bf16.mxu0 %vm4257_vm3, %v4128_v51  ;;  %v3553_v16 = vsel %vm3529_vm0, %v14480_v13, %v11950_v61  ;;  %v3552_v18 = vsel %vm3529_vm0, %v14481_v17, %v11949_v63  ;;  %v14485_v61 = vld [vmem:[%s15256_s27 + $0xd8] sm:$0xff] }
 0x147   : > { %11420 = vmatmul.mubr.msk.bf16.gmra.mrb[16].mxu0 %vm4257_vm3, %v4129_v14  ;;  %v11958_v0 = vpop.permute.xlu1 %11957  ;;  %v12286_v14 = vpack.i.bf16 %v1402_v45, %v1401_v43 }
 0x148   : > { %v11953_v8 = vpop.permute.xlu0 %11952  ;;  %v11960_v9 = vunpack.i.h.bf16 %v11958_v0  ;;  %v11959_v6 = vunpack.i.l.bf16 %v11958_v0 }
 0x149   : > { %12247 = vrot.lane.b32.xlu1 %v15510_v5, %s14691_s28  ;;  %v11955_v3 = vunpack.i.h.bf16 %v11953_v8  ;;  %v11954_v11 = vunpack.i.l.bf16 %v11953_v8  ;;  %v14482_v5 = vld [vmem:[%s15256_s27 + $0xb0] sm:$0xff] }
 0x14a   : > { %12242 = vrot.lane.b32.xlu0 %v15468_v22, %s14691_s28  ;;  %v3551_v25 = vsel %vm3529_vm0, %v14482_v5, %v11945_v2  ;;  %v3550_v22 = vsel %vm3529_vm0, %v14483_v26, %v11944_v15  ;;  %v3749_v24 = vsel %vm3726_vm1, %v3552_v18, %v11959_v6  ;;  %v3750_v28 = vsel %vm3726_vm1, %v3553_v16, %v11960_v9  ;;  %v14487_v9 = vld [vmem:[%s15256_s27 + $0xc8] sm:$0xff] }
 0x14b   : > { %v11968_v19 = vpop.permute.xlu1 %11967  ;;  %v3747_v31 = vsel %vm3726_vm1, %v3550_v22, %v11954_v11  ;;  %v3748_v32 = vsel %vm3726_vm1, %v3551_v25, %v11955_v3  ;;  %v15665_v2 = vpack.i.bf16 %v15653_v50, %v1402_v45  ;;  %v15667_v15 = vpack.i.bf16 %v1401_v43, %v1400_v46  ;;  %v14488_v46 = vld [vmem:[%s15256_s27 + $0x108] sm:$0xff] }
 0x14c   : > { %v11970_v62 = vunpack.i.h.bf16 %v11968_v19  ;;  %v11969_v20 = vunpack.i.l.bf16 %v11968_v19  ;;  %v11963_v27 = vpop.permute.xlu0 %11962 }
 0x14d   : > { %v11965_v29 = vunpack.i.h.bf16 %v11963_v27  ;;  %v11964_v30 = vunpack.i.l.bf16 %v11963_v27  ;;  %12257 = vrot.lane.b32.xlu1 %v12256_v10, %s14690_s17  ;;  %v1406_v27 = vld [vmem:[%s15256_s27 + $0x2d0] sm:$0xff] }
 0x14e   : > { %v3946_v33 = vsel %vm3923_vm2, %v3749_v24, %v11969_v20  ;;  %v3947_v34 = vsel %vm3923_vm2, %v3750_v28, %v11970_v62  ;;  %12252 = vrot.lane.b32.xlu0 %v12251_v12, %s14690_s17  ;;  %v1407_v24 = vld [vmem:[%s15256_s27 + $0x2d8] sm:$0xff] }
 0x14f   : > { %v3944_v23 = vsel %vm3923_vm2, %v3747_v31, %v11964_v30  ;;  %v3945_v37 = vsel %vm3923_vm2, %v3748_v32, %v11965_v29  ;;  %v11978_v39 = vpop.permute.xlu1 %11977  ;;  %v4131_v41 = vpack.c.bf16 %v3947_v34, %v3946_v33  ;;  %v1404_v31 = vld [vmem:[%s15256_s27 + $0x2c0] sm:$0xff] }
 0x150   : > { %v11973_v47 = vpop.permute.xlu0 %11972  ;;  %v4130_v42 = vpack.c.bf16 %v3945_v37, %v3944_v23  ;;  %v11980_v49 = vunpack.i.h.bf16 %v11978_v39  ;;  %v11979_v44 = vunpack.i.l.bf16 %v11978_v39  ;;  %v15693_v23 = vld [vmem:[%s15256_s27 + $0x2e0] sm:$0xff]  ;;  %v1405_v37 = vld [vmem:[%s15256_s27 + $0x2c8] sm:$0xff]  ;;  %v12311_v45 = vpack.i.bf16 %v1404_v31, %v15653_v50 }
 0x151   : > { %12267 = vrot.lane.b32.xlu1 %v15625_v21, %s14692_s29  ;;  %v11975_v38 = vunpack.i.h.bf16 %v11973_v47  ;;  %v11974_v48 = vunpack.i.l.bf16 %v11973_v47  ;;  %v12316_v47 = vpack.i.bf16 %v1407_v24, %v1406_v27 }
 0x152   : > { %12262 = vrot.lane.b32.xlu0 %v15627_v7, %s14692_s29  ;;  %11423 = vmatprep.mubr.msk.bf16.mxu0 %vm4257_vm3, %v4130_v42  ;;  %v3557_v60 = vsel %vm3529_vm0, %v14484_v59, %v11980_v49  ;;  %v3556_v63 = vsel %vm3529_vm0, %v14485_v61, %v11979_v44  ;;  %v14489_v44 = vld [vmem:[%s15256_s27 + $0x100] sm:$0xff] }
 0x153   : > { %11424 = vmatmul.mubr.msk.bf16.gmra.mrb[20].mxu0 %vm4257_vm3, %v4131_v41  ;;  %v11988_v40 = vpop.permute.xlu1 %11987 }
 0x154   : > { %v11983_v54 = vpop.permute.xlu0 %11982  ;;  %v11990_v55 = vunpack.i.h.bf16 %v11988_v40  ;;  %v11989_v56 = vunpack.i.l.bf16 %v11988_v40 }
 0x155   : > { %12277 = vrot.lane.b32.xlu1 %v15547_v53, %s14691_s28  ;;  %v11985_v57 = vunpack.i.h.bf16 %v11983_v54  ;;  %v11984_v51 = vunpack.i.l.bf16 %v11983_v54  ;;  %v14486_v53 = vld [vmem:[%s15256_s27 + $0xd0] sm:$0xff]  ;;  %v15708_v54 = vpack.i.bf16 %v1405_v37, %v1404_v31 }
 0x156   : > { %12272 = vrot.lane.b32.xlu0 %v15508_v4, %s14691_s28  ;;  %v3555_v8 = vsel %vm3529_vm0, %v14486_v53, %v11975_v38  ;;  %v3554_v4 = vsel %vm3529_vm0, %v14487_v9, %v11974_v48  ;;  %v3753_v3 = vsel %vm3726_vm1, %v3556_v63, %v11989_v56  ;;  %v3754_v11 = vsel %vm3726_vm1, %v3557_v60, %v11990_v55  ;;  %v14491_v56 = vld [vmem:[%s15256_s27 + $0xf0] sm:$0xff] }
 0x157   : > { %v11998_v0 = vpop.permute.xlu1 %11997  ;;  %v3751_v16 = vsel %vm3726_vm1, %v3554_v4, %v11984_v51  ;;  %v3752_v17 = vsel %vm3726_vm1, %v3555_v8, %v11985_v57  ;;  %v15706_v48 = vpack.i.bf16 %v15693_v23, %v1407_v24 }
 0x158   : > { %v12000_v6 = vunpack.i.h.bf16 %v11998_v0  ;;  %v11999_v1 = vunpack.i.l.bf16 %v11998_v0  ;;  %v11993_v10 = vpop.permute.xlu0 %11992 }
 0x159   : > { %v11995_v12 = vunpack.i.h.bf16 %v11993_v10  ;;  %v11994_v13 = vunpack.i.l.bf16 %v11993_v10  ;;  %12287 = vrot.lane.b32.xlu1 %v12286_v14, %s14690_s17 }
 0x15a   : > { %v3950_v18 = vsel %vm3923_vm2, %v3753_v3, %v11999_v1  ;;  %v3951_v19 = vsel %vm3923_vm2, %v3754_v11, %v12000_v6  ;;  %12282 = vrot.lane.b32.xlu0 %v12281_v58, %s14690_s17  ;;  %v1410_v3 = vld [vmem:[%s15256_s27 + $0x2f0] sm:$0xff]  ;;  %v1411_v11 = vld [vmem:[%s15256_s27 + $0x2f8] sm:$0xff] }
 0x15b   : > { %v3948_v5 = vsel %vm3923_vm2, %v3751_v16, %v11994_v13  ;;  %v3949_v25 = vsel %vm3923_vm2, %v3752_v17, %v11995_v12  ;;  %v12008_v26 = vpop.permute.xlu1 %12007  ;;  %v4133_v22 = vpack.c.bf16 %v3951_v19, %v3950_v18  ;;  %v1409_v17 = vld [vmem:[%s15256_s27 + $0x2e8] sm:$0xff] }
 0x15c   : > { %v12003_v62 = vpop.permute.xlu0 %12002  ;;  %v4132_v20 = vpack.c.bf16 %v3949_v25, %v3948_v5  ;;  %v12010_v28 = vunpack.i.h.bf16 %v12008_v26  ;;  %v12009_v29 = vunpack.i.l.bf16 %v12008_v26  ;;  %v15734_v25 = vld [vmem:[%s15256_s27 + $0x300] sm:$0xff]  ;;  %v12341_v24 = vpack.i.bf16 %v1409_v17, %v15693_v23 }
 0x15d   : > { %12297 = vrot.lane.b32.xlu1 %v15665_v2, %s14692_s29  ;;  %v12005_v32 = vunpack.i.h.bf16 %v12003_v62  ;;  %v12004_v33 = vunpack.i.l.bf16 %v12003_v62  ;;  %v12346_v62 = vpack.i.bf16 %v1411_v11, %v1410_v3 }
 0x15e   : > { %12292 = vrot.lane.b32.xlu0 %v15667_v15, %s14692_s29  ;;  %11427 = vmatprep.mubr.msk.bf16.mxu0 %vm4257_vm3, %v4132_v20  ;;  %v3561_v49 = vsel %vm3529_vm0, %v14488_v46, %v12010_v28  ;;  %v3560_v40 = vsel %vm3529_vm0, %v14489_v44, %v12009_v29  ;;  %v14492_v28 = vld [vmem:[%s15256_s27 + $0x128] sm:$0xff] }
 0x15f   : > { %11428 = vmatmul.mubr.msk.bf16.gmra.mrb[24].mxu0 %vm4257_vm3, %v4133_v22  ;;  %v12018_v30 = vpop.permute.xlu1 %12017 }
 0x160   : > { %v12013_v34 = vpop.permute.xlu0 %12012  ;;  %v12020_v39 = vunpack.i.h.bf16 %v12018_v30  ;;  %v12019_v41 = vunpack.i.l.bf16 %v12018_v30  ;;  %v14493_v30 = vld [vmem:[%s15256_s27 + $0x120] sm:$0xff] }
 0x161   : > { %12307 = vrot.lane.b32.xlu1 %v15587_v36, %s14691_s28  ;;  %v12015_v42 = vunpack.i.h.bf16 %v12013_v34  ;;  %v12014_v43 = vunpack.i.l.bf16 %v12013_v34  ;;  %v14490_v36 = vld [vmem:[%s15256_s27 + $0xf8] sm:$0xff]  ;;  %v15748_v34 = vpack.i.bf16 %v1410_v3, %v1409_v17 }
 0x162   : > { %12302 = vrot.lane.b32.xlu0 %v15545_v52, %s14691_s28  ;;  %v3559_v55 = vsel %vm3529_vm0, %v14490_v36, %v12005_v32  ;;  %v3558_v52 = vsel %vm3529_vm0, %v14491_v56, %v12004_v33  ;;  %v3757_v51 = vsel %vm3726_vm1, %v3560_v40, %v12019_v41  ;;  %v3758_v58 = vsel %vm3726_vm1, %v3561_v49, %v12020_v39  ;;  %v14495_v39 = vld [vmem:[%s15256_s27 + $0x110] sm:$0xff] }
 0x163   : > { %v12028_v38 = vpop.permute.xlu1 %12027  ;;  %v3755_v61 = vsel %vm3726_vm1, %v3558_v52, %v12014_v43  ;;  %v3756_v63 = vsel %vm3726_vm1, %v3559_v55, %v12015_v42  ;;  %v15746_v33 = vpack.i.bf16 %v15734_v25, %v1411_v11  ;;  %v14496_v11 = vld [vmem:[%s15256_s27 + $0x148] sm:$0xff] }
 0x164   : > { %v12030_v14 = vunpack.i.h.bf16 %v12028_v38  ;;  %v12029_v50 = vunpack.i.l.bf16 %v12028_v38  ;;  %v12023_v57 = vpop.permute.xlu0 %12022 }
 0x165   : > { %v12025_v59 = vunpack.i.h.bf16 %v12023_v57  ;;  %v12024_v60 = vunpack.i.l.bf16 %v12023_v57  ;;  %12317 = vrot.lane.b32.xlu1 %v12316_v47, %s14690_s17  ;;  %v1414_v57 = vld [vmem:[%s15256_s27 + $0x310] sm:$0xff] }
 0x166   : > { %v3954_v0 = vsel %vm3923_vm2, %v3757_v51, %v12029_v50  ;;  %v3955_v53 = vsel %vm3923_vm2, %v3758_v58, %v12030_v14  ;;  %12312 = vrot.lane.b32.xlu0 %v12311_v45, %s14690_s17  ;;  %v1415_v51 = vld [vmem:[%s15256_s27 + $0x318] sm:$0xff] }
 0x167   : > { %v3952_v8 = vsel %vm3923_vm2, %v3755_v61, %v12024_v60  ;;  %v3953_v9 = vsel %vm3923_vm2, %v3756_v63, %v12025_v59  ;;  %v12038_v4 = vpop.permute.xlu1 %12037  ;;  %v4135_v6 = vpack.c.bf16 %v3955_v53, %v3954_v0  ;;  %v1413_v61 = vld [vmem:[%s15256_s27 + $0x308] sm:$0xff] }
 0x168   : > { %v12033_v1 = vpop.permute.xlu0 %12032  ;;  %v4134_v10 = vpack.c.bf16 %v3953_v9, %v3952_v8  ;;  %v12040_v12 = vunpack.i.h.bf16 %v12038_v4  ;;  %v12039_v13 = vunpack.i.l.bf16 %v12038_v4  ;;  %v15774_v8 = vld [vmem:[%s15256_s27 + $0x320] sm:$0xff]  ;;  %v12371_v3 = vpack.i.bf16 %v1413_v61, %v15734_v25 }
 0x169   : > { %12327 = vrot.lane.b32.xlu1 %v15706_v48, %s14692_s29  ;;  %v12035_v18 = vunpack.i.h.bf16 %v12033_v1  ;;  %v12034_v19 = vunpack.i.l.bf16 %v12033_v1 }
 0x16a   : > { %12322 = vrot.lane.b32.xlu0 %v15708_v54, %s14692_s29  ;;  %11431 = vmatprep.mubr.msk.bf16.mxu0 %vm4257_vm3, %v4134_v10  ;;  %v3565_v29 = vsel %vm3529_vm0, %v14492_v28, %v12040_v12  ;;  %v3564_v31 = vsel %vm3529_vm0, %v14493_v30, %v12039_v13  ;;  %v14497_v13 = vld [vmem:[%s15256_s27 + $0x140] sm:$0xff] }
 0x16b   : > { %11432 = vmatmul.mubr.msk.bf16.gmra.mrb[28].mxu0 %vm4257_vm3, %v4135_v6  ;;  %v12048_v16 = vpop.permute.xlu1 %12047  ;;  %v12376_v6 = vpack.i.bf16 %v1415_v51, %v1414_v57 }
 0x16c   : > { %v12043_v5 = vpop.permute.xlu0 %12042  ;;  %v12050_v26 = vunpack.i.h.bf16 %v12048_v16  ;;  %v12049_v22 = vunpack.i.l.bf16 %v12048_v16 }
 0x16d   : > { %12337 = vrot.lane.b32.xlu1 %v15627_v7, %s14691_s28  ;;  %v12045_v20 = vunpack.i.h.bf16 %v12043_v5  ;;  %v12044_v27 = vunpack.i.l.bf16 %v12043_v5  ;;  %v14494_v7 = vld [vmem:[%s15256_s27 + $0x118] sm:$0xff] }
 0x16e   : > { %12332 = vrot.lane.b32.xlu0 %v15585_v35, %s14691_s28  ;;  %v3563_v37 = vsel %vm3529_vm0, %v14494_v7, %v12035_v18  ;;  %v3562_v35 = vsel %vm3529_vm0, %v14495_v39, %v12034_v19  ;;  %v3761_v42 = vsel %vm3726_vm1, %v3564_v31, %v12049_v22  ;;  %v3762_v43 = vsel %vm3726_vm1, %v3565_v29, %v12050_v26  ;;  %v14499_v26 = vld [vmem:[%s15256_s27 + $0x130] sm:$0xff] }
 0x16f   : > { %v12058_v32 = vpop.permute.xlu1 %12057  ;;  %v3759_v49 = vsel %vm3726_vm1, %v3562_v35, %v12044_v27  ;;  %v3760_v44 = vsel %vm3726_vm1, %v3563_v37, %v12045_v20  ;;  %v15786_v18 = vpack.i.bf16 %v15774_v8, %v1415_v51  ;;  %v15788_v19 = vpack.i.bf16 %v1414_v57, %v1413_v61  ;;  %v14500_v51 = vld [vmem:[%s15256_s27 + $0x170] sm:$0xff] }
 0x170   : > { %v12060_v41 = vunpack.i.h.bf16 %v12058_v32  ;;  %v12059_v23 = vunpack.i.l.bf16 %v12058_v32  ;;  %v12053_v47 = vpop.permute.xlu0 %12052 }
 0x171   : > { %v12055_v45 = vunpack.i.h.bf16 %v12053_v47  ;;  %v12054_v46 = vunpack.i.l.bf16 %v12053_v47  ;;  %12347 = vrot.lane.b32.xlu1 %v12346_v62, %s14690_s17  ;;  %v1418_v47 = vld [vmem:[%s15256_s27 + $0x330] sm:$0xff] }
 0x172   : > { %v3958_v40 = vsel %vm3923_vm2, %v3761_v42, %v12059_v23  ;;  %v3959_v38 = vsel %vm3923_vm2, %v3762_v43, %v12060_v41  ;;  %12342 = vrot.lane.b32.xlu0 %v12341_v24, %s14690_s17  ;;  %v1419_v42 = vld [vmem:[%s15256_s27 + $0x338] sm:$0xff] }
 0x173   : > { %v3956_v36 = vsel %vm3923_vm2, %v3759_v49, %v12054_v46  ;;  %v3957_v55 = vsel %vm3923_vm2, %v3760_v44, %v12055_v45  ;;  %v12068_v56 = vpop.permute.xlu1 %12067  ;;  %v4137_v52 = vpack.c.bf16 %v3959_v38, %v3958_v40  ;;  %v1417_v49 = vld [vmem:[%s15256_s27 + $0x328] sm:$0xff] }
 0x174   : > { %v12063_v14 = vpop.permute.xlu0 %12062  ;;  %v4136_v50 = vpack.c.bf16 %v3957_v55, %v3956_v36  ;;  %v12070_v58 = vunpack.i.h.bf16 %v12068_v56  ;;  %v12069_v59 = vunpack.i.l.bf16 %v12068_v56  ;;  %v1420_v36 = vld [vmem:[%s15256_s27 + $0x340] sm:$0xff]  ;;  %v12401_v57 = vpack.i.bf16 %v1417_v49, %v15774_v8 }
 0x175   : > { %12357 = vrot.lane.b32.xlu1 %v15746_v33, %s14692_s29  ;;  %v12065_v63 = vunpack.i.h.bf16 %v12063_v14  ;;  %v12064_v0 = vunpack.i.l.bf16 %v12063_v14 }
 0x176   : > { %12352 = vrot.lane.b32.xlu0 %v15748_v34, %s14692_s29  ;;  %11435 = vmatprep.mubr.msk.bf16.mxu0 %vm4257_vm3, %v4136_v50  ;;  %v3569_v12 = vsel %vm3529_vm0, %v14496_v11, %v12070_v58  ;;  %v3568_v16 = vsel %vm3529_vm0, %v14497_v13, %v12069_v59  ;;  %v14501_v59 = vld [vmem:[%s15256_s27 + $0x168] sm:$0xff] }
 0x177   : > { %11436 = vmatmul.mubr.msk.bf16.gmra.mrb[32].mxu0 %vm4257_vm3, %v4137_v52  ;;  %v12078_v60 = vpop.permute.xlu1 %12077  ;;  %v12406_v52 = vpack.i.bf16 %v1419_v42, %v1418_v47 }
 0x178   : > { %v12073_v53 = vpop.permute.xlu0 %12072  ;;  %v12080_v9 = vunpack.i.h.bf16 %v12078_v60  ;;  %v12079_v4 = vunpack.i.l.bf16 %v12078_v60 }
 0x179   : > { %12367 = vrot.lane.b32.xlu1 %v15667_v15, %s14691_s28  ;;  %v12075_v1 = vunpack.i.h.bf16 %v12073_v53  ;;  %v12074_v10 = vunpack.i.l.bf16 %v12073_v53  ;;  %v14498_v15 = vld [vmem:[%s15256_s27 + $0x138] sm:$0xff] }
 0x17a   : > { %12362 = vrot.lane.b32.xlu0 %v15625_v21, %s14691_s28  ;;  %v3567_v5 = vsel %vm3529_vm0, %v14498_v15, %v12065_v63  ;;  %v3566_v21 = vsel %vm3529_vm0, %v14499_v26, %v12064_v0  ;;  %v3765_v20 = vsel %vm3726_vm1, %v3568_v16, %v12079_v4  ;;  %v3766_v27 = vsel %vm3726_vm1, %v3569_v12, %v12080_v9  ;;  %v14503_v9 = vld [vmem:[%s15256_s27 + $0x150] sm:$0xff] }
 0x17b   : > { %v12088_v17 = vpop.permute.xlu1 %12087  ;;  %v3763_v29 = vsel %vm3726_vm1, %v3566_v21, %v12074_v10  ;;  %v3764_v30 = vsel %vm3726_vm1, %v3567_v5, %v12075_v1  ;;  %v15823_v63 = vpack.i.bf16 %v1420_v36, %v1419_v42  ;;  %v15825_v0 = vpack.i.bf16 %v1418_v47, %v1417_v49 }
 0x17c   : > { %v12090_v22 = vunpack.i.h.bf16 %v12088_v17  ;;  %v12089_v25 = vunpack.i.l.bf16 %v12088_v17  ;;  %v12083_v62 = vpop.permute.xlu0 %12082 }
 0x17d   : > { %v12085_v24 = vunpack.i.h.bf16 %v12083_v62  ;;  %v12084_v28 = vunpack.i.l.bf16 %v12083_v62  ;;  %12377 = vrot.lane.b32.xlu1 %v12376_v6, %s14690_s17  ;;  %v1423_v62 = vld [vmem:[%s15256_s27 + $0x358] sm:$0xff] }
 0x17e   : > { %v3962_v31 = vsel %vm3923_vm2, %v3765_v20, %v12089_v25  ;;  %v3963_v32 = vsel %vm3923_vm2, %v3766_v27, %v12090_v22  ;;  %12372 = vrot.lane.b32.xlu0 %v12371_v3, %s14690_s17  ;;  %v1424_v20 = vld [vmem:[%s15256_s27 + $0x360] sm:$0xff] }
 0x17f   : > { %v3960_v7 = vsel %vm3923_vm2, %v3763_v29, %v12084_v28  ;;  %v3961_v37 = vsel %vm3923_vm2, %v3764_v30, %v12085_v24  ;;  %v12098_v39 = vpop.permute.xlu1 %12097  ;;  %v4139_v35 = vpack.c.bf16 %v3963_v32, %v3962_v31  ;;  %v1421_v29 = vld [vmem:[%s15256_s27 + $0x348] sm:$0xff]  ;;  %v1422_v30 = vld [vmem:[%s15256_s27 + $0x350] sm:$0xff] }
 0x180   : > { %v12093_v41 = vpop.permute.xlu0 %12092  ;;  %v4138_v23 = vpack.c.bf16 %v3961_v37, %v3960_v7  ;;  %v12100_v43 = vunpack.i.h.bf16 %v12098_v39  ;;  %v12099_v45 = vunpack.i.l.bf16 %v12098_v39  ;;  %v15852_v37 = vld [vmem:[%s15256_s27 + $0x368] sm:$0xff]  ;;  %v12431_v42 = vpack.i.bf16 %v1422_v30, %v1421_v29 }
 0x181   : > { %12387 = vrot.lane.b32.xlu1 %v15786_v18, %s14692_s29  ;;  %v12095_v44 = vunpack.i.h.bf16 %v12093_v41  ;;  %v12094_v40 = vunpack.i.l.bf16 %v12093_v41  ;;  %v12436_v41 = vpack.i.bf16 %v1424_v20, %v1423_v62 }
 0x182   : > { %12382 = vrot.lane.b32.xlu0 %v15788_v19, %s14692_s29  ;;  %11439 = vmatprep.mubr.msk.bf16.mxu0 %vm4257_vm3, %v4138_v23  ;;  %v3573_v58 = vsel %vm3529_vm0, %v14500_v51, %v12100_v43  ;;  %v3572_v60 = vsel %vm3529_vm0, %v14501_v59, %v12099_v45  ;;  %v14504_v43 = vld [vmem:[%s15256_s27 + $0x190] sm:$0xff] }
 0x183   : > { %11440 = vmatmul.mubr.msk.bf16.gmra.mrb[36].mxu0 %vm4257_vm3, %v4139_v35  ;;  %v12108_v46 = vpop.permute.xlu1 %12107  ;;  %v3570_v4 = vsel %vm3529_vm0, %v14503_v9, %v12094_v40  ;;  %v15863_v40 = vpack.i.bf16 %v15852_v37, %v1424_v20 }
 0x184   : > { %v12103_v38 = vpop.permute.xlu0 %12102  ;;  %v12110_v55 = vunpack.i.h.bf16 %v12108_v46  ;;  %v12109_v56 = vunpack.i.l.bf16 %v12108_v46  ;;  %v14505_v46 = vld [vmem:[%s15256_s27 + $0x188] sm:$0xff] }
 0x185   : > { %12397 = vrot.lane.b32.xlu1 %v15708_v54, %s14691_s28  ;;  %v12105_v14 = vunpack.i.h.bf16 %v12103_v38  ;;  %v12104_v50 = vunpack.i.l.bf16 %v12103_v38  ;;  %v14502_v54 = vld [vmem:[%s15256_s27 + $0x158] sm:$0xff]  ;;  %v15865_v38 = vpack.i.bf16 %v1423_v62, %v1422_v30 }
 0x186   : > { %12392 = vrot.lane.b32.xlu0 %v15665_v2, %s14691_s28  ;;  %v3571_v53 = vsel %vm3529_vm0, %v14502_v54, %v12095_v44  ;;  %v3769_v1 = vsel %vm3726_vm1, %v3572_v60, %v12109_v56  ;;  %v3770_v10 = vsel %vm3726_vm1, %v3573_v58, %v12110_v55  ;;  %v14507_v55 = vld [vmem:[%s15256_s27 + $0x178] sm:$0xff] }
 0x187   : > { %v12118_v61 = vpop.permute.xlu1 %12117  ;;  %v3767_v12 = vsel %vm3726_vm1, %v3570_v4, %v12104_v50  ;;  %v3768_v13 = vsel %vm3726_vm1, %v3571_v53, %v12105_v14 }
 0x188   : > { %v12120_v2 = vunpack.i.h.bf16 %v12118_v61  ;;  %v12119_v6 = vunpack.i.l.bf16 %v12118_v61  ;;  %v12113_v8 = vpop.permute.xlu0 %12112 }
 0x189   : > { %v12115_v3 = vunpack.i.h.bf16 %v12113_v8  ;;  %v12114_v11 = vunpack.i.l.bf16 %v12113_v8  ;;  %12407 = vrot.lane.b32.xlu1 %v12406_v52, %s14690_s17 }
 0x18a   : > { %v3966_v16 = vsel %vm3923_vm2, %v3769_v1, %v12119_v6  ;;  %v3967_v17 = vsel %vm3923_vm2, %v3770_v10, %v12120_v2  ;;  %12402 = vrot.lane.b32.xlu0 %v12401_v57, %s14690_s17  ;;  %v1427_v1 = vld [vmem:[%s15256_s27 + $0x378] sm:$0xff]  ;;  %v1428_v10 = vld [vmem:[%s15256_s27 + $0x380] sm:$0xff] }
 0x18b   : > { %v3964_v15 = vsel %vm3923_vm2, %v3767_v12, %v12114_v11  ;;  %v3965_v5 = vsel %vm3923_vm2, %v3768_v13, %v12115_v3  ;;  %v12128_v26 = vpop.permute.xlu1 %12127  ;;  %v4141_v21 = vpack.c.bf16 %v3967_v17, %v3966_v16  ;;  %v1426_v13 = vld [vmem:[%s15256_s27 + $0x370] sm:$0xff] }
 0x18c   : > { %v12123_v22 = vpop.permute.xlu0 %12122  ;;  %v4140_v25 = vpack.c.bf16 %v3965_v5, %v3964_v15  ;;  %v12130_v27 = vunpack.i.h.bf16 %v12128_v26  ;;  %v12129_v24 = vunpack.i.l.bf16 %v12128_v26  ;;  %v15891_v5 = vld [vmem:[%s15256_s27 + $0x388] sm:$0xff]  ;;  %v12461_v20 = vpack.i.bf16 %v1426_v13, %v15852_v37 }
 0x18d   : > { %12417 = vrot.lane.b32.xlu1 %v15823_v63, %s14692_s29  ;;  %v12125_v31 = vunpack.i.h.bf16 %v12123_v22  ;;  %v12124_v32 = vunpack.i.l.bf16 %v12123_v22  ;;  %v12466_v22 = vpack.i.bf16 %v1428_v10, %v1427_v1 }
 0x18e   : > { %12412 = vrot.lane.b32.xlu0 %v15825_v0, %s14692_s29  ;;  %11443 = vmatprep.mubr.msk.bf16.mxu0 %vm4257_vm3, %v4140_v25  ;;  %v3577_v45 = vsel %vm3529_vm0, %v14504_v43, %v12130_v27  ;;  %v3576_v49 = vsel %vm3529_vm0, %v14505_v46, %v12129_v24  ;;  %v14508_v27 = vld [vmem:[%s15256_s27 + $0x1b0] sm:$0xff] }
 0x18f   : > { %11444 = vmatmul.mubr.msk.bf16.gmra.mrb[40].mxu0 %vm4257_vm3, %v4141_v21  ;;  %v12138_v28 = vpop.permute.xlu1 %12137  ;;  %v3574_v56 = vsel %vm3529_vm0, %v14507_v55, %v12124_v32  ;;  %v15905_v32 = vpack.i.bf16 %v1427_v1, %v1426_v13 }
 0x190   : > { %v12133_v7 = vpop.permute.xlu0 %12132  ;;  %v12140_v39 = vunpack.i.h.bf16 %v12138_v28  ;;  %v12139_v35 = vunpack.i.l.bf16 %v12138_v28  ;;  %v14509_v28 = vld [vmem:[%s15256_s27 + $0x1a8] sm:$0xff] }
 0x191   : > { %12427 = vrot.lane.b32.xlu1 %v15748_v34, %s14691_s28  ;;  %v12135_v23 = vunpack.i.h.bf16 %v12133_v7  ;;  %v12134_v47 = vunpack.i.l.bf16 %v12133_v7  ;;  %v14506_v34 = vld [vmem:[%s15256_s27 + $0x180] sm:$0xff] }
 0x192   : > { %12422 = vrot.lane.b32.xlu0 %v15706_v48, %s14691_s28  ;;  %v3575_v36 = vsel %vm3529_vm0, %v14506_v34, %v12125_v31  ;;  %v3773_v50 = vsel %vm3726_vm1, %v3576_v49, %v12139_v35  ;;  %v3774_v57 = vsel %vm3726_vm1, %v3577_v45, %v12140_v39  ;;  %v15903_v31 = vpack.i.bf16 %v15891_v5, %v1428_v10  ;;  %v14511_v39 = vld [vmem:[%s15256_s27 + $0x198] sm:$0xff]  ;;  %v14512_v10 = vld [vmem:[%s15256_s27 + $0x1d0] sm:$0xff] }
 0x193   : > { %v12148_v44 = vpop.permute.xlu1 %12147  ;;  %v3771_v59 = vsel %vm3726_vm1, %v3574_v56, %v12134_v47  ;;  %v3772_v60 = vsel %vm3726_vm1, %v3575_v36, %v12135_v23 }
 0x194   : > { %v12150_v48 = vunpack.i.h.bf16 %v12148_v44  ;;  %v12149_v52 = vunpack.i.l.bf16 %v12148_v44  ;;  %v12143_v14 = vpop.permute.xlu0 %12142 }
 0x195   : > { %v12145_v51 = vunpack.i.h.bf16 %v12143_v14  ;;  %v12144_v58 = vunpack.i.l.bf16 %v12143_v14  ;;  %12437 = vrot.lane.b32.xlu1 %v12436_v41, %s14690_s17  ;;  %v1431_v14 = vld [vmem:[%s15256_s27 + $0x398] sm:$0xff] }
 0x196   : > { %v3970_v61 = vsel %vm3923_vm2, %v3773_v50, %v12149_v52  ;;  %v3971_v54 = vsel %vm3923_vm2, %v3774_v57, %v12150_v48  ;;  %12432 = vrot.lane.b32.xlu0 %v12431_v42, %s14690_s17  ;;  %v1432_v50 = vld [vmem:[%s15256_s27 + $0x3a0] sm:$0xff] }
 0x197   : > { %v3968_v53 = vsel %vm3923_vm2, %v3771_v59, %v12144_v58  ;;  %v3969_v9 = vsel %vm3923_vm2, %v3772_v60, %v12145_v51  ;;  %v12158_v4 = vpop.permute.xlu1 %12157  ;;  %v4143_v2 = vpack.c.bf16 %v3971_v54, %v3970_v61  ;;  %v1430_v59 = vld [vmem:[%s15256_s27 + $0x390] sm:$0xff] }
 0x198   : > { %v12153_v6 = vpop.permute.xlu0 %12152  ;;  %v4142_v8 = vpack.c.bf16 %v3969_v9, %v3968_v53  ;;  %v12160_v3 = vunpack.i.h.bf16 %v12158_v4  ;;  %v12159_v11 = vunpack.i.l.bf16 %v12158_v4  ;;  %v15931_v53 = vld [vmem:[%s15256_s27 + $0x3a8] sm:$0xff]  ;;  %v12491_v1 = vpack.i.bf16 %v1430_v59, %v15891_v5 }
 0x199   : > { %12447 = vrot.lane.b32.xlu1 %v15863_v40, %s14692_s29  ;;  %v12155_v16 = vunpack.i.h.bf16 %v12153_v6  ;;  %v12154_v17 = vunpack.i.l.bf16 %v12153_v6 }
 0x19a   : > { %12442 = vrot.lane.b32.xlu0 %v15865_v38, %s14692_s29  ;;  %11447 = vmatprep.mubr.msk.bf16.mxu0 %vm4257_vm3, %v4142_v8  ;;  %v3581_v24 = vsel %vm3529_vm0, %v14508_v27, %v12160_v3  ;;  %v3580_v29 = vsel %vm3529_vm0, %v14509_v28, %v12159_v11  ;;  %v14513_v11 = vld [vmem:[%s15256_s27 + $0x1c8] sm:$0xff] }
 0x19b   : > { %11448 = vmatmul.mubr.msk.bf16.gmra.mrb[44].mxu0 %vm4257_vm3, %v4143_v2  ;;  %v12168_v12 = vpop.permute.xlu1 %12167  ;;  %v12496_v2 = vpack.i.bf16 %v1432_v50, %v1431_v14 }
 0x19c   : > { %v12163_v15 = vpop.permute.xlu0 %12162  ;;  %v12170_v26 = vunpack.i.h.bf16 %v12168_v12  ;;  %v12169_v21 = vunpack.i.l.bf16 %v12168_v12 }
 0x19d   : > { %12457 = vrot.lane.b32.xlu1 %v15788_v19, %s14691_s28  ;;  %v12165_v25 = vunpack.i.h.bf16 %v12163_v15  ;;  %v12164_v62 = vunpack.i.l.bf16 %v12163_v15  ;;  %v14510_v19 = vld [vmem:[%s15256_s27 + $0x1a0] sm:$0xff] }
 0x19e   : > { %12452 = vrot.lane.b32.xlu0 %v15746_v33, %s14691_s28  ;;  %v3579_v7 = vsel %vm3529_vm0, %v14510_v19, %v12155_v16  ;;  %v3578_v33 = vsel %vm3529_vm0, %v14511_v39, %v12154_v17  ;;  %v3777_v23 = vsel %vm3726_vm1, %v3580_v29, %v12169_v21  ;;  %v3778_v47 = vsel %vm3726_vm1, %v3581_v24, %v12170_v26  ;;  %v14515_v26 = vld [vmem:[%s15256_s27 + $0x1b8] sm:$0xff] }
 0x19f   : > { %v12178_v30 = vpop.permute.xlu1 %12177  ;;  %v3775_v45 = vsel %vm3726_vm1, %v3578_v33, %v12164_v62  ;;  %v3776_v46 = vsel %vm3726_vm1, %v3579_v7, %v12165_v25  ;;  %v15943_v16 = vpack.i.bf16 %v15931_v53, %v1432_v50  ;;  %v15945_v17 = vpack.i.bf16 %v1431_v14, %v1430_v59 }
 0x1a0   : > { %v12180_v35 = vunpack.i.h.bf16 %v12178_v30  ;;  %v12179_v37 = vunpack.i.l.bf16 %v12178_v30  ;;  %v12173_v41 = vpop.permute.xlu0 %12172 }
 0x1a1   : > { %v12175_v42 = vunpack.i.h.bf16 %v12173_v41  ;;  %v12174_v43 = vunpack.i.l.bf16 %v12173_v41  ;;  %12467 = vrot.lane.b32.xlu1 %v12466_v22, %s14690_s17  ;;  %v1436_v41 = vld [vmem:[%s15256_s27 + $0x3c0] sm:$0xff] }
 0x1a2   : > { %v3974_v49 = vsel %vm3923_vm2, %v3777_v23, %v12179_v37  ;;  %v3975_v44 = vsel %vm3923_vm2, %v3778_v47, %v12180_v35  ;;  %12462 = vrot.lane.b32.xlu0 %v12461_v20, %s14690_s17  ;;  %v1437_v23 = vld [vmem:[%s15256_s27 + $0x3c8] sm:$0xff] }
 0x1a3   : > { %v3972_v34 = vsel %vm3923_vm2, %v3775_v45, %v12174_v43  ;;  %v3973_v36 = vsel %vm3923_vm2, %v3776_v46, %v12175_v42  ;;  %v12188_v55 = vpop.permute.xlu1 %12187  ;;  %v4145_v56 = vpack.c.bf16 %v3975_v44, %v3974_v49  ;;  %v1434_v45 = vld [vmem:[%s15256_s27 + $0x3b0] sm:$0xff] }
 0x1a4   : > { %v12183_v48 = vpop.permute.xlu0 %12182  ;;  %v4144_v52 = vpack.c.bf16 %v3973_v36, %v3972_v34  ;;  %v12190_v57 = vunpack.i.h.bf16 %v12188_v55  ;;  %v12189_v51 = vunpack.i.l.bf16 %v12188_v55  ;;  %v15971_v34 = vld [vmem:[%s15256_s27 + $0x3d0] sm:$0xff]  ;;  %v1435_v36 = vld [vmem:[%s15256_s27 + $0x3b8] sm:$0xff]  ;;  %v12521_v50 = vpack.i.bf16 %v1434_v45, %v15931_v53 }
 0x1a5   : > { %12477 = vrot.lane.b32.xlu1 %v15903_v31, %s14692_s29  ;;  %v12185_v60 = vunpack.i.h.bf16 %v12183_v48  ;;  %v12184_v61 = vunpack.i.l.bf16 %v12183_v48  ;;  %v12526_v48 = vpack.i.bf16 %v1437_v23, %v1436_v41 }
 0x1a6   : > { %12472 = vrot.lane.b32.xlu0 %v15905_v32, %s14692_s29  ;;  %11451 = vmatprep.mubr.msk.bf16.mxu0 %vm4257_vm3, %v4144_v52  ;;  %v3585_v3 = vsel %vm3529_vm0, %v14512_v10, %v12190_v57  ;;  %v3584_v12 = vsel %vm3529_vm0, %v14513_v11, %v12189_v51  ;;  %v14516_v57 = vld [vmem:[%s15256_s27 + $0x1f8] sm:$0xff] }
 0x1a7   : > { %11452 = vmatmul.mubr.msk.bf16.gmra.mrb[48].mxu0 %vm4257_vm3, %v4145_v56  ;;  %v12198_v58 = vpop.permute.xlu1 %12197 }
 0x1a8   : > { %v12193_v54 = vpop.permute.xlu0 %12192  ;;  %v12200_v9 = vunpack.i.h.bf16 %v12198_v58  ;;  %v12199_v4 = vunpack.i.l.bf16 %v12198_v58  ;;  %v14517_v58 = vld [vmem:[%s15256_s27 + $0x1f0] sm:$0xff] }
 0x1a9   : > { %12487 = vrot.lane.b32.xlu1 %v15825_v0, %s14691_s28  ;;  %v12195_v6 = vunpack.i.h.bf16 %v12193_v54  ;;  %v12194_v8 = vunpack.i.l.bf16 %v12193_v54  ;;  %v14514_v0 = vld [vmem:[%s15256_s27 + $0x1c0] sm:$0xff]  ;;  %v15986_v54 = vpack.i.bf16 %v1435_v36, %v1434_v45 }
 0x1aa   : > { %12482 = vrot.lane.b32.xlu0 %v15786_v18, %s14691_s28  ;;  %v3583_v15 = vsel %vm3529_vm0, %v14514_v0, %v12185_v60  ;;  %v3582_v18 = vsel %vm3529_vm0, %v14515_v26, %v12184_v61  ;;  %v3781_v25 = vsel %vm3726_vm1, %v3584_v12, %v12199_v4  ;;  %v3782_v62 = vsel %vm3726_vm1, %v3585_v3, %v12200_v9  ;;  %v14519_v4 = vld [vmem:[%s15256_s27 + $0x1e0] sm:$0xff] }
 0x1ab   : > { %v12208_v13 = vpop.permute.xlu1 %12207  ;;  %v3779_v24 = vsel %vm3726_vm1, %v3582_v18, %v12194_v8  ;;  %v3780_v28 = vsel %vm3726_vm1, %v3583_v15, %v12195_v6  ;;  %v15984_v61 = vpack.i.bf16 %v15971_v34, %v1437_v23 }
 0x1ac   : > { %v12210_v21 = vunpack.i.h.bf16 %v12208_v13  ;;  %v12209_v5 = vunpack.i.l.bf16 %v12208_v13  ;;  %v12203_v22 = vpop.permute.xlu0 %12202 }
 0x1ad   : > { %v12205_v20 = vunpack.i.h.bf16 %v12203_v22  ;;  %v12204_v27 = vunpack.i.l.bf16 %v12203_v22  ;;  %12497 = vrot.lane.b32.xlu1 %v12496_v2, %s14690_s17 }
 0x1ae   : > { %v3978_v29 = vsel %vm3923_vm2, %v3781_v25, %v12209_v5  ;;  %v3979_v30 = vsel %vm3923_vm2, %v3782_v62, %v12210_v21  ;;  %12492 = vrot.lane.b32.xlu0 %v12491_v1, %s14690_s17  ;;  %v1440_v25 = vld [vmem:[%s15256_s27 + $0x3e0] sm:$0xff]  ;;  %v1441_v62 = vld [vmem:[%s15256_s27 + $0x3e8] sm:$0xff] }
 0x1af   : > { %v3976_v19 = vsel %vm3923_vm2, %v3779_v24, %v12204_v27  ;;  %v3977_v7 = vsel %vm3923_vm2, %v3780_v28, %v12205_v20  ;;  %v12218_v39 = vpop.permute.xlu1 %12217  ;;  %v4147_v33 = vpack.c.bf16 %v3979_v30, %v3978_v29  ;;  %v1439_v28 = vld [vmem:[%s15256_s27 + $0x3d8] sm:$0xff] }
 0x1b0   : > { %v12213_v35 = vpop.permute.xlu0 %12212  ;;  %v4146_v37 = vpack.c.bf16 %v3977_v7, %v3976_v19  ;;  %v12220_v47 = vunpack.i.h.bf16 %v12218_v39  ;;  %v12219_v42 = vunpack.i.l.bf16 %v12218_v39  ;;  %v16012_v7 = vld [vmem:[%s15256_s27 + $0x3f0] sm:$0xff]  ;;  %v12551_v23 = vpack.i.bf16 %v1439_v28, %v15971_v34 }
 0x1b1   : > { %12507 = vrot.lane.b32.xlu1 %v15943_v16, %s14692_s29  ;;  %v12215_v46 = vunpack.i.h.bf16 %v12213_v35  ;;  %v12214_v49 = vunpack.i.l.bf16 %v12213_v35  ;;  %v12556_v35 = vpack.i.bf16 %v1441_v62, %v1440_v25 }
 0x1b2   : > { %12502 = vrot.lane.b32.xlu0 %v15945_v17, %s14692_s29  ;;  %11455 = vmatprep.mubr.msk.bf16.mxu0 %vm4257_vm3, %v4146_v37  ;;  %v3589_v51 = vsel %vm3529_vm0, %v14516_v57, %v12220_v47  ;;  %v3588_v59 = vsel %vm3529_vm0, %v14517_v58, %v12219_v42  ;;  %v14520_v47 = vld [vmem:[%s15256_s27 + $0x218] sm:$0xff] }
 0x1b3   : > { %11456 = vmatmul.mubr.msk.bf16.gmra.mrb[52].mxu0 %vm4257_vm3, %v4147_v33  ;;  %v12228_v43 = vpop.permute.xlu1 %12227 }
 0x1b4   : > { %v12223_v44 = vpop.permute.xlu0 %12222  ;;  %v12230_v55 = vunpack.i.h.bf16 %v12228_v43  ;;  %v12229_v56 = vunpack.i.l.bf16 %v12228_v43  ;;  %v14521_v43 = vld [vmem:[%s15256_s27 + $0x210] sm:$0xff] }
 0x1b5   : > { %12517 = vrot.lane.b32.xlu1 %v15865_v38, %s14691_s28  ;;  %v12225_v52 = vunpack.i.h.bf16 %v12223_v44  ;;  %v12224_v14 = vunpack.i.l.bf16 %v12223_v44  ;;  %v14518_v38 = vld [vmem:[%s15256_s27 + $0x1e8] sm:$0xff]  ;;  %v16026_v44 = vpack.i.bf16 %v1440_v25, %v1439_v28 }
 0x1b6   : > { %12512 = vrot.lane.b32.xlu0 %v15823_v63, %s14691_s28  ;;  %v3587_v9 = vsel %vm3529_vm0, %v14518_v38, %v12215_v46  ;;  %v3586_v63 = vsel %vm3529_vm0, %v14519_v4, %v12214_v49  ;;  %v3785_v8 = vsel %vm3726_vm1, %v3588_v59, %v12229_v56  ;;  %v3786_v1 = vsel %vm3726_vm1, %v3589_v51, %v12230_v55  ;;  %v14523_v55 = vld [vmem:[%s15256_s27 + $0x200] sm:$0xff] }
 0x1b7   : > { %v12238_v60 = vpop.permute.xlu1 %12237  ;;  %v3783_v11 = vsel %vm3726_vm1, %v3586_v63, %v12224_v14  ;;  %v3784_v12 = vsel %vm3726_vm1, %v3587_v9, %v12225_v52  ;;  %v16024_v49 = vpack.i.bf16 %v16012_v7, %v1441_v62  ;;  %v14524_v62 = vld [vmem:[%s15256_s27 + $0x238] sm:$0xff] }
 0x1b8   : > { %v12240_v2 = vunpack.i.h.bf16 %v12238_v60  ;;  %v12239_v53 = vunpack.i.l.bf16 %v12238_v60  ;;  %v12233_v6 = vpop.permute.xlu0 %12232 }
 0x1b9   : > { %v12235_v10 = vunpack.i.h.bf16 %v12233_v6  ;;  %v12234_v3 = vunpack.i.l.bf16 %v12233_v6  ;;  %12527 = vrot.lane.b32.xlu1 %v12526_v48, %s14690_s17  ;;  %v1444_v6 = vld [vmem:[%s15256_s27 + $0x400] sm:$0xff] }
 0x1ba   : > { %v3982_v13 = vsel %vm3923_vm2, %v3785_v8, %v12239_v53  ;;  %v3983_v0 = vsel %vm3923_vm2, %v3786_v1, %v12240_v2  ;;  %12522 = vrot.lane.b32.xlu0 %v12521_v50, %s14690_s17  ;;  %v1445_v8 = vld [vmem:[%s15256_s27 + $0x408] sm:$0xff] }
 0x1bb   : > { %v3980_v15 = vsel %vm3923_vm2, %v3783_v11, %v12234_v3  ;;  %v3981_v26 = vsel %vm3923_vm2, %v3784_v12, %v12235_v10  ;;  %v12248_v18 = vpop.permute.xlu1 %12247  ;;  %v4149_v21 = vpack.c.bf16 %v3983_v0, %v3982_v13  ;;  %v1443_v11 = vld [vmem:[%s15256_s27 + $0x3f8] sm:$0xff] }
 0x1bc   : > { %v12243_v5 = vpop.permute.xlu0 %12242  ;;  %v4148_v22 = vpack.c.bf16 %v3981_v26, %v3980_v15  ;;  %v12250_v20 = vunpack.i.h.bf16 %v12248_v18  ;;  %v12249_v27 = vunpack.i.l.bf16 %v12248_v18  ;;  %v16052_v15 = vld [vmem:[%s15256_s27 + $0x410] sm:$0xff]  ;;  %v12581_v25 = vpack.i.bf16 %v1443_v11, %v16012_v7 }
 0x1bd   : > { %12537 = vrot.lane.b32.xlu1 %v15984_v61, %s14692_s29  ;;  %v12245_v29 = vunpack.i.h.bf16 %v12243_v5  ;;  %v12244_v30 = vunpack.i.l.bf16 %v12243_v5 }
 0x1be   : > { %12532 = vrot.lane.b32.xlu0 %v15986_v54, %s14692_s29  ;;  %11459 = vmatprep.mubr.msk.bf16.mxu0 %vm4257_vm3, %v4148_v22  ;;  %v3593_v42 = vsel %vm3529_vm0, %v14520_v47, %v12250_v20  ;;  %v3592_v45 = vsel %vm3529_vm0, %v14521_v43, %v12249_v27  ;;  %v14525_v27 = vld [vmem:[%s15256_s27 + $0x230] sm:$0xff] }
 0x1bf   : > { %11460 = vmatmul.mubr.msk.bf16.gmra.mrb[56].mxu0 %vm4257_vm3, %v4149_v21  ;;  %v12258_v24 = vpop.permute.xlu1 %12257  ;;  %v12586_v21 = vpack.i.bf16 %v1445_v8, %v1444_v6 }
 0x1c0   : > { %v12253_v19 = vpop.permute.xlu0 %12252  ;;  %v12260_v39 = vunpack.i.h.bf16 %v12258_v24  ;;  %v12259_v33 = vunpack.i.l.bf16 %v12258_v24 }
 0x1c1   : > { %12547 = vrot.lane.b32.xlu1 %v15905_v32, %s14691_s28  ;;  %v12255_v37 = vunpack.i.h.bf16 %v12253_v19  ;;  %v12254_v41 = vunpack.i.l.bf16 %v12253_v19  ;;  %v14522_v32 = vld [vmem:[%s15256_s27 + $0x208] sm:$0xff] }
 0x1c2   : > { %12542 = vrot.lane.b32.xlu0 %v15863_v40, %s14691_s28  ;;  %v3591_v36 = vsel %vm3529_vm0, %v14522_v32, %v12245_v29  ;;  %v3590_v40 = vsel %vm3529_vm0, %v14523_v55, %v12244_v30  ;;  %v3789_v52 = vsel %vm3726_vm1, %v3592_v45, %v12259_v33  ;;  %v3790_v14 = vsel %vm3726_vm1, %v3593_v42, %v12260_v39  ;;  %v14527_v39 = vld [vmem:[%s15256_s27 + $0x220] sm:$0xff] }
 0x1c3   : > { %v12268_v46 = vpop.permute.xlu1 %12267  ;;  %v3787_v51 = vsel %vm3726_vm1, %v3590_v40, %v12254_v41  ;;  %v3788_v58 = vsel %vm3726_vm1, %v3591_v36, %v12255_v37  ;;  %v16064_v29 = vpack.i.bf16 %v16052_v15, %v1445_v8  ;;  %v16066_v30 = vpack.i.bf16 %v1444_v6, %v1443_v11  ;;  %v14528_v8 = vld [vmem:[%s15256_s27 + $0x260] sm:$0xff] }
 0x1c4   : > { %v12270_v56 = vunpack.i.h.bf16 %v12268_v46  ;;  %v12269_v34 = vunpack.i.l.bf16 %v12268_v46  ;;  %v12263_v48 = vpop.permute.xlu0 %12262 }
 0x1c5   : > { %v12265_v50 = vunpack.i.h.bf16 %v12263_v48  ;;  %v12264_v57 = vunpack.i.l.bf16 %v12263_v48  ;;  %12557 = vrot.lane.b32.xlu1 %v12556_v35, %s14690_s17  ;;  %v1448_v48 = vld [vmem:[%s15256_s27 + $0x420] sm:$0xff] }
 0x1c6   : > { %v3986_v59 = vsel %vm3923_vm2, %v3789_v52, %v12269_v34  ;;  %v3987_v60 = vsel %vm3923_vm2, %v3790_v14, %v12270_v56  ;;  %12552 = vrot.lane.b32.xlu0 %v12551_v23, %s14690_s17  ;;  %v1449_v52 = vld [vmem:[%s15256_s27 + $0x428] sm:$0xff] }
 0x1c7   : > { %v3984_v38 = vsel %vm3923_vm2, %v3787_v51, %v12264_v57  ;;  %v3985_v9 = vsel %vm3923_vm2, %v3788_v58, %v12265_v50  ;;  %v12278_v4 = vpop.permute.xlu1 %12277  ;;  %v4151_v63 = vpack.c.bf16 %v3987_v60, %v3986_v59  ;;  %v1447_v51 = vld [vmem:[%s15256_s27 + $0x418] sm:$0xff] }
 0x1c8   : > { %v12273_v2 = vpop.permute.xlu0 %12272  ;;  %v4150_v53 = vpack.c.bf16 %v3985_v9, %v3984_v38  ;;  %v12280_v1 = vunpack.i.h.bf16 %v12278_v4  ;;  %v12279_v10 = vunpack.i.l.bf16 %v12278_v4  ;;  %v1450_v38 = vld [vmem:[%s15256_s27 + $0x430] sm:$0xff]  ;;  %v12611_v6 = vpack.i.bf16 %v1447_v51, %v16052_v15 }
 0x1c9   : > { %12567 = vrot.lane.b32.xlu1 %v16024_v49, %s14692_s29  ;;  %v12275_v12 = vunpack.i.h.bf16 %v12273_v2  ;;  %v12274_v13 = vunpack.i.l.bf16 %v12273_v2 }
 0x1ca   : > { %12562 = vrot.lane.b32.xlu0 %v16026_v44, %s14692_s29  ;;  %11463 = vmatprep.mubr.msk.bf16.mxu0 %vm4257_vm3, %v4150_v53  ;;  %v3597_v20 = vsel %vm3529_vm0, %v14524_v62, %v12280_v1  ;;  %v3596_v24 = vsel %vm3529_vm0, %v14525_v27, %v12279_v10  ;;  %v14529_v10 = vld [vmem:[%s15256_s27 + $0x258] sm:$0xff] }
 0x1cb   : > { %11464 = vmatmul.mubr.msk.bf16.gmra.mrb[60].mxu0 %vm4257_vm3, %v4151_v63  ;;  %v12288_v3 = vpop.permute.xlu1 %12287  ;;  %v12616_v63 = vpack.i.bf16 %v1449_v52, %v1448_v48 }
 0x1cc   : > { %v12283_v0 = vpop.permute.xlu0 %12282  ;;  %v12290_v26 = vunpack.i.h.bf16 %v12288_v3  ;;  %v12289_v18 = vunpack.i.l.bf16 %v12288_v3 }
 0x1cd   : > { %12577 = vrot.lane.b32.xlu1 %v15945_v17, %s14691_s28  ;;  %v12285_v5 = vunpack.i.h.bf16 %v12283_v0  ;;  %v12284_v22 = vunpack.i.l.bf16 %v12283_v0  ;;  %v14526_v17 = vld [vmem:[%s15256_s27 + $0x228] sm:$0xff] }
 0x1ce   : > { %12572 = vrot.lane.b32.xlu0 %v15903_v31, %s14691_s28  ;;  %v3595_v19 = vsel %vm3529_vm0, %v14526_v17, %v12275_v12  ;;  %v3594_v31 = vsel %vm3529_vm0, %v14527_v39, %v12274_v13  ;;  %v3793_v37 = vsel %vm3726_vm1, %v3596_v24, %v12289_v18  ;;  %v3794_v41 = vsel %vm3726_vm1, %v3597_v20, %v12290_v26  ;;  %v14531_v26 = vld [vmem:[%s15256_s27 + $0x240] sm:$0xff] }
 0x1cf   : > { %v12298_v28 = vpop.permute.xlu1 %12297  ;;  %v3791_v42 = vsel %vm3726_vm1, %v3594_v31, %v12284_v22  ;;  %v3792_v43 = vsel %vm3726_vm1, %v3595_v19, %v12285_v5  ;;  %v16101_v12 = vpack.i.bf16 %v1450_v38, %v1449_v52  ;;  %v16103_v13 = vpack.i.bf16 %v1448_v48, %v1447_v51 }
 0x1d0   : > { %v12300_v33 = vunpack.i.h.bf16 %v12298_v28  ;;  %v12299_v7 = vunpack.i.l.bf16 %v12298_v28  ;;  %v12293_v35 = vpop.permute.xlu0 %12292 }
 0x1d1   : > { %v12295_v23 = vunpack.i.h.bf16 %v12293_v35  ;;  %v12294_v47 = vunpack.i.l.bf16 %v12293_v35  ;;  %12587 = vrot.lane.b32.xlu1 %v12586_v21, %s14690_s17  ;;  %v1453_v35 = vld [vmem:[%s15256_s27 + $0x448] sm:$0xff] }
 0x1d2   : > { %v3990_v45 = vsel %vm3923_vm2, %v3793_v37, %v12299_v7  ;;  %v3991_v46 = vsel %vm3923_vm2, %v3794_v41, %v12300_v33  ;;  %12582 = vrot.lane.b32.xlu0 %v12581_v25, %s14690_s17  ;;  %v1454_v37 = vld [vmem:[%s15256_s27 + $0x450] sm:$0xff] }
 0x1d3   : > { %v3988_v32 = vsel %vm3923_vm2, %v3791_v42, %v12294_v47  ;;  %v3989_v36 = vsel %vm3923_vm2, %v3792_v43, %v12295_v23  ;;  %v12308_v55 = vpop.permute.xlu1 %12307  ;;  %v4153_v40 = vpack.c.bf16 %v3991_v46, %v3990_v45  ;;  %v1451_v42 = vld [vmem:[%s15256_s27 + $0x438] sm:$0xff]  ;;  %v1452_v43 = vld [vmem:[%s15256_s27 + $0x440] sm:$0xff] }
 0x1d4   : > { %v12303_v56 = vpop.permute.xlu0 %12302  ;;  %v4152_v34 = vpack.c.bf16 %v3989_v36, %v3988_v32  ;;  %v12310_v14 = vunpack.i.h.bf16 %v12308_v55  ;;  %v12309_v50 = vunpack.i.l.bf16 %v12308_v55  ;;  %v16130_v36 = vld [vmem:[%s15256_s27 + $0x458] sm:$0xff]  ;;  %v12641_v52 = vpack.i.bf16 %v1452_v43, %v1451_v42 }
 0x1d5   : > { %12597 = vrot.lane.b32.xlu1 %v16064_v29, %s14692_s29  ;;  %v12305_v58 = vunpack.i.h.bf16 %v12303_v56  ;;  %v12304_v59 = vunpack.i.l.bf16 %v12303_v56  ;;  %v12646_v56 = vpack.i.bf16 %v1454_v37, %v1453_v35 }
 0x1d6   : > { %12592 = vrot.lane.b32.xlu0 %v16066_v30, %s14692_s29  ;;  %11467 = vmatprep.mubr.msk.bf16.mxu0 %vm4257_vm3, %v4152_v34  ;;  %v3601_v1 = vsel %vm3529_vm0, %v14528_v8, %v12310_v14  ;;  %v3600_v3 = vsel %vm3529_vm0, %v14529_v10, %v12309_v50  ;;  %v14532_v14 = vld [vmem:[%s15256_s27 + $0x280] sm:$0xff] }
 0x1d7   : > { %11468 = vmatmul.mubr.msk.bf16.gmra.mrb[64].mxu0 %vm4257_vm3, %v4153_v40  ;;  %v12318_v57 = vpop.permute.xlu1 %12317  ;;  %v3598_v18 = vsel %vm3529_vm0, %v14531_v26, %v12304_v59  ;;  %v16141_v59 = vpack.i.bf16 %v16130_v36, %v1454_v37 }
 0x1d8   : > { %v12313_v60 = vpop.permute.xlu0 %12312  ;;  %v12320_v9 = vunpack.i.h.bf16 %v12318_v57  ;;  %v12319_v4 = vunpack.i.l.bf16 %v12318_v57  ;;  %v14533_v57 = vld [vmem:[%s15256_s27 + $0x278] sm:$0xff] }
 0x1d9   : > { %12607 = vrot.lane.b32.xlu1 %v15986_v54, %s14691_s28  ;;  %v12315_v2 = vunpack.i.h.bf16 %v12313_v60  ;;  %v12314_v53 = vunpack.i.l.bf16 %v12313_v60  ;;  %v14530_v54 = vld [vmem:[%s15256_s27 + $0x248] sm:$0xff]  ;;  %v16143_v60 = vpack.i.bf16 %v1453_v35, %v1452_v43 }
 0x1da   : > { %12602 = vrot.lane.b32.xlu0 %v15943_v16, %s14691_s28  ;;  %v3599_v0 = vsel %vm3529_vm0, %v14530_v54, %v12305_v58  ;;  %v3797_v5 = vsel %vm3726_vm1, %v3600_v3, %v12319_v4  ;;  %v3798_v22 = vsel %vm3726_vm1, %v3601_v1, %v12320_v9  ;;  %v14535_v9 = vld [vmem:[%s15256_s27 + $0x268] sm:$0xff] }
 0x1db   : > { %v12328_v11 = vpop.permute.xlu1 %12327  ;;  %v3795_v20 = vsel %vm3726_vm1, %v3598_v18, %v12314_v53  ;;  %v3796_v27 = vsel %vm3726_vm1, %v3599_v0, %v12315_v2 }
 0x1dc   : > { %v12330_v16 = vunpack.i.h.bf16 %v12328_v11  ;;  %v12329_v21 = vunpack.i.l.bf16 %v12328_v11  ;;  %v12323_v15 = vpop.permute.xlu0 %12322 }
 0x1dd   : > { %v12325_v25 = vunpack.i.h.bf16 %v12323_v15  ;;  %v12324_v62 = vunpack.i.l.bf16 %v12323_v15  ;;  %12617 = vrot.lane.b32.xlu1 %v12616_v63, %s14690_s17 }
 0x1de   : > { %v3994_v24 = vsel %vm3923_vm2, %v3797_v5, %v12329_v21  ;;  %v3995_v28 = vsel %vm3923_vm2, %v3798_v22, %v12330_v16  ;;  %12612 = vrot.lane.b32.xlu0 %v12611_v6, %s14690_s17  ;;  %v16166_v5 = vld [vmem:[%s20516_s2] ss:$0 sm:$0xff] }
 0x1df   : > { %v3992_v17 = vsel %vm3923_vm2, %v3795_v20, %v12324_v62  ;;  %v3993_v19 = vsel %vm3923_vm2, %v3796_v27, %v12325_v25  ;;  %v12338_v39 = vpop.permute.xlu1 %12337  ;;  %v4155_v31 = vpack.c.bf16 %v3995_v28, %v3994_v24  ;;  %v1457_v28 = vld [vmem:[%s15256_s27 + $0x468] sm:$0xff] }
 0x1e0   : > { %v12333_v33 = vpop.permute.xlu0 %12332  ;;  %v4154_v7 = vpack.c.bf16 %v3993_v19, %v3992_v17  ;;  %v12340_v41 = vunpack.i.h.bf16 %v12338_v39  ;;  %v12339_v23 = vunpack.i.l.bf16 %v12338_v39  ;;  %v1458_v17 = vld [vmem:[%s15256_s27 + $0x470] sm:$0xff] }
 0x1e1   : > { %12627 = vrot.lane.b32.xlu1 %v16101_v12, %s14692_s29  ;;  %v12335_v45 = vunpack.i.h.bf16 %v12333_v33  ;;  %v12334_v46 = vunpack.i.l.bf16 %v12333_v33 }
 0x1e2   : > { %12622 = vrot.lane.b32.xlu0 %v16103_v13, %s14692_s29  ;;  %11471 = vmatprep.mubr.msk.bf16.mxu0 %vm4257_vm3, %v4154_v7  ;;  %v3605_v50 = vsel %vm3529_vm0, %v14532_v14, %v12340_v41  ;;  %v3604_v51 = vsel %vm3529_vm0, %v14533_v57, %v12339_v23  ;;  %v1456_v7 = vld [vmem:[%s15256_s27 + $0x460] sm:$0xff]  ;;  %v14538_v57 = vld [vmem:[%s15256_s27 + $0x290] sm:$0xff] }
 0x1e3   : > { %11472 = vmatmul.mubr.msk.bf16.gmra.mrb[68].mxu0 %vm4257_vm3, %v4155_v31  ;;  %v12348_v47 = vpop.permute.xlu1 %12347  ;;  %v3602_v4 = vsel %vm3529_vm0, %v14535_v9, %v12334_v46 }
 0x1e4   : > { %v12343_v32 = vpop.permute.xlu0 %12342  ;;  %v12350_v55 = vunpack.i.h.bf16 %v12348_v47  ;;  %v12349_v40 = vunpack.i.l.bf16 %v12348_v47  ;;  %v16183_v47 = vld [vmem:[%s15256_s27 + $0x478] sm:$0xff] }
 0x1e5   : > { %12637 = vrot.lane.b32.xlu1 %v16026_v44, %s14691_s28  ;;  %v12345_v34 = vunpack.i.h.bf16 %v12343_v32  ;;  %v12344_v48 = vunpack.i.l.bf16 %v12343_v32  ;;  %v14534_v44 = vld [vmem:[%s15256_s27 + $0x270] sm:$0xff]  ;;  %v16199_v14 = vpack.i.bf16 %v16183_v47, %v1458_v17 }
 0x1e6   : > { %12632 = vrot.lane.b32.xlu0 %v15984_v61, %s14691_s28  ;;  %v3603_v38 = vsel %vm3529_vm0, %v14534_v44, %v12335_v45  ;;  %v3801_v53 = vsel %vm3726_vm1, %v3604_v51, %v12349_v40  ;;  %v3802_v6 = vsel %vm3726_vm1, %v3605_v50, %v12350_v55  ;;  %v12676_v45 = vpack.i.bf16 %v1458_v17, %v1457_v28 }
 0x1e7   : > { %v12358_v58 = vpop.permute.xlu1 %12357  ;;  %v3799_v10 = vsel %vm3726_vm1, %v3602_v4, %v12344_v48  ;;  %v3800_v3 = vsel %vm3726_vm1, %v3603_v38, %v12345_v34  ;;  %v12671_v40 = vpack.i.bf16 %v1456_v7, %v16130_v36  ;;  %v14537_v48 = vld [vmem:[%s15256_s27 + $0x298] sm:$0xff]  ;;  %v16201_v50 = vpack.i.bf16 %v1457_v28, %v1456_v7  ;;  %v1460_v28 = vld [vmem:[%s15256_s27 + $0x480] sm:$0xff] }
 0x1e8   : > { %v12360_v61 = vunpack.i.h.bf16 %v12358_v58  ;;  %v12359_v63 = vunpack.i.l.bf16 %v12358_v58  ;;  %v12353_v2 = vpop.permute.xlu0 %12352  ;;  %v14539_v58 = vld [vmem:[%s15256_s27 + $0x288] sm:$0xff] }
 0x1e9   : > { %v12355_v8 = vunpack.i.h.bf16 %v12353_v2  ;;  %v12354_v1 = vunpack.i.l.bf16 %v12353_v2  ;;  %12647 = vrot.lane.b32.xlu1 %v12646_v56, %s14690_s17  ;;  %v14536_v56 = vld [vmem:[%s15256_s27 + $0x2a0] sm:$0xff] }
 0x1ea   : > { %v3998_v11 = vsel %vm3923_vm2, %v3801_v53, %v12359_v63  ;;  %v3999_v54 = vsel %vm3923_vm2, %v3802_v6, %v12360_v61  ;;  %12642 = vrot.lane.b32.xlu0 %v12641_v52, %s14690_s17  ;;  %v16157_v0 = vpop.f32.mrb[0].mxu0 }
 0x1eb   : > { %v3996_v26 = vsel %vm3923_vm2, %v3799_v10, %v12354_v1  ;;  %v3997_v18 = vsel %vm3923_vm2, %v3800_v3, %v12355_v8  ;;  %v16161_v16 = vpop.f32.mrb[1].mxu0  ;;  %v12368_v21 = vpop.permute.xlu1 %12367  ;;  %v4157_v15 = vpack.c.bf16 %v3999_v54, %v3998_v11 }
 0x1ec   : > { %20640 = vst [vmem:[#allocation3_spill] sm:$0xff] %v16161_v16  ;;  %v12363_v22 = vpop.permute.xlu0 %12362  ;;  %v11406_v25 = vpop.f32.mrb[2].mxu0  ;;  %v4156_v62 = vpack.c.bf16 %v3997_v18, %v3996_v26  ;;  %v12370_v19 = vunpack.i.h.bf16 %v12368_v21  ;;  %v12369_v39 = vunpack.i.l.bf16 %v12368_v21 }
 0x1ed   : > { %v16169_v20 = vadd.f32 %v11406_v25, %v16166_v5  ;;  %v4589_v27 = vpop.f32.mrb[3].mxu0  ;;  %12657 = vrot.lane.b32.xlu1 %v16141_v59, %s14692_s29  ;;  %v12365_v35 = vunpack.i.h.bf16 %v12363_v22  ;;  %v12364_v37 = vunpack.i.l.bf16 %v12363_v22 }
 0x1ee   : > { %v4590_v24 = vadd.f32 %v16166_v5, %v4589_v27  ;;  %12652 = vrot.lane.b32.xlu0 %v16143_v60, %s14692_s29  ;;  %11475 = vmatprep.mubr.msk.bf16.mxu0 %vm4257_vm3, %v4156_v62  ;;  %v3609_v34 = vsel %vm3529_vm0, %v14536_v56, %v12370_v19  ;;  %v3608_v52 = vsel %vm3529_vm0, %v14537_v48, %v12369_v39  ;;  %v1461_v27 = vld [vmem:[%s15256_s27 + $0x488] sm:$0xff]  ;;  %v14540_v48 = vld [vmem:[%s15256_s27 + $0x2c0] sm:$0xff] }
 0x1ef   : > { %v5372_v31 = vmax.f32 %v16169_v20, 0.0  ;;  %11476 = vmatmul.mubr.msk.bf16.gmra.mrb[72].mxu0 %vm4257_vm3, %v4157_v15  ;;  %v12378_v33 = vpop.permute.xlu1 %12377  ;;  %v3607_v51 = vsel %vm3529_vm0, %v14538_v57, %v12365_v35  ;;  %v14542_v20 = vld [vmem:[%s15256_s27 + $0x2b0] sm:$0xff] }
 0x1f0   : > { %v5370_v41 = vmax.f32 %v4590_v24, 0.0  ;;  %v12373_v23 = vpop.permute.xlu0 %12372  ;;  %v12380_v42 = vunpack.i.h.bf16 %v12378_v33  ;;  %v12379_v43 = vunpack.i.l.bf16 %v12378_v33  ;;  %v1462_v24 = vld [vmem:[%s15256_s27 + $0x490] sm:$0xff] }
 0x1f1   : > { %12667 = vrot.lane.b32.xlu1 %v16066_v30, %s14691_s28  ;;  %v12375_v32 = vunpack.i.h.bf16 %v12373_v23  ;;  %v12374_v55 = vunpack.i.l.bf16 %v12373_v23  ;;  %v16236_v23 = vld [vmem:[%s15256_s27 + $0x498] sm:$0xff] }
 0x1f2   : > { %v16189_v46 = vpack.i.bf16 %v5372_v31, %v5370_v41  ;;  %12662 = vrot.lane.b32.xlu0 %v16024_v49, %s14691_s28  ;;  %v3606_v49 = vsel %vm3529_vm0, %v14539_v58, %v12364_v37  ;;  %v3805_v9 = vsel %vm3726_vm1, %v3608_v52, %v12379_v43  ;;  %v3806_v4 = vsel %vm3726_vm1, %v3609_v34, %v12380_v42  ;;  %v14541_v52 = vld [vmem:[%s15256_s27 + $0x2b8] sm:$0xff]  ;;  %v14543_v58 = vld [vmem:[%s15256_s27 + $0x2a8] sm:$0xff] }
 0x1f3   : > { %v12388_v30 = vpop.permute.xlu1 %12387  ;;  %v3803_v2 = vsel %vm3726_vm1, %v3606_v49, %v12374_v55  ;;  %v3804_v53 = vsel %vm3726_vm1, %v3607_v51, %v12375_v32  ;;  %v12701_v32 = vpack.i.bf16 %v1460_v28, %v16183_v47  ;;  %v16256_v57 = vpack.i.bf16 %v16236_v23, %v1462_v24 }
 0x1f4   : > { %v12390_v44 = vunpack.i.h.bf16 %v12388_v30  ;;  %v12389_v36 = vunpack.i.l.bf16 %v12388_v30  ;;  %v12383_v38 = vpop.permute.xlu0 %12382  ;;  %v16258_v51 = vpack.i.bf16 %v1461_v27, %v1460_v28  ;;  %v1466_v28 = vld [vmem:[%s15256_s27 + $0x4b0] sm:$0xff] }
 0x1f5   : > { %v12385_v61 = vunpack.i.h.bf16 %v12383_v38  ;;  %v12384_v63 = vunpack.i.l.bf16 %v12383_v38  ;;  %12677 = vrot.lane.b32.xlu1 %v12676_v45, %s14690_s17  ;;  %v12706_v45 = vpack.i.bf16 %v1462_v24, %v1461_v27 }
 0x1f6   : > { %v4002_v6 = vsel %vm3923_vm2, %v3805_v9, %v12389_v36  ;;  %v4003_v8 = vsel %vm3923_vm2, %v3806_v4, %v12390_v44  ;;  %12672 = vrot.lane.b32.xlu0 %v12671_v40, %s14690_s17  ;;  %v16215_v1 = vpop.f32.mrb[4].mxu0 }
 0x1f7   : > { %v4000_v10 = vsel %vm3923_vm2, %v3803_v2, %v12384_v63  ;;  %v4001_v3 = vsel %vm3923_vm2, %v3804_v53, %v12385_v61  ;;  %v16219_v11 = vpop.f32.mrb[5].mxu0  ;;  %v12398_v54 = vpop.permute.xlu1 %12397  ;;  %v4159_v26 = vpack.c.bf16 %v4003_v8, %v4002_v6 }
 0x1f8   : > { %v12393_v18 = vpop.permute.xlu0 %12392  ;;  %v11410_v21 = vpop.f32.mrb[6].mxu0  ;;  %v4158_v15 = vpack.c.bf16 %v4001_v3, %v4000_v10  ;;  %v12400_v17 = vunpack.i.h.bf16 %v12398_v54  ;;  %v12399_v19 = vunpack.i.l.bf16 %v12398_v54 }
 0x1f9   : > { %v16222_v22 = vadd.f32 %v11410_v21, %v16166_v5  ;;  %v4605_v25 = vpop.f32.mrb[7].mxu0  ;;  %12687 = vrot.lane.b32.xlu1 %v16199_v14, %s14692_s29  ;;  %v12395_v7 = vunpack.i.h.bf16 %v12393_v18  ;;  %v12394_v35 = vunpack.i.l.bf16 %v12393_v18 }
 0x1fa   : > { %v4606_v62 = vadd.f32 %v16166_v5, %v4605_v25  ;;  %12682 = vrot.lane.b32.xlu0 %v16201_v50, %s14692_s29  ;;  %11479 = vmatprep.mubr.msk.bf16.mxu0 %vm4257_vm3, %v4158_v15  ;;  %v3612_v30 = vsel %vm3529_vm0, %v14541_v52, %v12399_v19  ;;  %v1464_v19 = vld [vmem:[%s15256_s27 + $0x4a0] sm:$0xff] }
 0x1fb   : > { %v5376_v39 = vmax.f32 %v16222_v22, 0.0  ;;  %11480 = vmatmul.mubr.msk.bf16.gmra.mrb[76].mxu0 %vm4257_vm3, %v4159_v26  ;;  %v12408_v33 = vpop.permute.xlu1 %12407  ;;  %v3610_v49 = vsel %vm3529_vm0, %v14543_v58, %v12394_v35  ;;  %v12731_v52 = vpack.i.bf16 %v1464_v19, %v16236_v23  ;;  %v14544_v58 = vld [vmem:[%s15256_s27 + $0x2e8] sm:$0xff]  ;;  %v14546_v22 = vld [vmem:[%s15256_s27 + $0x2d8] sm:$0xff] }
 0x1fc   : > { %v5374_v37 = vmax.f32 %v4606_v62, 0.0  ;;  %v12403_v41 = vpop.permute.xlu0 %12402  ;;  %v12410_v42 = vunpack.i.h.bf16 %v12408_v33  ;;  %v12409_v43 = vunpack.i.l.bf16 %v12408_v33 }
 0x1fd   : > { %12697 = vrot.lane.b32.xlu1 %v16103_v13, %s14691_s28  ;;  %v12405_v56 = vunpack.i.h.bf16 %v12403_v41  ;;  %v12404_v34 = vunpack.i.l.bf16 %v12403_v41  ;;  %v3613_v13 = vsel %vm3529_vm0, %v14540_v48, %v12400_v17  ;;  %v1467_v17 = vld [vmem:[%s15256_s27 + $0x4b8] sm:$0xff] }
 0x1fe   : > { %v16243_v55 = vpack.i.bf16 %v5376_v39, %v5374_v37  ;;  %v16247_v40 = vpack.i.bf16 %v5374_v37, %v5372_v31  ;;  %12692 = vrot.lane.b32.xlu0 %v16064_v29, %s14691_s28  ;;  %v3611_v31 = vsel %vm3529_vm0, %v14542_v20, %v12395_v7  ;;  %v3809_v38 = vsel %vm3726_vm1, %v3612_v30, %v12409_v43 }
 0x1ff   : > { %v12418_v47 = vpop.permute.xlu1 %12417  ;;  %v3810_v9 = vsel %vm3726_vm1, %v3613_v13, %v12410_v42  ;;  %v3807_v63 = vsel %vm3726_vm1, %v3610_v49, %v12404_v34  ;;  %v3808_v2 = vsel %vm3726_vm1, %v3611_v31, %v12405_v56  ;;  %v1465_v56 = vld [vmem:[%s15256_s27 + $0x4a8] sm:$0xff]  ;;  %v12736_v13 = vpack.i.bf16 %v1467_v17, %v1466_v28  ;;  %v14545_v49 = vld [vmem:[%s15256_s27 + $0x2e0] sm:$0xff] }
 0x200   : > { %v12420_v44 = vunpack.i.h.bf16 %v12418_v47  ;;  %v12419_v29 = vunpack.i.l.bf16 %v12418_v47  ;;  %v12413_v36 = vpop.permute.xlu0 %12412 }
 0x201   : > { %v12415_v4 = vunpack.i.h.bf16 %v12413_v36  ;;  %v12414_v61 = vunpack.i.l.bf16 %v12413_v36  ;;  %12707 = vrot.lane.b32.xlu1 %v12706_v45, %s14690_s17  ;;  %v16316_v36 = vpack.i.bf16 %v1465_v56, %v1464_v19 }
 0x202   : > { %v4006_v53 = vsel %vm3923_vm2, %v3809_v38, %v12419_v29  ;;  %v4007_v6 = vsel %vm3923_vm2, %v3810_v9, %v12420_v44  ;;  %12702 = vrot.lane.b32.xlu0 %v12701_v32, %s14690_s17  ;;  %v16272_v8 = vpop.f32.mrb[8].mxu0  ;;  %v16293_v32 = vld [vmem:[%s15256_s27 + $0x4c0] sm:$0xff]  ;;  %v14547_v38 = vld [vmem:[%s15256_s27 + $0x2d0] sm:$0xff] }
 0x203   : > { %v4004_v10 = vsel %vm3923_vm2, %v3807_v63, %v12414_v61  ;;  %v4005_v3 = vsel %vm3923_vm2, %v3808_v2, %v12415_v4  ;;  %v16276_v54 = vpop.f32.mrb[9].mxu0  ;;  %v12428_v26 = vpop.permute.xlu1 %12427  ;;  %v4161_v18 = vpack.c.bf16 %v4007_v6, %v4006_v53  ;;  %v16314_v29 = vpack.i.bf16 %v16293_v32, %v1467_v17 }
 0x204   : > { %v12423_v21 = vpop.permute.xlu0 %12422  ;;  %v11414_v15 = vpop.f32.mrb[10].mxu0  ;;  %v4160_v25 = vpack.c.bf16 %v4005_v3, %v4004_v10  ;;  %v12430_v33 = vunpack.i.h.bf16 %v12428_v26  ;;  %v12429_v7 = vunpack.i.l.bf16 %v12428_v26 }
 0x205   : > { %v16279_v62 = vadd.f32 %v11414_v15, %v16166_v5  ;;  %v4621_v27 = vpop.f32.mrb[11].mxu0  ;;  %12717 = vrot.lane.b32.xlu1 %v16256_v57, %s14692_s29  ;;  %v12425_v41 = vunpack.i.h.bf16 %v12423_v21  ;;  %v12424_v42 = vunpack.i.l.bf16 %v12423_v21 }
 0x206   : > { %v4622_v24 = vadd.f32 %v16166_v5, %v4621_v27  ;;  %12712 = vrot.lane.b32.xlu0 %v16258_v51, %s14692_s29  ;;  %11483 = vmatprep.mubr.msk.bf16.mxu0 %vm4257_vm3, %v4160_v25  ;;  %v3616_v44 = vsel %vm3529_vm0, %v14545_v49, %v12429_v7 }
 0x207   : > { %v5380_v35 = vmax.f32 %v16279_v62, 0.0  ;;  %11484 = vmatmul.mubr.msk.bf16.gmra.mrb[80].mxu0 %vm4257_vm3, %v4161_v18  ;;  %v12438_v37 = vpop.permute.xlu1 %12437  ;;  %v3614_v9 = vsel %vm3529_vm0, %v14547_v38, %v12424_v42  ;;  %v1471_v42 = vld [vmem:[%s15256_s27 + $0x4d8] sm:$0xff]  ;;  %v14548_v38 = vld [vmem:[%s15256_s27 + $0x308] sm:$0xff] }
 0x208   : > { %v5378_v43 = vmax.f32 %v4622_v24, 0.0  ;;  %v12433_v45 = vpop.permute.xlu0 %12432  ;;  %v12440_v34 = vunpack.i.h.bf16 %v12438_v37  ;;  %v12439_v48 = vunpack.i.l.bf16 %v12438_v37 }
 0x209   : > { %12727 = vrot.lane.b32.xlu1 %v16143_v60, %s14691_s28  ;;  %v12435_v20 = vunpack.i.h.bf16 %v12433_v45  ;;  %v12434_v31 = vunpack.i.l.bf16 %v12433_v45  ;;  %v3617_v60 = vsel %vm3529_vm0, %v14544_v58, %v12430_v33 }
 0x20a   : > { %v16301_v30 = vpack.i.bf16 %v5380_v35, %v5378_v43  ;;  %v16305_v47 = vpack.i.bf16 %v5378_v43, %v5376_v39  ;;  %12722 = vrot.lane.b32.xlu0 %v16101_v12, %s14691_s28  ;;  %v3615_v39 = vsel %vm3529_vm0, %v14546_v22, %v12425_v41  ;;  %v3813_v63 = vsel %vm3726_vm1, %v3616_v44, %v12439_v48  ;;  %v1470_v41 = vld [vmem:[%s15256_s27 + $0x4d0] sm:$0xff] }
 0x20b   : > { %v12448_v23 = vpop.permute.xlu1 %12447  ;;  %v3814_v2 = vsel %vm3726_vm1, %v3617_v60, %v12440_v34  ;;  %v3811_v10 = vsel %vm3726_vm1, %v3614_v9, %v12434_v31  ;;  %v3812_v3 = vsel %vm3726_vm1, %v3615_v39, %v12435_v20  ;;  %v1469_v34 = vld [vmem:[%s15256_s27 + $0x4c8] sm:$0xff]  ;;  %v16347_v31 = vld [vmem:[%s15256_s27 + $0x4e0] sm:$0xff]  ;;  %v12766_v49 = vpack.i.bf16 %v1471_v42, %v1470_v41 }
 0x20c   : > { %v12450_v4 = vunpack.i.h.bf16 %v12448_v23  ;;  %v12449_v12 = vunpack.i.l.bf16 %v12448_v23  ;;  %v12443_v61 = vpop.permute.xlu0 %12442  ;;  %v12761_v39 = vpack.i.bf16 %v1469_v34, %v16293_v32  ;;  %v16365_v62 = vpack.i.bf16 %v1470_v41, %v1469_v34 }
 0x20d   : > { %v12445_v53 = vunpack.i.h.bf16 %v12443_v61  ;;  %v12444_v6 = vunpack.i.l.bf16 %v12443_v61  ;;  %12737 = vrot.lane.b32.xlu1 %v12736_v13, %s14690_s17  ;;  %v16363_v61 = vpack.i.bf16 %v16347_v31, %v1471_v42 }
 0x20e   : > { %v4010_v26 = vsel %vm3923_vm2, %v3813_v63, %v12449_v12  ;;  %v4011_v18 = vsel %vm3923_vm2, %v3814_v2, %v12450_v4  ;;  %12732 = vrot.lane.b32.xlu0 %v12731_v52, %s14690_s17  ;;  %v16330_v21 = vpop.f32.mrb[12].mxu0  ;;  %v14549_v4 = vld [vmem:[%s15256_s27 + $0x300] sm:$0xff]  ;;  %v14551_v2 = vld [vmem:[%s15256_s27 + $0x2f0] sm:$0xff] }
 0x20f   : > { %20641 = vst [vmem:[#allocation4_spill] sm:$0xff] %v16330_v21  ;;  %v4008_v15 = vsel %vm3923_vm2, %v3811_v10, %v12444_v6  ;;  %v4009_v25 = vsel %vm3923_vm2, %v3812_v3, %v12445_v53  ;;  %v16334_v27 = vpop.f32.mrb[13].mxu0  ;;  %v12458_v24 = vpop.permute.xlu1 %12457  ;;  %v4163_v28 = vpack.c.bf16 %v4011_v18, %v4010_v26 }
 0x210   : > { %v12453_v17 = vpop.permute.xlu0 %12452  ;;  %v11418_v19 = vpop.f32.mrb[14].mxu0  ;;  %v4162_v33 = vpack.c.bf16 %v4009_v25, %v4008_v15  ;;  %v12460_v43 = vunpack.i.h.bf16 %v12458_v24  ;;  %v12459_v45 = vunpack.i.l.bf16 %v12458_v24 }
 0x211   : > { %v4637_v7 = vpop.f32.mrb[15].mxu0  ;;  %12747 = vrot.lane.b32.xlu1 %v16314_v29, %s14692_s29  ;;  %v12455_v48 = vunpack.i.h.bf16 %v12453_v17  ;;  %v12454_v13 = vunpack.i.l.bf16 %v12453_v17 }
 0x212   : > { %v4638_v37 = vadd.f32 %v16166_v5, %v4637_v7  ;;  %12742 = vrot.lane.b32.xlu0 %v16316_v36, %s14692_s29  ;;  %11487 = vmatprep.mubr.msk.bf16.mxu0 %vm4257_vm3, %v4162_v33  ;;  %v3621_v9 = vsel %vm3529_vm0, %v14548_v38, %v12460_v43  ;;  %v3620_v12 = vsel %vm3529_vm0, %v14549_v4, %v12459_v45 }
 0x213   : > { %11488 = vmatmul.mubr.msk.bf16.gmra.mrb[84].mxu0 %vm4257_vm3, %v4163_v28  ;;  %v12468_v56 = vpop.permute.xlu1 %12467  ;;  %v4646_v43 = vadd.f32 %v11418_v19, %v16166_v5  ;;  %v1475_v19 = vld [vmem:[%s15256_s27 + $0x4f8] sm:$0xff] }
 0x214   : > { %v5382_v52 = vmax.f32 %v4638_v37, 0.0  ;;  %v12463_v20 = vpop.permute.xlu0 %12462  ;;  %v12470_v58 = vunpack.i.h.bf16 %v12468_v56  ;;  %v12469_v60 = vunpack.i.l.bf16 %v12468_v56 }
 0x215   : > { %12757 = vrot.lane.b32.xlu1 %v16201_v50, %s14691_s28  ;;  %v12465_v23 = vunpack.i.h.bf16 %v12463_v20  ;;  %v12464_v22 = vunpack.i.l.bf16 %v12463_v20  ;;  %v1474_v20 = vld [vmem:[%s15256_s27 + $0x4f0] sm:$0xff] }
 0x216   : > { %v16353_v44 = vpack.i.bf16 %v5382_v52, %v5380_v35  ;;  %12752 = vrot.lane.b32.xlu0 %v16141_v59, %s14691_s28  ;;  %v14550_v35 = vld [vmem:[%s15256_s27 + $0x2f8] sm:$0xff]  ;;  %v3618_v59 = vsel %vm3529_vm0, %v14551_v2, %v12454_v13  ;;  %v3817_v10 = vsel %vm3726_vm1, %v3620_v12, %v12469_v60  ;;  %v3818_v3 = vsel %vm3726_vm1, %v3621_v9, %v12470_v58  ;;  %v1473_v58 = vld [vmem:[%s15256_s27 + $0x4e8] sm:$0xff] }
 0x217   : > { %v12478_v50 = vpop.permute.xlu1 %12477  ;;  %v3619_v63 = vsel %vm3529_vm0, %v14550_v35, %v12455_v48  ;;  %v3815_v15 = vsel %vm3726_vm1, %v3618_v59, %v12464_v22  ;;  %v12796_v2 = vpack.i.bf16 %v1475_v19, %v1474_v20  ;;  %v12791_v59 = vpack.i.bf16 %v1473_v58, %v16347_v31 }
 0x218   : > { %v12480_v53 = vunpack.i.h.bf16 %v12478_v50  ;;  %v12479_v32 = vunpack.i.l.bf16 %v12478_v50  ;;  %v12473_v6 = vpop.permute.xlu0 %12472  ;;  %v3816_v25 = vsel %vm3726_vm1, %v3619_v63, %v12465_v23  ;;  %v16401_v50 = vld [vmem:[%s15256_s27 + $0x500] sm:$0xff] }
 0x219   : > { %v12475_v26 = vunpack.i.h.bf16 %v12473_v6  ;;  %v12474_v18 = vunpack.i.l.bf16 %v12473_v6  ;;  %12767 = vrot.lane.b32.xlu1 %v12766_v49, %s14690_s17  ;;  %v16419_v31 = vpack.i.bf16 %v16401_v50, %v1475_v19 }
 0x21a   : > { %v4014_v24 = vsel %vm3923_vm2, %v3817_v10, %v12479_v32  ;;  %v4015_v28 = vsel %vm3923_vm2, %v3818_v3, %v12480_v53  ;;  %12762 = vrot.lane.b32.xlu0 %v12761_v39, %s14690_s17  ;;  %v16379_v17 = vpop.f32.mrb[16].mxu0  ;;  %v5384_v39 = vmax.f32 %v4646_v43, 0.0  ;;  %v14552_v3 = vld [vmem:[%s15256_s27 + $0x328] sm:$0xff] }
 0x21b   : > { %v4012_v33 = vsel %vm3923_vm2, %v3815_v15, %v12474_v18  ;;  %v4013_v7 = vsel %vm3923_vm2, %v3816_v25, %v12475_v26  ;;  %v16383_v37 = vpop.f32.mrb[17].mxu0  ;;  %v12488_v41 = vpop.permute.xlu1 %12487  ;;  %v4165_v42 = vpack.c.bf16 %v4015_v28, %v4014_v24  ;;  %v14553_v18 = vld [vmem:[%s15256_s27 + $0x320] sm:$0xff]  ;;  %v16421_v25 = vpack.i.bf16 %v1474_v20, %v1473_v58  ;;  %v14554_v24 = vld [vmem:[%s15256_s27 + $0x318] sm:$0xff] }
 0x21c   : > { %v12483_v45 = vpop.permute.xlu0 %12482  ;;  %v11422_v56 = vpop.f32.mrb[18].mxu0  ;;  %v4164_v34 = vpack.c.bf16 %v4013_v7, %v4012_v33  ;;  %v12490_v60 = vunpack.i.h.bf16 %v12488_v41  ;;  %v12489_v49 = vunpack.i.l.bf16 %v12488_v41  ;;  %v14555_v33 = vld [vmem:[%s15256_s27 + $0x310] sm:$0xff] }
 0x21d   : > { %v16387_v48 = vadd.f32 %v11422_v56, %v16166_v5  ;;  %v4653_v13 = vpop.f32.mrb[19].mxu0  ;;  %12777 = vrot.lane.b32.xlu1 %v16363_v61, %s14692_s29  ;;  %v12485_v38 = vunpack.i.h.bf16 %v12483_v45  ;;  %v12484_v9 = vunpack.i.l.bf16 %v12483_v45 }
 0x21e   : > { %v4654_v52 = vadd.f32 %v16166_v5, %v4653_v13  ;;  %12772 = vrot.lane.b32.xlu0 %v16365_v62, %s14692_s29  ;;  %11491 = vmatprep.mubr.msk.bf16.mxu0 %vm4257_vm3, %v4164_v34  ;;  %v3625_v26 = vsel %vm3529_vm0, %v14552_v3, %v12490_v60 }
 0x21f   : > { %v5388_v23 = vmax.f32 %v16387_v48, 0.0  ;;  %11492 = vmatmul.mubr.msk.bf16.gmra.mrb[88].mxu0 %vm4257_vm3, %v4165_v42  ;;  %v12498_v22 = vpop.permute.xlu1 %12497  ;;  %v3623_v28 = vsel %vm3529_vm0, %v14554_v24, %v12485_v38  ;;  %v3622_v7 = vsel %vm3529_vm0, %v14555_v33, %v12484_v9 }
 0x220   : > { %v5386_v4 = vmax.f32 %v4654_v52, 0.0  ;;  %v12493_v12 = vpop.permute.xlu0 %12492  ;;  %v12500_v35 = vunpack.i.h.bf16 %v12498_v22  ;;  %v12499_v63 = vunpack.i.l.bf16 %v12498_v22 }
 0x221   : > { %12787 = vrot.lane.b32.xlu1 %v16258_v51, %s14691_s28  ;;  %v12495_v6 = vunpack.i.h.bf16 %v12493_v12  ;;  %v12494_v10 = vunpack.i.l.bf16 %v12493_v12  ;;  %v3624_v51 = vsel %vm3529_vm0, %v14553_v18, %v12489_v49 }
 0x222   : > { %v16408_v53 = vpack.i.bf16 %v5388_v23, %v5386_v4  ;;  %v16410_v32 = vpack.i.bf16 %v5386_v4, %v5384_v39  ;;  %12782 = vrot.lane.b32.xlu0 %v16199_v14, %s14691_s28  ;;  %v3821_v43 = vsel %vm3726_vm1, %v3624_v51, %v12499_v63  ;;  %v3822_v45 = vsel %vm3726_vm1, %v3625_v26, %v12500_v35 }
 0x223   : > { %v12508_v15 = vpop.permute.xlu1 %12507  ;;  %v3819_v13 = vsel %vm3726_vm1, %v3622_v7, %v12494_v10  ;;  %v3820_v52 = vsel %vm3726_vm1, %v3623_v28, %v12495_v6  ;;  %v1479_v6 = vld [vmem:[%s15256_s27 + $0x518] sm:$0xff]  ;;  %v1477_v10 = vld [vmem:[%s15256_s27 + $0x508] sm:$0xff]  ;;  %v1480_v7 = vld [vmem:[%s15256_s27 + $0x520] sm:$0xff] }
 0x224   : > { %v12510_v41 = vunpack.i.h.bf16 %v12508_v15  ;;  %v12509_v14 = vunpack.i.l.bf16 %v12508_v15  ;;  %v12503_v42 = vpop.permute.xlu0 %12502 }
 0x225   : > { %v12505_v56 = vunpack.i.h.bf16 %v12503_v42  ;;  %v12504_v34 = vunpack.i.l.bf16 %v12503_v42  ;;  %12797 = vrot.lane.b32.xlu1 %v12796_v2, %s14690_s17 }
 0x226   : > { %v4018_v20 = vsel %vm3923_vm2, %v3821_v43, %v12509_v14  ;;  %v4019_v19 = vsel %vm3923_vm2, %v3822_v45, %v12510_v41  ;;  %12792 = vrot.lane.b32.xlu0 %v12791_v59, %s14690_s17  ;;  %v16435_v58 = vpop.f32.mrb[20].mxu0  ;;  %v1478_v59 = vld [vmem:[%s15256_s27 + $0x510] sm:$0xff]  ;;  %v12821_v43 = vpack.i.bf16 %v1477_v10, %v16401_v50 }
 0x227   : > { %v4016_v60 = vsel %vm3923_vm2, %v3819_v13, %v12504_v34  ;;  %v4017_v49 = vsel %vm3923_vm2, %v3820_v52, %v12505_v56  ;;  %v16439_v22 = vpop.f32.mrb[21].mxu0  ;;  %v12518_v39 = vpop.permute.xlu1 %12517  ;;  %v4167_v38 = vpack.c.bf16 %v4019_v19, %v4018_v20  ;;  %v12826_v42 = vpack.i.bf16 %v1479_v6, %v1478_v59  ;;  %v14556_v52 = vld [vmem:[%s15256_s27 + $0x350] sm:$0xff]  ;;  %v14557_v20 = vld [vmem:[%s15256_s27 + $0x348] sm:$0xff] }
 0x228   : > { %v12513_v9 = vpop.permute.xlu0 %12512  ;;  %v11426_v4 = vpop.f32.mrb[22].mxu0  ;;  %v4166_v12 = vpack.c.bf16 %v4017_v49, %v4016_v60  ;;  %v12520_v3 = vunpack.i.h.bf16 %v12518_v39  ;;  %v12519_v26 = vunpack.i.l.bf16 %v12518_v39  ;;  %v16473_v60 = vpack.i.bf16 %v1480_v7, %v1479_v6  ;;  %v14558_v39 = vld [vmem:[%s15256_s27 + $0x338] sm:$0xff] }
 0x229   : > { %v16442_v35 = vadd.f32 %v11426_v4, %v16166_v5  ;;  %v4669_v63 = vpop.f32.mrb[23].mxu0  ;;  %12807 = vrot.lane.b32.xlu1 %v16419_v31, %s14692_s29  ;;  %v12515_v15 = vunpack.i.h.bf16 %v12513_v9  ;;  %v12514_v24 = vunpack.i.l.bf16 %v12513_v9  ;;  %v16475_v49 = vpack.i.bf16 %v1478_v59, %v1477_v10 }
 0x22a   : > { %v4670_v2 = vadd.f32 %v16166_v5, %v4669_v63  ;;  %12802 = vrot.lane.b32.xlu0 %v16421_v25, %s14692_s29  ;;  %11495 = vmatprep.mubr.msk.bf16.mxu0 %vm4257_vm3, %v4166_v12  ;;  %v3628_v19 = vsel %vm3529_vm0, %v14557_v20, %v12519_v26  ;;  %v1481_v20 = vld [vmem:[%s15256_s27 + $0x528] sm:$0xff] }
 0x22b   : > { %v5392_v18 = vmax.f32 %v16442_v35, 0.0  ;;  %11496 = vmatmul.mubr.msk.bf16.gmra.mrb[92].mxu0 %vm4257_vm3, %v4167_v38  ;;  %v12528_v51 = vpop.permute.xlu1 %12527  ;;  %v3627_v48 = vsel %vm3529_vm0, %v14558_v39, %v12515_v15  ;;  %v14562_v35 = vld [vmem:[%s15256_s27 + $0x360] sm:$0xff] }
 0x22c   : > { %v5390_v28 = vmax.f32 %v4670_v2, 0.0  ;;  %v12523_v33 = vpop.permute.xlu0 %12522  ;;  %v12530_v41 = vunpack.i.h.bf16 %v12528_v51  ;;  %v12529_v14 = vunpack.i.l.bf16 %v12528_v51 }
 0x22d   : > { %12817 = vrot.lane.b32.xlu1 %v16316_v36, %s14691_s28  ;;  %v12525_v34 = vunpack.i.h.bf16 %v12523_v33  ;;  %v12524_v13 = vunpack.i.l.bf16 %v12523_v33  ;;  %v3629_v36 = vsel %vm3529_vm0, %v14556_v52, %v12520_v3 }
 0x22e   : > { %v16461_v45 = vpack.i.bf16 %v5392_v18, %v5390_v28  ;;  %v16465_v56 = vpack.i.bf16 %v5390_v28, %v5388_v23  ;;  %12812 = vrot.lane.b32.xlu0 %v16256_v57, %s14691_s28  ;;  %v14559_v23 = vld [vmem:[%s15256_s27 + $0x330] sm:$0xff]  ;;  %v3825_v12 = vsel %vm3726_vm1, %v3628_v19, %v12529_v14  ;;  %v3826_v63 = vsel %vm3726_vm1, %v3629_v36, %v12530_v41  ;;  %v1484_v36 = vld [vmem:[%s15256_s27 + $0x540] sm:$0xff] }
 0x22f   : > { %v12538_v50 = vpop.permute.xlu1 %12537  ;;  %v3626_v38 = vsel %vm3529_vm0, %v14559_v23, %v12514_v24  ;;  %v3824_v6 = vsel %vm3726_vm1, %v3627_v48, %v12525_v34  ;;  %v1482_v19 = vld [vmem:[%s15256_s27 + $0x530] sm:$0xff] }
 0x230   : > { %v12540_v9 = vunpack.i.h.bf16 %v12538_v50  ;;  %v12539_v4 = vunpack.i.l.bf16 %v12538_v50  ;;  %v12533_v57 = vpop.permute.xlu0 %12532  ;;  %v3823_v59 = vsel %vm3726_vm1, %v3626_v38, %v12524_v13 }
 0x231   : > { %v12535_v2 = vunpack.i.h.bf16 %v12533_v57  ;;  %v12534_v3 = vunpack.i.l.bf16 %v12533_v57  ;;  %12827 = vrot.lane.b32.xlu1 %v12826_v42, %s14690_s17 }
 0x232   : > { %v4022_v10 = vsel %vm3923_vm2, %v3825_v12, %v12539_v4  ;;  %v4023_v26 = vsel %vm3923_vm2, %v3826_v63, %v12540_v9  ;;  %12822 = vrot.lane.b32.xlu0 %v12821_v43, %s14690_s17  ;;  %v16489_v51 = vpop.f32.mrb[24].mxu0  ;;  %v1483_v43 = vld [vmem:[%s15256_s27 + $0x538] sm:$0xff]  ;;  %v16508_v12 = vld [vmem:[%s15256_s27 + $0x548] sm:$0xff] }
 0x233   : > { %v4020_v15 = vsel %vm3923_vm2, %v3823_v59, %v12534_v3  ;;  %v4021_v24 = vsel %vm3923_vm2, %v3824_v6, %v12535_v2  ;;  %v16493_v28 = vpop.f32.mrb[25].mxu0  ;;  %v12548_v33 = vpop.permute.xlu1 %12547  ;;  %v4169_v7 = vpack.c.bf16 %v4023_v26, %v4022_v10  ;;  %v12856_v3 = vpack.i.bf16 %v1484_v36, %v1483_v43 }
 0x234   : > { %v12543_v41 = vpop.permute.xlu0 %12542  ;;  %v11430_v14 = vpop.f32.mrb[26].mxu0  ;;  %v4168_v42 = vpack.c.bf16 %v4021_v24, %v4020_v15  ;;  %v12550_v50 = vunpack.i.h.bf16 %v12548_v33  ;;  %v12549_v39 = vunpack.i.l.bf16 %v12548_v33  ;;  %v12851_v59 = vpack.i.bf16 %v1482_v19, %v1481_v20  ;;  %v14560_v24 = vld [vmem:[%s15256_s27 + $0x370] sm:$0xff] }
 0x235   : > { %v4694_v34 = vadd.f32 %v11430_v14, %v16166_v5  ;;  %v4685_v13 = vpop.f32.mrb[27].mxu0  ;;  %12837 = vrot.lane.b32.xlu1 %v16473_v60, %s14692_s29  ;;  %v12545_v38 = vunpack.i.h.bf16 %v12543_v41  ;;  %v12544_v9 = vunpack.i.l.bf16 %v12543_v41  ;;  %v16525_v14 = vpack.i.bf16 %v16508_v12, %v1484_v36 }
 0x236   : > { %v4686_v52 = vadd.f32 %v16166_v5, %v4685_v13  ;;  %12832 = vrot.lane.b32.xlu0 %v16475_v49, %s14692_s29  ;;  %11499 = vmatprep.mubr.msk.bf16.mxu0 %vm4257_vm3, %v4168_v42  ;;  %v3633_v33 = vsel %vm3529_vm0, %v14560_v24, %v12550_v50  ;;  %v16527_v42 = vpack.i.bf16 %v1483_v43, %v1482_v19 }
 0x237   : > { %v5396_v48 = vmax.f32 %v4694_v34, 0.0  ;;  %11500 = vmatmul.mubr.msk.bf16.gmra.mrb[96].mxu0 %vm4257_vm3, %v4169_v7  ;;  %v12558_v23 = vpop.permute.xlu1 %12557  ;;  %v14561_v7 = vld [vmem:[%s15256_s27 + $0x368] sm:$0xff]  ;;  %v14563_v34 = vld [vmem:[%s15256_s27 + $0x358] sm:$0xff] }
 0x238   : > { %v5394_v4 = vmax.f32 %v4686_v52, 0.0  ;;  %v12553_v57 = vpop.permute.xlu0 %12552  ;;  %v12560_v63 = vunpack.i.h.bf16 %v12558_v23  ;;  %v12559_v2 = vunpack.i.l.bf16 %v12558_v23  ;;  %v3630_v13 = vsel %vm3529_vm0, %v14563_v34, %v12544_v9 }
 0x239   : > { %12847 = vrot.lane.b32.xlu1 %v16365_v62, %s14691_s28  ;;  %v12555_v26 = vunpack.i.h.bf16 %v12553_v57  ;;  %v12554_v15 = vunpack.i.l.bf16 %v12553_v57  ;;  %v3632_v62 = vsel %vm3529_vm0, %v14561_v7, %v12549_v39 }
 0x23a   : > { %v16512_v6 = vpack.i.bf16 %v5396_v48, %v5394_v4  ;;  %v16516_v10 = vpack.i.bf16 %v5394_v4, %v5392_v18  ;;  %12842 = vrot.lane.b32.xlu0 %v16314_v29, %s14691_s28  ;;  %v3631_v18 = vsel %vm3529_vm0, %v14562_v35, %v12545_v38  ;;  %v3829_v50 = vsel %vm3726_vm1, %v3632_v62, %v12559_v2  ;;  %v1487_v62 = vld [vmem:[%s15256_s27 + $0x558] sm:$0xff] }
 0x23b   : > { %v12568_v41 = vpop.permute.xlu1 %12567  ;;  %v3830_v48 = vsel %vm3726_vm1, %v3633_v33, %v12560_v63  ;;  %v3827_v43 = vsel %vm3726_vm1, %v3630_v13, %v12554_v15  ;;  %v3828_v36 = vsel %vm3726_vm1, %v3631_v18, %v12555_v26 }
 0x23c   : > { %v12570_v52 = vunpack.i.h.bf16 %v12568_v41  ;;  %v12569_v29 = vunpack.i.l.bf16 %v12568_v41  ;;  %v12563_v20 = vpop.permute.xlu0 %12562  ;;  %v1488_v41 = vld [vmem:[%s15256_s27 + $0x560] sm:$0xff] }
 0x23d   : > { %v12565_v39 = vunpack.i.h.bf16 %v12563_v20  ;;  %v12564_v23 = vunpack.i.l.bf16 %v12563_v20  ;;  %12857 = vrot.lane.b32.xlu1 %v12856_v3, %s14690_s17 }
 0x23e   : > { %v4026_v19 = vsel %vm3923_vm2, %v3829_v50, %v12569_v29  ;;  %v4027_v38 = vsel %vm3923_vm2, %v3830_v48, %v12570_v52  ;;  %12852 = vrot.lane.b32.xlu0 %v12851_v59, %s14690_s17  ;;  %v16541_v9 = vpop.f32.mrb[28].mxu0  ;;  %v1486_v52 = vld [vmem:[%s15256_s27 + $0x550] sm:$0xff] }
 0x23f   : > { %v4024_v4 = vsel %vm3923_vm2, %v3827_v43, %v12564_v23  ;;  %v4025_v57 = vsel %vm3923_vm2, %v3828_v36, %v12565_v39  ;;  %v16545_v63 = vpop.f32.mrb[29].mxu0  ;;  %v12578_v2 = vpop.permute.xlu1 %12577  ;;  %v4171_v3 = vpack.c.bf16 %v4027_v38, %v4026_v19  ;;  %v16562_v39 = vld [vmem:[%s15256_s27 + $0x568] sm:$0xff]  ;;  %v12886_v36 = vpack.i.bf16 %v1488_v41, %v1487_v62 }
 0x240   : > { %20642 = vst [vmem:[#allocation5_spill] sm:$0xff] %v16545_v63  ;;  %v12573_v15 = vpop.permute.xlu0 %12572  ;;  %v11434_v26 = vpop.f32.mrb[30].mxu0  ;;  %v4170_v24 = vpack.c.bf16 %v4025_v57, %v4024_v4  ;;  %v12580_v35 = vunpack.i.h.bf16 %v12578_v2  ;;  %v12579_v18 = vunpack.i.l.bf16 %v12578_v2  ;;  %v12881_v57 = vpack.i.bf16 %v1486_v52, %v16508_v12  ;;  %v14564_v2 = vld [vmem:[%s15256_s27 + $0x390] sm:$0xff] }
 0x241   : > { %v16548_v33 = vadd.f32 %v11434_v26, %v16166_v5  ;;  %v4701_v59 = vpop.f32.mrb[31].mxu0  ;;  %12867 = vrot.lane.b32.xlu1 %v16525_v14, %s14692_s29  ;;  %v12575_v29 = vunpack.i.h.bf16 %v12573_v15  ;;  %v12574_v20 = vunpack.i.l.bf16 %v12573_v15  ;;  %v14565_v15 = vld [vmem:[%s15256_s27 + $0x388] sm:$0xff] }
 0x242   : > { %v4702_v7 = vadd.f32 %v16166_v5, %v4701_v59  ;;  %12862 = vrot.lane.b32.xlu0 %v16527_v42, %s14692_s29  ;;  %11503 = vmatprep.mubr.msk.bf16.mxu0 %vm4257_vm3, %v4170_v24  ;;  %v3636_v26 = vsel %vm3529_vm0, %v14565_v15, %v12579_v18  ;;  %v16578_v24 = vpack.i.bf16 %v16562_v39, %v1488_v41 }
 0x243   : > { %v20526_v34 = vmax.f32 %v16548_v33, 0.0  ;;  %11504 = vmatmul.mubr.msk.bf16.gmra.mrb[100].mxu0 %vm4257_vm3, %v4171_v3  ;;  %v12588_v13 = vpop.permute.xlu1 %12587  ;;  %v3637_v3 = vsel %vm3529_vm0, %v14564_v2, %v12580_v35  ;;  %v16580_v59 = vpack.i.bf16 %v1487_v62, %v1486_v52 }
 0x244   : > { %v5398_v50 = vmax.f32 %v4702_v7, 0.0  ;;  %v12583_v48 = vpop.permute.xlu0 %12582  ;;  %v12590_v23 = vunpack.i.h.bf16 %v12588_v13  ;;  %v12589_v43 = vunpack.i.l.bf16 %v12588_v13  ;;  %v14566_v7 = vld [vmem:[%s15256_s27 + $0x380] sm:$0xff] }
 0x245   : > { %12877 = vrot.lane.b32.xlu1 %v16421_v25, %s14691_s28  ;;  %v12585_v38 = vunpack.i.h.bf16 %v12583_v48  ;;  %v12584_v4 = vunpack.i.l.bf16 %v12583_v48  ;;  %v3635_v13 = vsel %vm3529_vm0, %v14566_v7, %v12575_v29  ;;  %v1491_v7 = vld [vmem:[%s15256_s27 + $0x578] sm:$0xff] }
 0x246   : > { %v16568_v19 = vpack.i.bf16 %v20526_v34, %v5398_v50  ;;  %12872 = vrot.lane.b32.xlu0 %v16363_v61, %s14691_s28  ;;  %v14567_v50 = vld [vmem:[%s15256_s27 + $0x378] sm:$0xff]  ;;  %v3833_v35 = vsel %vm3726_vm1, %v3636_v26, %v12589_v43  ;;  %v3834_v2 = vsel %vm3726_vm1, %v3637_v3, %v12590_v23 }
 0x247   : > { %v12598_v25 = vpop.permute.xlu1 %12597  ;;  %v3634_v61 = vsel %vm3529_vm0, %v14567_v50, %v12574_v20  ;;  %v3832_v41 = vsel %vm3726_vm1, %v3635_v13, %v12585_v38 }
 0x248   : > { %20643 = vst [vmem:[#allocation6_spill] sm:$0xff] %v16568_v19  ;;  %v12600_v48 = vunpack.i.h.bf16 %v12598_v25  ;;  %v12599_v12 = vunpack.i.l.bf16 %v12598_v25  ;;  %v12593_v34 = vpop.permute.xlu0 %12592  ;;  %v3831_v62 = vsel %vm3726_vm1, %v3634_v61, %v12584_v4  ;;  %v1492_v61 = vld [vmem:[%s15256_s27 + $0x580] sm:$0xff] }
 0x249   : > { %v12595_v18 = vunpack.i.h.bf16 %v12593_v34  ;;  %v12594_v15 = vunpack.i.l.bf16 %v12593_v34  ;;  %12887 = vrot.lane.b32.xlu1 %v12886_v36, %s14690_s17 }
 0x24a   : > { %v4030_v52 = vsel %vm3923_vm2, %v3833_v35, %v12599_v12  ;;  %v4031_v29 = vsel %vm3923_vm2, %v3834_v2, %v12600_v48  ;;  %12882 = vrot.lane.b32.xlu0 %v12881_v57, %s14690_s17  ;;  %v16594_v20 = vpop.f32.mrb[32].mxu0  ;;  %v1490_v48 = vld [vmem:[%s15256_s27 + $0x570] sm:$0xff]  ;;  %v13980_v12 = vld [vmem:[%s20517_s3] sm:$0xff]  }
 0x24b   : > { %20644 = vst [vmem:[#allocation7_spill] sm:$0xff] %v16594_v20  ;;  %v4028_v43 = vsel %vm3923_vm2, %v3831_v62, %v12594_v15  ;;  %v4029_v34 = vsel %vm3923_vm2, %v3832_v41, %v12595_v18  ;;  %v16598_v23 = vpop.f32.mrb[33].mxu0  ;;  %v12608_v36 = vpop.permute.xlu1 %12607  ;;  %v4173_v4 = vpack.c.bf16 %v4031_v29, %v4030_v52  ;;  %v16618_v62 = vld [vmem:[%s15256_s27 + $0x588] sm:$0xff] }
 0x24c   : > { %v12603_v38 = vpop.permute.xlu0 %12602  ;;  %v11438_v3 = vpop.f32.mrb[34].mxu0  ;;  %v4172_v26 = vpack.c.bf16 %v4029_v34, %v4028_v43  ;;  %v12610_v13 = vunpack.i.h.bf16 %v12608_v36  ;;  %v12609_v35 = vunpack.i.l.bf16 %v12608_v36  ;;  %v20528_v43 = vmov 0  }
 0x24d   : > { %v16601_v25 = vadd.f32 %v11438_v3, %v16166_v5  ;;  %v4717_v57 = vpop.f32.mrb[35].mxu0  ;;  %12897 = vrot.lane.b32.xlu1 %v16578_v24, %s14692_s29  ;;  %v12605_v2 = vunpack.i.h.bf16 %v12603_v38  ;;  %7061 = vmatprep.subr.bf16.mxu1 %v20528_v43  ;;  %v12916_v3 = vpack.i.bf16 %v1492_v61, %v1491_v7 }
 0x24e   : > { %v4718_v50 = vadd.f32 %v16166_v5, %v4717_v57  ;;  %12892 = vrot.lane.b32.xlu0 %v16580_v59, %s14692_s29  ;;  %11507 = vmatprep.mubr.msk.bf16.mxu0 %vm4257_vm3, %v4172_v26  ;;  %v12604_v5 = vunpack.i.l.bf16 %v12603_v38  ;;  %v20646_v26 = vmax.f32 %v16548_v33, 0.0  ;;  %v14570_v33 = vld [vmem:[%s15256_s27 + $0x3a0] sm:$0xff] }
 0x24f   : > { %v20527_v18 = vmax.f32 %v16601_v25, 0.0  ;;  %11508 = vmatmul.mubr.msk.bf16.gmra.mrb[104].mxu0 %vm4257_vm3, %v4173_v4  ;;  %v12618_v15 = vpop.permute.xlu1 %12617  ;;  %v12911_v4 = vpack.i.bf16 %v1490_v48, %v16562_v39  ;;  %7062 = vmatpush1.bf16.msra.mxu1 %v13980_v12  ;;  %v14568_v39 = vld [vmem:[%s15256_s27 + $0x3b0] sm:$0xff] }
 0x250   : > { %v5402_v41 = vmax.f32 %v4718_v50, 0.0  ;;  %v12619_v52 = vunpack.i.l.bf16 %v12618_v15  ;;  %v12613_v29 = vpop.permute.xlu0 %12612  ;;  %v12620_v34 = vunpack.i.h.bf16 %v12618_v15  ;;  %v16635_v15 = vpack.i.bf16 %v16618_v62, %v1492_v61  ;;  %v14571_v61 = vld [vmem:[%s15256_s27 + $0x398] sm:$0xff] }
 0x251   : > { %v12614_v36 = vunpack.i.l.bf16 %v12613_v29  ;;  %12907 = vrot.lane.b32.xlu1 %v16475_v49, %s14691_s28  ;;  %v12615_v50 = vunpack.i.h.bf16 %v12613_v29  ;;  %v13981_v49 = vld [vmem:[%s20517_s3 + $0x8] sm:$0xff]   ;;  %v3641_v12 = vsel %vm3529_vm0, %v14568_v39, %v12610_v13  ;;  %v3638_v63 = vsel %vm3529_vm0, %v14571_v61, %v12604_v5 }
 0x252   : > { %v16626_v38 = vpack.i.bf16 %v20527_v18, %v5402_v41  ;;  %v16630_v57 = vpack.i.bf16 %v5402_v41, %v20646_v26  ;;  %12902 = vrot.lane.b32.xlu0 %v16419_v31, %s14691_s28  ;;  %v14569_v18 = vld [vmem:[%s15256_s27 + $0x3a8] sm:$0xff]  ;;  %v3639_v41 = vsel %vm3529_vm0, %v14570_v33, %v12605_v2  ;;  %v16646_v26 = vpack.i.bf16 %v1491_v7, %v1490_v48 }
 0x253   : > { %v3640_v43 = vsel %vm3529_vm0, %v14569_v18, %v12609_v35  ;;  %v12628_v29 = vpop.permute.xlu1 %12627  ;;  %v20648_v31 = vmov 0   ;;  %v3838_v13 = vsel %vm3726_vm1, %v3641_v12, %v12620_v34  ;;  %v3835_v35 = vsel %vm3726_vm1, %v3638_v63, %v12614_v36  ;;  %v13982_v63 = vld [vmem:[%s20517_s3 + $0x10] sm:$0xff]  }
 0x254   : > { %20645 = vst [vmem:[#allocation8_spill] sm:$0xff] %v16626_v38  ;;  %20647 = vst [vmem:[#allocation9_spill] sm:$0xff] %v16630_v57  ;;  %7063 = vmatprep.subr.bf16.mxu1 %v20648_v31  ;;  %v3837_v21 = vsel %vm3726_vm1, %v3640_v43, %v12619_v52  ;;  %v12630_v16 = vunpack.i.h.bf16 %v12628_v29  ;;  %v12629_v38 = vunpack.i.l.bf16 %v12628_v29  ;;  %v12623_v57 = vpop.permute.xlu0 %12622  ;;  %v3836_v7 = vsel %vm3726_vm1, %v3639_v41, %v12615_v50  ;;  %v16685_v33 = vld [vmem:[%s15256_s27 + $0x5a8] sm:$0xff]  ;;  %v1494_v41 = vld [vmem:[%s15256_s27 + $0x590] sm:$0xff] }
 0x255   : > { %v12625_v18 = vunpack.i.h.bf16 %v12623_v57  ;;  %v12624_v39 = vunpack.i.l.bf16 %v12623_v57  ;;  %12917 = vrot.lane.b32.xlu1 %v12916_v3, %s14690_s17  ;;  %7064 = vmatpush1.bf16.msra.mxu1 %v13981_v49  ;;  %v1496_v49 = vld [vmem:[%s15256_s27 + $0x5a0] sm:$0xff]  ;;  %v13983_v29 = vld [vmem:[%s20517_s3 + $0x18] sm:$0xff]  }
 0x256   : > { %v4034_v48 = vsel %vm3923_vm2, %v3837_v21, %v12629_v38  ;;  %v4035_v2 = vsel %vm3923_vm2, %v3838_v13, %v12630_v16  ;;  %12912 = vrot.lane.b32.xlu0 %v12911_v4, %s14690_s17  ;;  %v16659_v5 = vpop.f32.mrb[36].mxu0  ;;  %7065 = vmatprep.subr.bf16.mxu1 %v20648_v31  ;;  %v16672_v38 = vld [vmem:[%s20516_s2] ss:$0 sm:$0xff] }
 0x257   : > { %20649 = vst [vmem:[#allocation10_spill] sm:$0xff] %v16659_v5  ;;  %v4032_v52 = vsel %vm3923_vm2, %v3835_v35, %v12624_v39  ;;  %v4033_v43 = vsel %vm3923_vm2, %v3836_v7, %v12625_v18  ;;  %v16667_v34 = vpop.f32.mrb[37].mxu0  ;;  %v12638_v16 = vpop.permute.xlu1 %12637  ;;  %v4175_v21 = vpack.c.bf16 %v4035_v2, %v4034_v48  ;;  %v16694_v7 = vld [vmem:[%s15256_s27 + $0x5b0] sm:$0xff] }
 0x258   : > { %v12633_v36 = vpop.permute.xlu0 %12632  ;;  %v11442_v3 = vpop.f32.mrb[38].mxu0  ;;  %v4174_v4 = vpack.c.bf16 %v4033_v43, %v4032_v52  ;;  %v12640_v61 = vunpack.i.h.bf16 %v12638_v16  ;;  %v12639_v13 = vunpack.i.l.bf16 %v12638_v16  ;;  %v1495_v43 = vld [vmem:[%s15256_s27 + $0x598] sm:$0xff] }
 0x259   : > { %v16675_v57 = vadd.f32 %v16672_v38, %v11442_v3  ;;  %v4733_v50 = vpop.f32.mrb[39].mxu0  ;;  %12927 = vrot.lane.b32.xlu1 %v16635_v15, %s14692_s29  ;;  %7066 = vmatpush1.bf16.msra.mxu1 %v13982_v63  ;;  %v12635_v35 = vunpack.i.h.bf16 %v12633_v36  ;;  %v12634_v48 = vunpack.i.l.bf16 %v12633_v36 }
 0x25a   : > { %v4734_v12 = vadd.f32 %v16672_v38, %v4733_v50  ;;  %12922 = vrot.lane.b32.xlu0 %v16646_v26, %s14692_s29  ;;  %11511 = vmatprep.mubr.msk.bf16.mxu0 %vm4257_vm3, %v4174_v4  ;;  %v12941_v4 = vpack.i.bf16 %v1494_v41, %v16618_v62  ;;  %v20651_v50 = vmax.f32 %v16601_v25, 0.0  ;;  %v13984_v62 = vld [vmem:[%s20517_s3 + $0x20] sm:$0xff]   ;;  %v14575_v25 = vld [vmem:[%s15256_s27 + $0x3c8] sm:$0xff] }
 0x25b   : > { %v20530_v18 = vmax.f32 %v16675_v57, 0.0  ;;  %11512 = vmatmul.mubr.msk.bf16.gmra.mrb[108].mxu0 %vm4257_vm3, %v4175_v21  ;;  %v12648_v39 = vpop.permute.xlu1 %12647  ;;  %7067 = vmatprep.subr.bf16.mxu1 %v20648_v31  ;;  %v12946_v21 = vpack.i.bf16 %v16685_v33, %v1496_v49  ;;  %v14573_v49 = vld [vmem:[%s15256_s27 + $0x3d8] sm:$0xff] }
 0x25c   : > { %v5406_v2 = vmax.f32 %v4734_v12, 0.0  ;;  %v12649_v63 = vunpack.i.l.bf16 %v12648_v39  ;;  %v12643_v52 = vpop.permute.xlu0 %12642  ;;  %v12650_v3 = vunpack.i.h.bf16 %v12648_v39 }
 0x25d   : > { %v12644_v16 = vunpack.i.l.bf16 %v12643_v52  ;;  %12937 = vrot.lane.b32.xlu1 %v16527_v42, %s14691_s28  ;;  %7068 = vmatpush1.bf16.msra.mxu1 %v13983_v29  ;;  %v12645_v39 = vunpack.i.h.bf16 %v12643_v52  ;;  %v12956_v42 = vpack.i.bf16 %v16694_v7, %v16685_v33  ;;  %v3645_v29 = vsel %vm3529_vm0, %v14573_v49, %v12640_v61 }
 0x25e   : > { %v16704_v36 = vpack.i.bf16 %v20530_v18, %v5406_v2  ;;  %v16708_v12 = vpack.i.bf16 %v5406_v2, %v20651_v50  ;;  %12932 = vrot.lane.b32.xlu0 %v16473_v60, %s14691_s28  ;;  %v14574_v18 = vld [vmem:[%s15256_s27 + $0x3d0] sm:$0xff]  ;;  %v3643_v2 = vsel %vm3529_vm0, %v14575_v25, %v12635_v35  ;;  %v16723_v50 = vpack.i.bf16 %v1495_v43, %v1494_v41  ;;  %v14576_v60 = vld [vmem:[%s15256_s27 + $0x3c0] sm:$0xff] }
 0x25f   : > { %v12658_v52 = vpop.permute.xlu1 %12657  ;;  %7069 = vmatprep.subr.bf16.mxu1 %v20648_v31  ;;  %v3642_v33 = vsel %vm3529_vm0, %v14576_v60, %v12634_v48  ;;  %v3842_v61 = vsel %vm3726_vm1, %v3645_v29, %v12650_v3  ;;  %v3840_v41 = vsel %vm3726_vm1, %v3643_v2, %v12645_v39  ;;  %v16757_v29 = vld [vmem:[%s15256_s27 + $0x5c8] sm:$0xff] }
 0x260   : > { %20650 = vst [vmem:[#allocation11_spill] sm:$0xff] %v16704_v36  ;;  %20652 = vst [vmem:[#allocation12_spill] sm:$0xff] %v16708_v12  ;;  %v3644_v36 = vsel %vm3529_vm0, %v14574_v18, %v12639_v13  ;;  %v12660_v5 = vunpack.i.h.bf16 %v12658_v52  ;;  %v12659_v20 = vunpack.i.l.bf16 %v12658_v52  ;;  %v12653_v19 = vpop.permute.xlu0 %12652  ;;  %v3839_v13 = vsel %vm3726_vm1, %v3642_v33, %v12644_v16  ;;  %v13986_v25 = vld [vmem:[%s20517_s3 + $0x30] sm:$0xff]   ;;  %v1499_v33 = vld [vmem:[%s15256_s27 + $0x5b8] sm:$0xff] }
 0x261   : > { %v3841_v12 = vsel %vm3726_vm1, %v3644_v36, %v12649_v63  ;;  %v12655_v18 = vunpack.i.h.bf16 %v12653_v19  ;;  %v12654_v49 = vunpack.i.l.bf16 %v12653_v19  ;;  %12947 = vrot.lane.b32.xlu1 %v12946_v21, %s14690_s17  ;;  %7070 = vmatpush1.bf16.msra.mxu1 %v13984_v62  ;;  %v13985_v19 = vld [vmem:[%s20517_s3 + $0x28] sm:$0xff]  }
 0x262   : > { %v4038_v35 = vsel %vm3923_vm2, %v3841_v12, %v12659_v20  ;;  %v4039_v48 = vsel %vm3923_vm2, %v3842_v61, %v12660_v5  ;;  %12942 = vrot.lane.b32.xlu0 %v12941_v4, %s14690_s17  ;;  %v16736_v63 = vpop.f32.mrb[40].mxu0  ;;  %7071 = vmatprep.subr.bf16.mxu1 %v20648_v31  ;;  %v16754_v62 = vld [vmem:[%s15256_s27 + $0x5c0] sm:$0xff]  ;;  %v16765_v61 = vld [vmem:[%s15256_s27 + $0x5d0] sm:$0xff] }
 0x263   : > { %20653 = vst [vmem:[#allocation13_spill] sm:$0xff] %v16736_v63  ;;  %v4036_v43 = vsel %vm3923_vm2, %v3839_v13, %v12654_v49  ;;  %v4037_v3 = vsel %vm3923_vm2, %v3840_v41, %v12655_v18  ;;  %v16744_v16 = vpop.f32.mrb[41].mxu0  ;;  %v12668_v20 = vpop.permute.xlu1 %12667  ;;  %v4177_v5 = vpack.c.bf16 %v4039_v48, %v4038_v35 }
 0x264   : > { %20654 = vst [vmem:[#allocation14_spill] sm:$0xff] %v16744_v16  ;;  %v12663_v21 = vpop.permute.xlu0 %12662  ;;  %v16746_v4 = vpop.f32.mrb[42].mxu0  ;;  %v4176_v36 = vpack.c.bf16 %v4037_v3, %v4036_v43  ;;  %v12670_v2 = vunpack.i.h.bf16 %v12668_v20  ;;  %v12669_v52 = vunpack.i.l.bf16 %v12668_v20  ;;  %v20655_v43 = vmax.f32 %v16675_v57, 0.0 }
 0x265   : > { %v4749_v12 = vpop.f32.mrb[43].mxu0  ;;  %12957 = vrot.lane.b32.xlu1 %v12956_v42, %s14692_s29  ;;  %7072 = vmatpush1.bf16.msra.mxu1 %v13985_v19  ;;  %v12665_v60 = vunpack.i.h.bf16 %v12663_v21  ;;  %v12664_v13 = vunpack.i.l.bf16 %v12663_v21  ;;  %v12976_v19 = vpack.i.bf16 %v16757_v29, %v16754_v62  ;;  %v12986_v21 = vpack.i.bf16 %v16765_v61, %v16757_v29 }
 0x266   : > { %v4750_v39 = vadd.f32 %v16672_v38, %v4749_v12  ;;  %12952 = vrot.lane.b32.xlu0 %v16723_v50, %s14692_s29  ;;  %11515 = vmatprep.mubr.msk.bf16.mxu0 %vm4257_vm3, %v4176_v36  ;;  %v14577_v36 = vld [vmem:[%s15256_s27 + $0x3f8] sm:$0xff]  ;;  %v14578_v12 = vld [vmem:[%s15256_s27 + $0x3f0] sm:$0xff] }
 0x267   : > { %11516 = vmatmul.mubr.msk.bf16.gmra.mrb[112].mxu0 %vm4257_vm3, %v4177_v5  ;;  %v12678_v42 = vpop.permute.xlu1 %12677  ;;  %7073 = vmatprep.subr.bf16.mxu1 %v20648_v31  ;;  %v12971_v5 = vpack.i.bf16 %v1499_v33, %v16694_v7  ;;  %v3649_v57 = vsel %vm3529_vm0, %v14577_v36, %v12670_v2  ;;  %v12981_v7 = vpack.i.bf16 %v16754_v62, %v1499_v33 }
 0x268   : > { %v5410_v18 = vmax.f32 %v4750_v39, 0.0  ;;  %v12679_v49 = vunpack.i.l.bf16 %v12678_v42  ;;  %v12673_v41 = vpop.permute.xlu0 %12672  ;;  %v12680_v35 = vunpack.i.h.bf16 %v12678_v42  ;;  %v3648_v39 = vsel %vm3529_vm0, %v14578_v12, %v12669_v52 }
 0x269   : > { %v12674_v48 = vunpack.i.l.bf16 %v12673_v41  ;;  %12967 = vrot.lane.b32.xlu1 %v16580_v59, %s14691_s28  ;;  %7074 = vmatpush1.bf16.msra.mxu1 %v13986_v25  ;;  %v12675_v20 = vunpack.i.h.bf16 %v12673_v41  ;;  %v13987_v59 = vld [vmem:[%s20517_s3 + $0x38] sm:$0xff]   ;;  %v14579_v25 = vld [vmem:[%s15256_s27 + $0x3e8] sm:$0xff] }
 0x26a   : > { %v16774_v3 = vpack.i.bf16 %v5410_v18, %v20655_v43  ;;  %12962 = vrot.lane.b32.xlu0 %v16525_v14, %s14691_s28  ;;  %7075 = vmatprep.subr.bf16.mxu1 %v20648_v31  ;;  %v3647_v14 = vsel %vm3529_vm0, %v14579_v25, %v12665_v60  ;;  %v14580_v18 = vld [vmem:[%s15256_s27 + $0x3e0] sm:$0xff]  ;;  %v3845_v41 = vsel %vm3726_vm1, %v3648_v39, %v12679_v49 }
 0x26b   : > { %v12688_v42 = vpop.permute.xlu1 %12687  ;;  %v3646_v29 = vsel %vm3529_vm0, %v14580_v18, %v12664_v13  ;;  %v3846_v16 = vsel %vm3726_vm1, %v3649_v57, %v12680_v35  ;;  %v3844_v60 = vsel %vm3726_vm1, %v3647_v14, %v12675_v20  ;;  %v13988_v49 = vld [vmem:[%s20517_s3 + $0x40] sm:$0xff]  }
 0x26c   : > { %20656 = vst [vmem:[#allocation15_spill] sm:$0xff] %v16774_v3  ;;  %v12690_v43 = vunpack.i.h.bf16 %v12688_v42  ;;  %v12689_v63 = vunpack.i.l.bf16 %v12688_v42  ;;  %v12683_v3 = vpop.permute.xlu0 %12682  ;;  %v3843_v2 = vsel %vm3726_vm1, %v3646_v29, %v12674_v48  ;;  %v16819_v39 = vld [vmem:[%s15256_s27 + $0x5e0] sm:$0xff]  ;;  %v16828_v14 = vld [vmem:[%s15256_s27 + $0x5d8] sm:$0xff] }
 0x26d   : > { %v12685_v36 = vunpack.i.h.bf16 %v12683_v3  ;;  %v12684_v52 = vunpack.i.l.bf16 %v12683_v3  ;;  %12977 = vrot.lane.b32.xlu1 %v12976_v19, %s14690_s17  ;;  %7076 = vmatpush1.bf16.msra.mxu1 %v13987_v59  ;;  %v4758_v3 = vadd.f32 %v16672_v38, %v16746_v4  ;;  %v16825_v4 = vld [vmem:[%s15256_s27 + $0x5e8] sm:$0xff] }
 0x26e   : > { %v4042_v62 = vsel %vm3923_vm2, %v3845_v41, %v12689_v63  ;;  %v4043_v33 = vsel %vm3923_vm2, %v3846_v16, %v12690_v43  ;;  %12972 = vrot.lane.b32.xlu0 %v12971_v5, %s14690_s17  ;;  %v16802_v13 = vpop.f32.mrb[44].mxu0  ;;  %7077 = vmatprep.subr.bf16.mxu1 %v20648_v31  ;;  %v13989_v42 = vld [vmem:[%s20517_s3 + $0x48] sm:$0xff]  }
 0x26f   : > { %v4040_v35 = vsel %vm3923_vm2, %v3843_v2, %v12684_v52  ;;  %v4041_v48 = vsel %vm3923_vm2, %v3844_v60, %v12685_v36  ;;  %v16810_v19 = vpop.f32.mrb[45].mxu0  ;;  %v12698_v63 = vpop.permute.xlu1 %12697  ;;  %v4179_v16 = vpack.c.bf16 %v4043_v33, %v4042_v62  ;;  %v16836_v2 = vld [vmem:[%s15256_s27 + $0x5f0] sm:$0xff] }
 0x270   : > { %v12693_v20 = vpop.permute.xlu0 %12692  ;;  %v11450_v5 = vpop.f32.mrb[46].mxu0  ;;  %v4178_v59 = vpack.c.bf16 %v4041_v48, %v4040_v35  ;;  %v12700_v18 = vunpack.i.h.bf16 %v12698_v63  ;;  %v12699_v29 = vunpack.i.l.bf16 %v12698_v63  ;;  %v13006_v35 = vpack.i.bf16 %v16825_v4, %v16819_v39 }
 0x271   : > { %v16815_v57 = vadd.f32 %v16672_v38, %v11450_v5  ;;  %v4765_v12 = vpop.f32.mrb[47].mxu0  ;;  %12987 = vrot.lane.b32.xlu1 %v12986_v21, %s14692_s29  ;;  %7078 = vmatpush1.bf16.msra.mxu1 %v13988_v49  ;;  %v12695_v21 = vunpack.i.h.bf16 %v12693_v20  ;;  %v12694_v36 = vunpack.i.l.bf16 %v12693_v20  ;;  %v13001_v48 = vpack.i.bf16 %v16828_v14, %v16765_v61  ;;  %v13990_v20 = vld [vmem:[%s20517_s3 + $0x50] sm:$0xff]   ;;  %v14581_v61 = vld [vmem:[%s15256_s27 + $0x418] sm:$0xff] }
 0x272   : > { %v4766_v25 = vadd.f32 %v16672_v38, %v4765_v12  ;;  %12982 = vrot.lane.b32.xlu0 %v12981_v7, %s14692_s29  ;;  %11519 = vmatprep.mubr.msk.bf16.mxu0 %vm4257_vm3, %v4178_v59  ;;  %v5412_v7 = vmax.f32 %v4758_v3, 0.0  ;;  %v3653_v5 = vsel %vm3529_vm0, %v14581_v61, %v12700_v18  ;;  %v14582_v59 = vld [vmem:[%s15256_s27 + $0x410] sm:$0xff] }
 0x273   : > { %v20531_v41 = vmax.f32 %v16815_v57, 0.0  ;;  %11520 = vmatmul.mubr.msk.bf16.gmra.mrb[116].mxu0 %vm4257_vm3, %v4179_v16  ;;  %v12708_v43 = vpop.permute.xlu1 %12707  ;;  %7079 = vmatprep.subr.bf16.mxu1 %v20648_v31  ;;  %v3652_v12 = vsel %vm3529_vm0, %v14582_v59, %v12699_v29 }
 0x274   : > { %v5414_v52 = vmax.f32 %v4766_v25, 0.0  ;;  %v12709_v60 = vunpack.i.l.bf16 %v12708_v43  ;;  %v12703_v62 = vpop.permute.xlu0 %12702  ;;  %v12710_v33 = vunpack.i.h.bf16 %v12708_v43  ;;  %v14583_v25 = vld [vmem:[%s15256_s27 + $0x408] sm:$0xff] }
 0x275   : > { %v12704_v49 = vunpack.i.l.bf16 %v12703_v62  ;;  %12997 = vrot.lane.b32.xlu1 %v16646_v26, %s14691_s28  ;;  %7080 = vmatpush1.bf16.msra.mxu1 %v13989_v42  ;;  %v12705_v3 = vunpack.i.h.bf16 %v12703_v62  ;;  %v13016_v26 = vpack.i.bf16 %v16836_v2, %v16825_v4  ;;  %v3651_v42 = vsel %vm3529_vm0, %v14583_v25, %v12695_v21  ;;  %v14584_v4 = vld [vmem:[%s15256_s27 + $0x400] sm:$0xff] }
 0x276   : > { %v16847_v63 = vpack.i.bf16 %v20531_v41, %v5414_v52  ;;  %v16849_v16 = vpack.i.bf16 %v5414_v52, %v5412_v7  ;;  %12992 = vrot.lane.b32.xlu0 %v16578_v24, %s14691_s28  ;;  %v13011_v24 = vpack.i.bf16 %v16819_v39, %v16828_v14  ;;  %7081 = vmatprep.subr.bf16.mxu1 %v20648_v31 }
 0x277   : > { %v12718_v43 = vpop.permute.xlu1 %12717  ;;  %v3650_v7 = vsel %vm3529_vm0, %v14584_v4, %v12694_v36  ;;  %v3849_v52 = vsel %vm3726_vm1, %v3652_v12, %v12709_v60  ;;  %v3850_v61 = vsel %vm3726_vm1, %v3653_v5, %v12710_v33  ;;  %v3848_v39 = vsel %vm3726_vm1, %v3651_v42, %v12705_v3  ;;  %v13991_v33 = vld [vmem:[%s20517_s3 + $0x58] sm:$0xff]   ;;  %v16888_v5 = vld [vmem:[%s15256_s27 + $0x600] sm:$0xff] }
 0x278   : > { %v12720_v62 = vunpack.i.h.bf16 %v12718_v43  ;;  %v12719_v41 = vunpack.i.l.bf16 %v12718_v43  ;;  %v12713_v18 = vpop.permute.xlu0 %12712  ;;  %v3847_v29 = vsel %vm3726_vm1, %v3650_v7, %v12704_v49  ;;  %v16895_v12 = vadd.f32 %v16672_v38, %v16157_v0 }
 0x279   : > { %v12715_v59 = vunpack.i.h.bf16 %v12713_v18  ;;  %v12714_v21 = vunpack.i.l.bf16 %v12713_v18  ;;  %13007 = vrot.lane.b32.xlu1 %v13006_v35, %s14690_s17  ;;  %7082 = vmatpush1.bf16.msra.mxu1 %v13990_v20  ;;  %v16899_v4 = vadd.f32 %v16672_v38, %v16219_v11  ;;  %v16914_v11 = vld [vmem:[%s15256_s27 + $0x610] sm:$0xff] }
 0x27a   : > { %v4046_v14 = vsel %vm3923_vm2, %v3849_v52, %v12719_v41  ;;  %v4047_v36 = vsel %vm3923_vm2, %v3850_v61, %v12720_v62  ;;  %13002 = vrot.lane.b32.xlu0 %v13001_v48, %s14690_s17  ;;  %v16877_v60 = vpop.f32.mrb[48].mxu0  ;;  %7083 = vmatprep.subr.bf16.mxu1 %v20648_v31  ;;  %v16891_v48 = vld [vmem:[%s15256_s27 + $0x608] sm:$0xff]  ;;  %v16906_v62 = vld [vmem:[%s15256_s27 + $0x5f8] sm:$0xff] }
 0x27b   : > { %v4044_v49 = vsel %vm3923_vm2, %v3847_v29, %v12714_v21  ;;  %v4045_v35 = vsel %vm3923_vm2, %v3848_v39, %v12715_v59  ;;  %v16885_v3 = vpop.f32.mrb[49].mxu0  ;;  %v12728_v41 = vpop.permute.xlu1 %12727  ;;  %v4181_v20 = vpack.c.bf16 %v4047_v36, %v4046_v14  ;;  %v13036_v0 = vpack.i.bf16 %v16891_v48, %v16888_v5  ;;  %v13992_v61 = vld [vmem:[%s20517_s3 + $0x60] sm:$0xff]  }
 0x27c   : > { %v12723_v25 = vpop.permute.xlu0 %12722  ;;  %v11454_v42 = vpop.f32.mrb[50].mxu0  ;;  %v4180_v43 = vpack.c.bf16 %v4045_v35, %v4044_v49  ;;  %v12730_v29 = vunpack.i.h.bf16 %v12728_v41  ;;  %v13031_v49 = vpack.i.bf16 %v16906_v62, %v16836_v2 }
 0x27d   : > { %v16902_v7 = vadd.f32 %v16672_v38, %v11454_v42  ;;  %v4781_v52 = vpop.f32.mrb[51].mxu0  ;;  %13017 = vrot.lane.b32.xlu1 %v13016_v26, %s14692_s29  ;;  %7084 = vmatpush1.bf16.msra.mxu1 %v13991_v33  ;;  %v12729_v26 = vunpack.i.l.bf16 %v12728_v41  ;;  %v12725_v59 = vunpack.i.h.bf16 %v12723_v25  ;;  %v13046_v41 = vpack.i.bf16 %v16914_v11, %v16891_v48  ;;  %v14585_v48 = vld [vmem:[%s15256_s27 + $0x440] sm:$0xff]  ;;  %v14587_v11 = vld [vmem:[%s15256_s27 + $0x428] sm:$0xff] }
 0x27e   : > { %v4782_v18 = vadd.f32 %v16672_v38, %v4781_v52  ;;  %13012 = vrot.lane.b32.xlu0 %v13011_v24, %s14692_s29  ;;  %11523 = vmatprep.mubr.msk.bf16.mxu0 %vm4257_vm3, %v4180_v43  ;;  %v12724_v24 = vunpack.i.l.bf16 %v12723_v25  ;;  %v16932_v25 = vadd.f32 %v16672_v38, %v16379_v17  ;;  %v20658_v43 = vmax.f32 %v16815_v57, 0.0 }
 0x27f   : > { %v20532_v21 = vmax.f32 %v16902_v7, 0.0  ;;  %11524 = vmatmul.mubr.msk.bf16.gmra.mrb[120].mxu0 %vm4257_vm3, %v4181_v20  ;;  %v12738_v39 = vpop.permute.xlu1 %12737  ;;  %7085 = vmatprep.subr.bf16.mxu1 %v20648_v31  ;;  %v13041_v20 = vpack.i.bf16 %v16888_v5, %v16906_v62  ;;  %v13993_v5 = vld [vmem:[%s20517_s3 + $0x68] sm:$0xff]   ;;  %v16949_v17 = vadd.f32 %v16672_v38, %v16383_v37  ;;  %v3657_v62 = vsel %vm3529_vm0, %v14585_v48, %v12730_v29 }
 0x280   : > { %v5418_v14 = vmax.f32 %v4782_v18, 0.0  ;;  %v12739_v36 = vunpack.i.l.bf16 %v12738_v39  ;;  %v12733_v33 = vpop.permute.xlu0 %12732  ;;  %v12740_v35 = vunpack.i.h.bf16 %v12738_v39  ;;  %v14586_v18 = vld [vmem:[%s15256_s27 + $0x438] sm:$0xff] }
 0x281   : > { %v12734_v42 = vunpack.i.l.bf16 %v12733_v33  ;;  %13027 = vrot.lane.b32.xlu1 %v16723_v50, %s14691_s28  ;;  %7086 = vmatpush1.bf16.msra.mxu1 %v13992_v61  ;;  %v12735_v50 = vunpack.i.h.bf16 %v12733_v33  ;;  %v3656_v57 = vsel %vm3529_vm0, %v14586_v18, %v12729_v26  ;;  %v3655_v61 = vsel %vm3529_vm0, %v14587_v11, %v12725_v59 }
 0x282   : > { %v16936_v2 = vpack.i.bf16 %v20532_v21, %v5418_v14  ;;  %v16940_v52 = vpack.i.bf16 %v5418_v14, %v20658_v43  ;;  %13022 = vrot.lane.b32.xlu0 %v16635_v15, %s14691_s28  ;;  %7087 = vmatprep.subr.bf16.mxu1 %v20648_v31  ;;  %v14588_v15 = vld [vmem:[%s15256_s27 + $0x420] sm:$0xff]  ;;  %v3853_v33 = vsel %vm3726_vm1, %v3656_v57, %v12739_v36  ;;  %v20533_v11 = vmax.f32 %v16932_v25, 0.0 }
 0x283   : > { %v12748_v39 = vpop.permute.xlu1 %12747  ;;  %v3654_v14 = vsel %vm3529_vm0, %v14588_v15, %v12724_v24  ;;  %v3852_v59 = vsel %vm3726_vm1, %v3655_v61, %v12735_v50  ;;  %v20539_v61 = vmax.f32 %v16949_v17, 0.0 }
 0x284   : > { %20657 = vst [vmem:[#allocation16_spill] sm:$0xff] %v16936_v2  ;;  %v12750_v43 = vunpack.i.h.bf16 %v12748_v39  ;;  %v12749_v37 = vunpack.i.l.bf16 %v12748_v39  ;;  %v12743_v21 = vpop.permute.xlu0 %12742  ;;  %v3854_v2 = vsel %vm3726_vm1, %v3657_v62, %v12740_v35  ;;  %v3851_v29 = vsel %vm3726_vm1, %v3654_v14, %v12734_v42  ;;  %v13994_v35 = vld [vmem:[%s20517_s3 + $0x70] sm:$0xff]  }
 0x285   : > { %v12745_v48 = vunpack.i.h.bf16 %v12743_v21  ;;  %v12744_v26 = vunpack.i.l.bf16 %v12743_v21  ;;  %13037 = vrot.lane.b32.xlu1 %v13036_v0, %s14690_s17  ;;  %7088 = vmatpush1.bf16.msra.mxu1 %v13993_v5  ;;  %v20540_v14 = vmax.f32 %v16895_v12, 0.0 }
 0x286   : > { %v4050_v18 = vsel %vm3923_vm2, %v3853_v33, %v12749_v37  ;;  %v4051_v24 = vsel %vm3923_vm2, %v3854_v2, %v12750_v43  ;;  %13032 = vrot.lane.b32.xlu0 %v13031_v49, %s14690_s17  ;;  %v16968_v36 = vpop.f32.mrb[52].mxu0  ;;  %7089 = vmatprep.subr.bf16.mxu1 %v20648_v31  ;;  %v20534_v2 = vmax.f32 %v16899_v4, 0.0  ;;  %v13995_v43 = vld [vmem:[%s20517_s3 + $0x78] sm:$0xff]  }
 0x287   : > { %v4048_v21 = vsel %vm3923_vm2, %v3851_v29, %v12744_v26  ;;  %v4049_v0 = vsel %vm3923_vm2, %v3852_v59, %v12745_v48  ;;  %v16976_v42 = vpop.f32.mrb[53].mxu0  ;;  %v12758_v50 = vpop.permute.xlu1 %12757  ;;  %v4183_v5 = vpack.c.bf16 %v4051_v24, %v4050_v18 }
 0x288   : > { %v12753_v62 = vpop.permute.xlu0 %12752  ;;  %v11458_v49 = vpop.f32.mrb[54].mxu0  ;;  %v4182_v57 = vpack.c.bf16 %v4049_v0, %v4048_v21  ;;  %v12760_v37 = vunpack.i.h.bf16 %v12758_v50  ;;  %v12759_v29 = vunpack.i.l.bf16 %v12758_v50  ;;  %v13061_v21 = vpack.i.bf16 %v20533_v11, %v20539_v61 }
 0x289   : > { %v4806_v39 = vadd.f32 %v16672_v38, %v11458_v49  ;;  %v4797_v15 = vpop.f32.mrb[55].mxu0  ;;  %13047 = vrot.lane.b32.xlu1 %v13046_v41, %s14692_s29  ;;  %7090 = vmatpush1.bf16.msra.mxu1 %v13994_v35  ;;  %v13066_v41 = vpack.i.bf16 %v20534_v2, %v20540_v14  ;;  %v12754_v59 = vunpack.i.l.bf16 %v12753_v62  ;;  %v16998_v35 = vadd.f32 %v16672_v38, %v16276_v54 }
 0x28a   : > { %v4798_v33 = vadd.f32 %v16672_v38, %v4797_v15  ;;  %13042 = vrot.lane.b32.xlu0 %v13041_v20, %s14692_s29  ;;  %11527 = vmatprep.mubr.msk.bf16.mxu0 %vm4257_vm3, %v4182_v57  ;;  %v12755_v20 = vunpack.i.h.bf16 %v12753_v62  ;;  %v20659_v62 = vmax.f32 %v16902_v7, 0.0  ;;  %v14589_v15 = vld [vmem:[%s15256_s27 + $0x460] sm:$0xff] }
 0x28b   : > { %v5424_v48 = vmax.f32 %v4806_v39, 0.0  ;;  %11528 = vmatmul.mubr.msk.bf16.gmra.mrb[124].mxu0 %vm4257_vm3, %v4183_v5  ;;  %v12768_v26 = vpop.permute.xlu1 %12767  ;;  %7091 = vmatprep.subr.bf16.mxu1 %v20648_v31  ;;  %v17016_v39 = vadd.f32 %v16672_v38, %v16435_v58 }
 0x28c   : > { %v5422_v18 = vmax.f32 %v4798_v33, 0.0  ;;  %v12763_v24 = vpop.permute.xlu0 %12762  ;;  %v12770_v0 = vunpack.i.h.bf16 %v12768_v26  ;;  %v12769_v50 = vunpack.i.l.bf16 %v12768_v26  ;;  %v3661_v33 = vsel %vm3529_vm0, %v14589_v15, %v12760_v37  ;;  %v14591_v26 = vld [vmem:[%s15256_s27 + $0x450] sm:$0xff] }
 0x28d   : > { %13057 = vrot.lane.b32.xlu1 %v16189_v46, %s14690_s17  ;;  %7092 = vmatpush1.bf16.msra.mxu1 %v13995_v43  ;;  %v12765_v54 = vunpack.i.h.bf16 %v12763_v24  ;;  %v12764_v57 = vunpack.i.l.bf16 %v12763_v24  ;;  %v17020_v46 = vadd.f32 %v16672_v38, %v16439_v22  ;;  %v14590_v43 = vld [vmem:[%s15256_s27 + $0x458] sm:$0xff] }
 0x28e   : > { %v17006_v5 = vpack.i.bf16 %v5424_v48, %v5422_v18  ;;  %v17010_v49 = vpack.i.bf16 %v5422_v18, %v20659_v62  ;;  %13052 = vrot.lane.b32.xlu0 %v16410_v32, %s14690_s17  ;;  %v3660_v7 = vsel %vm3529_vm0, %v14590_v43, %v12759_v29  ;;  %7238 = vmatprep.subr.bf16.mxu1 %v20648_v31  ;;  %v14592_v18 = vld [vmem:[%s15256_s27 + $0x448] sm:$0xff] }
 0x28f   : > { %v12778_v48 = vpop.permute.xlu1 %12777  ;;  %v3659_v32 = vsel %vm3529_vm0, %v14591_v26, %v12755_v20  ;;  %v3658_v58 = vsel %vm3529_vm0, %v14592_v18, %v12754_v59  ;;  %v3857_v22 = vsel %vm3726_vm1, %v3660_v7, %v12769_v50  ;;  %v3858_v2 = vsel %vm3726_vm1, %v3661_v33, %v12770_v0 }
 0x290   : > { %v12780_v24 = vunpack.i.h.bf16 %v12778_v48  ;;  %v12779_v62 = vunpack.i.l.bf16 %v12778_v48  ;;  %v12773_v11 = vpop.permute.xlu0 %12772  ;;  %v3855_v29 = vsel %vm3726_vm1, %v3658_v58, %v12764_v57  ;;  %v3856_v43 = vsel %vm3726_vm1, %v3659_v32, %v12765_v54 }
 0x291   : > { %v12775_v37 = vunpack.i.h.bf16 %v12773_v11  ;;  %v12774_v15 = vunpack.i.l.bf16 %v12773_v11  ;;  %13067 = vrot.lane.b32.xlu1 %v13066_v41, %s14694_s25  ;;  %v17043_v0 = vadd.f32 %v16672_v38, %v16215_v1  ;;  %v20535_v1 = vmax.f32 %v17016_v39, 0.0 }
 0x292   : > { %v4054_v20 = vsel %vm3923_vm2, %v3857_v22, %v12779_v62  ;;  %v4055_v59 = vsel %vm3923_vm2, %v3858_v2, %v12780_v24  ;;  %v17038_v26 = vpop.f32.mrb[56].mxu0  ;;  %13062 = vrot.lane.b32.xlu0 %v13061_v21, %s14694_s25  ;;  %v20536_v2 = vmax.f32 %v16998_v35, 0.0  ;;  %v20537_v18 = vmax.f32 %v17020_v46, 0.0 }
 0x293   : > { %v4052_v11 = vsel %vm3923_vm2, %v3855_v29, %v12774_v15  ;;  %v4053_v41 = vsel %vm3923_vm2, %v3856_v43, %v12775_v37  ;;  %v17047_v50 = vpop.f32.mrb[57].mxu0  ;;  %v12788_v57 = vpop.permute.xlu1 %12787  ;;  %v4185_v54 = vpack.c.bf16 %v4055_v59, %v4054_v20  ;;  %v20538_v24 = vmax.f32 %v17043_v0, 0.0 }
 0x294   : > { %20660 = vst [vmem:[#allocation17_spill] sm:$0xff] %v17047_v50  ;;  %v12783_v33 = vpop.permute.xlu0 %12782  ;;  %v11462_v7 = vpop.f32.mrb[58].mxu0  ;;  %v4184_v48 = vpack.c.bf16 %v4053_v41, %v4052_v11  ;;  %v12790_v62 = vunpack.i.h.bf16 %v12788_v57  ;;  %v12789_v22 = vunpack.i.l.bf16 %v12788_v57  ;;  %v17066_v15 = vadd.f32 %v16672_v38, %v16272_v8 }
 0x295   : > { %v17051_v32 = vadd.f32 %v16672_v38, %v11462_v7  ;;  %v4813_v21 = vpop.f32.mrb[59].mxu0  ;;  %13077 = vrot.lane.b32.xlu1 %v16247_v40, %s14695_s26  ;;  %v12785_v29 = vunpack.i.h.bf16 %v12783_v33  ;;  %v12784_v43 = vunpack.i.l.bf16 %v12783_v33  ;;  %v4635_v11 = vadd.f32 %v16672_v38, %v16334_v27 }
 0x296   : > { %v4814_v58 = vadd.f32 %v16672_v38, %v4813_v21  ;;  %11531 = vmatprep.mubr.msk.bf16.mxu0 %vm4257_vm3, %v4184_v48  ;;  %13072 = vrot.lane.b32.xlu0 %v16408_v53, %s14695_s26  ;;  %v13096_v53 = vpack.i.bf16 %v20536_v2, %v20538_v24  ;;  %v13091_v8 = vpack.i.bf16 %v20535_v1, %v20537_v18  ;;  %v14593_v48 = vld [vmem:[%s15256_s27 + $0x480] sm:$0xff]  ;;  %v14595_v1 = vld [vmem:[%s15256_s27 + $0x470] sm:$0xff]  ;;  %v14596_v2 = vld [vmem:[%s15256_s27 + $0x468] sm:$0xff] }
 0x297   : > { %v20541_v37 = vmax.f32 %v17051_v32, 0.0  ;;  %11532 = vmatmul.mubr.msk.bf16.gmra.mrb[128].mxu0 %vm4257_vm3, %v4185_v54  ;;  %v12798_v40 = vpop.permute.xlu1 %12797  ;;  %v4691_v27 = vadd.f32 %v16672_v38, %v16489_v51  ;;  %v3665_v21 = vsel %vm3529_vm0, %v14593_v48, %v12790_v62 }
 0x298   : > { %v5426_v20 = vmax.f32 %v4814_v58, 0.0  ;;  %v12793_v59 = vpop.permute.xlu0 %12792  ;;  %v12800_v41 = vunpack.i.h.bf16 %v12798_v40  ;;  %v12799_v57 = vunpack.i.l.bf16 %v12798_v40  ;;  %v14594_v58 = vld [vmem:[%s15256_s27 + $0x478] sm:$0xff] }
 0x299   : > { %13087 = vrot.lane.b32.xlu1 %v16243_v55, %s14690_s17  ;;  %v12795_v33 = vunpack.i.h.bf16 %v12793_v59  ;;  %v12794_v7 = vunpack.i.l.bf16 %v12793_v59  ;;  %v17090_v55 = vadd.f32 %v16672_v38, %v16493_v28  ;;  %v3664_v40 = vsel %vm3529_vm0, %v14594_v58, %v12789_v22 }
 0x29a   : > { %v17082_v54 = vpack.i.bf16 %v20541_v37, %v5426_v20  ;;  %13082 = vrot.lane.b32.xlu0 %v16465_v56, %s14690_s17  ;;  %v3663_v59 = vsel %vm3529_vm0, %v14595_v1, %v12785_v29  ;;  %v3662_v56 = vsel %vm3529_vm0, %v14596_v2, %v12784_v43  ;;  %v3861_v61 = vsel %vm3726_vm1, %v3664_v40, %v12799_v57 }
 0x29b   : > { %v12808_v20 = vpop.permute.xlu1 %12807  ;;  %v3862_v28 = vsel %vm3726_vm1, %v3665_v21, %v12800_v41  ;;  %v3859_v62 = vsel %vm3726_vm1, %v3662_v56, %v12794_v7  ;;  %v3860_v22 = vsel %vm3726_vm1, %v3663_v59, %v12795_v33  ;;  %v5381_v43 = vmax.f32 %v4635_v11, 0.0 }
 0x29c   : > { %v12810_v18 = vunpack.i.h.bf16 %v12808_v20  ;;  %v12809_v24 = vunpack.i.l.bf16 %v12808_v20  ;;  %v12803_v51 = vpop.permute.xlu0 %12802  ;;  %v5395_v7 = vmax.f32 %v4691_v27, 0.0  ;;  %v20551_v33 = vmax.f32 %v17090_v55, 0.0 }
 0x29d   : > { %v12805_v14 = vunpack.i.h.bf16 %v12803_v51  ;;  %v12804_v37 = vunpack.i.l.bf16 %v12803_v51  ;;  %13097 = vrot.lane.b32.xlu1 %v13096_v53, %s14694_s25 }
 0x29e   : > { %v4058_v1 = vsel %vm3923_vm2, %v3861_v61, %v12809_v24  ;;  %v4059_v29 = vsel %vm3923_vm2, %v3862_v28, %v12810_v18  ;;  %v17107_v2 = vpop.f32.mrb[60].mxu0  ;;  %13092 = vrot.lane.b32.xlu0 %v13091_v8, %s14694_s25  ;;  %v20542_v18 = vmax.f32 %v17066_v15, 0.0 }
 0x29f   : > { %v4056_v57 = vsel %vm3923_vm2, %v3859_v62, %v12804_v37  ;;  %v4057_v41 = vsel %vm3923_vm2, %v3860_v22, %v12805_v14  ;;  %v17112_v48 = vpop.f32.mrb[61].mxu0  ;;  %v12818_v53 = vpop.permute.xlu1 %12817  ;;  %v4187_v21 = vpack.c.bf16 %v4059_v29, %v4058_v1  ;;  %v17137_v22 = vadd.f32 %v16672_v38, %v16598_v23 }
 0x2a0   : > { %v12813_v58 = vpop.permute.xlu0 %12812  ;;  %v11466_v61 = vpop.f32.mrb[62].mxu0  ;;  %v4186_v24 = vpack.c.bf16 %v4057_v41, %v4056_v57  ;;  %v13126_v37 = vpack.i.bf16 %v5381_v43, %v20542_v18  ;;  %v12820_v8 = vunpack.i.h.bf16 %v12818_v53  ;;  %v12819_v27 = vunpack.i.l.bf16 %v12818_v53 }
 0x2a1   : > { %v17117_v40 = vadd.f32 %v16672_v38, %v11466_v61  ;;  %v4829_v11 = vpop.f32.mrb[63].mxu0  ;;  %13107 = vrot.lane.b32.xlu1 %v16305_v47, %s14695_s26  ;;  %v13121_v47 = vpack.i.bf16 %v5395_v7, %v20551_v33  ;;  %v12815_v56 = vunpack.i.h.bf16 %v12813_v58  ;;  %v12814_v51 = vunpack.i.l.bf16 %v12813_v58  ;;  %v14598_v58 = vld [vmem:[%s15256_s27 + $0x498] sm:$0xff] }
 0x2a2   : > { %v4830_v14 = vadd.f32 %v16672_v38, %v4829_v11  ;;  %11535 = vmatprep.mubr.msk.bf16.mxu0 %vm4257_vm3, %v4186_v24  ;;  %13102 = vrot.lane.b32.xlu0 %v16461_v45, %s14695_s26  ;;  %v17133_v45 = vadd.f32 %v16672_v38, %v16541_v9  ;;  %v20661_v57 = vmax.f32 %v17051_v32, 0.0  ;;  %v17153_v23 = vadd.f32 %v16672_v38, %v16802_v13  ;;  %v14599_v24 = vld [vmem:[%s15256_s27 + $0x490] sm:$0xff] }
 0x2a3   : > { %v5432_v20 = vmax.f32 %v17117_v40, 0.0  ;;  %11536 = vmatmul.mubr.msk.bf16.gmra.mrb[132].mxu0 %vm4257_vm3, %v4187_v21  ;;  %v12828_v59 = vpop.permute.xlu1 %12827  ;;  %v14597_v21 = vld [vmem:[%s15256_s27 + $0x4a0] sm:$0xff]  ;;  %v3668_v32 = vsel %vm3529_vm0, %v14598_v58, %v12819_v27  ;;  %v3667_v11 = vsel %vm3529_vm0, %v14599_v24, %v12815_v56 }
 0x2a4   : > { %v5430_v28 = vmax.f32 %v4830_v14, 0.0  ;;  %v12823_v62 = vpop.permute.xlu0 %12822  ;;  %v12830_v1 = vunpack.i.h.bf16 %v12828_v59  ;;  %v12829_v29 = vunpack.i.l.bf16 %v12828_v59  ;;  %v3669_v7 = vsel %vm3529_vm0, %v14597_v21, %v12820_v8  ;;  %v14600_v14 = vld [vmem:[%s15256_s27 + $0x488] sm:$0xff] }
 0x2a5   : > { %13117 = vrot.lane.b32.xlu1 %v16301_v30, %s14690_s17  ;;  %v12825_v9 = vunpack.i.h.bf16 %v12823_v62  ;;  %v12824_v53 = vunpack.i.l.bf16 %v12823_v62  ;;  %v17157_v30 = vadd.f32 %v16672_v38, %v16810_v19  ;;  %v20543_v24 = vmax.f32 %v17153_v23, 0.0 }
 0x2a6   : > { %v17143_v43 = vpack.i.bf16 %v5432_v20, %v5430_v28  ;;  %v17147_v41 = vpack.i.bf16 %v5430_v28, %v20661_v57  ;;  %13112 = vrot.lane.b32.xlu0 %v16516_v10, %s14690_s17  ;;  %v3666_v10 = vsel %vm3529_vm0, %v14600_v14, %v12814_v51  ;;  %v3865_v62 = vsel %vm3726_vm1, %v3668_v32, %v12829_v29 }
 0x2a7   : > { %v12838_v61 = vpop.permute.xlu1 %12837  ;;  %v3866_v19 = vsel %vm3726_vm1, %v3669_v7, %v12830_v1  ;;  %v3863_v8 = vsel %vm3726_vm1, %v3666_v10, %v12824_v53  ;;  %v3864_v27 = vsel %vm3726_vm1, %v3667_v11, %v12825_v9  ;;  %v20544_v53 = vmax.f32 %v17137_v22, 0.0 }
 0x2a8   : > { %v12840_v59 = vunpack.i.h.bf16 %v12838_v61  ;;  %v12839_v13 = vunpack.i.l.bf16 %v12838_v61  ;;  %v12833_v28 = vpop.permute.xlu0 %12832  ;;  %v20546_v11 = vmax.f32 %v17157_v30, 0.0 }
 0x2a9   : > { %v12835_v57 = vunpack.i.h.bf16 %v12833_v28  ;;  %v12834_v18 = vunpack.i.l.bf16 %v12833_v28  ;;  %13127 = vrot.lane.b32.xlu1 %v13126_v37, %s14694_s25 }
 0x2aa   : > { %v4062_v56 = vsel %vm3923_vm2, %v3865_v62, %v12839_v13  ;;  %v4063_v21 = vsel %vm3923_vm2, %v3866_v19, %v12840_v59  ;;  %v17174_v51 = vpop.f32.mrb[64].mxu0  ;;  %13122 = vrot.lane.b32.xlu0 %v13121_v47, %s14694_s25 }
 0x2ab   : > { %v4060_v29 = vsel %vm3923_vm2, %v3863_v8, %v12834_v18  ;;  %v4061_v1 = vsel %vm3923_vm2, %v3864_v27, %v12835_v57  ;;  %v17179_v7 = vpop.f32.mrb[65].mxu0  ;;  %v12848_v58 = vpop.permute.xlu1 %12847  ;;  %v4189_v37 = vpack.c.bf16 %v4063_v21, %v4062_v56  ;;  %v20545_v18 = vmax.f32 %v17133_v45, 0.0 }
 0x2ac   : > { %v12843_v32 = vpop.permute.xlu0 %12842  ;;  %v11470_v9 = vpop.f32.mrb[66].mxu0  ;;  %v4188_v61 = vpack.c.bf16 %v4061_v1, %v4060_v29  ;;  %v12850_v59 = vunpack.i.h.bf16 %v12848_v58  ;;  %v12849_v13 = vunpack.i.l.bf16 %v12848_v58  ;;  %v13151_v56 = vpack.i.bf16 %v20543_v24, %v20546_v11  ;;  %v20662_v1 = vld [vmem:[#allocation6_spill] sm:$0xff] }
 0x2ad   : > { %v17185_v14 = vadd.f32 %v16672_v38, %v11470_v9  ;;  %v4845_v47 = vpop.f32.mrb[67].mxu0  ;;  %13137 = vrot.lane.b32.xlu1 %v16353_v44, %s14695_s26  ;;  %v13156_v44 = vpack.i.bf16 %v20544_v53, %v20545_v18  ;;  %v12845_v19 = vunpack.i.h.bf16 %v12843_v32  ;;  %v12844_v57 = vunpack.i.l.bf16 %v12843_v32 }
 0x2ae   : > { %v4846_v10 = vadd.f32 %v16672_v38, %v4845_v47  ;;  %11539 = vmatprep.mubr.msk.bf16.mxu0 %vm4257_vm3, %v4188_v61  ;;  %13132 = vrot.lane.b32.xlu0 %v16512_v6, %s14695_s26  ;;  %v17202_v6 = vadd.f32 %v16672_v38, %v16667_v34  ;;  %v17222_v9 = vadd.f32 %v16672_v38, %v16877_v60  ;;  %v14601_v47 = vld [vmem:[%s15256_s27 + $0x4c8] sm:$0xff] }
 0x2af   : > { %v5436_v28 = vmax.f32 %v17185_v14, 0.0  ;;  %11540 = vmatmul.mubr.msk.bf16.gmra.mrb[136].mxu0 %vm4257_vm3, %v4189_v37  ;;  %v12858_v62 = vpop.permute.xlu1 %12857  ;;  %v17226_v61 = vadd.f32 %v16672_v38, %v16885_v3 }
 0x2b0   : > { %v5434_v8 = vmax.f32 %v4846_v10, 0.0  ;;  %v12853_v27 = vpop.permute.xlu0 %12852  ;;  %v12860_v21 = vunpack.i.h.bf16 %v12858_v62  ;;  %v12859_v29 = vunpack.i.l.bf16 %v12858_v62  ;;  %20663 = vst [vmem:[#allocation6_spill] sm:$0xff] %v17222_v9  ;;  %v3673_v10 = vsel %vm3529_vm0, %v14601_v47, %v12850_v59  ;;  %v14602_v62 = vld [vmem:[%s15256_s27 + $0x4c0] sm:$0xff] }
 0x2b1   : > { %13147 = vrot.lane.b32.xlu1 %v20662_v1, %s14690_s17  ;;  %v12855_v37 = vunpack.i.h.bf16 %v12853_v27  ;;  %v12854_v32 = vunpack.i.l.bf16 %v12853_v27  ;;  %v3672_v40 = vsel %vm3529_vm0, %v14602_v62, %v12849_v13  ;;  %v14604_v1 = vld [vmem:[%s15256_s27 + $0x4b0] sm:$0xff] }
 0x2b2   : > { %v17212_v58 = vpack.i.bf16 %v5436_v28, %v5434_v8  ;;  %v17216_v34 = vpack.i.bf16 %v5434_v8, %v5432_v20  ;;  %13142 = vrot.lane.b32.xlu0 %v16849_v16, %s14690_s17  ;;  %v14603_v8 = vld [vmem:[%s15256_s27 + $0x4b8] sm:$0xff]  ;;  %v3670_v16 = vsel %vm3529_vm0, %v14604_v1, %v12844_v57  ;;  %v3869_v18 = vsel %vm3726_vm1, %v3672_v40, %v12859_v29 }
 0x2b3   : > { %v12868_v20 = vpop.permute.xlu1 %12867  ;;  %v3671_v27 = vsel %vm3529_vm0, %v14603_v8, %v12845_v19  ;;  %v3870_v38 = vsel %vm3726_vm1, %v3673_v10, %v12860_v21  ;;  %v3867_v59 = vsel %vm3726_vm1, %v3670_v16, %v12854_v32  ;;  %v17249_v21 = vld [vmem:[%s20516_s2] ss:$0 sm:$0xff]  ;;  %v20547_v40 = vmax.f32 %v17202_v6, 0.0 }
 0x2b4   : > { %v12870_v24 = vunpack.i.h.bf16 %v12868_v20  ;;  %v12869_v60 = vunpack.i.l.bf16 %v12868_v20  ;;  %v12863_v53 = vpop.permute.xlu0 %12862  ;;  %v3868_v13 = vsel %vm3726_vm1, %v3671_v27, %v12855_v37  ;;  %v20666_v8 = vld [vmem:[#allocation9_spill] sm:$0xff]  ;;  %v20548_v27 = vmax.f32 %v17222_v9, 0.0 }
 0x2b5   : > { %v12865_v3 = vunpack.i.h.bf16 %v12863_v53  ;;  %v12864_v11 = vunpack.i.l.bf16 %v12863_v53  ;;  %13157 = vrot.lane.b32.xlu1 %v13156_v44, %s14694_s25  ;;  %v20665_v53 = vld [vmem:[#allocation7_spill] sm:$0xff]  ;;  %v20550_v1 = vmax.f32 %v17226_v61, 0.0 }
 0x2b6   : > { %v4066_v19 = vsel %vm3923_vm2, %v3869_v18, %v12869_v60  ;;  %v4067_v47 = vsel %vm3923_vm2, %v3870_v38, %v12870_v24  ;;  %v17243_v57 = vpop.f32.mrb[68].mxu0  ;;  %13152 = vrot.lane.b32.xlu0 %v13151_v56, %s14694_s25  ;;  %v17253_v44 = vadd.f32 %v17249_v21, %v20665_v53 }
 0x2b7   : > { %20664 = vst [vmem:[#allocation18_spill] sm:$0xff] %v17243_v57  ;;  %v4064_v29 = vsel %vm3923_vm2, %v3867_v59, %v12864_v11  ;;  %v4065_v37 = vsel %vm3923_vm2, %v3868_v13, %v12865_v3  ;;  %v17257_v18 = vpop.f32.mrb[69].mxu0  ;;  %v12878_v24 = vpop.permute.xlu1 %12877  ;;  %v4191_v32 = vpack.c.bf16 %v4067_v47, %v4066_v19  ;;  %v20667_v59 = vld [vmem:[#allocation10_spill] sm:$0xff] }
 0x2b8   : > { %v12873_v10 = vpop.permute.xlu0 %12872  ;;  %v11474_v62 = vpop.f32.mrb[70].mxu0  ;;  %v4190_v56 = vpack.c.bf16 %v4065_v37, %v4064_v29  ;;  %v20549_v16 = vmax.f32 %v17253_v44, 0.0  ;;  %v12880_v60 = vunpack.i.h.bf16 %v12878_v24  ;;  %v12879_v38 = vunpack.i.l.bf16 %v12878_v24  ;;  %v20668_v37 = vld [vmem:[#allocation14_spill] sm:$0xff] }
 0x2b9   : > { %v4861_v20 = vpop.f32.mrb[71].mxu0  ;;  %13167 = vrot.lane.b32.xlu1 %v20666_v8, %s14695_s26  ;;  %v17272_v13 = vadd.f32 %v17249_v21, %v20667_v59  ;;  %v12875_v19 = vunpack.i.h.bf16 %v12873_v10  ;;  %v12874_v47 = vunpack.i.l.bf16 %v12873_v10  ;;  %v4747_v24 = vadd.f32 %v17249_v21, %v20668_v37 }
 0x2ba   : > { %v4862_v11 = vadd.f32 %v17249_v21, %v4861_v20  ;;  %11543 = vmatprep.mubr.msk.bf16.mxu0 %vm4257_vm3, %v4190_v56  ;;  %13162 = vrot.lane.b32.xlu0 %v16847_v63, %s14695_s26  ;;  %v13186_v63 = vpack.i.bf16 %v20547_v40, %v20549_v16  ;;  %v20669_v20 = vld [vmem:[#allocation8_spill] sm:$0xff]  ;;  %v13181_v10 = vpack.i.bf16 %v20548_v27, %v20550_v1  ;;  %v14607_v27 = vld [vmem:[%s15256_s27 + $0x4e0] sm:$0xff] }
 0x2bb   : > { %11544 = vmatmul.mubr.msk.bf16.gmra.mrb[140].mxu0 %vm4257_vm3, %v4191_v32  ;;  %v12888_v3 = vpop.permute.xlu1 %12887  ;;  %v17296_v37 = vadd.f32 %v17249_v21, %v16976_v42  ;;  %v3676_v14 = vsel %vm3529_vm0, %v14607_v27, %v12879_v38  ;;  %v14609_v16 = vld [vmem:[%s15256_s27 + $0x4d0] sm:$0xff] }
 0x2bc   : > { %v5438_v53 = vmax.f32 %v4862_v11, 0.0  ;;  %v12883_v29 = vpop.permute.xlu0 %12882  ;;  %v12890_v32 = vunpack.i.h.bf16 %v12888_v3  ;;  %v12889_v56 = vunpack.i.l.bf16 %v12888_v3  ;;  %v4803_v3 = vadd.f32 %v17249_v21, %v16968_v36 }
 0x2bd   : > { %13177 = vrot.lane.b32.xlu1 %v20669_v20, %s14690_s17  ;;  %v12885_v11 = vunpack.i.h.bf16 %v12883_v29  ;;  %v12884_v59 = vunpack.i.l.bf16 %v12883_v29  ;;  %v14606_v20 = vld [vmem:[%s15256_s27 + $0x4e8] sm:$0xff] }
 0x2be   : > { %v17288_v8 = vpack.i.bf16 %v5438_v53, %v5436_v28  ;;  %13172 = vrot.lane.b32.xlu0 %v16940_v52, %s14690_s17  ;;  %v3677_v40 = vsel %vm3529_vm0, %v14606_v20, %v12880_v60  ;;  %v14608_v53 = vld [vmem:[%s15256_s27 + $0x4d8] sm:$0xff]  ;;  %v3674_v52 = vsel %vm3529_vm0, %v14609_v16, %v12874_v47  ;;  %v3873_v31 = vsel %vm3726_vm1, %v3676_v14, %v12889_v56 }
 0x2bf   : > { %v12898_v28 = vpop.permute.xlu1 %12897  ;;  %v3675_v29 = vsel %vm3529_vm0, %v14608_v53, %v12875_v19  ;;  %v3874_v42 = vsel %vm3726_vm1, %v3677_v40, %v12890_v32  ;;  %v3871_v27 = vsel %vm3726_vm1, %v3674_v52, %v12884_v59  ;;  %v5409_v47 = vmax.f32 %v4747_v24, 0.0 }
 0x2c0   : > { %v12900_v1 = vunpack.i.h.bf16 %v12898_v28  ;;  %v12899_v33 = vunpack.i.l.bf16 %v12898_v28  ;;  %v12893_v36 = vpop.permute.xlu0 %12892  ;;  %v3872_v60 = vsel %vm3726_vm1, %v3675_v29, %v12885_v11 }
 0x2c1   : > { %v12895_v57 = vunpack.i.h.bf16 %v12893_v36  ;;  %v12894_v50 = vunpack.i.l.bf16 %v12893_v36  ;;  %13187 = vrot.lane.b32.xlu1 %v13186_v63, %s14694_s25  ;;  %v4870_v63 = vadd.f32 %v17249_v21, %v11474_v62  ;;  %v20671_v62 = vld [vmem:[#allocation16_spill] sm:$0xff] }
 0x2c2   : > { %v4070_v38 = vsel %vm3923_vm2, %v3873_v31, %v12899_v33  ;;  %v4071_v19 = vsel %vm3923_vm2, %v3874_v42, %v12900_v1  ;;  %v11477_v16 = vpop.f32.mrb[72].mxu0  ;;  %13182 = vrot.lane.b32.xlu0 %v13181_v10, %s14694_s25  ;;  %v20554_v31 = vmax.f32 %v17272_v13, 0.0  ;;  %v5423_v33 = vmax.f32 %v4803_v3, 0.0 }
 0x2c3   : > { %v4068_v56 = vsel %vm3923_vm2, %v3871_v27, %v12894_v50  ;;  %v4069_v40 = vsel %vm3923_vm2, %v3872_v60, %v12895_v57  ;;  %v4874_v32 = vpop.f32.mrb[73].mxu0  ;;  %v12908_v20 = vpop.permute.xlu1 %12907  ;;  %v4193_v14 = vpack.c.bf16 %v4071_v19, %v4070_v38  ;;  %v20553_v1 = vmax.f32 %v17296_v37, 0.0  ;;  %v20670_v50 = vld [vmem:[#allocation12_spill] sm:$0xff] }
 0x2c4   : > { %v12903_v59 = vpop.permute.xlu0 %12902  ;;  %v11478_v28 = vpop.f32.mrb[74].mxu0  ;;  %v4192_v11 = vpack.c.bf16 %v4069_v40, %v4068_v56  ;;  %v13216_v53 = vpack.i.bf16 %v5409_v47, %v20554_v31  ;;  %v12910_v3 = vunpack.i.h.bf16 %v12908_v20  ;;  %v12909_v29 = vunpack.i.l.bf16 %v12908_v20 }
 0x2c5   : > { %v17320_v10 = vadd.f32 %v17249_v21, %v11478_v28  ;;  %v4877_v24 = vpop.f32.mrb[75].mxu0  ;;  %13197 = vrot.lane.b32.xlu1 %v20670_v50, %s14695_s26  ;;  %v5440_v42 = vmax.f32 %v4870_v63, 0.0  ;;  %v12905_v27 = vunpack.i.h.bf16 %v12903_v59  ;;  %v12904_v60 = vunpack.i.l.bf16 %v12903_v59 }
 0x2c6   : > { %v4878_v57 = vadd.f32 %v17249_v21, %v4877_v24  ;;  %11547 = vmatprep.mubr.msk.bf16.mxu0 %vm4257_vm3, %v4192_v11  ;;  %13192 = vrot.lane.b32.xlu0 %v20671_v62, %s14695_s26  ;;  %v13211_v56 = vpack.i.bf16 %v5423_v33, %v20553_v1  ;;  %v17336_v47 = vadd.f32 %v17249_v21, %v17038_v26  ;;  %v14610_v24 = vld [vmem:[%s15256_s27 + $0x508] sm:$0xff] }
 0x2c7   : > { %v20555_v52 = vmax.f32 %v17320_v10, 0.0  ;;  %11548 = vmatmul.mubr.msk.bf16.gmra.mrb[144].mxu0 %vm4257_vm3, %v4193_v14  ;;  %v12918_v36 = vpop.permute.xlu1 %12917  ;;  %v20672_v14 = vld [vmem:[#allocation11_spill] sm:$0xff]  ;;  %v17350_v26 = vadd.f32 %v17249_v21, %v17112_v48  ;;  %v17353_v33 = vadd.f32 %v17249_v21, %v11477_v16  ;;  %v3681_v50 = vsel %vm3529_vm0, %v14610_v24, %v12910_v3 }
 0x2c8   : > { %v5442_v38 = vmax.f32 %v4878_v57, 0.0  ;;  %v12913_v19 = vpop.permute.xlu0 %12912  ;;  %v12920_v40 = vunpack.i.h.bf16 %v12918_v36  ;;  %v12919_v20 = vunpack.i.l.bf16 %v12918_v36  ;;  %v14611_v57 = vld [vmem:[%s15256_s27 + $0x500] sm:$0xff] }
 0x2c9   : > { %13207 = vrot.lane.b32.xlu1 %v20672_v14, %s14690_s17  ;;  %v12915_v28 = vunpack.i.h.bf16 %v12913_v19  ;;  %v12914_v11 = vunpack.i.l.bf16 %v12913_v19  ;;  %20673 = vst [vmem:[#allocation7_spill] sm:$0xff] %v17353_v33  ;;  %v3680_v62 = vsel %vm3529_vm0, %v14611_v57, %v12909_v29  ;;  %v14613_v19 = vld [vmem:[%s15256_s27 + $0x4f0] sm:$0xff]  ;;  %v17372_v57 = vadd.f32 %v17249_v21, %v4874_v32 }
 0x2ca   : > { %v17342_v63 = vpack.i.bf16 %v20555_v52, %v5442_v38  ;;  %v17344_v59 = vpack.i.bf16 %v5442_v38, %v5440_v42  ;;  %13202 = vrot.lane.b32.xlu0 %v17010_v49, %s14690_s17  ;;  %v14612_v42 = vld [vmem:[%s15256_s27 + $0x4f8] sm:$0xff]  ;;  %v3678_v49 = vsel %vm3529_vm0, %v14613_v19, %v12904_v60  ;;  %v3877_v31 = vsel %vm3726_vm1, %v3680_v62, %v12919_v20 }
 0x2cb   : > { %v12928_v36 = vpop.permute.xlu1 %12927  ;;  %v3679_v38 = vsel %vm3529_vm0, %v14612_v42, %v12905_v27  ;;  %v3878_v16 = vsel %vm3726_vm1, %v3681_v50, %v12920_v40  ;;  %v3875_v3 = vsel %vm3726_vm1, %v3678_v49, %v12914_v11  ;;  %v20558_v32 = vmax.f32 %v17336_v47, 0.0 }
 0x2cc   : > { %v12930_v14 = vunpack.i.h.bf16 %v12928_v36  ;;  %v12929_v1 = vunpack.i.l.bf16 %v12928_v36  ;;  %v12923_v48 = vpop.permute.xlu0 %12922  ;;  %v3876_v29 = vsel %vm3726_vm1, %v3679_v38, %v12915_v28  ;;  %v20561_v38 = vmax.f32 %v17372_v57, 0.0 }
 0x2cd   : > { %v12925_v52 = vunpack.i.h.bf16 %v12923_v48  ;;  %v12924_v9 = vunpack.i.l.bf16 %v12923_v48  ;;  %13217 = vrot.lane.b32.xlu1 %v13216_v53, %s14694_s25 }
 0x2ce   : > { %v4074_v27 = vsel %vm3923_vm2, %v3877_v31, %v12929_v1  ;;  %v4075_v24 = vsel %vm3923_vm2, %v3878_v16, %v12930_v14  ;;  %v11481_v60 = vpop.f32.mrb[76].mxu0  ;;  %13212 = vrot.lane.b32.xlu0 %v13211_v56, %s14694_s25  ;;  %v20557_v31 = vmax.f32 %v17350_v26, 0.0  ;;  %v20674_v56 = vld [vmem:[#allocation15_spill] sm:$0xff]  ;;  %v17393_v16 = vadd.f32 %v17249_v21, %v17107_v2 }
 0x2cf   : > { %v4072_v40 = vsel %vm3923_vm2, %v3875_v3, %v12924_v9  ;;  %v4073_v20 = vsel %vm3923_vm2, %v3876_v29, %v12925_v52  ;;  %v4890_v50 = vpop.f32.mrb[77].mxu0  ;;  %v12938_v53 = vpop.permute.xlu1 %12937  ;;  %v4195_v62 = vpack.c.bf16 %v4075_v24, %v4074_v27  ;;  %v20560_v9 = vmax.f32 %v17353_v33, 0.0 }
 0x2d0   : > { %v12933_v11 = vpop.permute.xlu0 %12932  ;;  %v11482_v36 = vpop.f32.mrb[78].mxu0  ;;  %v4194_v28 = vpack.c.bf16 %v4073_v20, %v4072_v40  ;;  %v12940_v19 = vunpack.i.h.bf16 %v12938_v53  ;;  %v12939_v49 = vunpack.i.l.bf16 %v12938_v53  ;;  %v17401_v40 = vadd.f32 %v17249_v21, %v17179_v7 }
 0x2d1   : > { %v17378_v1 = vadd.f32 %v17249_v21, %v11482_v36  ;;  %v4893_v42 = vpop.f32.mrb[79].mxu0  ;;  %13227 = vrot.lane.b32.xlu1 %v20674_v56, %s14695_s26  ;;  %v12935_v3 = vunpack.i.h.bf16 %v12933_v11  ;;  %v12934_v29 = vunpack.i.l.bf16 %v12933_v11  ;;  %v13241_v7 = vpack.i.bf16 %v20560_v9, %v20561_v38 }
 0x2d2   : > { %v4894_v52 = vadd.f32 %v17249_v21, %v4893_v42  ;;  %11551 = vmatprep.mubr.msk.bf16.mxu0 %vm4257_vm3, %v4194_v28  ;;  %13222 = vrot.lane.b32.xlu0 %v17006_v5, %s14695_s26  ;;  %v13246_v5 = vpack.i.bf16 %v20557_v31, %v20558_v32  ;;  %v14614_v42 = vld [vmem:[%s15256_s27 + $0x530] sm:$0xff] }
 0x2d3   : > { %v20559_v14 = vmax.f32 %v17378_v1, 0.0  ;;  %11552 = vmatmul.mubr.msk.bf16.gmra.mrb[148].mxu0 %vm4257_vm3, %v4195_v62  ;;  %v12948_v48 = vpop.permute.xlu1 %12947  ;;  %v20675_v62 = vmax.f32 %v17320_v10, 0.0  ;;  %v3685_v56 = vsel %vm3529_vm0, %v14614_v42, %v12940_v19 }
 0x2d4   : > { %v5446_v27 = vmax.f32 %v4894_v52, 0.0  ;;  %v12943_v24 = vpop.permute.xlu0 %12942  ;;  %v12950_v20 = vunpack.i.h.bf16 %v12948_v48  ;;  %v12949_v53 = vunpack.i.l.bf16 %v12948_v48  ;;  %v14615_v52 = vld [vmem:[%s15256_s27 + $0x528] sm:$0xff] }
 0x2d5   : > { %13237 = vrot.lane.b32.xlu1 %v17082_v54, %s14690_s17  ;;  %v12945_v36 = vunpack.i.h.bf16 %v12943_v24  ;;  %v12944_v28 = vunpack.i.l.bf16 %v12943_v24  ;;  %v17420_v54 = vadd.f32 %v17249_v21, %v11481_v60  ;;  %v3684_v10 = vsel %vm3529_vm0, %v14615_v52, %v12939_v49 }
 0x2d6   : > { %v17407_v2 = vpack.i.bf16 %v20559_v14, %v5446_v27  ;;  %v17411_v11 = vpack.i.bf16 %v5446_v27, %v20675_v62  ;;  %13232 = vrot.lane.b32.xlu0 %v17344_v59, %s14690_s17  ;;  %v14616_v27 = vld [vmem:[%s15256_s27 + $0x518] sm:$0xff]  ;;  %v14617_v62 = vld [vmem:[%s15256_s27 + $0x510] sm:$0xff]  ;;  %v3881_v9 = vsel %vm3726_vm1, %v3684_v10, %v12949_v53  ;;  %v3882_v60 = vsel %vm3726_vm1, %v3685_v56, %v12950_v20 }
 0x2d7   : > { %v12958_v48 = vpop.permute.xlu1 %12957  ;;  %v3683_v24 = vsel %vm3529_vm0, %v14616_v27, %v12935_v3  ;;  %v3682_v59 = vsel %vm3529_vm0, %v14617_v62, %v12934_v29  ;;  %v17439_v52 = vadd.f32 %v17249_v21, %v4890_v50  ;;  %v20570_v50 = vmax.f32 %v17393_v16, 0.0 }
 0x2d8   : > { %v12960_v31 = vunpack.i.h.bf16 %v12958_v48  ;;  %v12959_v32 = vunpack.i.l.bf16 %v12958_v48  ;;  %v12953_v14 = vpop.permute.xlu0 %12952  ;;  %v3879_v19 = vsel %vm3726_vm1, %v3682_v59, %v12944_v28  ;;  %v3880_v49 = vsel %vm3726_vm1, %v3683_v24, %v12945_v36 }
 0x2d9   : > { %v12955_v38 = vunpack.i.h.bf16 %v12953_v14  ;;  %v12954_v33 = vunpack.i.l.bf16 %v12953_v14  ;;  %13247 = vrot.lane.b32.xlu1 %v13246_v5, %s14694_s25 }
 0x2da   : > { %v4078_v3 = vsel %vm3923_vm2, %v3881_v9, %v12959_v32  ;;  %v4079_v42 = vsel %vm3923_vm2, %v3882_v60, %v12960_v31  ;;  %v11485_v29 = vpop.f32.mrb[80].mxu0  ;;  %13242 = vrot.lane.b32.xlu0 %v13241_v7, %s14694_s25  ;;  %v20564_v32 = vmax.f32 %v17401_v40, 0.0  ;;  %v20565_v7 = vmax.f32 %v17439_v52, 0.0 }
 0x2db   : > { %v4076_v20 = vsel %vm3923_vm2, %v3879_v19, %v12954_v33  ;;  %v4077_v14 = vsel %vm3923_vm2, %v3880_v49, %v12955_v38  ;;  %v4906_v53 = vpop.f32.mrb[81].mxu0  ;;  %v12968_v5 = vpop.permute.xlu1 %12967  ;;  %v4197_v56 = vpack.c.bf16 %v4079_v42, %v4078_v3  ;;  %v20563_v33 = vmax.f32 %v17420_v54, 0.0 }
 0x2dc   : > { %v12963_v28 = vpop.permute.xlu0 %12962  ;;  %v11486_v10 = vpop.f32.mrb[82].mxu0  ;;  %v4196_v36 = vpack.c.bf16 %v4077_v14, %v4076_v20  ;;  %v12970_v48 = vunpack.i.h.bf16 %v12968_v5  ;;  %v12969_v27 = vunpack.i.l.bf16 %v12968_v5  ;;  %v17465_v3 = vadd.f32 %v17249_v21, %v17257_v18 }
 0x2dd   : > { %v4918_v31 = vadd.f32 %v17249_v21, %v11486_v10  ;;  %v4909_v9 = vpop.f32.mrb[83].mxu0  ;;  %13257 = vrot.lane.b32.xlu1 %v17147_v41, %s14695_s26  ;;  %v17457_v41 = vadd.f32 %v17249_v21, %v17174_v51  ;;  %v12965_v59 = vunpack.i.h.bf16 %v12963_v28  ;;  %v12964_v60 = vunpack.i.l.bf16 %v12963_v28 }
 0x2de   : > { %v4910_v38 = vadd.f32 %v17249_v21, %v4909_v9  ;;  %11555 = vmatprep.mubr.msk.bf16.mxu0 %vm4257_vm3, %v4196_v36  ;;  %13252 = vrot.lane.b32.xlu0 %v17342_v63, %s14695_s26  ;;  %v13276_v63 = vpack.i.bf16 %v20564_v32, %v20570_v50  ;;  %v20676_v14 = vmax.f32 %v17378_v1, 0.0  ;;  %v13271_v18 = vpack.i.bf16 %v20563_v33, %v20565_v7 }
 0x2df   : > { %v5452_v24 = vmax.f32 %v4918_v31, 0.0  ;;  %11556 = vmatmul.mubr.msk.bf16.gmra.mrb[152].mxu0 %vm4257_vm3, %v4197_v56  ;;  %v12978_v62 = vpop.permute.xlu1 %12977  ;;  %v17482_v10 = vadd.f32 %v17249_v21, %v11485_v29  ;;  %v14619_v31 = vld [vmem:[%s15256_s27 + $0x548] sm:$0xff] }
 0x2e0   : > { %v5450_v19 = vmax.f32 %v4910_v38, 0.0  ;;  %v12973_v49 = vpop.permute.xlu0 %12972  ;;  %v12980_v42 = vunpack.i.h.bf16 %v12978_v62  ;;  %v12979_v20 = vunpack.i.l.bf16 %v12978_v62  ;;  %v3688_v1 = vsel %vm3529_vm0, %v14619_v31, %v12969_v27  ;;  %v14620_v38 = vld [vmem:[%s15256_s27 + $0x540] sm:$0xff]  ;;  %v14621_v62 = vld [vmem:[%s15256_s27 + $0x538] sm:$0xff] }
 0x2e1   : > { %13267 = vrot.lane.b32.xlu1 %v17143_v43, %s14690_s17  ;;  %v12975_v56 = vunpack.i.h.bf16 %v12973_v49  ;;  %v12974_v28 = vunpack.i.l.bf16 %v12973_v49  ;;  %v14618_v43 = vld [vmem:[%s15256_s27 + $0x550] sm:$0xff]  ;;  %v17501_v31 = vadd.f32 %v17249_v21, %v4906_v53 }
 0x2e2   : > { %v17469_v51 = vpack.i.bf16 %v5452_v24, %v5450_v19  ;;  %v17473_v5 = vpack.i.bf16 %v5450_v19, %v20676_v14  ;;  %13262 = vrot.lane.b32.xlu0 %v17411_v11, %s14690_s17  ;;  %v3689_v36 = vsel %vm3529_vm0, %v14618_v43, %v12970_v48  ;;  %v3687_v24 = vsel %vm3529_vm0, %v14620_v38, %v12965_v59 }
 0x2e3   : > { %v12988_v9 = vpop.permute.xlu1 %12987  ;;  %v3686_v11 = vsel %vm3529_vm0, %v14621_v62, %v12964_v60  ;;  %v3885_v33 = vsel %vm3726_vm1, %v3688_v1, %v12979_v20  ;;  %v3886_v29 = vsel %vm3726_vm1, %v3689_v36, %v12980_v42  ;;  %v3884_v27 = vsel %vm3726_vm1, %v3687_v24, %v12975_v56 }
 0x2e4   : > { %v12990_v19 = vunpack.i.h.bf16 %v12988_v9  ;;  %v12989_v49 = vunpack.i.l.bf16 %v12988_v9  ;;  %v12983_v14 = vpop.permute.xlu0 %12982  ;;  %v3883_v48 = vsel %vm3726_vm1, %v3686_v11, %v12974_v28 }
 0x2e5   : > { %v12985_v32 = vunpack.i.h.bf16 %v12983_v14  ;;  %v12984_v7 = vunpack.i.l.bf16 %v12983_v14  ;;  %13277 = vrot.lane.b32.xlu1 %v13276_v63, %s14694_s25  ;;  %v14622_v14 = vld [vmem:[%s15256_s27 + $0x570] sm:$0xff] }
 0x2e6   : > { %v4082_v59 = vsel %vm3923_vm2, %v3885_v33, %v12989_v49  ;;  %v4083_v43 = vsel %vm3923_vm2, %v3886_v29, %v12990_v19  ;;  %v11489_v60 = vpop.f32.mrb[84].mxu0  ;;  %13272 = vrot.lane.b32.xlu0 %v13271_v18, %s14694_s25  ;;  %v5451_v19 = vmax.f32 %v17482_v10, 0.0  ;;  %v20568_v49 = vmax.f32 %v17501_v31, 0.0 }
 0x2e7   : > { %v4080_v42 = vsel %vm3923_vm2, %v3883_v48, %v12984_v7  ;;  %v4081_v20 = vsel %vm3923_vm2, %v3884_v27, %v12985_v32  ;;  %v17505_v36 = vpop.f32.mrb[85].mxu0  ;;  %v12998_v63 = vpop.permute.xlu1 %12997  ;;  %v4199_v28 = vpack.c.bf16 %v4083_v43, %v4082_v59  ;;  %v20569_v32 = vmax.f32 %v17457_v41, 0.0  ;;  %v14623_v48 = vld [vmem:[%s15256_s27 + $0x568] sm:$0xff] }
 0x2e8   : > { %v13000_v1 = vunpack.i.h.bf16 %v12998_v63  ;;  %v12999_v56 = vunpack.i.l.bf16 %v12998_v63  ;;  %v12993_v33 = vpop.permute.xlu0 %12992  ;;  %v11490_v9 = vpop.f32.mrb[86].mxu0  ;;  %v4198_v38 = vpack.c.bf16 %v4081_v20, %v4080_v42  ;;  %v5437_v7 = vmax.f32 %v17465_v3, 0.0  ;;  %v14624_v20 = vld [vmem:[%s15256_s27 + $0x560] sm:$0xff]  ;;  %v14625_v63 = vld [vmem:[%s15256_s27 + $0x558] sm:$0xff] }
 0x2e9   : > { %v12995_v24 = vunpack.i.h.bf16 %v12993_v33  ;;  %v12994_v62 = vunpack.i.l.bf16 %v12993_v33  ;;  %v17508_v53 = vadd.f32 %v17249_v21, %v11490_v9  ;;  %v4925_v18 = vpop.f32.mrb[87].mxu0  ;;  %13287 = vrot.lane.b32.xlu1 %v17216_v34, %s14695_s26 }
 0x2ea   : > { %v4926_v11 = vadd.f32 %v17249_v21, %v4925_v18  ;;  %11559 = vmatprep.mubr.msk.bf16.mxu0 %vm4257_vm3, %v4198_v38  ;;  %13282 = vrot.lane.b32.xlu0 %v17407_v2, %s14695_s26  ;;  %v3693_v34 = vsel %vm3529_vm0, %v14622_v14, %v13000_v1  ;;  %v3692_v27 = vsel %vm3529_vm0, %v14623_v48, %v12999_v56 }
 0x2eb   : > { %v5456_v29 = vmax.f32 %v17508_v53, 0.0  ;;  %11560 = vmatmul.mubr.msk.bf16.gmra.mrb[156].mxu0 %vm4257_vm3, %v4199_v28  ;;  %v13008_v3 = vpop.permute.xlu1 %13007  ;;  %v3691_v10 = vsel %vm3529_vm0, %v14624_v20, %v12995_v24  ;;  %v3690_v33 = vsel %vm3529_vm0, %v14625_v63, %v12994_v62  ;;  %v13306_v56 = vpack.i.bf16 %v5437_v7, %v20569_v32 }
 0x2ec   : > { %v5454_v59 = vmax.f32 %v4926_v11, 0.0  ;;  %v13010_v43 = vunpack.i.h.bf16 %v13008_v3  ;;  %v13009_v42 = vunpack.i.l.bf16 %v13008_v3  ;;  %v13003_v2 = vpop.permute.xlu0 %13002  ;;  %v13301_v38 = vpack.i.bf16 %v5451_v19, %v20568_v49 }
 0x2ed   : > { %v13005_v9 = vunpack.i.h.bf16 %v13003_v2  ;;  %v13004_v1 = vunpack.i.l.bf16 %v13003_v2  ;;  %13297 = vrot.lane.b32.xlu1 %v17212_v58, %s14690_s17 }
 0x2ee   : > { %v13326_v28 = vpack.i.bf16 %v5456_v29, %v5454_v59  ;;  %13292 = vrot.lane.b32.xlu0 %v17473_v5, %s14690_s17  ;;  %v3889_v24 = vsel %vm3726_vm1, %v3692_v27, %v13009_v42  ;;  %v3890_v62 = vsel %vm3726_vm1, %v3693_v34, %v13010_v43  ;;  %v17551_v34 = vadd.f32 %v17249_v21, %v11489_v60 }
 0x2ef   : > { %v13018_v18 = vpop.permute.xlu1 %13017  ;;  %v3887_v11 = vsel %vm3726_vm1, %v3690_v33, %v13004_v1  ;;  %v3888_v58 = vsel %vm3726_vm1, %v3691_v10, %v13005_v9 }
 0x2f0   : > { %v13020_v14 = vunpack.i.h.bf16 %v13018_v18  ;;  %v13019_v3 = vunpack.i.l.bf16 %v13018_v18  ;;  %v13013_v48 = vpop.permute.xlu0 %13012 }
 0x2f1   : > { %v13015_v59 = vunpack.i.h.bf16 %v13013_v48  ;;  %v13014_v5 = vunpack.i.l.bf16 %v13013_v48  ;;  %13307 = vrot.lane.b32.xlu1 %v13306_v56, %s14694_s25 }
 0x2f2   : > { %v4086_v7 = vsel %vm3923_vm2, %v3889_v24, %v13019_v3  ;;  %v4087_v19 = vsel %vm3923_vm2, %v3890_v62, %v13020_v14  ;;  %v17547_v2 = vpop.f32.mrb[88].mxu0  ;;  %13302 = vrot.lane.b32.xlu0 %v13301_v38, %s14694_s25  ;;  %v14626_v3 = vld [vmem:[%s15256_s27 + $0x590] sm:$0xff] }
 0x2f3   : > { %v4084_v27 = vsel %vm3923_vm2, %v3887_v11, %v13014_v5  ;;  %v4085_v43 = vsel %vm3923_vm2, %v3888_v58, %v13015_v59  ;;  %v4938_v42 = vpop.f32.mrb[89].mxu0  ;;  %v13028_v20 = vpop.permute.xlu1 %13027  ;;  %v4201_v10 = vpack.c.bf16 %v4087_v19, %v4086_v7  ;;  %v20567_v58 = vmax.f32 %v17551_v34, 0.0  ;;  %v14627_v5 = vld [vmem:[%s15256_s27 + $0x588] sm:$0xff] }
 0x2f4   : > { %v17556_v63 = vadd.f32 %v17249_v21, %v4938_v42  ;;  %v13030_v33 = vunpack.i.h.bf16 %v13028_v20  ;;  %v13029_v9 = vunpack.i.l.bf16 %v13028_v20  ;;  %v13023_v1 = vpop.permute.xlu0 %13022  ;;  %v11494_v56 = vpop.f32.mrb[90].mxu0  ;;  %v4200_v24 = vpack.c.bf16 %v4085_v43, %v4084_v27  ;;  %v14628_v42 = vld [vmem:[%s15256_s27 + $0x580] sm:$0xff] }
 0x2f5   : > { %v13025_v38 = vunpack.i.h.bf16 %v13023_v1  ;;  %v13024_v60 = vunpack.i.l.bf16 %v13023_v1  ;;  %v17559_v62 = vadd.f32 %v17249_v21, %v11494_v56  ;;  %v4941_v18 = vpop.f32.mrb[91].mxu0  ;;  %13317 = vrot.lane.b32.xlu1 %v17288_v8, %s14695_s26  ;;  %v14629_v1 = vld [vmem:[%s15256_s27 + $0x578] sm:$0xff] }
 0x2f6   : > { %v4942_v11 = vadd.f32 %v17249_v21, %v4941_v18  ;;  %11563 = vmatprep.mubr.msk.bf16.mxu0 %vm4257_vm3, %v4200_v24  ;;  %13312 = vrot.lane.b32.xlu0 %v17469_v51, %s14695_s26  ;;  %v20566_v14 = vmax.f32 %v17556_v63, 0.0  ;;  %v3697_v48 = vsel %vm3529_vm0, %v14626_v3, %v13030_v33  ;;  %v3696_v7 = vsel %vm3529_vm0, %v14627_v5, %v13029_v9 }
 0x2f7   : > { %v5460_v59 = vmax.f32 %v17559_v62, 0.0  ;;  %11564 = vmatmul.mubr.msk.bf16.gmra.mrb[160].mxu0 %vm4257_vm3, %v4201_v10  ;;  %v13038_v8 = vpop.permute.xlu1 %13037  ;;  %v3695_v20 = vsel %vm3529_vm0, %v14628_v42, %v13025_v38  ;;  %v3694_v56 = vsel %vm3529_vm0, %v14629_v1, %v13024_v60 }
 0x2f8   : > { %v5458_v19 = vmax.f32 %v4942_v11, 0.0  ;;  %v13040_v27 = vunpack.i.h.bf16 %v13038_v8  ;;  %v13039_v43 = vunpack.i.l.bf16 %v13038_v8  ;;  %v13033_v51 = vpop.permute.xlu0 %13032  ;;  %v13336_v18 = vpack.i.bf16 %v20566_v14, %v20567_v58 }
 0x2f9   : > { %v13035_v24 = vunpack.i.h.bf16 %v13033_v51  ;;  %v13034_v33 = vunpack.i.l.bf16 %v13033_v51  ;;  %13327 = vrot.lane.b32.xlu1 %v13326_v28, %s14690_s17 }
 0x2fa   : > { %v13356_v10 = vpack.i.bf16 %v5460_v59, %v5458_v19  ;;  %v13346_v9 = vpack.i.bf16 %v5458_v19, %v5456_v29  ;;  %v3893_v38 = vsel %vm3726_vm1, %v3696_v7, %v13039_v43  ;;  %v3894_v11 = vsel %vm3726_vm1, %v3697_v48, %v13040_v27 }
 0x2fb   : > { %v13048_v60 = vpop.permute.xlu1 %13047  ;;  %v3891_v3 = vsel %vm3726_vm1, %v3694_v56, %v13034_v33  ;;  %v3892_v28 = vsel %vm3726_vm1, %v3695_v20, %v13035_v24  ;;  %v20677_v56 = vld [vmem:[#allocation3_spill] sm:$0xff] }
 0x2fc   : > { %v13050_v8 = vunpack.i.h.bf16 %v13048_v60  ;;  %v13049_v5 = vunpack.i.l.bf16 %v13048_v60  ;;  %v13043_v51 = vpop.permute.xlu0 %13042  ;;  %v4587_v24 = vadd.f32 %v17249_v21, %v20677_v56 }
 0x2fd   : > { %v13045_v42 = vunpack.i.h.bf16 %v13043_v51  ;;  %v13044_v53 = vunpack.i.l.bf16 %v13043_v51  ;;  %13337 = vrot.lane.b32.xlu1 %v13336_v18, %s14694_s25 }
 0x2fe   : > { %v4090_v29 = vsel %vm3923_vm2, %v3893_v38, %v13049_v5  ;;  %v4091_v19 = vsel %vm3923_vm2, %v3894_v11, %v13050_v8  ;;  %v17595_v1 = vpop.f32.mrb[92].mxu0  ;;  %v20678_v5 = vld [vmem:[#allocation4_spill] sm:$0xff] }
 0x2ff   : > { %v4088_v48 = vsel %vm3923_vm2, %v3891_v3, %v13044_v53  ;;  %v4089_v7 = vsel %vm3923_vm2, %v3892_v28, %v13045_v42  ;;  %v4954_v27 = vpop.f32.mrb[93].mxu0  ;;  %v13058_v43 = vpop.permute.xlu1 %13057  ;;  %v4203_v20 = vpack.c.bf16 %v4091_v19, %v4090_v29  ;;  %v4643_v11 = vadd.f32 %v17249_v21, %v20678_v5 }
 0x300   : > { %v17602_v33 = vadd.f32 %v17249_v21, %v4954_v27  ;;  %v11498_v18 = vpop.f32.mrb[94].mxu0  ;;  %v13053_v60 = vpop.permute.xlu0 %13052  ;;  %v4202_v38 = vpack.c.bf16 %v4089_v7, %v4088_v48  ;;  %v17608_v3 = vadd.f32 %v17249_v21, %v17547_v2  ;;  %v13060_v29 = vunpack.i.h.bf16 %v13058_v43 }
 0x301   : > { %v17611_v28 = vadd.f32 %v17249_v21, %v11498_v18  ;;  %v4957_v8 = vpop.f32.mrb[95].mxu0  ;;  %13347 = vrot.lane.b32.xlu1 %v13346_v9, %s14695_s26  ;;  %v13059_v19 = vunpack.i.l.bf16 %v13058_v43  ;;  %v5369_v48 = vmax.f32 %v4587_v24, 0.0  ;;  %v13055_v7 = vunpack.i.h.bf16 %v13053_v60 }
 0x302   : > { %v4958_v51 = vadd.f32 %v17249_v21, %v4957_v8  ;;  %11567 = vmatprep.mubr.msk.bf16.mxu0 %vm4257_vm3, %v4202_v38  ;;  %v20575_v42 = vmax.f32 %v17602_v33, 0.0  ;;  %v13054_v27 = vunpack.i.l.bf16 %v13053_v60  ;;  %v5383_v5 = vmax.f32 %v4643_v11, 0.0 }
 0x303   : > { %v5464_v53 = vmax.f32 %v17611_v28, 0.0  ;;  %11568 = vmatmul.mubr.msk.bf16.gmra.mrb[164].mxu0 %vm4257_vm3, %v4203_v20  ;;  %v13068_v2 = vpop.permute.xlu1 %13067  ;;  %v20586_v9 = vmax.f32 %v17608_v3, 0.0  ;;  %v20679_v60 = vmax.f32 %v16895_v12, 0.0 }
 0x304   : > { %v5462_v56 = vmax.f32 %v4958_v51, 0.0  ;;  %v13063_v18 = vpop.permute.xlu0 %13062  ;;  %v13070_v8 = vunpack.i.h.bf16 %v13068_v2  ;;  %v13069_v14 = vunpack.i.l.bf16 %v13068_v2  ;;  %v6503_v51 = vsel %vm3726_vm1, %v5369_v48, %v13059_v19 }
 0x305   : > { %13357 = vrot.lane.b32.xlu1 %v13356_v10, %s14690_s17  ;;  %v13065_v20 = vunpack.i.h.bf16 %v13063_v18  ;;  %v13064_v58 = vunpack.i.l.bf16 %v13063_v18  ;;  %v13366_v24 = vpack.i.bf16 %v20575_v42, %v20586_v9  ;;  %v6504_v11 = vsel %vm3726_vm1, %v20679_v60, %v13060_v29 }
 0x306   : > { %v13386_v38 = vpack.i.bf16 %v5464_v53, %v5462_v56  ;;  %v13376_v43 = vpack.i.bf16 %v5462_v56, %v5460_v59  ;;  %v6612_v62 = vsel %vm3726_vm1, %v5383_v5, %v13054_v27  ;;  %v20680_v59 = vmax.f32 %v16949_v17, 0.0 }
 0x307   : > { %v13078_v10 = vpop.permute.xlu1 %13077  ;;  %v6539_v12 = vsel %vm4257_vm3, %v6503_v51, %v13069_v14  ;;  %v6540_v29 = vsel %vm4257_vm3, %v6504_v11, %v13070_v8  ;;  %v6648_v48 = vsel %vm4257_vm3, %v6612_v62, %v13064_v58  ;;  %v17651_v58 = vadd.f32 %v17249_v21, %v17595_v1 }
 0x308   : > { %v13073_v2 = vpop.permute.xlu0 %13072  ;;  %v13080_v49 = vunpack.i.h.bf16 %v13078_v10  ;;  %v13079_v32 = vunpack.i.l.bf16 %v13078_v10  ;;  %v6613_v56 = vsel %vm3726_vm1, %v20680_v59, %v13055_v7 }
 0x309   : > { %v13075_v18 = vunpack.i.h.bf16 %v13073_v2  ;;  %v13074_v50 = vunpack.i.l.bf16 %v13073_v2  ;;  %13367 = vrot.lane.b32.xlu1 %v13366_v24, %s14694_s25  ;;  %v6649_v60 = vsel %vm4257_vm3, %v6613_v56, %v13065_v20 }
 0x30a   : > { %v17640_v19 = vpop.f32.mrb[96].mxu0  ;;  %v6576_v27 = vsel %vm6575_vm4, %v6539_v12, %v13079_v32  ;;  %v6577_v17 = vsel %vm6575_vm4, %v6540_v29, %v13080_v49 }
 0x30b   : > { %v4970_v5 = vpop.f32.mrb[97].mxu0  ;;  %v13088_v7 = vpop.permute.xlu1 %13087  ;;  %v6684_v10 = vsel %vm6575_vm4, %v6648_v48, %v13074_v50  ;;  %v6685_v24 = vsel %vm6575_vm4, %v6649_v60, %v13075_v18  ;;  %v6756_v2 = vpack.c.bf16 %v6577_v17, %v6576_v27  ;;  %v20576_v48 = vmax.f32 %v17651_v58, 0.0 }
 0x30c   : > { %v4971_v14 = vadd.f32 %v17249_v21, %v4970_v5  ;;  %v11502_v8 = vpop.f32.mrb[98].mxu0  ;;  %v13083_v11 = vpop.permute.xlu0 %13082  ;;  %v6757_v51 = vpack.c.bf16 %v6685_v24, %v6684_v10  ;;  %v13090_v50 = vunpack.i.h.bf16 %v13088_v7  ;;  %v13089_v62 = vunpack.i.l.bf16 %v13088_v7 }
 0x30d   : > { %v4973_v20 = vpop.f32.mrb[99].mxu0  ;;  %13377 = vrot.lane.b32.xlu1 %v13376_v43, %s14695_s26  ;;  %v13085_v56 = vunpack.i.h.bf16 %v13083_v11  ;;  %v13084_v18 = vunpack.i.l.bf16 %v13083_v11  ;;  %v4982_v7 = vadd.f32 %v17249_v21, %v11502_v8  ;;  %v20681_v10 = vmax.f32 %v17043_v0, 0.0 }
 0x30e   : > { %v4974_v32 = vadd.f32 %v17249_v21, %v4973_v20  ;;  %7093 = vmatprep.mubr.bf16.mxu1 %v6757_v51  ;;  %v5465_v49 = vmax.f32 %v4971_v14, 0.0 }
 0x30f   : > { %7094 = vmatmul.mubr.bf16.vlgmr.msra.gmra.mrb[0].mxu1 %v6756_v2  ;;  %v13098_v59 = vpop.permute.xlu1 %13097  ;;  %v6506_v24 = vsel %vm3726_vm1, %v20681_v10, %v13090_v50  ;;  %v20682_v2 = vmax.f32 %v16899_v4, 0.0 }
 0x310   : > { %v5466_v12 = vmax.f32 %v4974_v32, 0.0  ;;  %v13093_v29 = vpop.permute.xlu0 %13092  ;;  %v13100_v60 = vunpack.i.h.bf16 %v13098_v59  ;;  %v13099_v1 = vunpack.i.l.bf16 %v13098_v59  ;;  %v13396_v5 = vpack.i.bf16 %v5465_v49, %v20576_v48 }
 0x311   : > { %13387 = vrot.lane.b32.xlu1 %v13386_v38, %s14690_s17  ;;  %v13095_v27 = vunpack.i.h.bf16 %v13093_v29  ;;  %v13094_v17 = vunpack.i.l.bf16 %v13093_v29  ;;  %v6505_v14 = vsel %vm3726_vm1, %v20682_v2, %v13089_v62  ;;  %v20683_v38 = vmax.f32 %v17020_v46, 0.0 }
 0x312   : > { %v13406_v43 = vpack.i.bf16 %v5466_v12, %v5464_v53  ;;  %v20684_v53 = vmax.f32 %v16932_v25, 0.0  ;;  %v6541_v4 = vsel %vm4257_vm3, %v6505_v14, %v13099_v1  ;;  %v6542_v50 = vsel %vm4257_vm3, %v6506_v24, %v13100_v60 }
 0x313   : > { %v13108_v11 = vpop.permute.xlu1 %13107  ;;  %v6615_v28 = vsel %vm3726_vm1, %v20683_v38, %v13085_v56 }
 0x314   : > { %v6614_v51 = vsel %vm3726_vm1, %v20684_v53, %v13084_v18  ;;  %v13103_v20 = vpop.permute.xlu0 %13102  ;;  %v13110_v32 = vunpack.i.h.bf16 %v13108_v11  ;;  %v13109_v8 = vunpack.i.l.bf16 %v13108_v11  ;;  %v6651_v59 = vsel %vm4257_vm3, %v6615_v28, %v13095_v27 }
 0x315   : > { %v13105_v49 = vunpack.i.h.bf16 %v13103_v20  ;;  %v13104_v0 = vunpack.i.l.bf16 %v13103_v20  ;;  %13397 = vrot.lane.b32.xlu1 %v13396_v5, %s14694_s25  ;;  %v6650_v46 = vsel %vm4257_vm3, %v6614_v51, %v13094_v17  ;;  %v5468_v11 = vmax.f32 %v4982_v7, 0.0 }
 0x316   : > { %v11505_v62 = vpop.f32.mrb[100].mxu0  ;;  %v6578_v25 = vsel %vm6575_vm4, %v6541_v4, %v13109_v8  ;;  %v6579_v56 = vsel %vm6575_vm4, %v6542_v50, %v13110_v32 }
 0x317   : > { %v4986_v18 = vpop.f32.mrb[101].mxu0  ;;  %v13118_v12 = vpop.permute.xlu1 %13117  ;;  %v6686_v29 = vsel %vm6575_vm4, %v6650_v46, %v13104_v0  ;;  %v6687_v10 = vsel %vm6575_vm4, %v6651_v59, %v13105_v49  ;;  %v6760_v5 = vpack.c.bf16 %v6579_v56, %v6578_v25  ;;  %v17684_v1 = vadd.f32 %v17249_v21, %v11505_v62 }
 0x318   : > { %v17687_v60 = vadd.f32 %v17249_v21, %v4986_v18  ;;  %v11506_v17 = vpop.f32.mrb[102].mxu0  ;;  %v13113_v24 = vpop.permute.xlu0 %13112  ;;  %v6761_v27 = vpack.c.bf16 %v6687_v10, %v6686_v29  ;;  %v13120_v51 = vunpack.i.h.bf16 %v13118_v12  ;;  %v13119_v20 = vunpack.i.l.bf16 %v13118_v12 }
 0x319   : > { %v17690_v2 = vadd.f32 %v17249_v21, %v11506_v17  ;;  %v4989_v14 = vpop.f32.mrb[103].mxu0  ;;  %13407 = vrot.lane.b32.xlu1 %v13406_v43, %s14695_s26  ;;  %v13115_v53 = vunpack.i.h.bf16 %v13113_v24  ;;  %v20584_v8 = vmax.f32 %v17684_v1, 0.0  ;;  %v13114_v0 = vunpack.i.l.bf16 %v13113_v24 }
 0x31a   : > { %v4990_v38 = vadd.f32 %v17249_v21, %v4989_v14  ;;  %7101 = vmatprep.mubr.bf16.mxu1 %v6761_v27  ;;  %v20587_v49 = vmax.f32 %v17687_v60, 0.0  ;;  %v20685_v25 = vmax.f32 %v17090_v55, 0.0  ;;  %v20686_v18 = vmax.f32 %v17066_v15, 0.0 }
 0x31b   : > { %v5472_v28 = vmax.f32 %v17690_v2, 0.0  ;;  %7102 = vmatmul.mubr.bf16.gmra.mrb[4].mxu1 %v6760_v5  ;;  %v13128_v32 = vpop.permute.xlu1 %13127  ;;  %v20687_v29 = vmax.f32 %v16998_v35, 0.0  ;;  %v20688_v24 = vmax.f32 %v17016_v39, 0.0 }
 0x31c   : > { %v5470_v4 = vmax.f32 %v4990_v38, 0.0  ;;  %v13123_v50 = vpop.permute.xlu0 %13122  ;;  %v13130_v62 = vunpack.i.h.bf16 %v13128_v32  ;;  %v13129_v43 = vunpack.i.l.bf16 %v13128_v32  ;;  %v6617_v56 = vsel %vm3726_vm1, %v20685_v25, %v13115_v53 }
 0x31d   : > { %v13125_v46 = vunpack.i.h.bf16 %v13123_v50  ;;  %v13124_v59 = vunpack.i.l.bf16 %v13123_v50  ;;  %v6508_v12 = vsel %vm3726_vm1, %v20686_v18, %v13120_v51  ;;  %v6507_v10 = vsel %vm3726_vm1, %v20687_v29, %v13119_v20  ;;  %v20689_v29 = vld [vmem:[#allocation5_spill] sm:$0xff] }
 0x31e   : > { %v13341_v21 = vpack.i.bf16 %v5472_v28, %v5470_v4  ;;  %v13321_v7 = vpack.i.bf16 %v5470_v4, %v5468_v11  ;;  %v13331_v17 = vpack.i.bf16 %v20584_v8, %v20587_v49  ;;  %v6616_v55 = vsel %vm3726_vm1, %v20688_v24, %v13114_v0  ;;  %v18078_v8 = vld [vmem:[%s15256_s27 + $0x638] sm:$0xff] }
 0x31f   : > { %v13138_v5 = vpop.permute.xlu1 %13137  ;;  %v6543_v35 = vsel %vm4257_vm3, %v6507_v10, %v13129_v43  ;;  %v6544_v53 = vsel %vm4257_vm3, %v6508_v12, %v13130_v62  ;;  %v6652_v20 = vsel %vm4257_vm3, %v6616_v55, %v13124_v59  ;;  %v6653_v32 = vsel %vm4257_vm3, %v6617_v56, %v13125_v46  ;;  %v17727_v62 = vld [vmem:[%s20516_s2] ss:$0 sm:$0xff] }
 0x320   : > { %13322 = vrot.lane.b32.xlu0 %v13321_v7, %s14690_s17  ;;  %v13133_v27 = vpop.permute.xlu0 %13132  ;;  %v13140_v15 = vunpack.i.h.bf16 %v13138_v5  ;;  %v13139_v14 = vunpack.i.l.bf16 %v13138_v5  ;;  %v4699_v10 = vadd.f32 %v17727_v62, %v20689_v29  ;;  %v20690_v5 = vld [vmem:[#allocation13_spill] sm:$0xff]  ;;  %v20691_v29 = vmax.f32 %v17157_v30, 0.0 }
 0x321   : > { %v13135_v11 = vunpack.i.h.bf16 %v13133_v27  ;;  %v13134_v38 = vunpack.i.l.bf16 %v13133_v27  ;;  %v4755_v24 = vadd.f32 %v17727_v62, %v20690_v5  ;;  %v20692_v5 = vmax.f32 %v17133_v45, 0.0 }
 0x322   : > { %v11509_v51 = vpop.f32.mrb[104].mxu0  ;;  %v6580_v39 = vsel %vm6575_vm4, %v6543_v35, %v13139_v14  ;;  %v6581_v0 = vsel %vm6575_vm4, %v6544_v53, %v13140_v15 }
 0x323   : > { %v5002_v4 = vpop.f32.mrb[105].mxu0  ;;  %v13148_v50 = vpop.permute.xlu1 %13147  ;;  %v6688_v7 = vsel %vm6575_vm4, %v6652_v20, %v13134_v38  ;;  %v6689_v25 = vsel %vm6575_vm4, %v6653_v32, %v13135_v11  ;;  %v6764_v18 = vpack.c.bf16 %v6581_v0, %v6580_v39  ;;  %v17730_v43 = vadd.f32 %v17727_v62, %v11509_v51 }
 0x324   : > { %v17733_v46 = vadd.f32 %v17727_v62, %v5002_v4  ;;  %v11510_v59 = vpop.f32.mrb[106].mxu0  ;;  %13332 = vrot.lane.b32.xlu0 %v13331_v17, %s14694_s25  ;;  %v13143_v56 = vpop.permute.xlu0 %13142  ;;  %v6765_v12 = vpack.c.bf16 %v6689_v25, %v6688_v7  ;;  %v13150_v38 = vunpack.i.h.bf16 %v13148_v50  ;;  %v13149_v17 = vunpack.i.l.bf16 %v13148_v50 }
 0x325   : > { %v17741_v55 = vadd.f32 %v17727_v62, %v11510_v59  ;;  %v5005_v27 = vpop.f32.mrb[107].mxu0  ;;  %v13145_v11 = vunpack.i.h.bf16 %v13143_v56  ;;  %v20571_v53 = vmax.f32 %v17730_v43, 0.0  ;;  %v13144_v20 = vunpack.i.l.bf16 %v13143_v56 }
 0x326   : > { %v5006_v15 = vadd.f32 %v17727_v62, %v5005_v27  ;;  %7109 = vmatprep.mubr.bf16.mxu1 %v6765_v12  ;;  %v20585_v51 = vmax.f32 %v17733_v46, 0.0  ;;  %v5397_v0 = vmax.f32 %v4699_v10, 0.0  ;;  %v5411_v4 = vmax.f32 %v4755_v24, 0.0 }
 0x327   : > { %v5476_v14 = vmax.f32 %v17741_v55, 0.0  ;;  %7110 = vmatmul.mubr.bf16.gmra.mrb[8].mxu1 %v6764_v18  ;;  %v13158_v35 = vpop.permute.xlu1 %13157  ;;  %v6619_v56 = vsel %vm3726_vm1, %v20691_v29, %v13145_v11  ;;  %v20698_v55 = vmax.f32 %v17153_v23, 0.0 }
 0x328   : > { %v5474_v32 = vmax.f32 %v5006_v15, 0.0  ;;  %13342 = vrot.lane.b32.xlu0 %v13341_v21, %s14695_s26  ;;  %v13153_v39 = vpop.permute.xlu0 %13152  ;;  %v13160_v7 = vunpack.i.h.bf16 %v13158_v35  ;;  %v13159_v25 = vunpack.i.l.bf16 %v13158_v35  ;;  %v6510_v21 = vsel %vm3726_vm1, %v20692_v5, %v13150_v38 }
 0x329   : > { %v13155_v18 = vunpack.i.h.bf16 %v13153_v39  ;;  %v13154_v12 = vunpack.i.l.bf16 %v13153_v39  ;;  %v6509_v10 = vsel %vm3726_vm1, %v5397_v0, %v13149_v17  ;;  %v13361_v27 = vpack.i.bf16 %v20571_v53, %v20585_v51 }
 0x32a   : > { %v13371_v59 = vpack.i.bf16 %v5476_v14, %v5474_v32  ;;  %v13351_v50 = vpack.i.bf16 %v5474_v32, %v5472_v28  ;;  %v6618_v2 = vsel %vm3726_vm1, %v5411_v4, %v13144_v20  ;;  %v6545_v45 = vsel %vm4257_vm3, %v6509_v10, %v13159_v25 }
 0x32b   : > { %v13168_v24 = vpop.permute.xlu1 %13167  ;;  %v6546_v38 = vsel %vm4257_vm3, %v6510_v21, %v13160_v7  ;;  %v6654_v32 = vsel %vm4257_vm3, %v6618_v2, %v13154_v12  ;;  %v6655_v39 = vsel %vm4257_vm3, %v6619_v56, %v13155_v18 }
 0x32c   : > { %13352 = vrot.lane.b32.xlu0 %v13351_v50, %s14690_s17  ;;  %v13163_v28 = vpop.permute.xlu0 %13162  ;;  %v13170_v30 = vunpack.i.h.bf16 %v13168_v24  ;;  %v13169_v15 = vunpack.i.l.bf16 %v13168_v24 }
 0x32d   : > { %v13165_v11 = vunpack.i.h.bf16 %v13163_v28  ;;  %v13164_v35 = vunpack.i.l.bf16 %v13163_v28 }
 0x32e   : > { %v11513_v17 = vpop.f32.mrb[108].mxu0  ;;  %v6582_v0 = vsel %vm6575_vm4, %v6545_v45, %v13169_v15  ;;  %v6583_v20 = vsel %vm6575_vm4, %v6546_v38, %v13170_v30 }
 0x32f   : > { %v5018_v4 = vpop.f32.mrb[109].mxu0  ;;  %v13178_v50 = vpop.permute.xlu1 %13177  ;;  %v6690_v29 = vsel %vm6575_vm4, %v6654_v32, %v13164_v35  ;;  %v6691_v5 = vsel %vm6575_vm4, %v6655_v39, %v13165_v11  ;;  %v17773_v24 = vpack.c.bf16 %v6583_v20, %v6582_v0  ;;  %v5027_v25 = vadd.f32 %v17727_v62, %v11513_v17 }
 0x330   : > { %v17777_v7 = vadd.f32 %v17727_v62, %v5018_v4  ;;  %v11514_v12 = vpop.f32.mrb[110].mxu0  ;;  %13362 = vrot.lane.b32.xlu0 %v13361_v27, %s14694_s25  ;;  %v13173_v18 = vpop.permute.xlu0 %13172  ;;  %v17780_v56 = vpack.c.bf16 %v6691_v5, %v6690_v29  ;;  %v13180_v15 = vunpack.i.h.bf16 %v13178_v50  ;;  %v13179_v11 = vunpack.i.l.bf16 %v13178_v50 }
 0x331   : > { %20693 = vst [vmem:[#allocation9_spill] sm:$0xff] %v17773_v24  ;;  %v5030_v21 = vadd.f32 %v17727_v62, %v11514_v12  ;;  %v5021_v10 = vpop.f32.mrb[111].mxu0  ;;  %v13175_v30 = vunpack.i.h.bf16 %v13173_v18  ;;  %v5479_v45 = vmax.f32 %v5027_v25, 0.0  ;;  %v13174_v38 = vunpack.i.l.bf16 %v13173_v18 }
 0x332   : > { %20694 = vst [vmem:[#allocation10_spill] sm:$0xff] %v17780_v56  ;;  %v5022_v2 = vadd.f32 %v17727_v62, %v5021_v10  ;;  %7117 = vmatprep.mubr.bf16.mxu1 %v17780_v56  ;;  %v20572_v27 = vmax.f32 %v17777_v7, 0.0  ;;  %v20695_v50 = vmax.f32 %v17226_v61, 0.0  ;;  %v20696_v25 = vmax.f32 %v17253_v44, 0.0 }
 0x333   : > { %v5480_v28 = vmax.f32 %v5030_v21, 0.0  ;;  %7118 = vmatmul.mubr.bf16.gmra.mrb[12].mxu1 %v17773_v24  ;;  %v13188_v35 = vpop.permute.xlu1 %13187  ;;  %v20697_v21 = vmax.f32 %v17137_v22, 0.0 }
 0x334   : > { %v5478_v17 = vmax.f32 %v5022_v2, 0.0  ;;  %13372 = vrot.lane.b32.xlu0 %v13371_v59, %s14695_s26  ;;  %v13183_v32 = vpop.permute.xlu0 %13182  ;;  %v13190_v39 = vunpack.i.h.bf16 %v13188_v35  ;;  %v13189_v0 = vunpack.i.l.bf16 %v13188_v35  ;;  %v6621_v12 = vsel %vm3726_vm1, %v20695_v50, %v13175_v30 }
 0x335   : > { %v13185_v29 = vunpack.i.h.bf16 %v13183_v32  ;;  %v13184_v5 = vunpack.i.l.bf16 %v13183_v32  ;;  %v6512_v18 = vsel %vm3726_vm1, %v20696_v25, %v13180_v15  ;;  %v6511_v59 = vsel %vm3726_vm1, %v20697_v21, %v13179_v11 }
 0x336   : > { %v13401_v20 = vpack.i.bf16 %v5480_v28, %v5478_v17  ;;  %v13381_v4 = vpack.i.bf16 %v5478_v17, %v5476_v14  ;;  %v13391_v2 = vpack.i.bf16 %v5479_v45, %v20572_v27  ;;  %v6620_v14 = vsel %vm3726_vm1, %v20698_v55, %v13174_v38 }
 0x337   : > { %v13198_v10 = vpop.permute.xlu1 %13197  ;;  %v6547_v15 = vsel %vm4257_vm3, %v6511_v59, %v13189_v0  ;;  %v6548_v22 = vsel %vm4257_vm3, %v6512_v18, %v13190_v39  ;;  %v6656_v17 = vsel %vm4257_vm3, %v6620_v14, %v13184_v5  ;;  %v6657_v45 = vsel %vm4257_vm3, %v6621_v12, %v13185_v29 }
 0x338   : > { %13382 = vrot.lane.b32.xlu0 %v13381_v4, %s14690_s17  ;;  %v13193_v61 = vpop.permute.xlu0 %13192  ;;  %v13200_v28 = vunpack.i.h.bf16 %v13198_v10  ;;  %v13199_v30 = vunpack.i.l.bf16 %v13198_v10 }
 0x339   : > { %v13195_v44 = vunpack.i.h.bf16 %v13193_v61  ;;  %v13194_v35 = vunpack.i.l.bf16 %v13193_v61 }
 0x33a   : > { %v11517_v11 = vpop.f32.mrb[112].mxu0  ;;  %v6584_v23 = vsel %vm6575_vm4, %v6547_v15, %v13199_v30  ;;  %v6585_v38 = vsel %vm6575_vm4, %v6548_v22, %v13200_v28 }
 0x33b   : > { %v17811_v32 = vpop.f32.mrb[113].mxu0  ;;  %v13208_v4 = vpop.permute.xlu1 %13207  ;;  %v6692_v50 = vsel %vm6575_vm4, %v6656_v17, %v13194_v35  ;;  %v6693_v25 = vsel %vm6575_vm4, %v6657_v45, %v13195_v44  ;;  %v17815_v21 = vpack.c.bf16 %v6585_v38, %v6584_v23  ;;  %v17831_v45 = vadd.f32 %v17727_v62, %v11517_v11 }
 0x33c   : > { %v11518_v0 = vpop.f32.mrb[114].mxu0  ;;  %13392 = vrot.lane.b32.xlu0 %v13391_v2, %s14694_s25  ;;  %v13203_v39 = vpop.permute.xlu0 %13202  ;;  %v17818_v5 = vpack.c.bf16 %v6693_v25, %v6692_v50  ;;  %v13210_v10 = vunpack.i.h.bf16 %v13208_v4  ;;  %v13209_v55 = vunpack.i.l.bf16 %v13208_v4  ;;  %v20701_v23 = vmax.f32 %v17272_v13, 0.0 }
 0x33d   : > { %20699 = vst [vmem:[#allocation14_spill] sm:$0xff] %v17815_v21  ;;  %v17821_v29 = vadd.f32 %v17727_v62, %v11518_v0  ;;  %v5037_v12 = vpop.f32.mrb[115].mxu0  ;;  %v13205_v61 = vunpack.i.h.bf16 %v13203_v39  ;;  %v13204_v2 = vunpack.i.l.bf16 %v13203_v39  ;;  %v20702_v4 = vmax.f32 %v17202_v6, 0.0  ;;  %v20704_v39 = vld [vmem:[#allocation6_spill] sm:$0xff] }
 0x33e   : > { %20700 = vst [vmem:[#allocation8_spill] sm:$0xff] %v17818_v5  ;;  %v5038_v18 = vadd.f32 %v17727_v62, %v5037_v12  ;;  %7125 = vmatprep.mubr.bf16.mxu1 %v17818_v5  ;;  %v6514_v38 = vsel %vm3726_vm1, %v20701_v23, %v13210_v10  ;;  %v20703_v25 = vmax.f32 %v17296_v37, 0.0  ;;  %v20705_v12 = vmax.f32 %v20704_v39, 0.0 }
 0x33f   : > { %v5484_v59 = vmax.f32 %v17821_v29, 0.0  ;;  %7126 = vmatmul.mubr.bf16.gmra.mrb[16].mxu1 %v17815_v21  ;;  %v13218_v14 = vpop.permute.xlu1 %13217  ;;  %v6513_v50 = vsel %vm3726_vm1, %v20702_v4, %v13209_v55 }
 0x340   : > { %v5482_v28 = vmax.f32 %v5038_v18, 0.0  ;;  %13402 = vrot.lane.b32.xlu0 %v13401_v20, %s14695_s26  ;;  %v13213_v30 = vpop.permute.xlu0 %13212  ;;  %v13220_v44 = vunpack.i.h.bf16 %v13218_v14  ;;  %v13219_v35 = vunpack.i.l.bf16 %v13218_v14  ;;  %v6623_v0 = vsel %vm3726_vm1, %v20703_v25, %v13205_v61 }
 0x341   : > { %v13215_v22 = vunpack.i.h.bf16 %v13213_v30  ;;  %v13214_v17 = vunpack.i.l.bf16 %v13213_v30  ;;  %v6622_v18 = vsel %vm3726_vm1, %v20705_v12, %v13204_v2 }
 0x342   : > { %v13416_v15 = vpack.i.bf16 %v5484_v59, %v5482_v28  ;;  %v6549_v6 = vsel %vm4257_vm3, %v6513_v50, %v13219_v35  ;;  %v6550_v55 = vsel %vm4257_vm3, %v6514_v38, %v13220_v44 }
 0x343   : > { %v13228_v20 = vpop.permute.xlu1 %13227  ;;  %v6658_v37 = vsel %vm4257_vm3, %v6622_v18, %v13214_v17  ;;  %v6659_v61 = vsel %vm4257_vm3, %v6623_v0, %v13215_v22  ;;  %v20708_v22 = vld [vmem:[#allocation17_spill] sm:$0xff]  ;;  %v20709_v0 = vld [vmem:[#allocation18_spill] sm:$0xff] }
 0x344   : > { %v13223_v14 = vpop.permute.xlu0 %13222  ;;  %13417 = vrot.lane.b32.xlu1 %v13416_v15, %s14690_s17  ;;  %v13230_v11 = vunpack.i.h.bf16 %v13228_v20  ;;  %v13229_v13 = vunpack.i.l.bf16 %v13228_v20  ;;  %v4811_v50 = vadd.f32 %v17727_v62, %v20708_v22  ;;  %v4867_v12 = vadd.f32 %v17727_v62, %v20709_v0 }
 0x345   : > { %v13225_v28 = vunpack.i.h.bf16 %v13223_v14  ;;  %v13224_v10 = vunpack.i.l.bf16 %v13223_v14 }
 0x346   : > { %v11521_v30 = vpop.f32.mrb[116].mxu0  ;;  %v6586_v23 = vsel %vm6575_vm4, %v6549_v6, %v13229_v13  ;;  %v6587_v2 = vsel %vm6575_vm4, %v6550_v55, %v13230_v11  ;;  %v20574_v11 = vmax.f32 %v17831_v45, 0.0 }
 0x347   : > { %v5050_v4 = vpop.f32.mrb[117].mxu0  ;;  %v13238_v25 = vpop.permute.xlu1 %13237  ;;  %v6694_v15 = vsel %vm6575_vm4, %v6658_v37, %v13224_v10  ;;  %v6695_v20 = vsel %vm6575_vm4, %v6659_v61, %v13225_v28  ;;  %v17854_v39 = vpack.c.bf16 %v6587_v2, %v6586_v23 }
 0x348   : > { %v17857_v35 = vadd.f32 %v17727_v62, %v5050_v4  ;;  %v11522_v44 = vpop.f32.mrb[118].mxu0  ;;  %v13233_v38 = vpop.permute.xlu0 %13232  ;;  %v17859_v17 = vpack.c.bf16 %v6695_v20, %v6694_v15  ;;  %v13240_v6 = vunpack.i.h.bf16 %v13238_v25  ;;  %v13239_v55 = vunpack.i.l.bf16 %v13238_v25 }
 0x349   : > { %20706 = vst [vmem:[#allocation12_spill] sm:$0xff] %v17854_v39  ;;  %v17866_v18 = vadd.f32 %v17727_v62, %v11522_v44  ;;  %v5053_v14 = vpop.f32.mrb[119].mxu0  ;;  %v13235_v23 = vunpack.i.h.bf16 %v13233_v38  ;;  %v13234_v2 = vunpack.i.l.bf16 %v13233_v38  ;;  %v5425_v20 = vmax.f32 %v4811_v50, 0.0 }
 0x34a   : > { %20707 = vst [vmem:[#allocation16_spill] sm:$0xff] %v17859_v17  ;;  %v20573_v13 = vmax.f32 %v17857_v35, 0.0  ;;  %v5054_v28 = vadd.f32 %v17727_v62, %v5053_v14  ;;  %7133 = vmatprep.mubr.bf16.mxu1 %v17859_v17  ;;  %v5439_v44 = vmax.f32 %v4867_v12, 0.0  ;;  %v20710_v38 = vmax.f32 %v17336_v47, 0.0 }
 0x34b   : > { %v5488_v10 = vmax.f32 %v17866_v18, 0.0  ;;  %7134 = vmatmul.mubr.bf16.gmra.mrb[20].mxu1 %v17854_v39  ;;  %v13248_v37 = vpop.permute.xlu1 %13247  ;;  %v6515_v12 = vsel %vm3726_vm1, %v5425_v20, %v13239_v55 }
 0x34c   : > { %v13426_v61 = vpack.i.bf16 %v20573_v13, %v20574_v11  ;;  %v5486_v4 = vmax.f32 %v5054_v28, 0.0  ;;  %v13243_v15 = vpop.permute.xlu0 %13242  ;;  %v13250_v22 = vunpack.i.h.bf16 %v13248_v37  ;;  %v13249_v0 = vunpack.i.l.bf16 %v13248_v37 }
 0x34d   : > { %v13245_v53 = vunpack.i.h.bf16 %v13243_v15  ;;  %v13244_v27 = vunpack.i.l.bf16 %v13243_v15  ;;  %v17884_v13 = vadd.f32 %v17727_v62, %v11521_v30  ;;  %v6516_v50 = vsel %vm3726_vm1, %v20710_v38, %v13240_v6 }
 0x34e   : > { %v13446_v14 = vpack.i.bf16 %v5488_v10, %v5486_v4  ;;  %v13436_v25 = vpack.i.bf16 %v5486_v4, %v5484_v59  ;;  %13427 = vrot.lane.b32.xlu1 %v13426_v61, %s14694_s25  ;;  %v20711_v37 = vmax.f32 %v17372_v57, 0.0  ;;  %v6624_v29 = vsel %vm3726_vm1, %v5439_v44, %v13234_v2 }
 0x34f   : > { %v13258_v28 = vpop.permute.xlu1 %13257  ;;  %v6551_v30 = vsel %vm4257_vm3, %v6515_v12, %v13249_v0  ;;  %v6552_v47 = vsel %vm4257_vm3, %v6516_v50, %v13250_v22  ;;  %v6660_v6 = vsel %vm4257_vm3, %v6624_v29, %v13244_v27  ;;  %v20578_v12 = vmax.f32 %v17884_v13, 0.0 }
 0x350   : > { %v6625_v11 = vsel %vm3726_vm1, %v20711_v37, %v13235_v23  ;;  %v13253_v59 = vpop.permute.xlu0 %13252  ;;  %v13260_v4 = vunpack.i.h.bf16 %v13258_v28  ;;  %v13259_v15 = vunpack.i.l.bf16 %v13258_v28 }
 0x351   : > { %v13255_v61 = vunpack.i.h.bf16 %v13253_v59  ;;  %v13254_v42 = vunpack.i.l.bf16 %v13253_v59  ;;  %v6661_v57 = vsel %vm4257_vm3, %v6625_v11, %v13245_v53 }
 0x352   : > { %v17896_v48 = vpop.f32.mrb[120].mxu0  ;;  %13437 = vrot.lane.b32.xlu1 %v13436_v25, %s14695_s26  ;;  %v6588_v55 = vsel %vm6575_vm4, %v6551_v30, %v13259_v15  ;;  %v6589_v23 = vsel %vm6575_vm4, %v6552_v47, %v13260_v4 }
 0x353   : > { %v5066_v2 = vpop.f32.mrb[121].mxu0  ;;  %v13268_v20 = vpop.permute.xlu1 %13267  ;;  %v6696_v44 = vsel %vm6575_vm4, %v6660_v6, %v13254_v42  ;;  %v6697_v0 = vsel %vm6575_vm4, %v6661_v57, %v13255_v61  ;;  %v17905_v38 = vpack.c.bf16 %v6589_v23, %v6588_v55 }
 0x354   : > { %v17908_v22 = vadd.f32 %v17727_v62, %v5066_v2  ;;  %v11526_v25 = vpop.f32.mrb[122].mxu0  ;;  %v13263_v50 = vpop.permute.xlu0 %13262  ;;  %v17910_v27 = vpack.c.bf16 %v6697_v0, %v6696_v44  ;;  %v13270_v29 = vunpack.i.h.bf16 %v13268_v20  ;;  %v13269_v59 = vunpack.i.l.bf16 %v13268_v20 }
 0x355   : > { %20712 = vst [vmem:[#allocation11_spill] sm:$0xff] %v17905_v38  ;;  %v17913_v53 = vadd.f32 %v17727_v62, %v11526_v25  ;;  %v5069_v11 = vpop.f32.mrb[123].mxu0  ;;  %v13265_v61 = vunpack.i.h.bf16 %v13263_v50  ;;  %v13264_v30 = vunpack.i.l.bf16 %v13263_v50  ;;  %v20714_v44 = vmax.f32 %v17393_v16, 0.0 }
 0x356   : > { %20713 = vst [vmem:[#allocation15_spill] sm:$0xff] %v17910_v27  ;;  %v20577_v28 = vmax.f32 %v17908_v22, 0.0  ;;  %v5070_v42 = vadd.f32 %v17727_v62, %v5069_v11  ;;  %13447 = vrot.lane.b32.xlu1 %v13446_v14, %s14690_s17  ;;  %7141 = vmatprep.mubr.bf16.mxu1 %v17910_v27  ;;  %v20715_v25 = vmax.f32 %v17350_v26, 0.0  ;;  %v14631_v11 = vld [vmem:[%s15256_s27 + $0x5a8] sm:$0xff] }
 0x357   : > { %v5492_v37 = vmax.f32 %v17913_v53, 0.0  ;;  %7142 = vmatmul.mubr.bf16.gmra.mrb[24].mxu1 %v17905_v38  ;;  %v13278_v4 = vpop.permute.xlu1 %13277  ;;  %v6518_v0 = vsel %vm3726_vm1, %v20714_v44, %v13270_v29 }
 0x358   : > { %v13456_v15 = vpack.i.bf16 %v20577_v28, %v20578_v12  ;;  %v5490_v47 = vmax.f32 %v5070_v42, 0.0  ;;  %v13273_v14 = vpop.permute.xlu0 %13272  ;;  %v13280_v6 = vunpack.i.h.bf16 %v13278_v4  ;;  %v13279_v57 = vunpack.i.l.bf16 %v13278_v4  ;;  %v14632_v42 = vld [vmem:[%s15256_s27 + $0x5b0] sm:$0xff] }
 0x359   : > { %v13275_v2 = vunpack.i.h.bf16 %v13273_v14  ;;  %v13274_v20 = vunpack.i.l.bf16 %v13273_v14  ;;  %v6517_v50 = vsel %vm3726_vm1, %v20715_v25, %v13269_v59  ;;  %v13476_v4 = vpack.i.bf16 %v14632_v42, %v14631_v11 }
 0x35a   : > { %v17926_v55 = vpack.i.bf16 %v5492_v37, %v5490_v47  ;;  %v13466_v23 = vpack.i.bf16 %v5490_v47, %v5488_v10  ;;  %13457 = vrot.lane.b32.xlu1 %v13456_v15, %s14694_s25  ;;  %v20716_v28 = vmax.f32 %v17439_v52, 0.0  ;;  %v20717_v10 = vld [vmem:[#allocation7_spill] sm:$0xff]  ;;  %v6553_v26 = vsel %vm4257_vm3, %v6517_v50, %v13279_v57 }
 0x35b   : > { %v13288_v53 = vpop.permute.xlu1 %13287  ;;  %v20718_v47 = vmax.f32 %v20717_v10, 0.0  ;;  %v6554_v59 = vsel %vm4257_vm3, %v6518_v0, %v13280_v6 }
 0x35c   : > { %v6627_v18 = vsel %vm3726_vm1, %v20716_v28, %v13265_v61  ;;  %v13283_v14 = vpop.permute.xlu0 %13282  ;;  %v13290_v16 = vunpack.i.h.bf16 %v13288_v53  ;;  %v13289_v12 = vunpack.i.l.bf16 %v13288_v53 }
 0x35d   : > { %v6626_v15 = vsel %vm3726_vm1, %v20718_v47, %v13264_v30  ;;  %v13285_v29 = vunpack.i.h.bf16 %v13283_v14  ;;  %v13284_v44 = vunpack.i.l.bf16 %v13283_v14  ;;  %v6663_v28 = vsel %vm4257_vm3, %v6627_v18, %v13275_v2 }
 0x35e   : > { %v17947_v25 = vpop.f32.mrb[124].mxu0  ;;  %13467 = vrot.lane.b32.xlu1 %v13466_v23, %s14695_s26  ;;  %v6662_v52 = vsel %vm4257_vm3, %v6626_v15, %v13274_v20  ;;  %v6590_v61 = vsel %vm6575_vm4, %v6553_v26, %v13289_v12  ;;  %v6591_v30 = vsel %vm6575_vm4, %v6554_v59, %v13290_v16 }
 0x35f   : > { %v17954_v11 = vpop.f32.mrb[125].mxu0  ;;  %v13298_v53 = vpop.permute.xlu1 %13297  ;;  %v6698_v42 = vsel %vm6575_vm4, %v6662_v52, %v13284_v44  ;;  %v6699_v57 = vsel %vm6575_vm4, %v6663_v28, %v13285_v29  ;;  %v17958_v6 = vpack.c.bf16 %v6591_v30, %v6590_v61  ;;  %v20721_v28 = vmax.f32 %v17457_v41, 0.0 }
 0x360   : > { %v11530_v0 = vpop.f32.mrb[126].mxu0  ;;  %v13293_v50 = vpop.permute.xlu0 %13292  ;;  %v17960_v23 = vpack.c.bf16 %v6699_v57, %v6698_v42  ;;  %v13300_v12 = vunpack.i.h.bf16 %v13298_v53  ;;  %v13299_v18 = vunpack.i.l.bf16 %v13298_v53  ;;  %v20723_v42 = vmax.f32 %v17501_v31, 0.0 }
 0x361   : > { %20719 = vst [vmem:[#allocation3_spill] sm:$0xff] %v17958_v6  ;;  %v5085_v20 = vpop.f32.mrb[127].mxu0  ;;  %v13295_v47 = vunpack.i.h.bf16 %v13293_v50  ;;  %v13294_v15 = vunpack.i.l.bf16 %v13293_v50  ;;  %v20724_v50 = vmax.f32 %v17420_v54, 0.0 }
 0x362   : > { %20720 = vst [vmem:[#allocation4_spill] sm:$0xff] %v17960_v23  ;;  %v5086_v2 = vadd.f32 %v17727_v62, %v5085_v20  ;;  %7149 = vmatprep.mubr.bf16.mxu1 %v17960_v23  ;;  %13477 = vrot.lane.b32.xlu1 %v13476_v4, %s14691_s28  ;;  %v6520_v61 = vsel %vm3726_vm1, %v20721_v28, %v13300_v12  ;;  %v20722_v4 = vmax.f32 %v17401_v40, 0.0 }
 0x363   : > { %7150 = vmatmul.mubr.bf16.gmra.mrb[28].mxu1 %v17958_v6  ;;  %v13308_v10 = vpop.permute.xlu1 %13307  ;;  %v6629_v57 = vsel %vm3726_vm1, %v20723_v42, %v13295_v47 }
 0x364   : > { %v5494_v14 = vmax.f32 %v5086_v2, 0.0  ;;  %v13303_v16 = vpop.permute.xlu0 %13302  ;;  %v13310_v29 = vunpack.i.h.bf16 %v13308_v10  ;;  %v13309_v44 = vunpack.i.l.bf16 %v13308_v10  ;;  %v6519_v30 = vsel %vm3726_vm1, %v20722_v4, %v13299_v18 }
 0x365   : > { %v13305_v59 = vunpack.i.h.bf16 %v13303_v16  ;;  %v13304_v52 = vunpack.i.l.bf16 %v13303_v16 }
 0x366   : > { %v17966_v26 = vpack.i.bf16 %v5494_v14, %v5492_v37  ;;  %v6628_v37 = vsel %vm3726_vm1, %v20724_v50, %v13294_v15  ;;  %v6555_v12 = vsel %vm4257_vm3, %v6519_v30, %v13309_v44  ;;  %v6556_v40 = vsel %vm4257_vm3, %v6520_v61, %v13310_v29 }
 0x367   : > { %v13318_v53 = vpop.permute.xlu1 %13317  ;;  %v6664_v18 = vsel %vm4257_vm3, %v6628_v37, %v13304_v52  ;;  %v6665_v31 = vsel %vm4257_vm3, %v6629_v57, %v13305_v59  ;;  %v5094_v44 = vadd.f32 %v17727_v62, %v11530_v0 }
 0x368   : > { %v13313_v20 = vpop.permute.xlu0 %13312  ;;  %v13320_v2 = vunpack.i.h.bf16 %v13318_v53  ;;  %v13319_v10 = vunpack.i.l.bf16 %v13318_v53 }
 0x369   : > { %v13315_v14 = vunpack.i.h.bf16 %v13313_v20  ;;  %v13314_v41 = vunpack.i.l.bf16 %v13313_v20  ;;  %v5496_v0 = vmax.f32 %v5094_v44, 0.0 }
 0x36a   : > { %v11533_v16 = vpop.f32.mrb[128].mxu0  ;;  %v6592_v47 = vsel %vm6575_vm4, %v6555_v12, %v13319_v10  ;;  %v6593_v54 = vsel %vm6575_vm4, %v6556_v40, %v13320_v2 }
 0x36b   : > { %v5098_v28 = vpop.f32.mrb[129].mxu0  ;;  %v6700_v15 = vsel %vm6575_vm4, %v6664_v18, %v13314_v41  ;;  %v6701_v4 = vsel %vm6575_vm4, %v6665_v31, %v13315_v14  ;;  %v17988_v53 = vpack.c.bf16 %v6593_v54, %v6592_v47  ;;  %v17995_v59 = vadd.f32 %v17727_v62, %v11533_v16  ;;  %v18020_v44 = vpop.permute.xlu1 %13327 }
 0x36c   : > { %v11534_v30 = vpop.f32.mrb[130].mxu0  ;;  %v17991_v29 = vpack.c.bf16 %v6701_v4, %v6700_v15  ;;  %v17998_v42 = vadd.f32 %v17727_v62, %v5098_v28 }
 0x36d   : > { %20725 = vst [vmem:[#allocation5_spill] sm:$0xff] %v17988_v53  ;;  %v5110_v52 = vadd.f32 %v17727_v62, %v11534_v30  ;;  %v5101_v61 = vpop.f32.mrb[131].mxu0  ;;  %v20580_v20 = vmax.f32 %v17995_v59, 0.0 }
 0x36e   : > { %20726 = vst [vmem:[#allocation13_spill] sm:$0xff] %v17991_v29  ;;  %v5102_v57 = vadd.f32 %v17727_v62, %v5101_v61  ;;  %7157 = vmatprep.mubr.bf16.mxu1 %v17991_v29  ;;  %v20583_v2 = vmax.f32 %v17998_v42, 0.0 }
 0x36f   : > { %v5500_v50 = vmax.f32 %v5110_v52, 0.0  ;;  %7158 = vmatmul.mubr.bf16.gmra.mrb[32].mxu1 %v17988_v53 }
 0x370   : > { %v5498_v37 = vmax.f32 %v5102_v57, 0.0  ;;  %v13421_v41 = vpack.i.bf16 %v20580_v20, %v20583_v2  ;;  %v1514_v2 = vld [vmem:[%s15256_s27 + $0x630] sm:$0xff] }
 0x371   : > { %v18092_v9 = vpack.i.bf16 %v18078_v8, %v1514_v2 }
 0x372   : > { %v13431_v10 = vpack.i.bf16 %v5500_v50, %v5498_v37  ;;  %v13411_v14 = vpack.i.bf16 %v5498_v37, %v5496_v0 }
 0x374   : > { %13412 = vrot.lane.b32.xlu0 %v13411_v14, %s14690_s17  ;;  %v18029_v14 = vpop.permute.xlu1 %13337 }
 0x375   : > { %v13340_v49 = vunpack.i.h.bf16 %v18029_v14 }
 0x376   : > { %v11537_v12 = vpop.f32.mrb[132].mxu0 }
 0x377   : > { %v5114_v40 = vpop.f32.mrb[133].mxu0  ;;  %v18013_v47 = vadd.f32 %v17727_v62, %v11537_v12 }
 0x378   : > { %v11538_v16 = vpop.f32.mrb[134].mxu0  ;;  %13422 = vrot.lane.b32.xlu0 %v13421_v41, %s14694_s25  ;;  %v18016_v54 = vadd.f32 %v17727_v62, %v5114_v40 }
 0x379   : > { %v5126_v18 = vadd.f32 %v17727_v62, %v11538_v16  ;;  %v5117_v31 = vpop.f32.mrb[135].mxu0  ;;  %v20579_v30 = vmax.f32 %v18013_v47, 0.0 }
 0x37a   : > { %v5118_v28 = vadd.f32 %v17727_v62, %v5117_v31  ;;  %v20582_v52 = vmax.f32 %v18016_v54, 0.0 }
 0x37b   : > { %v5504_v15 = vmax.f32 %v5126_v18, 0.0 }
 0x37c   : > { %v5502_v4 = vmax.f32 %v5118_v28, 0.0  ;;  %13432 = vrot.lane.b32.xlu0 %v13431_v10, %s14695_s26  ;;  %v13451_v0 = vpack.i.bf16 %v20579_v30, %v20582_v52  ;;  %v1512_v30 = vld [vmem:[%s15256_s27 + $0x620] sm:$0xff] }
 0x37e   : > { %v13461_v61 = vpack.i.bf16 %v5504_v15, %v5502_v4  ;;  %v13441_v57 = vpack.i.bf16 %v5502_v4, %v5500_v50 }
 0x380   : > { %13442 = vrot.lane.b32.xlu0 %v13441_v57, %s14690_s17  ;;  %v1511_v57 = vld [vmem:[%s15256_s27 + $0x618] sm:$0xff] }
 0x381   : > { %v13496_v20 = vpack.i.bf16 %v1512_v30, %v1511_v57  ;;  %v18066_v57 = vld [vmem:[%s15256_s27 + $0x5b8] sm:$0xff] }
 0x382   : > { %v11541_v37 = vpop.f32.mrb[136].mxu0 }
 0x383   : > { %v5139_v10 = vadd.f32 %v17727_v62, %v11541_v37  ;;  %v5130_v41 = vpop.f32.mrb[137].mxu0 }
 0x384   : > { %v18033_v12 = vadd.f32 %v17727_v62, %v5130_v41  ;;  %v11542_v40 = vpop.f32.mrb[138].mxu0  ;;  %13452 = vrot.lane.b32.xlu0 %v13451_v0, %s14694_s25  ;;  %v18044_v0 = vpop.permute.xlu1 %13347 }
 0x385   : > { %v5507_v50 = vmax.f32 %v5139_v10, 0.0  ;;  %v5142_v16 = vadd.f32 %v17727_v62, %v11542_v40  ;;  %v5133_v18 = vpop.f32.mrb[139].mxu0 }
 0x386   : > { %v20581_v31 = vmax.f32 %v18033_v12, 0.0  ;;  %v5134_v28 = vadd.f32 %v17727_v62, %v5133_v18 }
 0x387   : > { %v5508_v4 = vmax.f32 %v5142_v16, 0.0  ;;  %v5083_v16 = vadd.f32 %v17727_v62, %v17954_v11  ;;  %v14633_v11 = vld [vmem:[%s15256_s27 + $0x5c0] sm:$0xff] }
 0x388   : > { %v13486_v37 = vpack.i.bf16 %v5507_v50, %v20581_v31  ;;  %v5506_v41 = vmax.f32 %v5134_v28, 0.0  ;;  %13462 = vrot.lane.b32.xlu0 %v13461_v61, %s14695_s26  ;;  %v18053_v50 = vpop.permute.xlu1 %13357  ;;  %v1513_v28 = vld [vmem:[%s15256_s27 + $0x628] sm:$0xff] }
 0x389   : > { %v13511_v6 = vpack.i.bf16 %v1514_v2, %v1513_v28 }
 0x38a   : > { %v13506_v10 = vpack.i.bf16 %v5508_v4, %v5506_v41  ;;  %v13471_v40 = vpack.i.bf16 %v5506_v41, %v5504_v15  ;;  %13487 = vrot.lane.b32.xlu1 %v13486_v37, %s14694_s25  ;;  %v18060_v15 = vadd.f32 %v17727_v62, %v17896_v48  ;;  %v18074_v48 = vpack.i.bf16 %v1513_v28, %v1512_v30  ;;  %v18118_v28 = vld [vmem:[%s15256_s27 + $0x5c8] sm:$0xff] }
 0x38b   : > { %v13329_v30 = vunpack.i.l.bf16 %v18020_v44 }
 0x38c   : > { %13472 = vrot.lane.b32.xlu0 %v13471_v40, %s14690_s17  ;;  %v5493_v40 = vmax.f32 %v5083_v16, 0.0  ;;  %v4979_v16 = vadd.f32 %v17727_v62, %v17640_v19 }
 0x38e   : > { %v18050_v18 = vpop.f32.mrb[140].mxu0  ;;  %13497 = vrot.lane.b32.xlu1 %v13496_v20, %s14690_s17  ;;  %v13491_v20 = vpack.i.bf16 %v14633_v11, %v18066_v57 }
 0x38f   : > { %v18055_v61 = vpop.f32.mrb[141].mxu0 }
 0x390   : > { %v11546_v4 = vpop.f32.mrb[142].mxu0  ;;  %13482 = vrot.lane.b32.xlu0 %v17926_v55, %s14690_s17  ;;  %v4923_v55 = vadd.f32 %v17727_v62, %v17505_v36 }
 0x391   : > { %v18070_v37 = vadd.f32 %v17727_v62, %v11546_v4  ;;  %v5149_v41 = vpop.f32.mrb[143].mxu0  ;;  %v20591_v4 = vmax.f32 %v18060_v15, 0.0 }
 0x392   : > { %v5150_v31 = vadd.f32 %v17727_v62, %v5149_v41  ;;  %v13323_v52 = vpop.permute.xlu0 %13322  ;;  %13507 = vrot.lane.b32.xlu1 %v13506_v10, %s14695_s26  ;;  %v13330_v10 = vunpack.i.h.bf16 %v18020_v44  ;;  %v18089_v41 = vpop.permute.xlu1 %13367  ;;  %v5453_v44 = vmax.f32 %v4923_v55, 0.0 }
 0x393   : > { %v20593_v11 = vmax.f32 %v18070_v37, 0.0  ;;  %v13501_v36 = vpack.i.bf16 %v5493_v40, %v20591_v4  ;;  %v13325_v53 = vunpack.i.h.bf16 %v13323_v52  ;;  %v13324_v29 = vunpack.i.l.bf16 %v13323_v52 }
 0x394   : > { %v5510_v51 = vmax.f32 %v5150_v31, 0.0  ;;  %13492 = vrot.lane.b32.xlu0 %v13491_v20, %s14691_s28  ;;  %v13339_v31 = vunpack.i.l.bf16 %v18029_v14  ;;  %v13350_v40 = vunpack.i.h.bf16 %v18044_v0  ;;  %v13349_v4 = vunpack.i.l.bf16 %v18044_v0 }
 0x395   : > { %v6521_v55 = vsel %vm3726_vm1, %v5453_v44, %v13329_v30 }
 0x396   : > { %v18100_v20 = vpack.i.bf16 %v20593_v11, %v5510_v51  ;;  %v13333_v19 = vpop.permute.xlu0 %13332  ;;  %13517 = vrot.lane.b32.xlu1 %v18074_v48, %s14692_s29  ;;  %v5467_v51 = vmax.f32 %v4979_v16, 0.0  ;;  %v20727_v11 = vmax.f32 %v17551_v34, 0.0  ;;  %v6557_v2 = vsel %vm4257_vm3, %v6521_v55, %v13339_v31  ;;  %v13378_v34 = vpop.permute.xlu1 %13377 }
 0x397   : > { %v13335_v23 = vunpack.i.h.bf16 %v13333_v19  ;;  %v13334_v14 = vunpack.i.l.bf16 %v13333_v19  ;;  %v6594_v31 = vsel %vm6575_vm4, %v6557_v2, %v13349_v4 }
 0x398   : > { %13502 = vrot.lane.b32.xlu0 %v13501_v36, %s14694_s25  ;;  %v6522_v38 = vsel %vm3726_vm1, %v20727_v11, %v13330_v10  ;;  %v14636_v36 = vld [vmem:[%s15256_s27 + $0x5d0] sm:$0xff]  ;;  %v20728_v11 = vmax.f32 %v17687_v60, 0.0  ;;  %v6630_v30 = vsel %vm3726_vm1, %v5467_v51, %v13324_v29 }
 0x399   : > { %v6558_v0 = vsel %vm4257_vm3, %v6522_v38, %v13340_v49  ;;  %v13536_v16 = vpack.i.bf16 %v14636_v36, %v18118_v28  ;;  %v6666_v49 = vsel %vm4257_vm3, %v6630_v30, %v13334_v14  ;;  %v13359_v14 = vunpack.i.l.bf16 %v18053_v50 }
 0x39a   : > { %v18111_v27 = vpop.f32.mrb[144].mxu0  ;;  %v13343_v52 = vpop.permute.xlu0 %13342  ;;  %13527 = vrot.lane.b32.xlu1 %v18092_v9, %s14692_s29  ;;  %v6631_v10 = vsel %vm3726_vm1, %v20728_v11, %v13325_v53  ;;  %v6595_v55 = vsel %vm6575_vm4, %v6558_v0, %v13350_v40  ;;  %v13370_v0 = vunpack.i.h.bf16 %v18089_v41 }
 0x39b   : > { %v13345_v19 = vunpack.i.h.bf16 %v13343_v52  ;;  %v13344_v44 = vunpack.i.l.bf16 %v13343_v52  ;;  %v18126_v39 = vpop.f32.mrb[145].mxu0  ;;  %v6667_v38 = vsel %vm4257_vm3, %v6631_v10, %v13335_v23  ;;  %v18143_v4 = vpack.c.bf16 %v6595_v55, %v6594_v31  ;;  %v13388_v2 = vpop.permute.xlu1 %13387 }
 0x39c   : > { %v11550_v17 = vpop.f32.mrb[146].mxu0  ;;  %13512 = vrot.lane.b32.xlu0 %v13511_v6, %s14690_s17  ;;  %v20731_v10 = vmax.f32 %v18070_v37, 0.0  ;;  %v20732_v55 = vmax.f32 %v17608_v3, 0.0  ;;  %v20735_v3 = vmax.f32 %v17684_v1, 0.0 }
 0x39d   : > { %v18134_v60 = vadd.f32 %v17727_v62, %v11550_v17  ;;  %v5165_v53 = vpop.f32.mrb[147].mxu0  ;;  %v6702_v29 = vsel %vm6575_vm4, %v6666_v49, %v13344_v44  ;;  %v6703_v51 = vsel %vm6575_vm4, %v6667_v38, %v13345_v19  ;;  %20730 = vst [vmem:[#allocation17_spill] sm:$0xff] %v18143_v4  ;;  %v13360_v17 = vunpack.i.h.bf16 %v18053_v50 }
 0x39e   : > { %v5166_v52 = vadd.f32 %v17727_v62, %v5165_v53  ;;  %v13353_v36 = vpop.permute.xlu0 %13352  ;;  %v18139_v6 = vpack.c.bf16 %v6703_v51, %v6702_v29  ;;  %13537 = vrot.lane.b32.xlu1 %v13536_v16, %s14691_s28  ;;  %v13369_v16 = vunpack.i.l.bf16 %v18089_v41  ;;  %v13380_v49 = vunpack.i.h.bf16 %v13378_v34 }
 0x39f   : > { %v5516_v23 = vmax.f32 %v18134_v60, 0.0  ;;  %v13355_v19 = vunpack.i.h.bf16 %v13353_v36  ;;  %v13354_v44 = vunpack.i.l.bf16 %v13353_v36  ;;  %v13379_v38 = vunpack.i.l.bf16 %v13378_v34  ;;  %v13398_v36 = vpop.permute.xlu1 %13397 }
 0x3a0   : > { %20729 = vst [vmem:[#allocation6_spill] sm:$0xff] %v18139_v6  ;;  %v5514_v40 = vmax.f32 %v5166_v52, 0.0  ;;  %13522 = vrot.lane.b32.xlu0 %v17966_v26, %s14695_s26  ;;  %7165 = vmatprep.mubr.bf16.mxu1 %v18139_v6  ;;  %v6524_v60 = vsel %vm3726_vm1, %v20732_v55, %v13360_v17  ;;  %v20733_v53 = vmax.f32 %v17556_v63, 0.0  ;;  %v20734_v34 = vmax.f32 %v17733_v46, 0.0 }
 0x3a1   : > { %7166 = vmatmul.mubr.bf16.gmra.mrb[36].mxu1 %v18143_v4  ;;  %v6560_v52 = vsel %vm4257_vm3, %v6524_v60, %v13370_v0  ;;  %v6632_v17 = vsel %vm3726_vm1, %v20735_v3, %v13354_v44  ;;  %v1520_v4 = vld [vmem:[%s15256_s27 + $0x660] sm:$0xff] }
 0x3a2   : > { %v18153_v11 = vpack.i.bf16 %v5516_v23, %v5514_v40  ;;  %v18157_v30 = vpack.i.bf16 %v5514_v40, %v20731_v10  ;;  %v13363_v26 = vpop.permute.xlu0 %13362  ;;  %v6523_v41 = vsel %vm3726_vm1, %v20733_v53, %v13359_v14  ;;  %v6633_v40 = vsel %vm3726_vm1, %v20734_v34, %v13355_v19 }
 0x3a3   : > { %v13365_v31 = vunpack.i.h.bf16 %v13363_v26  ;;  %v13364_v50 = vunpack.i.l.bf16 %v13363_v26  ;;  %v6559_v51 = vsel %vm4257_vm3, %v6523_v41, %v13369_v16  ;;  %v6597_v60 = vsel %vm6575_vm4, %v6560_v52, %v13380_v49 }
 0x3a4   : > { %v6596_v0 = vsel %vm6575_vm4, %v6559_v51, %v13379_v38  ;;  %v13390_v38 = vunpack.i.h.bf16 %v13388_v2  ;;  %v13389_v49 = vunpack.i.l.bf16 %v13388_v2  ;;  %v13408_v51 = vpop.permute.xlu1 %13407  ;;  %v13400_v52 = vunpack.i.h.bf16 %v13398_v36 }
 0x3a5   : > { %v6668_v55 = vsel %vm4257_vm3, %v6632_v17, %v13364_v50  ;;  %v6669_v16 = vsel %vm4257_vm3, %v6633_v40, %v13365_v31  ;;  %v18187_v50 = vpack.c.bf16 %v6597_v60, %v6596_v0  ;;  %v13399_v40 = vunpack.i.l.bf16 %v13398_v36 }
 0x3a6   : > { %v18165_v29 = vpop.f32.mrb[148].mxu0  ;;  %v13373_v37 = vpop.permute.xlu0 %13372  ;;  %v20738_v60 = vmax.f32 %v17651_v58, 0.0 }
 0x3a7   : > { %v13375_v10 = vunpack.i.h.bf16 %v13373_v37  ;;  %v13374_v63 = vunpack.i.l.bf16 %v13373_v37  ;;  %v18175_v26 = vpop.f32.mrb[149].mxu0  ;;  %20737 = vst [vmem:[#allocation7_spill] sm:$0xff] %v18187_v50 }
 0x3a8   : > { %v11554_v14 = vpop.f32.mrb[150].mxu0  ;;  %v6526_v2 = vsel %vm3726_vm1, %v20738_v60, %v13390_v38 }
 0x3a9   : > { %v5190_v46 = vadd.f32 %v17727_v62, %v11554_v14  ;;  %v5181_v19 = vpop.f32.mrb[151].mxu0  ;;  %v6704_v1 = vsel %vm6575_vm4, %v6668_v55, %v13374_v63  ;;  %v6705_v44 = vsel %vm6575_vm4, %v6669_v16, %v13375_v10  ;;  %v13410_v14 = vunpack.i.h.bf16 %v13408_v51 }
 0x3aa   : > { %v5182_v53 = vadd.f32 %v17727_v62, %v5181_v19  ;;  %v13383_v41 = vpop.permute.xlu0 %13382  ;;  %v18185_v37 = vpack.c.bf16 %v6705_v44, %v6704_v1  ;;  %v13409_v55 = vunpack.i.l.bf16 %v13408_v51  ;;  %v6562_v44 = vsel %vm4257_vm3, %v6526_v2, %v13400_v52 }
 0x3ab   : > { %v5520_v34 = vmax.f32 %v5190_v46, 0.0  ;;  %v13385_v10 = vunpack.i.h.bf16 %v13383_v41  ;;  %v13384_v63 = vunpack.i.l.bf16 %v13383_v41  ;;  %v20739_v46 = vmax.f32 %v17602_v33, 0.0 }
 0x3ac   : > { %20736 = vst [vmem:[#allocation18_spill] sm:$0xff] %v18185_v37  ;;  %v5518_v31 = vmax.f32 %v5182_v53, 0.0  ;;  %7173 = vmatprep.mubr.bf16.mxu1 %v18185_v37  ;;  %v20740_v53 = vmax.f32 %v17777_v7, 0.0  ;;  %v6599_v52 = vsel %vm6575_vm4, %v6562_v44, %v13410_v14 }
 0x3ad   : > { %7174 = vmatmul.mubr.bf16.gmra.mrb[40].mxu1 %v18187_v50  ;;  %v6525_v19 = vsel %vm3726_vm1, %v20739_v46, %v13389_v49 }
 0x3ae   : > { %v18191_v3 = vpack.i.bf16 %v5520_v34, %v5518_v31  ;;  %v18193_v17 = vpack.i.bf16 %v5518_v31, %v5516_v23  ;;  %v13393_v62 = vpop.permute.xlu0 %13392  ;;  %v6561_v23 = vsel %vm4257_vm3, %v6525_v19, %v13399_v40  ;;  %v6635_v41 = vsel %vm3726_vm1, %v20740_v53, %v13385_v10 }
 0x3af   : > { %v13395_v16 = vunpack.i.h.bf16 %v13393_v62  ;;  %v13394_v0 = vunpack.i.l.bf16 %v13393_v62  ;;  %v20741_v31 = vmax.f32 %v17730_v43, 0.0  ;;  %v6598_v40 = vsel %vm6575_vm4, %v6561_v23, %v13409_v55 }
 0x3b1   : > { %v6634_v58 = vsel %vm3726_vm1, %v20741_v31, %v13384_v63  ;;  %v6671_v60 = vsel %vm4257_vm3, %v6635_v41, %v13395_v16  ;;  %v18222_v63 = vld [vmem:[%s20516_s2] ss:$0 sm:$0xff] }
 0x3b2   : > { %v18201_v36 = vpop.f32.mrb[152].mxu0  ;;  %v13403_v1 = vpop.permute.xlu0 %13402  ;;  %v6670_v62 = vsel %vm4257_vm3, %v6634_v58, %v13394_v0  ;;  %v18227_v0 = vpack.c.bf16 %v6599_v52, %v6598_v40 }
 0x3b3   : > { %v13405_v38 = vunpack.i.h.bf16 %v13403_v1  ;;  %v13404_v51 = vunpack.i.l.bf16 %v13403_v1  ;;  %v18211_v33 = vpop.f32.mrb[153].mxu0 }
 0x3b4   : > { %v11558_v49 = vpop.f32.mrb[154].mxu0  ;;  %20743 = vst [vmem:[#allocation20_spill] sm:$0xff] %v18227_v0 }
 0x3b5   : > { %v5197_v7 = vpop.f32.mrb[155].mxu0  ;;  %v6706_v10 = vsel %vm6575_vm4, %v6670_v62, %v13404_v51  ;;  %v6707_v43 = vsel %vm6575_vm4, %v6671_v60, %v13405_v38  ;;  %v5206_v23 = vadd.f32 %v18222_v63, %v11558_v49  ;;  %v1516_v62 = vld [vmem:[%s15256_s27 + $0x640] sm:$0xff] }
 0x3b6   : > { %v5198_v2 = vadd.f32 %v18222_v63, %v5197_v7  ;;  %v18225_v46 = vpack.c.bf16 %v6707_v43, %v6706_v10  ;;  %v13556_v10 = vpack.i.bf16 %v1516_v62, %v18078_v8  ;;  %v18254_v43 = vadd.f32 %v18222_v63, %v18126_v39  ;;  %v18268_v39 = vld [vmem:[%s15256_s27 + $0x5e0] sm:$0xff] }
 0x3b7   : > { %v5524_v60 = vmax.f32 %v5206_v23, 0.0  ;;  %v18263_v8 = vadd.f32 %v18222_v63, %v18050_v18 }
 0x3b8   : > { %20742 = vst [vmem:[#allocation19_spill] sm:$0xff] %v18225_v46  ;;  %v5522_v16 = vmax.f32 %v5198_v2, 0.0  ;;  %7181 = vmatprep.mubr.bf16.mxu1 %v18225_v46  ;;  %20744 = vst [vmem:[#allocation21_spill] sm:$0xff] %v18254_v43 }
 0x3b9   : > { %7182 = vmatmul.mubr.bf16.gmra.mrb[44].mxu1 %v18227_v0  ;;  %v13999_v0 = vld [vmem:[%s20517_s3 + $0x98] sm:$0xff]  }
 0x3ba   : > { %v18231_v14 = vpack.i.bf16 %v5522_v16, %v5520_v34 }
 0x3be   : > { %v11561_v55 = vpop.f32.mrb[156].mxu0 }
 0x3bf   : > { %v18234_v19 = vadd.f32 %v18222_v63, %v11561_v55  ;;  %v5210_v1 = vpop.f32.mrb[157].mxu0  ;;  %v1517_v55 = vld [vmem:[%s15256_s27 + $0x648] sm:$0xff] }
 0x3c0   : > { %v18238_v44 = vadd.f32 %v18222_v63, %v5210_v1  ;;  %v11562_v53 = vpop.f32.mrb[158].mxu0  ;;  %v13996_v1 = vld [vmem:[%s20517_s3 + $0x80] sm:$0xff]  }
 0x3c1   : > { %v20598_v41 = vmax.f32 %v18234_v19, 0.0  ;;  %v5222_v31 = vadd.f32 %v18222_v63, %v11562_v53  ;;  %v5213_v58 = vpop.f32.mrb[159].mxu0  ;;  %v18271_v53 = vld [vmem:[%s15256_s27 + $0x5d8] sm:$0xff]  ;;  %7239 = vmatpush1.bf16.msra.mxu1 %v13996_v1  ;;  %v13997_v1 = vld [vmem:[%s20517_s3 + $0x88] sm:$0xff]  }
 0x3c2   : > { %v20599_v38 = vmax.f32 %v18238_v44, 0.0  ;;  %v5214_v34 = vadd.f32 %v18222_v63, %v5213_v58 }
 0x3c3   : > { %v5528_v51 = vmax.f32 %v5222_v31, 0.0  ;;  %v13551_v31 = vpack.i.bf16 %v18268_v39, %v18271_v53 }
 0x3c4   : > { %v13546_v49 = vpack.i.bf16 %v20598_v41, %v20599_v38  ;;  %v5526_v40 = vmax.f32 %v5214_v34, 0.0  ;;  %v20601_v41 = vmax.f32 %v18263_v8, 0.0 }
 0x3c6   : > { %v13566_v52 = vpack.i.bf16 %v5528_v51, %v5526_v40  ;;  %v13531_v7 = vpack.i.bf16 %v5526_v40, %v5524_v60  ;;  %13547 = vrot.lane.b32.xlu1 %v13546_v49, %s14694_s25  ;;  %v20600_v60 = vmax.f32 %v18254_v43, 0.0  ;;  %v18279_v49 = vpack.i.bf16 %v1517_v55, %v1516_v62  ;;  %v1519_v40 = vld [vmem:[%s15256_s27 + $0x658] sm:$0xff] }
 0x3c8   : > { %13532 = vrot.lane.b32.xlu0 %v13531_v7, %s14690_s17  ;;  %v20745_v7 = vmov 0   ;;  %v13561_v62 = vpack.i.bf16 %v20600_v60, %v20601_v41  ;;  %v13998_v60 = vld [vmem:[%s20517_s3 + $0x90] sm:$0xff]  }
 0x3c9   : > { %7240 = vmatprep.subr.bf16.mxu1 %v20745_v7 }
 0x3ca   : > { %v11565_v2 = vpop.f32.mrb[160].mxu0  ;;  %13557 = vrot.lane.b32.xlu1 %v13556_v10, %s14690_s17  ;;  %7241 = vmatpush1.bf16.msra.mxu1 %v13997_v1  ;;  %v18315_v1 = vld [vmem:[%s15256_s27 + $0x5e8] sm:$0xff] }
 0x3cb   : > { %v5226_v16 = vpop.f32.mrb[161].mxu0  ;;  %7242 = vmatprep.subr.bf16.mxu1 %v20745_v7 }
 0x3cc   : > { %v11566_v23 = vpop.f32.mrb[162].mxu0  ;;  %13542 = vrot.lane.b32.xlu0 %v18100_v20, %s14690_s17  ;;  %v1518_v20 = vld [vmem:[%s15256_s27 + $0x650] sm:$0xff] }
 0x3cd   : > { %v5238_v58 = vadd.f32 %v18222_v63, %v11566_v23  ;;  %v5229_v34 = vpop.f32.mrb[163].mxu0  ;;  %v18289_v23 = vpack.i.bf16 %v1519_v40, %v1518_v20 }
 0x3ce   : > { %v5230_v18 = vadd.f32 %v18222_v63, %v5229_v34  ;;  %13567 = vrot.lane.b32.xlu1 %v13566_v52, %s14695_s26  ;;  %v18302_v34 = vadd.f32 %v18222_v63, %v5226_v16  ;;  %7243 = vmatpush1.bf16.msra.mxu1 %v13998_v60 }
 0x3cf   : > { %v5532_v10 = vmax.f32 %v5238_v58, 0.0  ;;  %7244 = vmatprep.subr.bf16.mxu1 %v20745_v7 }
 0x3d0   : > { %v5530_v38 = vmax.f32 %v5230_v18, 0.0  ;;  %13552 = vrot.lane.b32.xlu0 %v13551_v31, %s14691_s28  ;;  %v18299_v31 = vadd.f32 %v18222_v63, %v11565_v2  ;;  %v13571_v18 = vpack.i.bf16 %v1518_v20, %v1517_v55  ;;  %v18318_v2 = vld [vmem:[%s15256_s27 + $0x5f0] sm:$0xff] }
 0x3d1   : > { %20747 = vst [vmem:[#allocation23_spill] sm:$0xff] %v18318_v2  ;;  %v13596_v16 = vpack.i.bf16 %v18318_v2, %v18315_v1 }
 0x3d2   : > { %v13626_v52 = vpack.i.bf16 %v5532_v10, %v5530_v38  ;;  %v13591_v58 = vpack.i.bf16 %v5530_v38, %v5528_v51  ;;  %13577 = vrot.lane.b32.xlu1 %v18279_v49, %s14692_s29  ;;  %20746 = vst [vmem:[#allocation22_spill] sm:$0xff] %v18299_v31  ;;  %v18308_v38 = vpop.permute.xlu1 %13417  ;;  %7245 = vmatpush1.bf16.msra.mxu1 %v13999_v0 }
 0x3d3   : > { %7246 = vmatprep.subr.bf16.mxu1 %v20745_v7  ;;  %v13616_v0 = vpack.i.bf16 %v1520_v4, %v1519_v40  ;;  %v5035_v40 = vadd.f32 %v18222_v63, %v17811_v32 }
 0x3d4   : > { %13562 = vrot.lane.b32.xlu0 %v13561_v62, %s14694_s25  ;;  %v20609_v62 = vmax.f32 %v18302_v34, 0.0 }
 0x3d5   : > { %v5481_v5 = vmax.f32 %v5035_v40, 0.0 }
 0x3d6   : > { %v18310_v51 = vpop.f32.mrb[164].mxu0  ;;  %13587 = vrot.lane.b32.xlu1 %v18289_v23, %s14692_s29  ;;  %v18332_v37 = vpop.permute.xlu1 %13427 }
 0x3d7   : > { %v18322_v55 = vpop.f32.mrb[165].mxu0  ;;  %v13429_v24 = vunpack.i.l.bf16 %v18332_v37 }
 0x3d8   : > { %v11570_v41 = vpop.f32.mrb[166].mxu0  ;;  %13572 = vrot.lane.b32.xlu0 %v13571_v18, %s14690_s17  ;;  %v20748_v18 = vmax.f32 %v18299_v31, 0.0 }
 0x3d9   : > { %v5254_v46 = vadd.f32 %v18222_v63, %v11570_v41  ;;  %v5245_v50 = vpop.f32.mrb[167].mxu0 }
 0x3da   : > { %v5246_v60 = vadd.f32 %v18222_v63, %v5245_v50  ;;  %13597 = vrot.lane.b32.xlu1 %v13596_v16, %s14691_s28  ;;  %v13606_v6 = vpack.i.bf16 %v20748_v18, %v20609_v62  ;;  %v14000_v50 = vld [vmem:[%s20517_s3 + $0xa0] sm:$0xff]   ;;  %v18353_v16 = vpop.permute.xlu1 %13437  ;;  %v13419_v62 = vunpack.i.l.bf16 %v18308_v38 }
 0x3db   : > { %v5536_v20 = vmax.f32 %v5254_v46, 0.0  ;;  %7247 = vmatpush1.bf16.msra.mxu1 %v14000_v50  ;;  %v1522_v50 = vld [vmem:[%s15256_s27 + $0x670] sm:$0xff] }
 0x3dc   : > { %v5534_v21 = vmax.f32 %v5246_v60, 0.0  ;;  %13582 = vrot.lane.b32.xlu0 %v18157_v30, %s14695_s26  ;;  %7248 = vmatprep.subr.bf16.mxu1 %v20745_v7  ;;  %v14001_v30 = vld [vmem:[%s20517_s3 + $0xa8] sm:$0xff]   ;;  %v14002_v60 = vld [vmem:[%s20517_s3 + $0xb0] sm:$0xff]  }
 0x3de   : > { %v18347_v41 = vpack.i.bf16 %v5536_v20, %v5534_v21  ;;  %v18349_v46 = vpack.i.bf16 %v5534_v21, %v5532_v10  ;;  %13607 = vrot.lane.b32.xlu1 %v13606_v6, %s14694_s25  ;;  %v18361_v21 = vadd.f32 %v18222_v63, %v18175_v26  ;;  %v18365_v6 = vld [vmem:[%s15256_s27 + $0x668] sm:$0xff]  ;;  %v18372_v10 = vadd.f32 %v18222_v63, %v18111_v27  ;;  %v18377_v26 = vld [vmem:[%s15256_s27 + $0x600] sm:$0xff]  ;;  %v18388_v18 = vpop.permute.xlu1 %13447 }
 0x3df   : > { %7249 = vmatpush1.bf16.msra.mxu1 %v14001_v30  ;;  %20751 = vst [vmem:[#allocation26_spill] sm:$0xff] %v18377_v26  ;;  %v13420_v30 = vunpack.i.h.bf16 %v18308_v38 }
 0x3e0   : > { %13592 = vrot.lane.b32.xlu0 %v13591_v58, %s14690_s17  ;;  %20749 = vst [vmem:[#allocation24_spill] sm:$0xff] %v18361_v21  ;;  %7250 = vmatprep.subr.bf16.mxu1 %v20745_v7  ;;  %20750 = vst [vmem:[#allocation25_spill] sm:$0xff] %v18372_v10  ;;  %v18380_v58 = vld [vmem:[%s15256_s27 + $0x5f8] sm:$0xff]  ;;  %v20618_v32 = vmax.f32 %v18372_v10, 0.0  ;;  %v20753_v40 = vmax.f32 %v18361_v21, 0.0  ;;  %v6527_v10 = vsel %vm3726_vm1, %v5481_v5, %v13419_v62 }
 0x3e1   : > { %20752 = vst [vmem:[#allocation27_spill] sm:$0xff] %v18380_v58  ;;  %v13611_v20 = vpack.i.bf16 %v18377_v26, %v18380_v58  ;;  %v13439_v26 = vunpack.i.l.bf16 %v18353_v16  ;;  %v14004_v5 = vld [vmem:[%s20517_s3 + $0xc0] sm:$0xff]  }
 0x3e2   : > { %13617 = vrot.lane.b32.xlu1 %v13616_v0, %s14690_s17  ;;  %v18396_v0 = vld [vmem:[%s15256_s27 + $0x678] sm:$0xff]  ;;  %v13621_v56 = vpack.i.bf16 %v20753_v40, %v20618_v32  ;;  %v5251_v32 = vadd.f32 %v18222_v63, %v18310_v51  ;;  %v18444_v51 = vld [vmem:[%s15256_s27 + $0x608] sm:$0xff] }
 0x3e3   : > { %7251 = vmatpush1.bf16.msra.mxu1 %v14002_v60  ;;  %v13430_v60 = vunpack.i.h.bf16 %v18332_v37  ;;  %v18411_v38 = vpack.i.bf16 %v18396_v0, %v1522_v50  ;;  %v20754_v37 = vmax.f32 %v17831_v45, 0.0 }
 0x3e4   : > { %13602 = vrot.lane.b32.xlu0 %v18153_v11, %s14690_s17  ;;  %v18392_v11 = vpack.i.bf16 %v18365_v6, %v1520_v4  ;;  %7252 = vmatprep.subr.bf16.mxu1 %v20745_v7  ;;  %v14003_v4 = vld [vmem:[%s20517_s3 + $0xb8] sm:$0xff]   ;;  %v5535_v2 = vmax.f32 %v5251_v32, 0.0 }
 0x3e5   : > { %v6528_v43 = vsel %vm3726_vm1, %v20754_v37, %v13420_v30 }
 0x3e6   : > { %v13413_v27 = vpop.permute.xlu0 %13412  ;;  %13627 = vrot.lane.b32.xlu1 %v13626_v52, %s14695_s26  ;;  %v5091_v52 = vadd.f32 %v18222_v63, %v17947_v25  ;;  %v13631_v25 = vpack.i.bf16 %v1522_v50, %v18365_v6  ;;  %v18433_v6 = vadd.f32 %v18222_v63, %v18322_v55  ;;  %v6564_v30 = vsel %vm4257_vm3, %v6528_v43, %v13430_v60  ;;  %v14645_v55 = vld [vmem:[%s15256_s27 + $0x610] sm:$0xff] }
 0x3e7   : > { %7253 = vmatpush1.bf16.msra.mxu1 %v14003_v4  ;;  %v13415_v21 = vunpack.i.h.bf16 %v13413_v27  ;;  %v13414_v40 = vunpack.i.l.bf16 %v13413_v27  ;;  %v6563_v27 = vsel %vm4257_vm3, %v6527_v10, %v13429_v24 }
 0x3e8   : > { %13612 = vrot.lane.b32.xlu0 %v13611_v20, %s14691_s28  ;;  %v13440_v20 = vunpack.i.h.bf16 %v18353_v16  ;;  %7254 = vmatprep.subr.bf16.mxu1 %v20745_v7  ;;  %v18427_v16 = vpop.permute.xlu1 %13457  ;;  %v5495_v62 = vmax.f32 %v5091_v52, 0.0  ;;  %v20755_v52 = vmax.f32 %v17998_v42, 0.0  ;;  %v5533_v58 = vmax.f32 %v18433_v6, 0.0  ;;  %v14005_v42 = vld [vmem:[%s20517_s3 + $0xc8] sm:$0xff]  }
 0x3ea   : > { %v13423_v31 = vpop.permute.xlu0 %13422  ;;  %13637 = vrot.lane.b32.xlu1 %v18392_v11, %s14692_s29  ;;  %v6601_v37 = vsel %vm6575_vm4, %v6564_v30, %v13440_v20  ;;  %v6637_v24 = vsel %vm3726_vm1, %v20755_v52, %v13415_v21  ;;  %v6636_v43 = vsel %vm3726_vm1, %v5495_v62, %v13414_v40  ;;  %v13450_v30 = vunpack.i.h.bf16 %v18388_v18 }
 0x3eb   : > { %v13425_v45 = vunpack.i.h.bf16 %v13423_v31  ;;  %v13424_v50 = vunpack.i.l.bf16 %v13423_v31  ;;  %v13656_v31 = vpack.i.bf16 %v14645_v55, %v18444_v51  ;;  %7255 = vmatpush1.bf16.msra.mxu1 %v14004_v5  ;;  %v13460_v55 = vunpack.i.h.bf16 %v18427_v16 }
 0x3ec   : > { %13622 = vrot.lane.b32.xlu0 %v13621_v56, %s14694_s25  ;;  %v6600_v56 = vsel %vm6575_vm4, %v6563_v27, %v13439_v26  ;;  %7256 = vmatprep.subr.bf16.mxu1 %v20745_v7  ;;  %v13468_v5 = vpop.permute.xlu1 %13467  ;;  %v14006_v27 = vld [vmem:[%s20517_s3 + $0xd0] sm:$0xff]  }
 0x3ed   : > { %v6672_v26 = vsel %vm4257_vm3, %v6636_v43, %v13424_v50  ;;  %v6673_v20 = vsel %vm4257_vm3, %v6637_v24, %v13425_v45  ;;  %v18470_v50 = vld [vmem:[%s15256_s27 + $0x680] sm:$0xff]  ;;  %v13666_v45 = vpack.i.bf16 %v5535_v2, %v5533_v58  ;;  %v13469_v24 = vunpack.i.l.bf16 %v13468_v5 }
 0x3ee   : > { %v13433_v4 = vpop.permute.xlu0 %13432  ;;  %13647 = vrot.lane.b32.xlu1 %v18411_v38, %s14692_s29 }
 0x3ef   : > { %v13435_v10 = vunpack.i.h.bf16 %v13433_v4  ;;  %v13434_v60 = vunpack.i.l.bf16 %v13433_v4  ;;  %7257 = vmatpush1.bf16.msra.mxu1 %v14005_v42  ;;  %v13449_v4 = vunpack.i.l.bf16 %v18388_v18  ;;  %v13470_v18 = vunpack.i.h.bf16 %v13468_v5 }
 0x3f0   : > { %13632 = vrot.lane.b32.xlu0 %v13631_v25, %s14690_s17  ;;  %v18467_v25 = vpack.c.bf16 %v6601_v37, %v6600_v56  ;;  %7258 = vmatprep.subr.bf16.mxu1 %v20745_v7  ;;  %v13676_v56 = vpack.i.bf16 %v18470_v50, %v18396_v0  ;;  %v18499_v0 = vadd.f32 %v18222_v63, %v18165_v29  ;;  %v20758_v29 = vmax.f32 %v18016_v54, 0.0 }
 0x3f1   : > { %v6708_v21 = vsel %vm6575_vm4, %v6672_v26, %v13434_v60  ;;  %v6709_v40 = vsel %vm6575_vm4, %v6673_v20, %v13435_v10  ;;  %v20756_v60 = vmax.f32 %v17884_v13, 0.0  ;;  %v20757_v20 = vmax.f32 %v17857_v35, 0.0 }
 0x3f2   : > { %v13443_v62 = vpop.permute.xlu0 %13442  ;;  %13657 = vrot.lane.b32.xlu1 %v13656_v31, %s14691_s28  ;;  %v18465_v32 = vpack.c.bf16 %v6709_v40, %v6708_v21  ;;  %v13459_v31 = vunpack.i.l.bf16 %v18427_v16  ;;  %v14007_v16 = vld [vmem:[%s20517_s3 + $0xd8] sm:$0xff]   ;;  %v5195_v21 = vadd.f32 %v18222_v63, %v18211_v33 }
 0x3f3   : > { %7259 = vmatpush1.bf16.msra.mxu1 %v14006_v27  ;;  %v13445_v37 = vunpack.i.h.bf16 %v13443_v62  ;;  %v13444_v52 = vunpack.i.l.bf16 %v13443_v62  ;;  %v6530_v26 = vsel %vm3726_vm1, %v20756_v60, %v13450_v30  ;;  %v6529_v42 = vsel %vm3726_vm1, %v20757_v20, %v13449_v4  ;;  %v1525_v30 = vld [vmem:[%s15256_s27 + $0x688] sm:$0xff]  ;;  %v18542_v60 = vld [vmem:[%s15256_s27 + $0x6a0] sm:$0xff]  ;;  %v1526_v20 = vld [vmem:[%s15256_s27 + $0x690] sm:$0xff] }
 0x3f4   : > { %13642 = vrot.lane.b32.xlu0 %v18193_v17, %s14695_s26  ;;  %7189 = vmatprep.mubr.bf16.mxu1 %v18465_v32  ;;  %v18487_v17 = vpop.permute.xlu1 %13477  ;;  %v6565_v40 = vsel %vm4257_vm3, %v6529_v42, %v13459_v31  ;;  %v6566_v5 = vsel %vm4257_vm3, %v6530_v26, %v13460_v55  ;;  %v20759_v62 = vmax.f32 %v17995_v59, 0.0  ;;  %v14008_v31 = vld [vmem:[%s20517_s3 + $0xe0] sm:$0xff]   ;;  %v5519_v26 = vmax.f32 %v18499_v0, 0.0  ;;  %v14009_v42 = vld [vmem:[%s20517_s3 + $0xe8] sm:$0xff]  }
 0x3f5   : > { %7190 = vmatmul.mubr.bf16.gmra.mrb[48].mxu1 %v18467_v25  ;;  %7260 = vmatprep.subr.bf16.mxu1 %v20745_v7  ;;  %v6639_v13 = vsel %vm3726_vm1, %v20758_v29, %v13445_v37  ;;  %v6602_v55 = vsel %vm6575_vm4, %v6565_v40, %v13469_v24  ;;  %v6603_v59 = vsel %vm6575_vm4, %v6566_v5, %v13470_v18  ;;  %v20760_v29 = vmax.f32 %v18033_v12, 0.0  ;;  %v14010_v12 = vld [vmem:[%s20517_s3 + $0xf0] sm:$0xff]  }
 0x3f6   : > { %v13453_v2 = vpop.permute.xlu0 %13452  ;;  %13667 = vrot.lane.b32.xlu1 %v13666_v45, %s14694_s25  ;;  %v6638_v35 = vsel %vm3726_vm1, %v20759_v62, %v13444_v52  ;;  %v18536_v24 = vpack.i.bf16 %v1525_v30, %v18470_v50 }
 0x3f7   : > { %v13455_v43 = vunpack.i.h.bf16 %v13453_v2  ;;  %v13454_v10 = vunpack.i.l.bf16 %v13453_v2  ;;  %7261 = vmatpush1.bf16.msra.mxu1 %v14007_v16  ;;  %v1527_v16 = vld [vmem:[%s15256_s27 + $0x698] sm:$0xff] }
 0x3f8   : > { %13652 = vrot.lane.b32.xlu0 %v18349_v46, %s14690_s17  ;;  %7262 = vmatprep.subr.bf16.mxu1 %v20745_v7 }
 0x3f9   : > { %v6674_v4 = vsel %vm4257_vm3, %v6638_v35, %v13454_v10  ;;  %v6675_v54 = vsel %vm4257_vm3, %v6639_v13, %v13455_v43  ;;  %v18538_v10 = vpack.c.bf16 %v6603_v59, %v6602_v55  ;;  %v13691_v35 = vpack.i.bf16 %v1527_v16, %v1526_v20  ;;  %v14646_v55 = vld [vmem:[%s15256_s27 + $0x5a8] sm:$0xff]  ;;  %v14647_v59 = vld [vmem:[%s15256_s27 + $0x5a0] sm:$0xff] }
 0x3fa   : > { %v13463_v46 = vpop.permute.xlu0 %13462  ;;  %13677 = vrot.lane.b32.xlu1 %v13676_v56, %s14690_s17 }
 0x3fb   : > { %v13465_v45 = vunpack.i.h.bf16 %v13463_v46  ;;  %v13464_v27 = vunpack.i.l.bf16 %v13463_v46  ;;  %7263 = vmatpush1.bf16.msra.mxu1 %v14008_v31  ;;  %v13479_v46 = vunpack.i.l.bf16 %v18487_v17 }
 0x3fc   : > { %13662 = vrot.lane.b32.xlu0 %v18191_v3, %s14690_s17  ;;  %v13488_v33 = vpop.permute.xlu1 %13487  ;;  %v5521_v3 = vmax.f32 %v5195_v21, 0.0  ;;  %7264 = vmatprep.subr.bf16.mxu1 %v20745_v7  ;;  %v13480_v21 = vunpack.i.h.bf16 %v18487_v17  ;;  %v20761_v17 = vmax.f32 %v18013_v47, 0.0 }
 0x3fd   : > { %v6710_v2 = vsel %vm6575_vm4, %v6674_v4, %v13464_v27  ;;  %v6711_v56 = vsel %vm6575_vm4, %v6675_v54, %v13465_v45  ;;  %v13490_v45 = vunpack.i.h.bf16 %v13488_v33  ;;  %v13489_v27 = vunpack.i.l.bf16 %v13488_v33 }
 0x3fe   : > { %v13473_v37 = vpop.permute.xlu0 %13472  ;;  %13687 = vrot.lane.b32.xlu1 %v18347_v41, %s14695_s26  ;;  %v18533_v52 = vpack.c.bf16 %v6711_v56, %v6710_v2  ;;  %v13681_v40 = vpack.i.bf16 %v5521_v3, %v5519_v26  ;;  %v3699_v47 = vsel %vm3529_vm0, %v14646_v55, %v13480_v21  ;;  %v3698_v31 = vsel %vm3529_vm0, %v14647_v59, %v13479_v46  ;;  %v1529_v55 = vld [vmem:[%s15256_s27 + $0x6a8] sm:$0xff] }
 0x3ff   : > { %v13475_v18 = vunpack.i.h.bf16 %v13473_v37  ;;  %v13474_v43 = vunpack.i.l.bf16 %v13473_v37  ;;  %7265 = vmatpush1.bf16.msra.mxu1 %v14009_v42 }
 0x400   : > { %13672 = vrot.lane.b32.xlu0 %v18074_v48, %s14691_s28  ;;  %v13498_v41 = vpop.permute.xlu1 %13497  ;;  %7197 = vmatprep.mubr.bf16.mxu1 %v18533_v52  ;;  %v13706_v48 = vpack.i.bf16 %v18542_v60, %v1527_v16  ;;  %v18584_v16 = vld [vmem:[%s15256_s27 + $0x6b0] sm:$0xff] }
 0x401   : > { %7198 = vmatmul.mubr.bf16.gmra.mrb[52].mxu1 %v18538_v10  ;;  %v6641_v13 = vsel %vm3726_vm1, %v20760_v29, %v13475_v18  ;;  %v6640_v62 = vsel %vm3726_vm1, %v20761_v17, %v13474_v43  ;;  %7266 = vmatprep.subr.bf16.mxu1 %v20745_v7  ;;  %v13500_v30 = vunpack.i.h.bf16 %v13498_v41  ;;  %v13499_v4 = vunpack.i.l.bf16 %v13498_v41  ;;  %v1531_v41 = vld [vmem:[%s15256_s27 + $0x6b8] sm:$0xff] }
 0x402   : > { %v18558_v5 = vpop.permute.xlu0 %13482  ;;  %13697 = vrot.lane.b32.xlu1 %v18536_v24, %s14692_s29  ;;  %v6676_v3 = vsel %vm4257_vm3, %v6640_v62, %v13489_v27  ;;  %v6677_v37 = vsel %vm4257_vm3, %v6641_v13, %v13490_v45  ;;  %v13726_v62 = vpack.i.bf16 %v1531_v41, %v18584_v16 }
 0x403   : > { %7267 = vmatpush1.bf16.msra.mxu1 %v14010_v12  ;;  %v3895_v20 = vsel %vm3726_vm1, %v3698_v31, %v13499_v4  ;;  %v3896_v42 = vsel %vm3726_vm1, %v3699_v47, %v13500_v30  ;;  %v14648_v47 = vld [vmem:[%s15256_s27 + $0x5b0] sm:$0xff] }
 0x404   : > { %13682 = vrot.lane.b32.xlu0 %v13681_v40, %s14694_s25  ;;  %v13508_v54 = vpop.permute.xlu1 %13507  ;;  %7268 = vmatprep.subr.bf16.mxu1 %v20745_v7  ;;  %v14011_v40 = vld [vmem:[%s20517_s3 + $0xf8] sm:$0xff]  }
 0x405   : > { %v13510_v2 = vunpack.i.h.bf16 %v13508_v54  ;;  %v13509_v56 = vunpack.i.l.bf16 %v13508_v54  ;;  %v13485_v54 = vunpack.i.h.bf16 %v18558_v5 }
 0x406   : > { %v13493_v33 = vpop.permute.xlu0 %13492  ;;  %13707 = vrot.lane.b32.xlu1 %v13706_v48, %s14692_s29 }
 0x407   : > { %v6712_v18 = vsel %vm6575_vm4, %v6676_v3, %v13509_v56  ;;  %v6713_v43 = vsel %vm6575_vm4, %v6677_v37, %v13510_v2  ;;  %v13495_v13 = vunpack.i.h.bf16 %v13493_v33  ;;  %v13494_v17 = vunpack.i.l.bf16 %v13493_v33  ;;  %7269 = vmatpush1.bf16.msra.mxu1 %v14011_v40 }
 0x408   : > { %13692 = vrot.lane.b32.xlu0 %v13691_v35, %s14690_s17  ;;  %v18591_v21 = vpack.c.bf16 %v6713_v43, %v6712_v18  ;;  %v13518_v46 = vpop.permute.xlu1 %13517  ;;  %v1532_v35 = vld [vmem:[%s15256_s27 + $0x6c0] sm:$0xff] }
 0x409   : > { %v13520_v48 = vunpack.i.h.bf16 %v13518_v46  ;;  %v13519_v29 = vunpack.i.l.bf16 %v13518_v46  ;;  %v13736_v12 = vpack.i.bf16 %v1532_v35, %v1531_v41  ;;  %v3700_v59 = vsel %vm3529_vm0, %v14648_v47, %v13494_v17  ;;  %v1534_v17 = vld [vmem:[%s15256_s27 + $0x6d0] sm:$0xff] }
 0x40a   : > { %v13503_v7 = vpop.permute.xlu0 %13502  ;;  %7205 = vmatprep.mubr.bf16.mxu1 %v18591_v21  ;;  %13717 = vrot.lane.b32.xlu1 %v18279_v49, %s14691_s28  ;;  %v3701_v49 = vsel %vm3529_vm0, %v18066_v57, %v13495_v13  ;;  %v13721_v57 = vpack.i.bf16 %v1529_v55, %v18542_v60 }
 0x40b   : > { %v4092_v45 = vsel %vm3923_vm2, %v3895_v20, %v13519_v29  ;;  %v4093_v27 = vsel %vm3923_vm2, %v3896_v42, %v13520_v48  ;;  %v13505_v37 = vunpack.i.h.bf16 %v13503_v7  ;;  %v13504_v18 = vunpack.i.l.bf16 %v13503_v7 }
 0x40c   : > { %v4204_v30 = vpack.c.bf16 %v4093_v27, %v4092_v45  ;;  %13702 = vrot.lane.b32.xlu0 %v18231_v14, %s14695_s26  ;;  %v13528_v4 = vpop.permute.xlu1 %13527  ;;  %v13484_v14 = vunpack.i.l.bf16 %v18558_v5  ;;  %v20762_v20 = vmax.f32 %v18060_v15, 0.0  ;;  %v20763_v48 = vmax.f32 %v17908_v22, 0.0  ;;  %v1535_v15 = vld [vmem:[%s15256_s27 + $0x6d8] sm:$0xff] }
 0x40d   : > { %v13530_v2 = vunpack.i.h.bf16 %v13528_v4  ;;  %v13529_v56 = vunpack.i.l.bf16 %v13528_v4  ;;  %v13731_v7 = vpack.i.bf16 %v18584_v16, %v1529_v55  ;;  %v13756_v4 = vpack.i.bf16 %v1535_v15, %v1534_v17  ;;  %v1536_v16 = vld [vmem:[%s15256_s27 + $0x6e0] sm:$0xff] }
 0x40e   : > { %v13513_v31 = vpop.permute.xlu0 %13512  ;;  %13727 = vrot.lane.b32.xlu1 %v13726_v62, %s14690_s17  ;;  %11571 = vmatprep.mubr.msk.bf16.mxu0 %vm4257_vm3, %v4204_v30  ;;  %v6532_v42 = vsel %vm3726_vm1, %v20762_v20, %v13485_v54  ;;  %v1533_v54 = vld [vmem:[%s15256_s27 + $0x6c8] sm:$0xff] }
 0x40f   : > { %v13515_v33 = vunpack.i.h.bf16 %v13513_v31  ;;  %v13514_v3 = vunpack.i.l.bf16 %v13513_v31  ;;  %v6568_v45 = vsel %vm4257_vm3, %v6532_v42, %v13505_v37  ;;  %v13751_v55 = vpack.i.bf16 %v1533_v54, %v1532_v35  ;;  %v1540_v31 = vld [vmem:[%s15256_s27 + $0x700] sm:$0xff] }
 0x410   : > { %13712 = vrot.lane.b32.xlu0 %v18092_v9, %s14691_s28  ;;  %v6531_v9 = vsel %vm3726_vm1, %v20763_v48, %v13484_v14  ;;  %v13761_v47 = vpack.i.bf16 %v1534_v17, %v1533_v54  ;;  %v20764_v42 = vmax.f32 %v18238_v44, 0.0  ;;  %v14649_v44 = vld [vmem:[%s15256_s27 + $0x5c0] sm:$0xff] }
 0x411   : > { %v3897_v43 = vsel %vm3726_vm1, %v3700_v59, %v13514_v3  ;;  %v3898_v41 = vsel %vm3726_vm1, %v3701_v49, %v13515_v33  ;;  %v6567_v62 = vsel %vm4257_vm3, %v6531_v9, %v13504_v18  ;;  %v1539_v49 = vld [vmem:[%s15256_s27 + $0x6f8] sm:$0xff]  ;;  %v5203_v33 = vadd.f32 %v18222_v63, %v18201_v36 }
 0x412   : > { %v4095_v5 = vsel %vm3923_vm2, %v3898_v41, %v13530_v2  ;;  %v4094_v46 = vsel %vm3923_vm2, %v3897_v43, %v13529_v56  ;;  %v13523_v40 = vpop.permute.xlu0 %13522  ;;  %13737 = vrot.lane.b32.xlu1 %v13736_v12, %s14692_s29  ;;  %v13766_v12 = vpack.i.bf16 %v1536_v16, %v1535_v15  ;;  %v1537_v2 = vld [vmem:[%s15256_s27 + $0x6e8] sm:$0xff]  ;;  %v13796_v56 = vpack.i.bf16 %v1540_v31, %v1539_v49 }
 0x413   : > { %v4205_v60 = vpack.c.bf16 %v4095_v5, %v4094_v46  ;;  %v13525_v29 = vunpack.i.h.bf16 %v13523_v40  ;;  %v13524_v13 = vunpack.i.l.bf16 %v13523_v40  ;;  %v5523_v43 = vmax.f32 %v5203_v33, 0.0 }
 0x414   : > { %13722 = vrot.lane.b32.xlu0 %v13721_v57, %s14690_s17 }
 0x415   : > { %11572 = vmatmul.mubr.msk.bf16.gmra.mrb[168].mxu0 %vm4257_vm3, %v4205_v60  ;;  %v6604_v22 = vsel %vm6575_vm4, %v6567_v62, %v13524_v13  ;;  %v6605_v27 = vsel %vm6575_vm4, %v6568_v45, %v13525_v29 }
 0x416   : > { %13747 = vrot.lane.b32.xlu1 %v18392_v11, %s14691_s28  ;;  %v18639_v30 = vpack.c.bf16 %v6605_v27, %v6604_v22  ;;  %v1538_v11 = vld [vmem:[%s15256_s27 + $0x6f0] sm:$0xff] }
 0x417   : > { %v13786_v59 = vpack.i.bf16 %v1539_v49, %v1538_v11  ;;  %v13791_v35 = vpack.i.bf16 %v1538_v11, %v1537_v2 }
 0x418   : > { %13732 = vrot.lane.b32.xlu0 %v13731_v7, %s14692_s29  ;;  %7206 = vmatmul.mubr.bf16.gmra.mrb[56].mxu1 %v18639_v30 }
 0x41a   : > { %13757 = vrot.lane.b32.xlu1 %v13756_v4, %s14690_s17 }
 0x41c   : > { %13742 = vrot.lane.b32.xlu0 %v18289_v23, %s14691_s28  ;;  %v13781_v23 = vpack.i.bf16 %v1537_v2, %v1536_v16 }
 0x41e   : > { %13767 = vrot.lane.b32.xlu1 %v13766_v12, %s14692_s29 }
 0x420   : > { %13752 = vrot.lane.b32.xlu0 %v13751_v55, %s14690_s17 }
 0x422   : > { %13777 = vrot.lane.b32.xlu1 %v18536_v24, %s14691_s28  ;;  %v13538_v24 = vpop.permute.xlu1 %13537 }
 0x423   : > { %v13539_v20 = vunpack.i.l.bf16 %v13538_v24 }
 0x424   : > { %13762 = vrot.lane.b32.xlu0 %v13761_v47, %s14692_s29 }
 0x425   : > { %v3702_v45 = vsel %vm3529_vm0, %v14649_v44, %v13539_v20 }
 0x426   : > { %13787 = vrot.lane.b32.xlu1 %v13786_v59, %s14690_s17 }
 0x428   : > { %13772 = vrot.lane.b32.xlu0 %v18411_v38, %s14691_s28  ;;  %v13540_v38 = vunpack.i.h.bf16 %v13538_v24 }
 0x42a   : > { %13797 = vrot.lane.b32.xlu1 %v13796_v56, %s14692_s29  ;;  %v3703_v62 = vsel %vm3529_vm0, %v18118_v28, %v13540_v38 }
 0x42c   : > { %13782 = vrot.lane.b32.xlu0 %v13781_v23, %s14690_s17  ;;  %v5147_v23 = vadd.f32 %v18222_v63, %v18055_v61 }
 0x430   : > { %13792 = vrot.lane.b32.xlu0 %v13791_v35, %s14692_s29 }
 0x438   : > { %v13548_v14 = vpop.permute.xlu1 %13547 }
 0x439   : > { %v13550_v40 = vunpack.i.h.bf16 %v13548_v14  ;;  %v13549_v48 = vunpack.i.l.bf16 %v13548_v14 }
 0x43a   : > { %v13533_v3 = vpop.permute.xlu0 %13532 }
 0x43b   : > { %v13535_v37 = vunpack.i.h.bf16 %v13533_v3  ;;  %v13534_v18 = vunpack.i.l.bf16 %v13533_v3 }
 0x43c   : > { %v13558_v57 = vpop.permute.xlu1 %13557 }
 0x43d   : > { %v6643_v5 = vsel %vm3726_vm1, %v20764_v42, %v13535_v37  ;;  %v6642_v46 = vsel %vm3726_vm1, %v5523_v43, %v13534_v18  ;;  %v13560_v29 = vunpack.i.h.bf16 %v13558_v57  ;;  %v13559_v13 = vunpack.i.l.bf16 %v13558_v57  ;;  %v14650_v43 = vld [vmem:[%s15256_s27 + $0x5d0] sm:$0xff] }
 0x43e   : > { %v13543_v41 = vpop.permute.xlu0 %13542  ;;  %v6678_v15 = vsel %vm4257_vm3, %v6642_v46, %v13549_v48  ;;  %v6679_v7 = vsel %vm4257_vm3, %v6643_v5, %v13550_v40  ;;  %v5509_v46 = vmax.f32 %v5147_v23, 0.0 }
 0x43f   : > { %v3899_v55 = vsel %vm3726_vm1, %v3702_v45, %v13559_v13  ;;  %v3900_v11 = vsel %vm3726_vm1, %v3703_v62, %v13560_v29  ;;  %v13545_v33 = vunpack.i.h.bf16 %v13543_v41  ;;  %v13544_v3 = vunpack.i.l.bf16 %v13543_v41 }
 0x440   : > { %v13568_v9 = vpop.permute.xlu1 %13567 }
 0x441   : > { %v13570_v60 = vunpack.i.h.bf16 %v13568_v9  ;;  %v13569_v36 = vunpack.i.l.bf16 %v13568_v9  ;;  %v20765_v9 = vmax.f32 %v18263_v8, 0.0 }
 0x442   : > { %v13553_v17 = vpop.permute.xlu0 %13552 }
 0x443   : > { %v6714_v22 = vsel %vm6575_vm4, %v6678_v15, %v13569_v36  ;;  %v6715_v27 = vsel %vm6575_vm4, %v6679_v7, %v13570_v60  ;;  %v13555_v59 = vunpack.i.h.bf16 %v13553_v17  ;;  %v13554_v31 = vunpack.i.l.bf16 %v13553_v17 }
 0x444   : > { %v13578_v4 = vpop.permute.xlu1 %13577  ;;  %v18677_v16 = vpack.c.bf16 %v6715_v27, %v6714_v22  ;;  %v6533_v60 = vsel %vm3726_vm1, %v5509_v46, %v13544_v3 }
 0x445   : > { %v13580_v54 = vunpack.i.h.bf16 %v13578_v4  ;;  %v13579_v12 = vunpack.i.l.bf16 %v13578_v4  ;;  %v3705_v57 = vsel %vm3529_vm0, %v18271_v53, %v13555_v59  ;;  %v3704_v38 = vsel %vm3529_vm0, %v14650_v43, %v13554_v31 }
 0x446   : > { %v13563_v49 = vpop.permute.xlu0 %13562  ;;  %7213 = vmatprep.mubr.bf16.mxu1 %v18677_v16  ;;  %v6534_v53 = vsel %vm3726_vm1, %v20765_v9, %v13545_v33 }
 0x447   : > { %v4096_v28 = vsel %vm3923_vm2, %v3899_v55, %v13579_v12  ;;  %v4097_v47 = vsel %vm3923_vm2, %v3900_v11, %v13580_v54  ;;  %v13565_v20 = vunpack.i.h.bf16 %v13563_v49  ;;  %v13564_v42 = vunpack.i.l.bf16 %v13563_v49 }
 0x448   : > { %v4206_v2 = vpack.c.bf16 %v4097_v47, %v4096_v28  ;;  %v13588_v56 = vpop.permute.xlu1 %13587  ;;  %v20766_v11 = vmax.f32 %v18302_v34, 0.0  ;;  %v20767_v28 = vmax.f32 %v18234_v19, 0.0 }
 0x449   : > { %v13590_v35 = vunpack.i.h.bf16 %v13588_v56  ;;  %v13589_v24 = vunpack.i.l.bf16 %v13588_v56  ;;  %v6569_v13 = vsel %vm4257_vm3, %v6533_v60, %v13564_v42  ;;  %v6570_v17 = vsel %vm4257_vm3, %v6534_v53, %v13565_v20 }
 0x44a   : > { %v13573_v14 = vpop.permute.xlu0 %13572  ;;  %11575 = vmatprep.mubr.msk.bf16.mxu0 %vm4257_vm3, %v4206_v2 }
 0x44b   : > { %v13575_v37 = vunpack.i.h.bf16 %v13573_v14  ;;  %v13574_v18 = vunpack.i.l.bf16 %v13573_v14 }
 0x44c   : > { %v13598_v5 = vpop.permute.xlu1 %13597 }
 0x44d   : > { %v3901_v61 = vsel %vm3726_vm1, %v3704_v38, %v13574_v18  ;;  %v3902_v63 = vsel %vm3726_vm1, %v3705_v57, %v13575_v37  ;;  %v13600_v12 = vunpack.i.h.bf16 %v13598_v5  ;;  %v13599_v55 = vunpack.i.l.bf16 %v13598_v5 }
 0x44e   : > { %v13583_v40 = vpop.permute.xlu0 %13582  ;;  %v4098_v48 = vsel %vm3923_vm2, %v3901_v61, %v13589_v24  ;;  %v4099_v41 = vsel %vm3923_vm2, %v3902_v63, %v13590_v35 }
 0x44f   : > { %v13585_v36 = vunpack.i.h.bf16 %v13583_v40  ;;  %v13584_v29 = vunpack.i.l.bf16 %v13583_v40  ;;  %v4207_v7 = vpack.c.bf16 %v4099_v41, %v4098_v48  ;;  %v3707_v34 = vsel %vm3529_vm0, %v18315_v1, %v13600_v12 }
 0x450   : > { %v13608_v15 = vpop.permute.xlu1 %13607  ;;  %v3706_v19 = vsel %vm3529_vm0, %v18268_v39, %v13599_v55 }
 0x451   : > { %v6606_v62 = vsel %vm6575_vm4, %v6569_v13, %v13584_v29  ;;  %v6607_v44 = vsel %vm6575_vm4, %v6570_v17, %v13585_v36  ;;  %11576 = vmatmul.mubr.msk.bf16.gmra.mrb[172].mxu0 %vm4257_vm3, %v4207_v7  ;;  %v13610_v59 = vunpack.i.h.bf16 %v13608_v15  ;;  %v13609_v31 = vunpack.i.l.bf16 %v13608_v15  ;;  %v20768_v17 = vld [vmem:[#allocation27_spill] sm:$0xff] }
 0x452   : > { %v13593_v45 = vpop.permute.xlu0 %13592  ;;  %v18704_v8 = vpack.c.bf16 %v6607_v44, %v6606_v62  ;;  %v20769_v7 = vld [vmem:[#allocation23_spill] sm:$0xff] }
 0x453   : > { %v13595_v22 = vunpack.i.h.bf16 %v13593_v45  ;;  %v13594_v27 = vunpack.i.l.bf16 %v13593_v45 }
 0x454   : > { %v13618_v4 = vpop.permute.xlu1 %13617  ;;  %7214 = vmatmul.mubr.bf16.gmra.mrb[60].mxu1 %v18704_v8 }
 0x455   : > { %v6645_v49 = vsel %vm3726_vm1, %v20766_v11, %v13595_v22  ;;  %v6644_v47 = vsel %vm3726_vm1, %v20767_v28, %v13594_v27  ;;  %v13620_v35 = vunpack.i.h.bf16 %v13618_v4  ;;  %v13619_v24 = vunpack.i.l.bf16 %v13618_v4  ;;  %v20770_v11 = vld [vmem:[#allocation25_spill] sm:$0xff] }
 0x456   : > { %v13603_v54 = vpop.permute.xlu0 %13602  ;;  %v6680_v33 = vsel %vm4257_vm3, %v6644_v47, %v13609_v31  ;;  %v6681_v3 = vsel %vm4257_vm3, %v6645_v49, %v13610_v59  ;;  %v20771_v49 = vmax.f32 %v20770_v11, 0.0  ;;  %v20772_v47 = vld [vmem:[#allocation21_spill] sm:$0xff] }
 0x457   : > { %v3903_v42 = vsel %vm3726_vm1, %v3706_v19, %v13619_v24  ;;  %v3904_v5 = vsel %vm3726_vm1, %v3707_v34, %v13620_v35  ;;  %v13605_v60 = vunpack.i.h.bf16 %v13603_v54  ;;  %v13604_v36 = vunpack.i.l.bf16 %v13603_v54 }
 0x458   : > { %v13628_v2 = vpop.permute.xlu1 %13627  ;;  %v20773_v59 = vmax.f32 %v20772_v47, 0.0 }
 0x459   : > { %v13630_v56 = vunpack.i.h.bf16 %v13628_v2  ;;  %v13629_v23 = vunpack.i.l.bf16 %v13628_v2  ;;  %v6536_v28 = vsel %vm3726_vm1, %v20771_v49, %v13605_v60 }
 0x45a   : > { %v13613_v14 = vpop.permute.xlu0 %13612  ;;  %v6535_v31 = vsel %vm3726_vm1, %v20773_v59, %v13604_v36 }
 0x45b   : > { %v6716_v37 = vsel %vm6575_vm4, %v6680_v33, %v13629_v23  ;;  %v6717_v18 = vsel %vm6575_vm4, %v6681_v3, %v13630_v56  ;;  %v13615_v61 = vunpack.i.h.bf16 %v13613_v14  ;;  %v13614_v63 = vunpack.i.l.bf16 %v13613_v14 }
 0x45c   : > { %v13638_v57 = vpop.permute.xlu1 %13637  ;;  %v18721_v43 = vpack.c.bf16 %v6717_v18, %v6716_v37 }
 0x45d   : > { %v13640_v38 = vunpack.i.h.bf16 %v13638_v57  ;;  %v13639_v20 = vunpack.i.l.bf16 %v13638_v57  ;;  %v3709_v15 = vsel %vm3529_vm0, %v20768_v17, %v13615_v61  ;;  %v3708_v62 = vsel %vm3529_vm0, %v20769_v7, %v13614_v63 }
 0x45e   : > { %v13623_v46 = vpop.permute.xlu0 %13622  ;;  %7221 = vmatprep.mubr.bf16.mxu1 %v18721_v43 }
 0x45f   : > { %v4100_v1 = vsel %vm3923_vm2, %v3903_v42, %v13639_v20  ;;  %v4101_v39 = vsel %vm3923_vm2, %v3904_v5, %v13640_v38  ;;  %v13625_v44 = vunpack.i.h.bf16 %v13623_v46  ;;  %v13624_v45 = vunpack.i.l.bf16 %v13623_v46  ;;  %v20774_v46 = vld [vmem:[#allocation22_spill] sm:$0xff] }
 0x460   : > { %v4208_v40 = vpack.c.bf16 %v4101_v39, %v4100_v1  ;;  %v13648_v48 = vpop.permute.xlu1 %13647  ;;  %v20775_v1 = vmax.f32 %v20774_v46, 0.0 }
 0x461   : > { %v13650_v41 = vunpack.i.h.bf16 %v13648_v48  ;;  %v13649_v9 = vunpack.i.l.bf16 %v13648_v48  ;;  %v6571_v23 = vsel %vm4257_vm3, %v6535_v31, %v13624_v45  ;;  %v6572_v35 = vsel %vm4257_vm3, %v6536_v28, %v13625_v44 }
 0x462   : > { %v13633_v53 = vpop.permute.xlu0 %13632  ;;  %11579 = vmatprep.mubr.msk.bf16.mxu0 %vm4257_vm3, %v4208_v40 }
 0x463   : > { %v13635_v29 = vunpack.i.h.bf16 %v13633_v53  ;;  %v13634_v13 = vunpack.i.l.bf16 %v13633_v53 }
 0x464   : > { %v13658_v22 = vpop.permute.xlu1 %13657 }
 0x465   : > { %v3905_v27 = vsel %vm3726_vm1, %v3708_v62, %v13634_v13  ;;  %v3906_v4 = vsel %vm3726_vm1, %v3709_v15, %v13635_v29  ;;  %v13660_v20 = vunpack.i.h.bf16 %v13658_v22  ;;  %v13659_v42 = vunpack.i.l.bf16 %v13658_v22 }
 0x466   : > { %v13643_v12 = vpop.permute.xlu0 %13642  ;;  %v4102_v55 = vsel %vm3923_vm2, %v3905_v27, %v13649_v9  ;;  %v4103_v54 = vsel %vm3923_vm2, %v3906_v4, %v13650_v41 }
 0x467   : > { %v13645_v2 = vunpack.i.h.bf16 %v13643_v12  ;;  %v13644_v56 = vunpack.i.l.bf16 %v13643_v12  ;;  %v4209_v14 = vpack.c.bf16 %v4103_v54, %v4102_v55  ;;  %v3711_v6 = vsel %vm3529_vm0, %v18444_v51, %v13660_v20 }
 0x468   : > { %v13668_v24 = vpop.permute.xlu1 %13667 }
 0x469   : > { %v6608_v33 = vsel %vm6575_vm4, %v6571_v23, %v13644_v56  ;;  %v6609_v3 = vsel %vm6575_vm4, %v6572_v35, %v13645_v2  ;;  %11580 = vmatmul.mubr.msk.bf16.gmra.mrb[176].mxu0 %vm4257_vm3, %v4209_v14  ;;  %v13670_v61 = vunpack.i.h.bf16 %v13668_v24  ;;  %v13669_v63 = vunpack.i.l.bf16 %v13668_v24  ;;  %v14651_v35 = vld [vmem:[%s15256_s27 + $0x620] sm:$0xff]  ;;  %v14652_v14 = vld [vmem:[%s15256_s27 + $0x618] sm:$0xff] }
 0x46a   : > { %v13653_v34 = vpop.permute.xlu0 %13652  ;;  %v18748_v19 = vpack.c.bf16 %v6609_v3, %v6608_v33 }
 0x46b   : > { %v13655_v37 = vunpack.i.h.bf16 %v13653_v34  ;;  %v13654_v18 = vunpack.i.l.bf16 %v13653_v34 }
 0x46c   : > { %v13678_v57 = vpop.permute.xlu1 %13677  ;;  %7222 = vmatmul.mubr.bf16.gmra.mrb[64].mxu1 %v18748_v19 }
 0x46d   : > { %v6647_v5 = vsel %vm3726_vm1, %v5533_v58, %v13655_v37  ;;  %v6646_v39 = vsel %vm3726_vm1, %v20775_v1, %v13654_v18  ;;  %v13680_v9 = vunpack.i.h.bf16 %v13678_v57  ;;  %v13679_v53 = vunpack.i.l.bf16 %v13678_v57  ;;  %v20776_v58 = vld [vmem:[#allocation26_spill] sm:$0xff]  ;;  %v14012_v18 = vld [vmem:[%s20519_s5 + $0xc0] sm:$0xff]  }
 0x46e   : > { %v13663_v38 = vpop.permute.xlu0 %13662  ;;  %v6682_v36 = vsel %vm4257_vm3, %v6646_v39, %v13669_v63  ;;  %v6683_v29 = vsel %vm4257_vm3, %v6647_v5, %v13670_v61  ;;  %v3710_v13 = vsel %vm3529_vm0, %v20776_v58, %v13659_v42  ;;  %v14013_v57 = vld [vmem:[%s20519_s5 + $0x80] sm:$0xff]   ;;  %11275 = vmatprep.subr.bf16.mxu0 %v14012_v18  ;;  %v20777_v39 = vld [vmem:[#allocation24_spill] sm:$0xff] }
 0x46f   : > { %v3907_v22 = vsel %vm3726_vm1, %v3710_v13, %v13679_v53  ;;  %v3908_v27 = vsel %vm3726_vm1, %v3711_v6, %v13680_v9  ;;  %v13665_v31 = vunpack.i.h.bf16 %v13663_v38  ;;  %v13664_v2 = vunpack.i.l.bf16 %v13663_v38  ;;  %11276 = vmatpush3.bf16.msra.mxu0 %v14013_v57  ;;  %v20780_v18 = vld [vmem:[#allocation9_spill] sm:$0xff] }
 0x470   : > { %v13688_v40 = vpop.permute.xlu1 %13687  ;;  %v20778_v61 = vmax.f32 %v20777_v39, 0.0 }
 0x471   : > { %v13690_v48 = vunpack.i.h.bf16 %v13688_v40  ;;  %v13689_v41 = vunpack.i.l.bf16 %v13688_v40  ;;  %v6538_v1 = vsel %vm3726_vm1, %v5519_v26, %v13665_v31 }
 0x472   : > { %v13673_v60 = vpop.permute.xlu0 %13672  ;;  %v6537_v63 = vsel %vm3726_vm1, %v20778_v61, %v13664_v2  ;;  %v14655_v2 = vld [vmem:[%s15256_s27 + $0x630] sm:$0xff] }
 0x473   : > { %v6718_v17 = vsel %vm6575_vm4, %v6682_v36, %v13689_v41  ;;  %v6719_v15 = vsel %vm6575_vm4, %v6683_v29, %v13690_v48  ;;  %v13675_v55 = vunpack.i.h.bf16 %v13673_v60  ;;  %v13674_v54 = vunpack.i.l.bf16 %v13673_v60 }
 0x474   : > { %v13698_v7 = vpop.permute.xlu1 %13697  ;;  %v18765_v62 = vpack.c.bf16 %v6719_v15, %v6718_v17 }
 0x475   : > { %v13700_v44 = vunpack.i.h.bf16 %v13698_v7  ;;  %v13699_v45 = vunpack.i.l.bf16 %v13698_v7  ;;  %v3713_v24 = vsel %vm3529_vm0, %v14651_v35, %v13675_v55  ;;  %v3712_v33 = vsel %vm3529_vm0, %v14652_v14, %v13674_v54  ;;  %v20779_v7 = vld [vmem:[#allocation10_spill] sm:$0xff] }
 0x476   : > { %v13683_v4 = vpop.permute.xlu0 %13682  ;;  %7229 = vmatprep.mubr.bf16.mxu1 %v18765_v62 }
 0x477   : > { %v4104_v51 = vsel %vm3923_vm2, %v3907_v22, %v13699_v45  ;;  %v4105_v12 = vsel %vm3923_vm2, %v3908_v27, %v13700_v44  ;;  %v13685_v3 = vunpack.i.h.bf16 %v13683_v4  ;;  %v13684_v34 = vunpack.i.l.bf16 %v13683_v4  ;;  %v14653_v44 = vld [vmem:[%s15256_s27 + $0x640] sm:$0xff]  ;;  %v14654_v22 = vld [vmem:[%s15256_s27 + $0x638] sm:$0xff] }
 0x478   : > { %v4210_v11 = vpack.c.bf16 %v4105_v12, %v4104_v51  ;;  %v13708_v49 = vpop.permute.xlu1 %13707 }
 0x479   : > { %v13710_v28 = vunpack.i.h.bf16 %v13708_v49  ;;  %v13709_v47 = vunpack.i.l.bf16 %v13708_v49  ;;  %v6573_v41 = vsel %vm4257_vm3, %v6537_v63, %v13684_v34  ;;  %v6574_v9 = vsel %vm4257_vm3, %v6538_v1, %v13685_v3 }
 0x47a   : > { %v13693_v59 = vpop.permute.xlu0 %13692  ;;  %11583 = vmatprep.mubr.msk.bf16.mxu0 %vm4257_vm3, %v4210_v11 }
 0x47b   : > { %v13695_v56 = vunpack.i.h.bf16 %v13693_v59  ;;  %v13694_v23 = vunpack.i.l.bf16 %v13693_v59 }
 0x47c   : > { %v13718_v37 = vpop.permute.xlu1 %13717 }
 0x47d   : > { %v3909_v38 = vsel %vm3726_vm1, %v3712_v33, %v13694_v23  ;;  %v3910_v20 = vsel %vm3726_vm1, %v3713_v24, %v13695_v56  ;;  %v13720_v26 = vunpack.i.h.bf16 %v13718_v37  ;;  %v13719_v29 = vunpack.i.l.bf16 %v13718_v37  ;;  %v14656_v23 = vld [vmem:[%s15256_s27 + $0x628] sm:$0xff] }
 0x47e   : > { %v13703_v42 = vpop.permute.xlu0 %13702  ;;  %v4106_v5 = vsel %vm3923_vm2, %v3909_v38, %v13709_v47  ;;  %v4107_v46 = vsel %vm3923_vm2, %v3910_v20, %v13710_v28 }
 0x47f   : > { %v13705_v40 = vunpack.i.h.bf16 %v13703_v42  ;;  %v13704_v48 = vunpack.i.l.bf16 %v13703_v42  ;;  %v4211_v60 = vpack.c.bf16 %v4107_v46, %v4106_v5  ;;  %v3717_v45 = vsel %vm3529_vm0, %v14653_v44, %v13720_v26  ;;  %v20781_v42 = vld [vmem:[#allocation8_spill] sm:$0xff] }
 0x480   : > { %v13728_v53 = vpop.permute.xlu1 %13727  ;;  %v3716_v27 = vsel %vm3529_vm0, %v14654_v22, %v13719_v29  ;;  %v20783_v22 = vld [vmem:[#allocation16_spill] sm:$0xff] }
 0x481   : > { %v6610_v36 = vsel %vm6575_vm4, %v6573_v41, %v13704_v48  ;;  %v6611_v0 = vsel %vm6575_vm4, %v6574_v9, %v13705_v40  ;;  %11584 = vmatmul.mubr.msk.bf16.gmra.mrb[180].mxu0 %vm4257_vm3, %v4211_v60  ;;  %v13730_v17 = vunpack.i.h.bf16 %v13728_v53  ;;  %v13729_v15 = vunpack.i.l.bf16 %v13728_v53  ;;  %v14657_v41 = vld [vmem:[%s15256_s27 + $0x660] sm:$0xff]  ;;  %v14658_v53 = vld [vmem:[%s15256_s27 + $0x658] sm:$0xff] }
 0x482   : > { %v13713_v6 = vpop.permute.xlu0 %13712  ;;  %v18798_v58 = vpack.c.bf16 %v6611_v0, %v6610_v36 }
 0x483   : > { %v13715_v51 = vunpack.i.h.bf16 %v13713_v6  ;;  %v13714_v12 = vunpack.i.l.bf16 %v13713_v6  ;;  %v3913_v47 = vsel %vm3726_vm1, %v3716_v27, %v13729_v15  ;;  %v3914_v59 = vsel %vm3726_vm1, %v3717_v45, %v13730_v17  ;;  %v20782_v15 = vld [vmem:[#allocation14_spill] sm:$0xff] }
 0x484   : > { %7230 = vmatmul.mubr.bf16.gmra.mrb[68].mxu1 %v18798_v58  ;;  %v13738_v13 = vpop.permute.xlu1 %13737 }
 0x485   : > { %7270 = vmatprep.mubr.bf16.mxu1 %v20779_v7  ;;  %v13740_v55 = vunpack.i.h.bf16 %v13738_v13  ;;  %v13739_v54 = vunpack.i.l.bf16 %v13738_v13  ;;  %v3715_v56 = vsel %vm3529_vm0, %v14655_v2, %v13715_v51  ;;  %v3714_v35 = vsel %vm3529_vm0, %v14656_v23, %v13714_v12  ;;  %v14660_v12 = vld [vmem:[%s15256_s27 + $0x648] sm:$0xff] }
 0x486   : > { %v13723_v4 = vpop.permute.xlu0 %13722 }
 0x487   : > { %v13725_v11 = vunpack.i.h.bf16 %v13723_v4  ;;  %v13724_v49 = vunpack.i.l.bf16 %v13723_v4  ;;  %v4110_v33 = vsel %vm3923_vm2, %v3913_v47, %v13739_v54  ;;  %v4111_v3 = vsel %vm3923_vm2, %v3914_v59, %v13740_v55  ;;  %v14659_v4 = vld [vmem:[%s15256_s27 + $0x650] sm:$0xff] }
 0x488   : > { %v13748_v28 = vpop.permute.xlu1 %13747  ;;  %v4213_v61 = vpack.c.bf16 %v4111_v3, %v4110_v33  ;;  %v20784_v3 = vld [vmem:[#allocation12_spill] sm:$0xff] }
 0x489   : > { %v3911_v34 = vsel %vm3726_vm1, %v3714_v35, %v13724_v49  ;;  %v3912_v37 = vsel %vm3726_vm1, %v3715_v56, %v13725_v11  ;;  %v13750_v5 = vunpack.i.h.bf16 %v13748_v28  ;;  %v13749_v46 = vunpack.i.l.bf16 %v13748_v28 }
 0x48a   : > { %v13733_v31 = vpop.permute.xlu0 %13732 }
 0x48b   : > { %v13735_v24 = vunpack.i.h.bf16 %v13733_v31  ;;  %v13734_v14 = vunpack.i.l.bf16 %v13733_v31  ;;  %v3721_v9 = vsel %vm3529_vm0, %v14657_v41, %v13750_v5  ;;  %v3720_v60 = vsel %vm3529_vm0, %v14658_v53, %v13749_v46  ;;  %v14662_v53 = vld [vmem:[%s15256_s27 + $0x670] sm:$0xff] }
 0x48c   : > { %7271 = vmatmul.mubr.bf16.vlgmr.msra.gmra.mrb[0].mxu1 %v20780_v18  ;;  %v13758_v57 = vpop.permute.xlu1 %13757 }
 0x48d   : > { %v4108_v38 = vsel %vm3923_vm2, %v3911_v34, %v13734_v14  ;;  %v4109_v20 = vsel %vm3923_vm2, %v3912_v37, %v13735_v24  ;;  %7278 = vmatprep.mubr.bf16.mxu1 %v20781_v42  ;;  %v13760_v40 = vunpack.i.h.bf16 %v13758_v57  ;;  %v13759_v48 = vunpack.i.l.bf16 %v13758_v57  ;;  %v20785_v57 = vld [vmem:[#allocation15_spill] sm:$0xff] }
 0x48e   : > { %v4212_v1 = vpack.c.bf16 %v4109_v20, %v4108_v38  ;;  %v13743_v39 = vpop.permute.xlu0 %13742  ;;  %v14661_v20 = vld [vmem:[%s15256_s27 + $0x678] sm:$0xff] }
 0x48f   : > { %v13745_v0 = vunpack.i.h.bf16 %v13743_v39  ;;  %v13744_v26 = vunpack.i.l.bf16 %v13743_v39  ;;  %v3917_v44 = vsel %vm3726_vm1, %v3720_v60, %v13759_v48  ;;  %v3918_v45 = vsel %vm3726_vm1, %v3721_v9, %v13760_v40 }
 0x490   : > { %11587 = vmatprep.mubr.msk.bf16.mxu0 %vm4257_vm3, %v4212_v1  ;;  %v13768_v63 = vpop.permute.xlu1 %13767 }
 0x491   : > { %11588 = vmatmul.mubr.msk.bf16.gmra.mrb[184].mxu0 %vm4257_vm3, %v4213_v61  ;;  %v13770_v29 = vunpack.i.h.bf16 %v13768_v63  ;;  %v13769_v6 = vunpack.i.l.bf16 %v13768_v63  ;;  %v3719_v51 = vsel %vm3529_vm0, %v14659_v4, %v13745_v0  ;;  %v3718_v55 = vsel %vm3529_vm0, %v14660_v12, %v13744_v26  ;;  %v20788_v4 = vld [vmem:[#allocation3_spill] sm:$0xff]  ;;  %v20790_v12 = vld [vmem:[#allocation5_spill] sm:$0xff] }
 0x492   : > { %v13753_v36 = vpop.permute.xlu0 %13752 }
 0x493   : > { %v13755_v13 = vunpack.i.h.bf16 %v13753_v36  ;;  %v13754_v17 = vunpack.i.l.bf16 %v13753_v36  ;;  %v4114_v49 = vsel %vm3923_vm2, %v3917_v44, %v13769_v6  ;;  %v4115_v28 = vsel %vm3923_vm2, %v3918_v45, %v13770_v29  ;;  %v14663_v36 = vld [vmem:[%s15256_s27 + $0x668] sm:$0xff]  ;;  %v20787_v45 = vld [vmem:[#allocation4_spill] sm:$0xff] }
 0x494   : > { %7279 = vmatmul.mubr.bf16.gmra.mrb[4].mxu1 %v20782_v15  ;;  %v13778_v7 = vpop.permute.xlu1 %13777  ;;  %v4215_v33 = vpack.c.bf16 %v4115_v28, %v4114_v49  ;;  %v20786_v15 = vld [vmem:[#allocation11_spill] sm:$0xff]  ;;  %v20793_v49 = vld [vmem:[#allocation18_spill] sm:$0xff] }
 0x495   : > { %7286 = vmatprep.mubr.bf16.mxu1 %v20783_v22  ;;  %v3915_v47 = vsel %vm3726_vm1, %v3718_v55, %v13754_v17  ;;  %v3916_v59 = vsel %vm3726_vm1, %v3719_v51, %v13755_v13  ;;  %v13780_v23 = vunpack.i.h.bf16 %v13778_v7  ;;  %v13779_v35 = vunpack.i.l.bf16 %v13778_v7  ;;  %v20789_v51 = vld [vmem:[#allocation13_spill] sm:$0xff]  ;;  %v20791_v55 = vld [vmem:[#allocation6_spill] sm:$0xff] }
 0x496   : > { %v13763_v27 = vpop.permute.xlu0 %13762  ;;  %v14015_v28 = vld [vmem:[%s20519_s5 + $0x88] sm:$0xff]  }
 0x497   : > { %v13765_v54 = vunpack.i.h.bf16 %v13763_v27  ;;  %v13764_v11 = vunpack.i.l.bf16 %v13763_v27  ;;  %v3725_v38 = vsel %vm3529_vm0, %v18470_v50, %v13780_v23  ;;  %v3724_v42 = vsel %vm3529_vm0, %v14661_v20, %v13779_v35 }
 0x498   : > { %v13788_v31 = vpop.permute.xlu1 %13787 }
 0x499   : > { %v4112_v2 = vsel %vm3923_vm2, %v3915_v47, %v13764_v11  ;;  %v4113_v56 = vsel %vm3923_vm2, %v3916_v59, %v13765_v54  ;;  %v13790_v34 = vunpack.i.h.bf16 %v13788_v31  ;;  %v13789_v37 = vunpack.i.l.bf16 %v13788_v31  ;;  %v14014_v54 = vld [vmem:[%s20519_s5 + $0xc8] sm:$0xff]   ;;  %v20792_v11 = vld [vmem:[#allocation17_spill] sm:$0xff]  ;;  %v20794_v47 = vld [vmem:[#allocation7_spill] sm:$0xff] }
 0x49a   : > { %v4214_v24 = vpack.c.bf16 %v4113_v56, %v4112_v2  ;;  %v13773_v14 = vpop.permute.xlu0 %13772  ;;  %11277 = vmatprep.subr.bf16.mxu0 %v14014_v54  ;;  %v20795_v59 = vld [vmem:[#allocation19_spill] sm:$0xff]  ;;  %v20796_v31 = vld [vmem:[#allocation20_spill] sm:$0xff] }
 0x49b   : > { %v13775_v46 = vunpack.i.h.bf16 %v13773_v14  ;;  %v13774_v1 = vunpack.i.l.bf16 %v13773_v14  ;;  %v3921_v48 = vsel %vm3726_vm1, %v3724_v42, %v13789_v37  ;;  %v3922_v41 = vsel %vm3726_vm1, %v3725_v38, %v13790_v34  ;;  %11278 = vmatpush3.bf16.msra.mxu0 %v14015_v28 }
 0x49c   : > { %11591 = vmatprep.mubr.msk.bf16.mxu0 %vm4257_vm3, %v4214_v24  ;;  %7287 = vmatmul.mubr.bf16.gmra.mrb[8].mxu1 %v20784_v3  ;;  %v13798_v18 = vpop.permute.xlu1 %13797 }
 0x49d   : > { %11592 = vmatmul.mubr.msk.bf16.gmra.mrb[188].mxu0 %vm4257_vm3, %v4215_v33  ;;  %7294 = vmatprep.mubr.bf16.mxu1 %v20785_v57  ;;  %v13800_v39 = vunpack.i.h.bf16 %v13798_v18  ;;  %v13799_v61 = vunpack.i.l.bf16 %v13798_v18  ;;  %v3723_v60 = vsel %vm3529_vm0, %v14662_v53, %v13775_v46  ;;  %v3722_v50 = vsel %vm3529_vm0, %v14663_v36, %v13774_v1 }
 0x49e   : > { %v13783_v5 = vpop.permute.xlu0 %13782 }
 0x49f   : > { %v13785_v63 = vunpack.i.h.bf16 %v13783_v5  ;;  %v13784_v40 = vunpack.i.l.bf16 %v13783_v5  ;;  %v4118_v29 = vsel %vm3923_vm2, %v3921_v48, %v13799_v61  ;;  %v4119_v6 = vsel %vm3923_vm2, %v3922_v41, %v13800_v39 }
 0x4a0   : > { %v4217_v27 = vpack.c.bf16 %v4119_v6, %v4118_v29  ;;  %v14020_v6 = vld [vmem:[%s20519_s5 + $0xe0] sm:$0xff]  }
 0x4a1   : > { %v3919_v13 = vsel %vm3726_vm1, %v3722_v50, %v13784_v40  ;;  %v3920_v17 = vsel %vm3726_vm1, %v3723_v60, %v13785_v63 }
 0x4a2   : > { %v13793_v9 = vpop.permute.xlu0 %13792 }
 0x4a3   : > { %v13795_v0 = vunpack.i.h.bf16 %v13793_v9  ;;  %v13794_v26 = vunpack.i.l.bf16 %v13793_v9 }
 0x4a4   : > { %7295 = vmatmul.mubr.bf16.gmra.mrb[12].mxu1 %v20786_v15  ;;  %v14023_v15 = vld [vmem:[%s20519_s5 + $0xa0] sm:$0xff]  }
 0x4a5   : > { %v4116_v7 = vsel %vm3923_vm2, %v3919_v13, %v13794_v26  ;;  %v4117_v44 = vsel %vm3923_vm2, %v3920_v17, %v13795_v0  ;;  %7302 = vmatprep.mubr.bf16.mxu1 %v20787_v45  ;;  %v14021_v13 = vld [vmem:[%s20519_s5 + $0x40] sm:$0xff]  }
 0x4a6   : > { %v4216_v22 = vpack.c.bf16 %v4117_v44, %v4116_v7  ;;  %11211 = vmatprep.subr.bf16.mxu1 %v14021_v13  ;;  %v14022_v17 = vld [vmem:[%s20519_s5] sm:$0xff]  }
 0x4a7   : > { %11212 = vmatpush3.bf16.msra.mxu1 %v14022_v17 }
 0x4a8   : > { %11595 = vmatprep.mubr.msk.bf16.mxu0 %vm4257_vm3, %v4216_v22 }
 0x4a9   : > { %11596 = vmatmul.mubr.msk.bf16.gmra.mrb[192].mxu0 %vm4257_vm3, %v4217_v27 }
 0x4ac   : > { %7303 = vmatmul.mubr.bf16.gmra.mrb[16].mxu1 %v20788_v4 }
 0x4ad   : > { %7310 = vmatprep.mubr.bf16.mxu1 %v20789_v51 }
 0x4b4   : > { %7311 = vmatmul.mubr.bf16.gmra.mrb[20].mxu1 %v20790_v12 }
 0x4b5   : > { %7318 = vmatprep.mubr.bf16.mxu1 %v20791_v55 }
 0x4bc   : > { %7319 = vmatmul.mubr.bf16.gmra.mrb[24].mxu1 %v20792_v11 }
 0x4bd   : > { %7326 = vmatprep.mubr.bf16.mxu1 %v20793_v49 }
 0x4c4   : > { %7327 = vmatmul.mubr.bf16.gmra.mrb[28].mxu1 %v20794_v47 }
 0x4c5   : > { %7334 = vmatprep.mubr.bf16.mxu1 %v20795_v59 }
 0x4cc   : > { %7335 = vmatmul.mubr.bf16.gmra.mrb[32].mxu1 %v20796_v31 }
 0x4cd   : > { %7342 = vmatprep.mubr.bf16.mxu1 %v18465_v32  ;;  %v18891_v32 = vld [vmem:[%s20516_s2] ss:$0 sm:$0xff] }
 0x4d4   : > { %7343 = vmatmul.mubr.bf16.gmra.mrb[36].mxu1 %v18467_v25 }
 0x4d5   : > { %7350 = vmatprep.mubr.bf16.mxu1 %v18533_v52 }
 0x4dc   : > { %7351 = vmatmul.mubr.bf16.gmra.mrb[40].mxu1 %v18538_v10 }
 0x4dd   : > { %7358 = vmatprep.mubr.bf16.mxu1 %v18591_v21  ;;  %v14016_v21 = vld [vmem:[%s20519_s5 + $0xd0] sm:$0xff]  }
 0x4de   : > { %11279 = vmatprep.subr.bf16.mxu0 %v14016_v21 }
 0x4e4   : > { %7359 = vmatmul.mubr.bf16.gmra.mrb[44].mxu1 %v18639_v30  ;;  %v14017_v30 = vld [vmem:[%s20519_s5 + $0x90] sm:$0xff]  }
 0x4e5   : > { %7366 = vmatprep.mubr.bf16.mxu1 %v18677_v16  ;;  %11280 = vmatpush3.bf16.msra.mxu0 %v14017_v30 }
 0x4e8   : > { %v11573_v2 = vpop.f32.mrb[168].mxu0 }
 0x4e9   : > { %v18886_v56 = vpop.f32.mrb[169].mxu0  ;;  %v18914_v14 = vadd.f32 %v18891_v32, %v11573_v2  ;;  %v14024_v2 = vld [vmem:[%s20519_s5 + $0x48] sm:$0xff]  }
 0x4ea   : > { %v11574_v23 = vpop.f32.mrb[170].mxu0  ;;  %11213 = vmatprep.subr.bf16.mxu1 %v14024_v2 }
 0x4eb   : > { %v5270_v25 = vadd.f32 %v18891_v32, %v11574_v23  ;;  %v5261_v52 = vpop.f32.mrb[171].mxu0  ;;  %v5539_v37 = vmax.f32 %v18914_v14, 0.0 }
 0x4ec   : > { %v5262_v10 = vadd.f32 %v18891_v32, %v5261_v52  ;;  %7367 = vmatmul.mubr.bf16.gmra.mrb[48].mxu1 %v18704_v8  ;;  %v14018_v8 = vld [vmem:[%s20519_s5 + $0xd8] sm:$0xff]   ;;  %v18982_v52 = vld [vmem:[%s20518_s4] ss:$0 sm:$0xff] }
 0x4ed   : > { %v5540_v16 = vmax.f32 %v5270_v25, 0.0  ;;  %7374 = vmatprep.mubr.bf16.mxu1 %v18721_v43  ;;  %v14019_v43 = vld [vmem:[%s20519_s5 + $0x98] sm:$0xff]   ;;  %11281 = vmatprep.subr.bf16.mxu0 %v14018_v8  ;;  %v14025_v25 = vld [vmem:[%s20519_s5 + $0x8] sm:$0xff]  }
 0x4ee   : > { %v5538_v35 = vmax.f32 %v5262_v10, 0.0  ;;  %11282 = vmatpush3.bf16.msra.mxu0 %v14019_v43  ;;  %11214 = vmatpush3.bf16.msra.mxu1 %v14025_v25 }
 0x4ef   : > { %11283 = vmatprep.subr.bf16.mxu0 %v14020_v6 }
 0x4f0   : > { %v13806_v24 = vpack.i.bf16 %v5540_v16, %v5538_v35 }
 0x4f2   : > { %13807 = vrot.lane.b32.xlu1 %v13806_v24, %s14690_s17  ;;  %11284 = vmatpush3.bf16.msra.mxu0 %v14023_v15 }
 0x4f4   : > { %7375 = vmatmul.mubr.bf16.gmra.mrb[52].mxu1 %v18748_v19 }
 0x4f5   : > { %7382 = vmatprep.mubr.bf16.mxu1 %v18765_v62 }
 0x4fc   : > { %7383 = vmatmul.mubr.bf16.gmra.mrb[56].mxu1 %v18798_v58 }
 0x524   : > { %v11577_v33 = vpop.f32.mrb[172].mxu0 }
 0x525   : > { %v5274_v3 = vpop.f32.mrb[173].mxu0  ;;  %v18931_v1 = vadd.f32 %v18891_v32, %v11577_v33 }
 0x526   : > { %v18917_v19 = vadd.f32 %v18891_v32, %v5274_v3  ;;  %v11578_v62 = vpop.f32.mrb[174].mxu0 }
 0x527   : > { %v5286_v58 = vadd.f32 %v18891_v32, %v11578_v62  ;;  %v5277_v34 = vpop.f32.mrb[175].mxu0  ;;  %v20639_v9 = vmax.f32 %v18931_v1, 0.0 }
 0x528   : > { %v20638_v18 = vmax.f32 %v18917_v19, 0.0  ;;  %v5278_v57 = vadd.f32 %v18891_v32, %v5277_v34 }
 0x529   : > { %v5544_v38 = vmax.f32 %v5286_v58, 0.0 }
 0x52a   : > { %v13816_v20 = vpack.i.bf16 %v20638_v18, %v5539_v37  ;;  %v5542_v42 = vmax.f32 %v5278_v57, 0.0 }
 0x52c   : > { %v13836_v5 = vpack.i.bf16 %v5544_v38, %v5542_v42  ;;  %v13826_v46 = vpack.i.bf16 %v5542_v42, %v5540_v16  ;;  %13817 = vrot.lane.b32.xlu1 %v13816_v20, %s14694_s25 }
 0x530   : > { %13827 = vrot.lane.b32.xlu1 %v13826_v46, %s14695_s26 }
 0x534   : > { %13837 = vrot.lane.b32.xlu1 %v13836_v5, %s14690_s17 }
 0x53c   : > { %v11581_v39 = vpop.f32.mrb[176].mxu0 }
 0x53d   : > { %v5290_v61 = vpop.f32.mrb[177].mxu0  ;;  %v18960_v7 = vadd.f32 %v18891_v32, %v11581_v39 }
 0x53e   : > { %v18934_v63 = vadd.f32 %v18891_v32, %v5290_v61  ;;  %v11582_v40 = vpop.f32.mrb[178].mxu0 }
 0x53f   : > { %v5302_v48 = vadd.f32 %v18891_v32, %v11582_v40  ;;  %v5293_v41 = vpop.f32.mrb[179].mxu0  ;;  %v20634_v51 = vmax.f32 %v18960_v7, 0.0 }
 0x540   : > { %v20633_v53 = vmax.f32 %v18934_v63, 0.0  ;;  %v5294_v60 = vadd.f32 %v18891_v32, %v5293_v41 }
 0x541   : > { %v5548_v36 = vmax.f32 %v5302_v48, 0.0 }
 0x542   : > { %v13846_v50 = vpack.i.bf16 %v20633_v53, %v20639_v9  ;;  %v5546_v0 = vmax.f32 %v5294_v60, 0.0 }
 0x544   : > { %v13866_v26 = vpack.i.bf16 %v5548_v36, %v5546_v0  ;;  %v13856_v29 = vpack.i.bf16 %v5546_v0, %v5544_v38  ;;  %13847 = vrot.lane.b32.xlu1 %v13846_v50, %s14694_s25 }
 0x548   : > { %13857 = vrot.lane.b32.xlu1 %v13856_v29, %s14695_s26 }
 0x54c   : > { %13867 = vrot.lane.b32.xlu1 %v13866_v26, %s14690_s17 }
 0x554   : > { %v18962_v44 = vpop.f32.mrb[180].mxu0 }
 0x555   : > { %v5306_v45 = vpop.f32.mrb[181].mxu0 }
 0x556   : > { %v5307_v22 = vadd.f32 %v18891_v32, %v5306_v45  ;;  %v11586_v27 = vpop.f32.mrb[182].mxu0 }
 0x557   : > { %v5309_v4 = vpop.f32.mrb[183].mxu0  ;;  %v5318_v21 = vadd.f32 %v18891_v32, %v11586_v27 }
 0x558   : > { %v5549_v12 = vmax.f32 %v5307_v22, 0.0  ;;  %v5310_v55 = vadd.f32 %v18891_v32, %v5309_v4 }
 0x559   : > { %v5552_v38 = vmax.f32 %v5318_v21, 0.0 }
 0x55a   : > { %v13876_v54 = vpack.i.bf16 %v5549_v12, %v20634_v51  ;;  %v5550_v11 = vmax.f32 %v5310_v55, 0.0  ;;  %v14026_v12 = vld [vmem:[%s20519_s5 + $0x50] sm:$0xff]  }
 0x55b   : > { %v14027_v55 = vld [vmem:[%s20519_s5 + $0x10] sm:$0xff]   ;;  %11215 = vmatprep.subr.bf16.mxu1 %v14026_v12 }
 0x55c   : > { %v13886_v49 = vpack.i.bf16 %v5550_v11, %v5548_v36  ;;  %13877 = vrot.lane.b32.xlu1 %v13876_v54, %s14694_s25  ;;  %11216 = vmatpush3.bf16.msra.mxu1 %v14027_v55 }
 0x55f   : > { %v18970_v28 = vpop.f32.mrb[0].mxu1 }
 0x560   : > { %v7274_v47 = vpop.f32.mrb[1].mxu1  ;;  %13887 = vrot.lane.b32.xlu1 %v13886_v49, %s14695_s26 }
 0x561   : > { %v7275_v59 = vpop.f32.mrb[2].mxu1 }
 0x562   : > { %v7277_v31 = vpop.f32.mrb[3].mxu1  ;;  %v18986_v30 = vadd.f32 %v18982_v52, %v7275_v59 }
 0x564   : > { %v11589_v23 = vpop.f32.mrb[184].mxu0  ;;  %v20628_v20 = vmax.f32 %v18986_v30, 0.0 }
 0x565   : > { %v5322_v10 = vpop.f32.mrb[185].mxu0  ;;  %v18989_v35 = vadd.f32 %v18891_v32, %v11589_v23 }
 0x566   : > { %v11590_v16 = vpop.f32.mrb[186].mxu0  ;;  %v18993_v33 = vadd.f32 %v18891_v32, %v5322_v10 }
 0x567   : > { %v5334_v24 = vadd.f32 %v18891_v32, %v11590_v16  ;;  %v5325_v8 = vpop.f32.mrb[187].mxu0  ;;  %v7280_v43 = vpop.f32.mrb[4].mxu1  ;;  %v20636_v39 = vmax.f32 %v18989_v35, 0.0 }
 0x568   : > { %v5326_v3 = vadd.f32 %v18891_v32, %v5325_v8  ;;  %v11625_v62 = vadd.f32 %v18982_v52, %v7280_v43  ;;  %v7282_v58 = vpop.f32.mrb[5].mxu1  ;;  %v5553_v61 = vmax.f32 %v18993_v33, 0.0  ;;  %v14028_v43 = vld [vmem:[%s20519_s5 + $0x58] sm:$0xff]  }
 0x569   : > { %v5556_v34 = vmax.f32 %v5334_v24, 0.0  ;;  %v7283_v57 = vpop.f32.mrb[6].mxu1  ;;  %11217 = vmatprep.subr.bf16.mxu1 %v14028_v43 }
 0x56a   : > { %v5554_v42 = vmax.f32 %v5326_v3, 0.0  ;;  %v18998_v5 = vmax.f32 %v11625_v62, 0.0  ;;  %v7285_v46 = vpop.f32.mrb[7].mxu1  ;;  %v11626_v60 = vadd.f32 %v18982_v52, %v7283_v57  ;;  %v13811_v50 = vpack.i.bf16 %v20636_v39, %v5553_v61  ;;  %v14029_v3 = vld [vmem:[%s20519_s5 + $0x18] sm:$0xff]  }
 0x56b   : > { %11218 = vmatpush3.bf16.msra.mxu1 %v14029_v3 }
 0x56c   : > { %v13821_v40 = vpack.i.bf16 %v5556_v34, %v5554_v42  ;;  %v13801_v48 = vpack.i.bf16 %v5554_v42, %v5552_v38  ;;  %v13896_v41 = vpack.i.bf16 %v18998_v5, %v20628_v20  ;;  %v19017_v17 = vmax.f32 %v11626_v60, 0.0  ;;  %v14030_v38 = vld [vmem:[%s20519_s5 + $0x60] sm:$0xff]  }
 0x56d   : > { %v14033_v60 = vld [vmem:[%s20519_s5 + $0x20] sm:$0xff]   ;;  %11219 = vmatprep.subr.bf16.mxu1 %v14030_v38 }
 0x56e   : > { %13802 = vrot.lane.b32.xlu0 %v13801_v48, %s14690_s17  ;;  %13897 = vrot.lane.b32.xlu1 %v13896_v41, %s14694_s25  ;;  %v14031_v48 = vld [vmem:[%s20519_s5 + $0xe8] sm:$0xff]  }
 0x56f   : > { %v7288_v36 = vpop.f32.mrb[8].mxu1  ;;  %v14032_v41 = vld [vmem:[%s20519_s5 + $0xa8] sm:$0xff]   ;;  %11285 = vmatprep.subr.bf16.mxu0 %v14031_v48  ;;  %11220 = vmatpush3.bf16.msra.mxu1 %v14033_v60 }
 0x570   : > { %v19013_v0 = vadd.f32 %v18982_v52, %v7288_v36  ;;  %v11593_v26 = vpop.f32.mrb[188].mxu0  ;;  %v7290_v29 = vpop.f32.mrb[9].mxu1  ;;  %11286 = vmatpush3.bf16.msra.mxu0 %v14032_v41 }
 0x571   : > { %v5338_v6 = vpop.f32.mrb[189].mxu0  ;;  %v19015_v13 = vpop.f32.mrb[10].mxu1  ;;  %v19032_v11 = vadd.f32 %v18891_v32, %v11593_v26 }
 0x572   : > { %v20627_v15 = vmax.f32 %v19013_v0, 0.0  ;;  %v11594_v45 = vpop.f32.mrb[190].mxu0  ;;  %13812 = vrot.lane.b32.xlu0 %v13811_v50, %s14694_s25  ;;  %v7293_v22 = vpop.f32.mrb[11].mxu1  ;;  %v19035_v49 = vadd.f32 %v18891_v32, %v5338_v6 }
 0x573   : > { %v5350_v27 = vadd.f32 %v18891_v32, %v11594_v45  ;;  %v5341_v4 = vpop.f32.mrb[191].mxu0  ;;  %v20631_v23 = vmax.f32 %v19032_v11, 0.0  ;;  %v14034_v22 = vld [vmem:[%s20519_s5 + $0x68] sm:$0xff]  }
 0x574   : > { %v13906_v54 = vpack.i.bf16 %v20627_v15, %v19017_v17  ;;  %v5342_v47 = vadd.f32 %v18891_v32, %v5341_v4  ;;  %v20637_v25 = vmax.f32 %v19035_v49, 0.0  ;;  %11221 = vmatprep.subr.bf16.mxu1 %v14034_v22 }
 0x575   : > { %v5560_v59 = vmax.f32 %v5350_v27, 0.0  ;;  %v14035_v27 = vld [vmem:[%s20519_s5 + $0x28] sm:$0xff]  }
 0x576   : > { %v5558_v31 = vmax.f32 %v5342_v47, 0.0  ;;  %13822 = vrot.lane.b32.xlu0 %v13821_v40, %s14695_s26  ;;  %13907 = vrot.lane.b32.xlu1 %v13906_v54, %s14694_s25  ;;  %v13841_v62 = vpack.i.bf16 %v20631_v23, %v20637_v25 }
 0x577   : > { %v7296_v2 = vpop.f32.mrb[12].mxu1  ;;  %11222 = vmatpush3.bf16.msra.mxu1 %v14035_v27  ;;  %v14042_v27 = vld [vmem:[%s20519_s5 + $0xf8] sm:$0xff]  }
 0x578   : > { %v13851_v10 = vpack.i.bf16 %v5560_v59, %v5558_v31  ;;  %v13831_v21 = vpack.i.bf16 %v5558_v31, %v5556_v34  ;;  %v7298_v16 = vpop.f32.mrb[13].mxu1 }
 0x579   : > { %v7299_v24 = vpop.f32.mrb[14].mxu1 }
 0x57a   : > { %13832 = vrot.lane.b32.xlu0 %v13831_v21, %s14690_s17  ;;  %v7301_v8 = vpop.f32.mrb[15].mxu1  ;;  %v14036_v21 = vld [vmem:[%s20519_s5 + $0x70] sm:$0xff]  }
 0x57b   : > { %v19088_v8 = vadd.f32 %v18982_v52, %v7299_v24  ;;  %11223 = vmatprep.subr.bf16.mxu1 %v14036_v21  ;;  %v14039_v24 = vld [vmem:[%s20519_s5 + $0x38] sm:$0xff]  }
 0x57c   : > { %v11597_v58 = vpop.f32.mrb[192].mxu0 }
 0x57d   : > { %v5354_v34 = vpop.f32.mrb[193].mxu0  ;;  %v5363_v36 = vadd.f32 %v18891_v32, %v11597_v58 }
 0x57e   : > { %v11598_v57 = vpop.f32.mrb[194].mxu0  ;;  %13842 = vrot.lane.b32.xlu0 %v13841_v62, %s14694_s25  ;;  %v19069_v50 = vadd.f32 %v18891_v32, %v5354_v34  ;;  %v19095_v62 = vadd.f32 %v18982_v52, %v7296_v2  ;;  %v14038_v34 = vld [vmem:[%s20519_s5 + $0x78] sm:$0xff]  }
 0x57f   : > { %v5366_v42 = vadd.f32 %v18891_v32, %v11598_v57  ;;  %v5357_v46 = vpop.f32.mrb[195].mxu0  ;;  %v7304_v40 = vpop.f32.mrb[16].mxu1  ;;  %v5563_v55 = vmax.f32 %v5363_v36, 0.0  ;;  %v20626_v57 = vmax.f32 %v19088_v8, 0.0  ;;  %v14040_v36 = vld [vmem:[%s20519_s5 + $0xf0] sm:$0xff]  }
 0x580   : > { %v5358_v26 = vadd.f32 %v18891_v32, %v5357_v46  ;;  %v7306_v29 = vpop.f32.mrb[17].mxu1  ;;  %v20632_v54 = vmax.f32 %v19069_v50, 0.0  ;;  %v20623_v2 = vmax.f32 %v19095_v62, 0.0  ;;  %11287 = vmatprep.subr.bf16.mxu0 %v14040_v36 }
 0x581   : > { %v5564_v6 = vmax.f32 %v5366_v42, 0.0  ;;  %v7307_v45 = vpop.f32.mrb[18].mxu1  ;;  %v11631_v42 = vadd.f32 %v18982_v52, %v7304_v40  ;;  %v14041_v40 = vld [vmem:[%s20519_s5 + $0xb0] sm:$0xff]  }
 0x582   : > { %v5562_v4 = vmax.f32 %v5358_v26, 0.0  ;;  %13852 = vrot.lane.b32.xlu0 %v13851_v10, %s14695_s26  ;;  %v7309_v12 = vpop.f32.mrb[19].mxu1  ;;  %v14037_v10 = vld [vmem:[%s20519_s5 + $0x30] sm:$0xff]   ;;  %v13871_v43 = vpack.i.bf16 %v5563_v55, %v20632_v54  ;;  %v11632_v38 = vadd.f32 %v18982_v52, %v7307_v45  ;;  %v13891_v48 = vpack.i.bf16 %v20623_v2, %v20626_v57  ;;  %11288 = vmatpush3.bf16.msra.mxu0 %v14041_v40 }
 0x583   : > { %11224 = vmatpush3.bf16.msra.mxu1 %v14037_v10  ;;  %v19121_v29 = vmax.f32 %v11631_v42, 0.0  ;;  %11289 = vmatprep.subr.bf16.mxu0 %v14042_v27 }
 0x584   : > { %v13881_v47 = vpack.i.bf16 %v5564_v6, %v5562_v4  ;;  %v13861_v31 = vpack.i.bf16 %v5562_v4, %v5560_v59  ;;  %11225 = vmatprep.subr.bf16.mxu1 %v14038_v34  ;;  %v19113_v41 = vmax.f32 %v11632_v38, 0.0  ;;  %v14043_v4 = vld [vmem:[%s20519_s5 + $0xb8] sm:$0xff]   ;;  %v13808_v38 = vpop.permute.xlu1 %13807 }
 0x585   : > { %v13810_v40 = vunpack.i.h.bf16 %v13808_v38 }
 0x586   : > { %13862 = vrot.lane.b32.xlu0 %v13861_v31, %s14690_s17  ;;  %v13901_v12 = vpack.i.bf16 %v19113_v41, %v19121_v29  ;;  %11290 = vmatpush3.bf16.msra.mxu0 %v14043_v4 }
 0x587   : > { %v7312_v16 = vpop.f32.mrb[20].mxu1  ;;  %11226 = vmatpush3.bf16.msra.mxu1 %v14039_v24 }
 0x588   : > { %v7314_v3 = vpop.f32.mrb[21].mxu1  ;;  %v11633_v21 = vadd.f32 %v18982_v52, %v7312_v16 }
 0x589   : > { %v19092_v59 = vpop.f32.mrb[22].mxu1 }
 0x58a   : > { %13872 = vrot.lane.b32.xlu0 %v13871_v43, %s14694_s25  ;;  %v7317_v58 = vpop.f32.mrb[23].mxu1  ;;  %v19149_v42 = vmax.f32 %v11633_v21, 0.0 }
 0x58e   : > { %13882 = vrot.lane.b32.xlu0 %v13881_v47, %s14695_s26 }
 0x58f   : > { %v7320_v46 = vpop.f32.mrb[24].mxu1 }
 0x590   : > { %v7322_v60 = vpop.f32.mrb[25].mxu1  ;;  %v19124_v6 = vadd.f32 %v18982_v52, %v7320_v46 }
 0x591   : > { %v7323_v26 = vpop.f32.mrb[26].mxu1 }
 0x592   : > { %v19127_v45 = vadd.f32 %v18982_v52, %v7323_v26  ;;  %v7325_v22 = vpop.f32.mrb[27].mxu1  ;;  %13892 = vrot.lane.b32.xlu0 %v13891_v48, %s14694_s25  ;;  %v20625_v47 = vmax.f32 %v19124_v6, 0.0  ;;  %v5259_v48 = vadd.f32 %v18891_v32, %v18886_v56  ;;  %v6721_v56 = vsel %vm3726_vm1, %v5539_v37, %v13810_v40 }
 0x593   : > { %v13809_v22 = vunpack.i.l.bf16 %v13808_v38 }
 0x594   : > { %v20624_v55 = vmax.f32 %v19127_v45, 0.0  ;;  %v5537_v21 = vmax.f32 %v5259_v48, 0.0 }
 0x596   : > { %13902 = vrot.lane.b32.xlu0 %v13901_v12, %s14694_s25  ;;  %v13911_v10 = vpack.i.bf16 %v20625_v47, %v20624_v55 }
 0x597   : > { %v7328_v31 = vpop.f32.mrb[28].mxu1 }
 0x598   : > { %v11637_v43 = vadd.f32 %v18982_v52, %v7328_v31  ;;  %v7330_v3 = vpop.f32.mrb[29].mxu1 }
 0x599   : > { %v7331_v58 = vpop.f32.mrb[30].mxu1  ;;  %v6720_v3 = vsel %vm3726_vm1, %v5537_v21, %v13809_v22 }
 0x59a   : > { %v11638_v34 = vadd.f32 %v18982_v52, %v7331_v58  ;;  %v7333_v24 = vpop.f32.mrb[31].mxu1  ;;  %13912 = vrot.lane.b32.xlu0 %v13911_v10, %s14694_s25  ;;  %v19151_v46 = vmax.f32 %v11637_v43, 0.0 }
 0x59c   : > { %v19153_v16 = vmax.f32 %v11638_v34, 0.0 }
 0x59e   : > { %7481 = vrot.lane.b32.xlu0 %v19149_v42, %s14694_s25  ;;  %v13916_v60 = vpack.i.bf16 %v19153_v16, %v19151_v46  ;;  %v13818_v36 = vpop.permute.xlu1 %13817 }
 0x59f   : > { %v7336_v26 = vpop.f32.mrb[32].mxu1  ;;  %v13820_v4 = vunpack.i.h.bf16 %v13818_v36  ;;  %v13819_v12 = vunpack.i.l.bf16 %v13818_v36 }
 0x5a0   : > { %v7338_v27 = vpop.f32.mrb[33].mxu1  ;;  %13917 = vrot.lane.b32.xlu1 %v13916_v60, %s14694_s25 }
 0x5a1   : > { %v7339_v31 = vpop.f32.mrb[34].mxu1  ;;  %v6726_v24 = vsel %vm4257_vm3, %v6720_v3, %v13819_v12  ;;  %v6727_v38 = vsel %vm4257_vm3, %v6721_v56, %v13820_v4 }
 0x5a2   : > { %v7341_v10 = vpop.f32.mrb[35].mxu1  ;;  %v13828_v43 = vpop.permute.xlu1 %13827 }
 0x5a3   : > { %v13830_v58 = vunpack.i.h.bf16 %v13828_v43  ;;  %v13829_v34 = vunpack.i.l.bf16 %v13828_v43  ;;  %v11639_v10 = vadd.f32 %v18982_v52, %v7336_v26 }
 0x5a5   : > { %v19169_v60 = vsel %vm6575_vm4, %v6726_v24, %v13829_v34  ;;  %v19172_v36 = vsel %vm6575_vm4, %v6727_v38, %v13830_v58  ;;  %v19191_v24 = vmax.f32 %v11639_v10, 0.0 }
 0x5a6   : > { %v20797_v33 = vpack.c.bf16 %v19172_v36, %v19169_v60 }
 0x5a7   : > { %v7344_v48 = vpop.f32.mrb[36].mxu1 }
 0x5a8   : > { %v19177_v37 = vadd.f32 %v18982_v52, %v7344_v48  ;;  %v7346_v40 = vpop.f32.mrb[37].mxu1 }
 0x5a9   : > { %v7347_v22 = vpop.f32.mrb[38].mxu1 }
 0x5aa   : > { %v19180_v27 = vadd.f32 %v18982_v52, %v7347_v22  ;;  %v7349_v12 = vpop.f32.mrb[39].mxu1  ;;  %v20621_v4 = vmax.f32 %v19177_v37, 0.0 }
 0x5ac   : > { %v20622_v21 = vmax.f32 %v19180_v27, 0.0 }
 0x5ae   : > { %v13921_v43 = vpack.i.bf16 %v20621_v4, %v20622_v21 }
 0x5af   : > { %v7352_v56 = vpop.f32.mrb[40].mxu1 }
 0x5b0   : > { %v11643_v3 = vadd.f32 %v18982_v52, %v7352_v56  ;;  %v7354_v58 = vpop.f32.mrb[41].mxu1  ;;  %13922 = vrot.lane.b32.xlu1 %v13921_v43, %s14694_s25 }
 0x5b1   : > { %v7355_v34 = vpop.f32.mrb[42].mxu1 }
 0x5b2   : > { %v11644_v38 = vadd.f32 %v18982_v52, %v7355_v34  ;;  %v7357_v48 = vpop.f32.mrb[43].mxu1  ;;  %v19194_v40 = vmax.f32 %v11643_v3, 0.0 }
 0x5b4   : > { %v19196_v26 = vmax.f32 %v11644_v38, 0.0  ;;  %7489 = vrot.lane.b32.xlu1 %v19191_v24, %s14694_s25  ;;  %v19209_v38 = vld [vmem:[%s20519_s5 + $0x100] sm:$0xff]  }
 0x5b5   : > { %11599 = vmatprep.subr.bf16.mxu1 %v19209_v38 }
 0x5b6   : > { %v13926_v22 = vpack.i.bf16 %v19196_v26, %v19194_v40 }
 0x5b7   : > { %v7360_v12 = vpop.f32.mrb[44].mxu1 }
 0x5b8   : > { %v7362_v56 = vpop.f32.mrb[45].mxu1  ;;  %13927 = vrot.lane.b32.xlu0 %v13926_v22, %s14694_s25 }
 0x5b9   : > { %v7363_v43 = vpop.f32.mrb[46].mxu1 }
 0x5ba   : > { %v7365_v10 = vpop.f32.mrb[47].mxu1 }
 0x5bb   : > { %v11645_v10 = vadd.f32 %v18982_v52, %v7360_v12 }
 0x5bd   : > { %v19225_v47 = vmax.f32 %v11645_v10, 0.0 }
 0x5bf   : > { %v7368_v58 = vpop.f32.mrb[48].mxu1 }
 0x5c0   : > { %v19204_v34 = vadd.f32 %v18982_v52, %v7368_v58  ;;  %v7370_v3 = vpop.f32.mrb[49].mxu1 }
 0x5c1   : > { %v7371_v48 = vpop.f32.mrb[50].mxu1 }
 0x5c2   : > { %v19212_v4 = vadd.f32 %v18982_v52, %v7371_v48  ;;  %v7373_v21 = vpop.f32.mrb[51].mxu1  ;;  %v20629_v22 = vmax.f32 %v19204_v34, 0.0  ;;  %v11640_v48 = vadd.f32 %v18982_v52, %v7339_v31 }
 0x5c4   : > { %v20630_v56 = vmax.f32 %v19212_v4, 0.0 }
 0x5c6   : > { %v13931_v58 = vpack.i.bf16 %v20630_v56, %v20629_v22 }
 0x5c7   : > { %v7376_v3 = vpop.f32.mrb[52].mxu1 }
 0x5c8   : > { %v11649_v2 = vadd.f32 %v18982_v52, %v7376_v3  ;;  %v7378_v55 = vpop.f32.mrb[53].mxu1  ;;  %13932 = vrot.lane.b32.xlu0 %v13931_v58, %s14694_s25  ;;  %v19238_v58 = vmax.f32 %v11640_v48, 0.0  ;;  %v11646_v3 = vadd.f32 %v18982_v52, %v7363_v43 }
 0x5c9   : > { %v7379_v21 = vpop.f32.mrb[54].mxu1  ;;  %v19236_v55 = vadd.f32 %v18982_v52, %v19092_v59 }
 0x5ca   : > { %v11650_v57 = vadd.f32 %v18982_v52, %v7379_v21  ;;  %v7381_v15 = vpop.f32.mrb[55].mxu1  ;;  %v19228_v12 = vmax.f32 %v11649_v2, 0.0  ;;  %v19252_v22 = vmax.f32 %v11646_v3, 0.0 }
 0x5cb   : > { %v20635_v59 = vmax.f32 %v19236_v55, 0.0 }
 0x5cc   : > { %v19230_v20 = vmax.f32 %v11650_v57, 0.0  ;;  %7497 = vrot.lane.b32.xlu0 %v19225_v47, %s14694_s25 }
 0x5ce   : > { %v13936_v31 = vpack.i.bf16 %v19230_v20, %v19228_v12 }
 0x5cf   : > { %v7384_v10 = vpop.f32.mrb[56].mxu1 }
 0x5d0   : > { %v11651_v15 = vadd.f32 %v18982_v52, %v7384_v10  ;;  %v7386_v2 = vpop.f32.mrb[57].mxu1  ;;  %7550 = vrot.lane.b32.xlu0 %v19238_v58, %s14694_s25  ;;  %13937 = vrot.lane.b32.xlu1 %v13936_v31, %s14694_s25  ;;  %v13838_v31 = vpop.permute.xlu1 %13837 }
 0x5d1   : > { %v19247_v57 = vpop.f32.mrb[58].mxu1  ;;  %v5315_v2 = vadd.f32 %v18891_v32, %v18962_v44  ;;  %v13840_v14 = vunpack.i.h.bf16 %v13838_v31 }
 0x5d2   : > { %v19250_v21 = vmax.f32 %v11651_v15, 0.0  ;;  %v7389_v48 = vpop.f32.mrb[59].mxu1 }
 0x5d3   : > { %v5551_v53 = vmax.f32 %v5315_v2, 0.0 }
 0x5d4   : > { %7548 = vrot.lane.b32.xlu1 %v20635_v59, %s14694_s25  ;;  %v13941_v43 = vpack.i.bf16 %v19252_v22, %v19250_v21  ;;  %v13848_v15 = vpop.permute.xlu1 %13847 }
 0x5d8   : > { %13942 = vrot.lane.b32.xlu1 %v13941_v43, %s14694_s25  ;;  %v13858_v44 = vpop.permute.xlu1 %13857 }
 0x5e0   : > { %v13803_v10 = vpop.permute.xlu0 %13802 }
 0x5e1   : > { %v13805_v23 = vunpack.i.h.bf16 %v13803_v10  ;;  %v13804_v48 = vunpack.i.l.bf16 %v13803_v10 }
 0x5e3   : > { %v6738_v59 = vsel %vm3726_vm1, %v5551_v53, %v13804_v48  ;;  %v6739_v39 = vsel %vm3726_vm1, %v5553_v61, %v13805_v23  ;;  %v13839_v53 = vunpack.i.l.bf16 %v13838_v31  ;;  %v13850_v61 = vunpack.i.h.bf16 %v13848_v15 }
 0x5e4   : > { %v13813_v56 = vpop.permute.xlu0 %13812  ;;  %v13860_v48 = vunpack.i.h.bf16 %v13858_v44  ;;  %v20799_v31 = vmax.f32 %v18917_v19, 0.0 }
 0x5e5   : > { %v13815_v3 = vunpack.i.h.bf16 %v13813_v56  ;;  %v13814_v54 = vunpack.i.l.bf16 %v13813_v56 }
 0x5e7   : > { %v6744_v18 = vsel %vm4257_vm3, %v6738_v59, %v13814_v54  ;;  %v6745_v32 = vsel %vm4257_vm3, %v6739_v39, %v13815_v3  ;;  %v13868_v54 = vpop.permute.xlu1 %13867  ;;  %v13859_v3 = vunpack.i.l.bf16 %v13858_v44 }
 0x5e8   : > { %v13823_v51 = vpop.permute.xlu0 %13822 }
 0x5e9   : > { %v13825_v43 = vunpack.i.h.bf16 %v13823_v51  ;;  %v13824_v25 = vunpack.i.l.bf16 %v13823_v51  ;;  %v13849_v51 = vunpack.i.l.bf16 %v13848_v15 }
 0x5eb   : > { %v6750_v9 = vsel %vm6575_vm4, %v6744_v18, %v13824_v25  ;;  %v6751_v10 = vsel %vm6575_vm4, %v6745_v32, %v13825_v43  ;;  %v20798_v43 = vmax.f32 %v18931_v1, 0.0  ;;  %v6722_v32 = vsel %vm3726_vm1, %v20799_v31, %v13839_v53 }
 0x5ec   : > { %v13833_v56 = vpop.permute.xlu0 %13832  ;;  %v6793_v2 = vpack.c.bf16 %v6751_v10, %v6750_v9  ;;  %v6728_v60 = vsel %vm4257_vm3, %v6722_v32, %v13849_v51  ;;  %v13878_v10 = vpop.permute.xlu1 %13877 }
 0x5ed   : > { %v13835_v59 = vunpack.i.h.bf16 %v13833_v56  ;;  %v13834_v39 = vunpack.i.l.bf16 %v13833_v56  ;;  %v6723_v9 = vsel %vm3726_vm1, %v20798_v43, %v13840_v14  ;;  %v20800_v56 = vmax.f32 %v19035_v49, 0.0 }
 0x5ee   : > { %7390 = vmatprep.mubr.bf16.mxu1 %v6793_v2  ;;  %v6729_v36 = vsel %vm4257_vm3, %v6723_v9, %v13850_v61  ;;  %v20801_v2 = vmax.f32 %v18989_v35, 0.0  ;;  %v6734_v51 = vsel %vm6575_vm4, %v6728_v60, %v13859_v3  ;;  %v13870_v35 = vunpack.i.h.bf16 %v13868_v54 }
 0x5ef   : > { %7391 = vmatmul.mubr.bf16.gmra.mrb[60].mxu1 %v20797_v33  ;;  %v6741_v44 = vsel %vm3726_vm1, %v20800_v56, %v13835_v59  ;;  %v6735_v61 = vsel %vm6575_vm4, %v6729_v36, %v13860_v48  ;;  %v13880_v32 = vunpack.i.h.bf16 %v13878_v10 }
 0x5f0   : > { %v13843_v23 = vpop.permute.xlu0 %13842  ;;  %v6740_v1 = vsel %vm3726_vm1, %v20801_v2, %v13834_v39  ;;  %v6794_v9 = vpack.c.bf16 %v6735_v61, %v6734_v51  ;;  %v13869_v39 = vunpack.i.l.bf16 %v13868_v54  ;;  %v13888_v31 = vpop.permute.xlu1 %13887  ;;  %v20805_v51 = vmax.f32 %v19032_v11, 0.0 }
 0x5f1   : > { %v13845_v18 = vunpack.i.h.bf16 %v13843_v23  ;;  %v13844_v25 = vunpack.i.l.bf16 %v13843_v23  ;;  %v13890_v3 = vunpack.i.h.bf16 %v13888_v31  ;;  %v13889_v60 = vunpack.i.l.bf16 %v13888_v31 }
 0x5f2   : > { %v11623_v11 = vadd.f32 %v18982_v52, %v18970_v28 }
 0x5f3   : > { %v6746_v19 = vsel %vm4257_vm3, %v6740_v1, %v13844_v25  ;;  %v6747_v53 = vsel %vm4257_vm3, %v6741_v44, %v13845_v18  ;;  %v13879_v25 = vunpack.i.l.bf16 %v13878_v10  ;;  %v20802_v44 = vmax.f32 %v18960_v7, 0.0 }
 0x5f4   : > { %v13853_v15 = vpop.permute.xlu0 %13852  ;;  %v20803_v1 = vmax.f32 %v18934_v63, 0.0 }
 0x5f5   : > { %v13855_v33 = vunpack.i.h.bf16 %v13853_v15  ;;  %v13854_v14 = vunpack.i.l.bf16 %v13853_v15  ;;  %v6725_v2 = vsel %vm3726_vm1, %v20802_v44, %v13870_v35 }
 0x5f7   : > { %v6752_v23 = vsel %vm6575_vm4, %v6746_v19, %v13854_v14  ;;  %v6753_v49 = vsel %vm6575_vm4, %v6747_v53, %v13855_v33  ;;  %v6724_v33 = vsel %vm3726_vm1, %v20803_v1, %v13869_v39  ;;  %v6731_v14 = vsel %vm4257_vm3, %v6725_v2, %v13880_v32 }
 0x5f8   : > { %v13863_v43 = vpop.permute.xlu0 %13862  ;;  %v6795_v59 = vpack.c.bf16 %v6753_v49, %v6752_v23  ;;  %v6730_v54 = vsel %vm4257_vm3, %v6724_v33, %v13879_v25  ;;  %v20804_v19 = vmax.f32 %v19069_v50, 0.0  ;;  %v11628_v32 = vadd.f32 %v18982_v52, %v19015_v13 }
 0x5f9   : > { %v13865_v18 = vunpack.i.h.bf16 %v13863_v43  ;;  %v13864_v56 = vunpack.i.l.bf16 %v13863_v43  ;;  %v6736_v43 = vsel %vm6575_vm4, %v6730_v54, %v13889_v60  ;;  %v20806_v33 = vmax.f32 %v18986_v30, 0.0 }
 0x5fa   : > { %7398 = vmatprep.mubr.bf16.mxu1 %v6795_v59  ;;  %v6737_v59 = vsel %vm6575_vm4, %v6731_v14, %v13890_v3  ;;  %v7420_v2 = vmax.f32 %v11628_v32, 0.0 }
 0x5fb   : > { %7399 = vmatmul.mubr.bf16.gmra.mrb[64].mxu1 %v6794_v9  ;;  %v6743_v53 = vsel %vm3726_vm1, %v20804_v19, %v13865_v18  ;;  %v6742_v61 = vsel %vm3726_vm1, %v20805_v51, %v13864_v56  ;;  %v13898_v9 = vpop.permute.xlu1 %13897  ;;  %v6796_v18 = vpack.c.bf16 %v6737_v59, %v6736_v43  ;;  %v20807_v19 = vmax.f32 %v19013_v0, 0.0  ;;  %v14046_v0 = vld [vmem:[%s20519_s5 + $0x110] sm:$0xff]  }
 0x5fc   : > { %v13873_v15 = vpop.permute.xlu0 %13872  ;;  %v13900_v56 = vunpack.i.h.bf16 %v13898_v9  ;;  %v13899_v3 = vunpack.i.l.bf16 %v13898_v9 }
 0x5fd   : > { %v13875_v48 = vunpack.i.h.bf16 %v13873_v15  ;;  %v13874_v36 = vunpack.i.l.bf16 %v13873_v15 }
 0x5fe   : > { %v7580_v54 = vsel %vm4257_vm3, %v20806_v33, %v13900_v56  ;;  %v20810_v56 = vmax.f32 %v19127_v45, 0.0  ;;  %v20811_v45 = vmax.f32 %v19236_v55, 0.0 }
 0x5ff   : > { %v6748_v49 = vsel %vm4257_vm3, %v6742_v61, %v13874_v36  ;;  %v6749_v63 = vsel %vm4257_vm3, %v6743_v53, %v13875_v48  ;;  %v7415_v48 = vmax.f32 %v11623_v11, 0.0 }
 0x600   : > { %v13883_v10 = vpop.permute.xlu0 %13882 }
 0x601   : > { %v13885_v7 = vunpack.i.h.bf16 %v13883_v10  ;;  %v13884_v23 = vunpack.i.l.bf16 %v13883_v10  ;;  %v7579_v14 = vsel %vm4257_vm3, %v7415_v48, %v13899_v3  ;;  %v13908_v10 = vpop.permute.xlu1 %13907 }
 0x602   : > { %v13909_v30 = vunpack.i.l.bf16 %v13908_v10 }
 0x603   : > { %v6754_v35 = vsel %vm6575_vm4, %v6748_v49, %v13884_v23  ;;  %v6755_v50 = vsel %vm6575_vm4, %v6749_v63, %v13885_v7  ;;  %v7623_v7 = vpack.c.bf16 %v7580_v54, %v7579_v14  ;;  %v14045_v23 = vld [vmem:[%s20519_s5 + $0x108] sm:$0xff]   ;;  %v13910_v49 = vunpack.i.h.bf16 %v13908_v10 }
 0x604   : > { %v19315_v39 = vpop.permute.xlu0 %13892  ;;  %v6797_v31 = vpack.c.bf16 %v6755_v50, %v6754_v35  ;;  %v7581_v35 = vsel %vm4257_vm3, %v18998_v5, %v13909_v30 }
 0x605   : > { %v13895_v25 = vunpack.i.h.bf16 %v19315_v39  ;;  %v13894_v15 = vunpack.i.l.bf16 %v19315_v39  ;;  %v7582_v50 = vsel %vm4257_vm3, %v19017_v17, %v13910_v49 }
 0x606   : > { %7406 = vmatprep.mubr.bf16.mxu1 %v6797_v31 }
 0x607   : > { %7407 = vmatmul.mubr.bf16.gmra.mrb[68].mxu1 %v6796_v18  ;;  %v7595_v60 = vsel %vm4257_vm3, %v18998_v5, %v13895_v25  ;;  %v7596_v28 = vsel %vm4257_vm3, %v19017_v17, %v13894_v15  ;;  %v7628_v18 = vpack.c.bf16 %v7582_v50, %v7581_v35  ;;  %v20809_v5 = vmax.f32 %v19124_v6, 0.0 }
 0x608   : > { %v13903_v36 = vpop.permute.xlu0 %13902  ;;  %v7624_v44 = vpack.c.bf16 %v7596_v28, %v7595_v60  ;;  %v14047_v28 = vld [vmem:[%s20519_s5 + $0x118] sm:$0xff]   ;;  %v20813_v50 = vmax.f32 %v19180_v27, 0.0 }
 0x609   : > { %v13905_v13 = vunpack.i.h.bf16 %v13903_v36  ;;  %v13904_v1 = vunpack.i.l.bf16 %v13903_v36 }
 0x60a   : > { %8010 = vmatprep.mubr.bf16.mxu1 %v7624_v44  ;;  %v20812_v44 = vmax.f32 %v19095_v62, 0.0 }
 0x60b   : > { %v7597_v53 = vsel %vm4257_vm3, %v20807_v19, %v13904_v1  ;;  %v7598_v51 = vsel %vm4257_vm3, %v7420_v2, %v13905_v13  ;;  %v7585_v25 = vsel %vm4257_vm3, %v19121_v29, %v13905_v13 }
 0x60c   : > { %v13913_v61 = vpop.permute.xlu0 %13912  ;;  %v7629_v63 = vpack.c.bf16 %v7598_v51, %v7597_v53  ;;  %v7583_v2 = vsel %vm4257_vm3, %v20812_v44, %v13894_v15 }
 0x60d   : > { %v13915_v43 = vunpack.i.h.bf16 %v13913_v61  ;;  %v13914_v59 = vunpack.i.l.bf16 %v13913_v61 }
 0x60f   : > { %8011 = vmatmul.mubr.bf16.vlgmr.msra.gmra.mrb[72].mxu1 %v7623_v7  ;;  %v7599_v39 = vsel %vm4257_vm3, %v19121_v29, %v13915_v43  ;;  %v7600_v31 = vsel %vm4257_vm3, %v19113_v41, %v13914_v59  ;;  %v7587_v17 = vsel %vm4257_vm3, %v20809_v5, %v13914_v59 }
 0x610   : > { %8018 = vmatprep.mubr.bf16.mxu1 %v7629_v63  ;;  %11600 = vmatpush3.bf16.msra.mxu1 %v19209_v38  ;;  %v20808_v38 = vmax.f32 %v19088_v8, 0.0  ;;  %v7634_v60 = vpack.c.bf16 %v7600_v31, %v7599_v39  ;;  %v7482_v33 = vpop.permute.xlu0 %7481 }
 0x611   : > { %11601 = vmatprep.subr.bf16.mxu1 %v14045_v23  ;;  %v7586_v54 = vsel %vm4257_vm3, %v19113_v41, %v7482_v33  ;;  %v7632_v33 = vpack.c.bf16 %v19238_v58, %v19191_v24 }
 0x612   : > { %v13918_v9 = vpop.permute.xlu1 %13917  ;;  %v7584_v32 = vsel %vm4257_vm3, %v20808_v38, %v13904_v1  ;;  %v7638_v53 = vpack.c.bf16 %v7586_v54, %v7585_v25 }
 0x613   : > { %v13919_v11 = vunpack.i.l.bf16 %v13918_v9  ;;  %v7625_v29 = vpack.c.bf16 %v7585_v25, %v7584_v32  ;;  %v13920_v48 = vunpack.i.h.bf16 %v13918_v9  ;;  %v7633_v13 = vpack.c.bf16 %v7584_v32, %v7583_v2 }
 0x614   : > { %11602 = vmatpush3.bf16.msra.mxu1 %v14045_v23  ;;  %v20814_v32 = vmax.f32 %v19177_v37, 0.0  ;;  %v20815_v37 = vmax.f32 %v19212_v4, 0.0 }
 0x615   : > { %v19359_v3 = vsel %vm4257_vm3, %v20810_v56, %v13919_v11  ;;  %11603 = vmatprep.subr.bf16.mxu1 %v14046_v0  ;;  %v7601_v6 = vsel %vm4257_vm3, %v19149_v42, %v13919_v11  ;;  %v7602_v36 = vsel %vm4257_vm3, %v20811_v45, %v13920_v48  ;;  %v7589_v61 = vsel %vm4257_vm3, %v19151_v46, %v13920_v48 }
 0x616   : > { %v7626_v8 = vpack.c.bf16 %v19359_v3, %v7587_v17  ;;  %v7639_v1 = vpack.c.bf16 %v7602_v36, %v7601_v6 }
 0x617   : > { %8019 = vmatmul.mubr.bf16.gmra.mrb[76].mxu1 %v7628_v18 }
 0x618   : > { %8026 = vmatprep.mubr.bf16.mxu1 %v7634_v60  ;;  %8107 = vmatprep.mubr.bf16.mxu0 %v7626_v8 }
 0x619   : > { %8108 = vmatmul.mubr.bf16.vlgmr.msra.gmra.mrb[196].mxu0 %v7625_v29  ;;  %11604 = vmatpush3.bf16.msra.mxu1 %v14046_v0 }
 0x61a   : > { %11605 = vmatprep.subr.bf16.mxu1 %v14047_v28 }
 0x61d   : > { %11606 = vmatpush3.bf16.msra.mxu1 %v14047_v28 }
 0x61f   : > { %8027 = vmatmul.mubr.bf16.gmra.mrb[80].mxu1 %v7633_v13 }
 0x620   : > { %8034 = vmatprep.mubr.bf16.mxu1 %v7639_v1  ;;  %v7627_v1 = vpack.c.bf16 %v19153_v16, %v19151_v46 }
 0x622   : > { %v13923_v14 = vpop.permute.xlu1 %13922 }
 0x623   : > { %v13925_v10 = vunpack.i.h.bf16 %v13923_v14  ;;  %v13924_v19 = vunpack.i.l.bf16 %v13923_v14  ;;  %v7635_v14 = vpack.c.bf16 %v7589_v61, %v19359_v3 }
 0x625   : > { %v7603_v55 = vsel %vm4257_vm3, %v19151_v46, %v13925_v10  ;;  %v7604_v62 = vsel %vm4257_vm3, %v19153_v16, %v13924_v19  ;;  %v7591_v25 = vsel %vm4257_vm3, %v20814_v32, %v13924_v19  ;;  %v7637_v10 = vpack.c.bf16 %v19196_v26, %v19194_v40 }
 0x626   : > { %v7490_v15 = vpop.permute.xlu1 %7489  ;;  %v7643_v51 = vpack.c.bf16 %v7604_v62, %v7603_v55 }
 0x627   : > { %v19383_v7 = vsel %vm4257_vm3, %v19153_v16, %v7490_v15  ;;  %8035 = vmatmul.mubr.bf16.gmra.mrb[84].mxu1 %v7638_v53  ;;  %v7642_v16 = vpack.c.bf16 %v19252_v22, %v19225_v47 }
 0x628   : > { %v7631_v41 = vpack.c.bf16 %v19383_v7, %v7589_v61  ;;  %8042 = vmatprep.mubr.bf16.mxu1 %v7643_v51 }
 0x62a   : > { %v13928_v23 = vpop.permute.xlu0 %13927  ;;  %8115 = vmatprep.mubr.bf16.mxu0 %v7631_v41 }
 0x62b   : > { %v13930_v49 = vunpack.i.h.bf16 %v13928_v23  ;;  %v13929_v30 = vunpack.i.l.bf16 %v13928_v23 }
 0x62d   : > { %v7605_v63 = vsel %vm4257_vm3, %v19191_v24, %v13929_v30  ;;  %v7606_v43 = vsel %vm4257_vm3, %v19238_v58, %v13930_v49  ;;  %v7592_v11 = vsel %vm4257_vm3, %v20813_v50, %v13929_v30  ;;  %v7593_v6 = vsel %vm4257_vm3, %v19194_v40, %v13930_v49 }
 0x62e   : > { %v7647_v59 = vpack.c.bf16 %v7606_v43, %v7605_v63  ;;  %v7636_v18 = vpack.c.bf16 %v7592_v11, %v7591_v25  ;;  %v11652_v58 = vadd.f32 %v18982_v52, %v19247_v57  ;;  %v7644_v55 = vpack.c.bf16 %v7593_v6, %v7592_v11 }
 0x62f   : > { %8043 = vmatmul.mubr.bf16.gmra.mrb[88].mxu1 %v7626_v8 }
 0x630   : > { %8050 = vmatprep.mubr.bf16.mxu1 %v7647_v59 }
 0x637   : > { %8051 = vmatmul.mubr.bf16.gmra.mrb[92].mxu1 %v7631_v41 }
 0x63a   : > { %v13933_v0 = vpop.permute.xlu0 %13932 }
 0x63b   : > { %v13935_v9 = vunpack.i.h.bf16 %v13933_v0  ;;  %v13934_v35 = vunpack.i.l.bf16 %v13933_v0 }
 0x63d   : > { %v7607_v39 = vsel %vm4257_vm3, %v19194_v40, %v13934_v35  ;;  %v7608_v31 = vsel %vm4257_vm3, %v19196_v26, %v13935_v9  ;;  %v7646_v40 = vpack.c.bf16 %v19230_v20, %v19228_v12 }
 0x63e   : > { %v7651_v38 = vpack.c.bf16 %v7608_v31, %v7607_v39  ;;  %v7498_v5 = vpop.permute.xlu0 %7497  ;;  %v14050_v31 = vld [vmem:[%s20521_s7 + $0x4] ss:$16 sps:$4 sm:$0xff]  }
 0x63f   : > { %v7594_v60 = vsel %vm4257_vm3, %v19196_v26, %v7498_v5  ;;  %v14053_v5 = vld [vmem:[%s20521_s7 + $0xc] ss:$16 sps:$4 sm:$0xff]   ;;  %9891 = vmatprep.subr.bf16.mxu0 %v14050_v31 }
 0x640   : > { %8058 = vmatprep.mubr.bf16.mxu1 %v7651_v38  ;;  %v7641_v2 = vpack.c.bf16 %v7594_v60, %v7593_v6  ;;  %v19485_v38 = vld [vmem:[%s20518_s4] ss:$0 sm:$0xff]  ;;  %10055 = vmatprep.subr.bf16.mxu1 %v14053_v5  ;;  %v14057_v6 = vld [vmem:[%s20521_s7 + $0x28] ss:$16 sps:$4 sm:$0xff]   ;;  %v14089_v31 = vld [vmem:[%s20521_s7 + $0xcc] ss:$16 sps:$4 sm:$0xff]  }
 0x641   : > { %8059 = vmatmul.mubr.bf16.gmra.mrb[96].mxu1 %v7636_v18  ;;  %v14084_v5 = vld [vmem:[%s20521_s7 + $0xc0] ss:$16 sps:$4 sm:$0xff]  }
 0x642   : > { %v13938_v17 = vpop.permute.xlu1 %13937 }
 0x643   : > { %v13940_v56 = vunpack.i.h.bf16 %v13938_v17  ;;  %v13939_v27 = vunpack.i.l.bf16 %v13938_v17 }
 0x645   : > { %v7609_v8 = vsel %vm4257_vm3, %v19225_v47, %v13939_v27  ;;  %v7610_v28 = vsel %vm4257_vm3, %v19252_v22, %v13940_v56  ;;  %v19409_v29 = vsel %vm4257_vm3, %v20815_v37, %v13939_v27  ;;  %v19413_v48 = vsel %vm4257_vm3, %v19228_v12, %v13940_v56  ;;  %v14056_v56 = vld [vmem:[%s20521_s7 + $0x24] ss:$16 sps:$4 sm:$0xff]   ;;  %v14059_v37 = vld [vmem:[%s20521_s7 + $0x2c] ss:$16 sps:$4 sm:$0xff]  }
 0x646   : > { %v7549_v45 = vpop.permute.xlu1 %7548  ;;  %v7655_v36 = vpack.c.bf16 %v7610_v28, %v7609_v8  ;;  %v7652_v44 = vpack.c.bf16 %v19413_v48, %v19409_v29  ;;  %v7444_v22 = vmax.f32 %v11652_v58, 0.0  ;;  %v14054_v28 = vld [vmem:[%s20521_s7 + $0x20] ss:$16 sps:$4 sm:$0xff]  }
 0x647   : > { %v7611_v13 = vsel %vm4257_vm3, %v19149_v42, %v7549_v45  ;;  %v7551_v42 = vpop.permute.xlu0 %7550  ;;  %v14062_v45 = vld [vmem:[%s20521_s7 + $0x44] ss:$16 sps:$4 sm:$0xff]  }
 0x648   : > { %v7630_v4 = vpack.c.bf16 %v7611_v13, %v7586_v54  ;;  %8066 = vmatprep.mubr.bf16.mxu1 %v7655_v36  ;;  %v7612_v46 = vsel %vm4257_vm3, %v19191_v24, %v7551_v42  ;;  %v20816_v54 = vmax.f32 %v19204_v34, 0.0  ;;  %v7650_v12 = vpack.c.bf16 %v7444_v22, %v19250_v21  ;;  %v14065_v13 = vld [vmem:[%s20521_s7 + $0x4c] ss:$16 sps:$4 sm:$0xff]   ;;  %v19527_v42 = vld [vmem:[%s20520_s6] ss:$0 sm:$0xff] }
 0x649   : > { %8067 = vmatmul.mubr.bf16.gmra.mrb[100].mxu1 %v7641_v2  ;;  %v7640_v26 = vpack.c.bf16 %v7612_v46, %v19383_v7 }
 0x64a   : > { %8116 = vmatmul.mubr.bf16.gmra.mrb[200].mxu0 %v7630_v4  ;;  %11607 = vmatprep.mubr.msk.bf16.mxu1 %vm4257_vm3, %v7627_v1  ;;  %v13943_v3 = vpop.permute.xlu1 %13942  ;;  %v7618_v19 = vsel %vm4257_vm3, %v20816_v54, %v13935_v9  ;;  %v14060_v1 = vld [vmem:[%s20521_s7 + $0x40] ss:$16 sps:$4 sm:$0xff]  }
 0x64b   : > { %8123 = vmatprep.mubr.bf16.mxu0 %v7636_v18  ;;  %v7645_v24 = vpack.c.bf16 %v19409_v29, %v7618_v19  ;;  %v13944_v53 = vunpack.i.l.bf16 %v13943_v3  ;;  %v13945_v34 = vunpack.i.h.bf16 %v13943_v3  ;;  %v14051_v18 = vld [vmem:[%s20521_s7 + $0x8] ss:$16 sps:$4 sm:$0xff]  }
 0x64d   : > { %v19448_v57 = vsel %vm4257_vm3, %v19230_v20, %v13944_v53  ;;  %v7613_v15 = vsel %vm4257_vm3, %v19225_v47, %v13945_v34  ;;  %v14074_v53 = vld [vmem:[%s20521_s7 + $0x84] ss:$16 sps:$4 sm:$0xff]   ;;  %v14075_v34 = vld [vmem:[%s20521_s7 + $0x88] ss:$16 sps:$4 sm:$0xff]  }
 0x64e   : > { %v7649_v62 = vpack.c.bf16 %v19448_v57, %v19413_v48  ;;  %v7648_v51 = vpack.c.bf16 %v7613_v15, %v7594_v60 }
 0x651   : > { %11608 = vmatmul.mubr.msk.bf16.vlgmr.msra.gmra.mrb[104].mxu1 %vm4257_vm3, %v7632_v33 }
 0x652   : > { %8124 = vmatmul.mubr.bf16.gmra.mrb[204].mxu0 %v7635_v14  ;;  %11611 = vmatprep.mubr.msk.bf16.mxu1 %vm4257_vm3, %v7637_v10  ;;  %v14063_v14 = vld [vmem:[%s20521_s7 + $0x48] ss:$16 sps:$4 sm:$0xff]   ;;  %v14068_v10 = vld [vmem:[%s20521_s7 + $0x64] ss:$16 sps:$4 sm:$0xff]  }
 0x653   : > { %8131 = vmatprep.mubr.bf16.mxu0 %v7641_v2  ;;  %10056 = vmatpush1.bf16.msra.mxu1 %v14051_v18 }
 0x654   : > { %10057 = vmatprep.subr.bf16.mxu1 %v14059_v37 }
 0x657   : > { %10058 = vmatpush1.bf16.msra.mxu1 %v14057_v6 }
 0x658   : > { %10059 = vmatprep.subr.bf16.mxu1 %v14065_v13 }
 0x659   : > { %11612 = vmatmul.mubr.msk.bf16.gmra.mrb[108].mxu1 %vm4257_vm3, %v7642_v16  ;;  %v14071_v16 = vld [vmem:[%s20521_s7 + $0x6c] ss:$16 sps:$4 sm:$0xff]  }
 0x65a   : > { %8132 = vmatmul.mubr.bf16.gmra.mrb[208].mxu0 %v7640_v26  ;;  %11615 = vmatprep.mubr.msk.bf16.mxu1 %vm4257_vm3, %v7646_v40  ;;  %v14066_v26 = vld [vmem:[%s20521_s7 + $0x60] ss:$16 sps:$4 sm:$0xff]  }
 0x65b   : > { %8139 = vmatprep.mubr.bf16.mxu0 %v7645_v24  ;;  %10060 = vmatpush1.bf16.msra.mxu1 %v14063_v14  ;;  %v14069_v24 = vld [vmem:[%s20521_s7 + $0x68] ss:$16 sps:$4 sm:$0xff]   ;;  %v14096_v14 = vld [vmem:[%s20521_s7 + $0x100] ss:$16 sps:$4 sm:$0xff]  }
 0x65c   : > { %10061 = vmatprep.subr.bf16.mxu1 %v14071_v16  ;;  %v14104_v16 = vld [vmem:[%s20521_s7 + $0x124] ss:$16 sps:$4 sm:$0xff]  }
 0x65f   : > { %10062 = vmatpush1.bf16.msra.mxu1 %v14069_v24 }
 0x661   : > { %11616 = vmatmul.mubr.msk.bf16.gmra.mrb[112].mxu1 %vm4257_vm3, %v7650_v12  ;;  %v14072_v12 = vld [vmem:[%s20521_s7 + $0x80] ss:$16 sps:$4 sm:$0xff]  }
 0x662   : > { %8140 = vmatmul.mubr.bf16.gmra.mrb[212].mxu0 %v7644_v55 }
 0x663   : > { %8147 = vmatprep.mubr.bf16.mxu0 %v7649_v62  ;;  %v14080_v62 = vld [vmem:[%s20521_s7 + $0xa4] ss:$16 sps:$4 sm:$0xff]  }
 0x66a   : > { %8148 = vmatmul.mubr.bf16.gmra.mrb[216].mxu0 %v7648_v51  ;;  %v14083_v51 = vld [vmem:[%s20521_s7 + $0xac] ss:$16 sps:$4 sm:$0xff]  }
 0x6c2   : > { %v19456_v61 = vpop.f32.mrb[60].mxu1 }
 0x6c3   : > { %v7394_v20 = vpop.f32.mrb[61].mxu1 }
 0x6c4   : > { %v7395_v7 = vpop.f32.mrb[62].mxu1 }
 0x6c5   : > { %v7397_v41 = vpop.f32.mrb[63].mxu1  ;;  %v19459_v23 = vadd.f32 %v18982_v52, %v7395_v7 }
 0x6c7   : > { %v7446_v59 = vmax.f32 %v19459_v23, 0.0 }
 0x6ce   : > { %v7400_v49 = vpop.f32.mrb[64].mxu1 }
 0x6cf   : > { %v11655_v30 = vadd.f32 %v18982_v52, %v7400_v49  ;;  %v7402_v63 = vpop.f32.mrb[65].mxu1 }
 0x6d0   : > { %v7403_v43 = vpop.f32.mrb[66].mxu1  ;;  %v14078_v63 = vld [vmem:[%s20521_s7 + $0xa0] ss:$16 sps:$4 sm:$0xff]  }
 0x6d1   : > { %v19463_v0 = vmax.f32 %v11655_v30, 0.0  ;;  %v11656_v47 = vadd.f32 %v18982_v52, %v7403_v43  ;;  %v7405_v9 = vpop.f32.mrb[67].mxu1  ;;  %v14048_v52 = vld [vmem:[%s20521_s7] ss:$16 sps:$4 sm:$0xff]  }
 0x6d2   : > { %9892 = vmatpush1.bf16.msra.mxu0 %v14048_v52 }
 0x6d3   : > { %v13946_v35 = vpack.i.bf16 %v19463_v0, %v7446_v59  ;;  %v19469_v50 = vmax.f32 %v11656_v47, 0.0  ;;  %9893 = vmatprep.subr.bf16.mxu0 %v14056_v56 }
 0x6d5   : > { %v7654_v11 = vpack.c.bf16 %v19469_v50, %v19463_v0  ;;  %13947 = vrot.lane.b32.xlu0 %v13946_v35, %s14694_s25 }
 0x6d6   : > { %9894 = vmatpush1.bf16.msra.mxu0 %v14054_v28  ;;  %v14095_v28 = vld [vmem:[%s20521_s7 + $0xec] ss:$16 sps:$4 sm:$0xff]  }
 0x6d7   : > { %11619 = vmatprep.mubr.msk.bf16.mxu1 %vm4257_vm3, %v7654_v11  ;;  %9895 = vmatprep.subr.bf16.mxu0 %v14062_v45  ;;  %v14081_v11 = vld [vmem:[%s20521_s7 + $0xa8] ss:$16 sps:$4 sm:$0xff]  }
 0x6d9   : > { %7556 = vrot.lane.b32.xlu0 %v7444_v22, %s14694_s25  ;;  %v14077_v22 = vld [vmem:[%s20521_s7 + $0x8c] ss:$16 sps:$4 sm:$0xff]  }
 0x6da   : > { %v7408_v39 = vpop.f32.mrb[68].mxu1  ;;  %9896 = vmatpush1.bf16.msra.mxu0 %v14060_v1  ;;  %10063 = vmatprep.subr.bf16.mxu1 %v14077_v22  ;;  %v14098_v1 = vld [vmem:[%s20521_s7 + $0x104] ss:$16 sps:$4 sm:$0xff]   ;;  %v14105_v22 = vld [vmem:[%s20521_s7 + $0x128] ss:$16 sps:$4 sm:$0xff]  }
 0x6db   : > { %v11657_v32 = vadd.f32 %v19485_v38, %v7408_v39  ;;  %v7410_v25 = vpop.f32.mrb[69].mxu1  ;;  %9897 = vmatprep.subr.bf16.mxu0 %v14068_v10  ;;  %10064 = vmatpush1.bf16.msra.mxu1 %v14075_v34  ;;  %v14086_v39 = vld [vmem:[%s20521_s7 + $0xc4] ss:$16 sps:$4 sm:$0xff]   ;;  %v14108_v34 = vld [vmem:[%s20521_s7 + $0x140] ss:$16 sps:$4 sm:$0xff]  }
 0x6dc   : > { %v7411_v17 = vpop.f32.mrb[70].mxu1  ;;  %10065 = vmatprep.subr.bf16.mxu1 %v14083_v51  ;;  %v14116_v51 = vld [vmem:[%s20521_s7 + $0x164] ss:$16 sps:$4 sm:$0xff]  }
 0x6dd   : > { %v7449_v27 = vmax.f32 %v11657_v32, 0.0  ;;  %v11658_v60 = vadd.f32 %v19485_v38, %v7411_v17  ;;  %v7413_v8 = vpop.f32.mrb[71].mxu1 }
 0x6de   : > { %9898 = vmatpush1.bf16.msra.mxu0 %v14066_v26 }
 0x6df   : > { %v13951_v36 = vpack.i.bf16 %v7449_v27, %v19469_v50  ;;  %v7450_v2 = vmax.f32 %v11658_v60, 0.0  ;;  %9899 = vmatprep.subr.bf16.mxu0 %v14074_v53  ;;  %10066 = vmatpush1.bf16.msra.mxu1 %v14081_v11  ;;  %v14092_v60 = vld [vmem:[%s20521_s7 + $0xe4] ss:$16 sps:$4 sm:$0xff]   ;;  %v14117_v11 = vld [vmem:[%s20521_s7 + $0x168] ss:$16 sps:$4 sm:$0xff]  }
 0x6e0   : > { %10067 = vmatprep.subr.bf16.mxu1 %v14089_v31  ;;  %v14120_v31 = vld [vmem:[%s20521_s7 + $0x180] ss:$16 sps:$4 sm:$0xff]  }
 0x6e1   : > { %v7658_v4 = vpack.c.bf16 %v7450_v2, %v7449_v27  ;;  %13952 = vrot.lane.b32.xlu1 %v13951_v36, %s14694_s25  ;;  %v14087_v27 = vld [vmem:[%s20521_s7 + $0xc8] ss:$16 sps:$4 sm:$0xff]   ;;  %v14090_v36 = vld [vmem:[%s20521_s7 + $0xe0] ss:$16 sps:$4 sm:$0xff]  }
 0x6e2   : > { %v11227_v33 = vpop.f32.mrb[72].mxu1  ;;  %9900 = vmatpush1.bf16.msra.mxu0 %v14072_v12  ;;  %v14110_v12 = vld [vmem:[%s20521_s7 + $0x144] ss:$16 sps:$4 sm:$0xff]  }
 0x6e3   : > { %v11228_v46 = vpop.f32.mrb[73].mxu1  ;;  %11620 = vmatmul.mubr.msk.bf16.gmra.mrb[116].mxu1 %vm4257_vm3, %v7658_v4  ;;  %9901 = vmatprep.subr.bf16.mxu0 %v14080_v62  ;;  %v14093_v4 = vld [vmem:[%s20521_s7 + $0xe8] ss:$16 sps:$4 sm:$0xff]  }
 0x6e4   : > { %v11229_v58 = vadd.f32 %v11228_v46, %v11227_v33  ;;  %v11230_v3 = vpop.f32.mrb[74].mxu1  ;;  %10068 = vmatpush1.bf16.msra.mxu1 %v14087_v27  ;;  %v14101_v33 = vld [vmem:[%s20521_s7 + $0x10c] ss:$16 sps:$4 sm:$0xff]   ;;  %v14099_v46 = vld [vmem:[%s20521_s7 + $0x108] ss:$16 sps:$4 sm:$0xff]  }
 0x6e5   : > { %v11231_v40 = vpop.f32.mrb[75].mxu1  ;;  %10069 = vmatprep.subr.bf16.mxu1 %v14095_v28  ;;  %v14131_v27 = vld [vmem:[%s20521_s7 + $0x1ac] ss:$16 sps:$4 sm:$0xff]  }
 0x6e6   : > { %v8013_v54 = vadd.f32 %v11229_v58, %v19527_v42  ;;  %v11232_v19 = vadd.f32 %v11231_v40, %v11230_v3  ;;  %9902 = vmatpush1.bf16.msra.mxu0 %v14078_v63  ;;  %v14107_v3 = vld [vmem:[%s20521_s7 + $0x12c] ss:$16 sps:$4 sm:$0xff]   ;;  %v14114_v63 = vld [vmem:[%s20521_s7 + $0x160] ss:$16 sps:$4 sm:$0xff]  }
 0x6e7   : > { %9903 = vmatprep.subr.bf16.mxu0 %v14086_v39  ;;  %v14122_v39 = vld [vmem:[%s20521_s7 + $0x184] ss:$16 sps:$4 sm:$0xff]  }
 0x6e8   : > { %v8016_v32 = vadd.f32 %v11232_v19, %v19527_v42  ;;  %10070 = vmatpush1.bf16.msra.mxu1 %v14093_v4  ;;  %v14102_v19 = vld [vmem:[%s20521_s7 + $0x120] ss:$16 sps:$4 sm:$0xff]   ;;  %v14134_v4 = vld [vmem:[%s20521_s7 + $0x1c4] ss:$16 sps:$4 sm:$0xff]  }
 0x6e9   : > { %10071 = vmatprep.subr.bf16.mxu1 %v14101_v33  ;;  %v14132_v33 = vld [vmem:[%s20521_s7 + $0x1c0] ss:$16 sps:$4 sm:$0xff]  }
 0x6ea   : > { %v11233_v55 = vpop.f32.mrb[76].mxu1  ;;  %9904 = vmatpush1.bf16.msra.mxu0 %v14084_v5  ;;  %v14128_v5 = vld [vmem:[%s20521_s7 + $0x1a4] ss:$16 sps:$4 sm:$0xff]  }
 0x6eb   : > { %v11234_v15 = vpop.f32.mrb[77].mxu1  ;;  %9905 = vmatprep.subr.bf16.mxu0 %v14092_v60 }
 0x6ec   : > { %v11235_v20 = vadd.f32 %v11234_v15, %v11233_v55  ;;  %v11236_v7 = vpop.f32.mrb[78].mxu1  ;;  %v11291_v41 = vpop.f32.mrb[196].mxu0  ;;  %10072 = vmatpush1.bf16.msra.mxu1 %v14099_v46  ;;  %v14113_v55 = vld [vmem:[%s20521_s7 + $0x14c] ss:$16 sps:$4 sm:$0xff]   ;;  %v14111_v15 = vld [vmem:[%s20521_s7 + $0x148] ss:$16 sps:$4 sm:$0xff]  }
 0x6ed   : > { %v11237_v49 = vpop.f32.mrb[79].mxu1  ;;  %v11292_v30 = vpop.f32.mrb[197].mxu0  ;;  %10073 = vmatprep.subr.bf16.mxu1 %v14107_v3 }
 0x6ee   : > { %v19562_v43 = vadd.f32 %v11235_v20, %v19527_v42  ;;  %v19564_v47 = vadd.f32 %v11237_v49, %v11236_v7  ;;  %v11293_v9 = vadd.f32 %v11292_v30, %v11291_v41  ;;  %v11294_v35 = vpop.f32.mrb[198].mxu0  ;;  %9906 = vmatpush1.bf16.msra.mxu0 %v14090_v36  ;;  %v14119_v7 = vld [vmem:[%s20521_s7 + $0x16c] ss:$16 sps:$4 sm:$0xff]   ;;  %v14129_v36 = vld [vmem:[%s20521_s7 + $0x1a8] ss:$16 sps:$4 sm:$0xff]  }
 0x6ef   : > { %v11295_v52 = vpop.f32.mrb[199].mxu0  ;;  %9907 = vmatprep.subr.bf16.mxu0 %v14098_v1  ;;  %v14137_v1 = vld [vmem:[%s20521_s7 + $0x1cc] ss:$16 sps:$4 sm:$0xff]  }
 0x6f0   : > { %v11296_v25 = vadd.f32 %v11295_v52, %v11294_v35  ;;  %v19576_v18 = vadd.f32 %v11293_v9, %v8013_v54  ;;  %10074 = vmatpush1.bf16.msra.mxu1 %v14105_v22  ;;  %v14125_v52 = vld [vmem:[%s20521_s7 + $0x18c] ss:$16 sps:$4 sm:$0xff]  }
 0x6f1   : > { %10075 = vmatprep.subr.bf16.mxu1 %v14113_v55 }
 0x6f2   : > { %v11239_v17 = vpop.f32.mrb[80].mxu1  ;;  %v19581_v56 = vadd.f32 %v11296_v25, %v8016_v32  ;;  %9908 = vmatpush1.bf16.msra.mxu0 %v14096_v14  ;;  %v14123_v25 = vld [vmem:[%s20521_s7 + $0x188] ss:$16 sps:$4 sm:$0xff]  }
 0x6f3   : > { %v11240_v8 = vpop.f32.mrb[81].mxu1  ;;  %9909 = vmatprep.subr.bf16.mxu0 %v14104_v16  ;;  %v14135_v14 = vld [vmem:[%s20521_s7 + $0x1c8] ss:$16 sps:$4 sm:$0xff]  }
 0x6f4   : > { %v11241_v37 = vadd.f32 %v11240_v8, %v11239_v17  ;;  %v11242_v6 = vpop.f32.mrb[82].mxu1  ;;  %10076 = vmatpush1.bf16.msra.mxu1 %v14111_v15 }
 0x6f5   : > { %v11243_v45 = vpop.f32.mrb[83].mxu1  ;;  %10077 = vmatprep.subr.bf16.mxu1 %v14119_v7 }
 0x6f6   : > { %v19596_v2 = vadd.f32 %v11241_v37, %v19527_v42  ;;  %v19598_v13 = vadd.f32 %v11243_v45, %v11242_v6  ;;  %9910 = vmatpush1.bf16.msra.mxu0 %v14102_v19  ;;  %v14126_v37 = vld [vmem:[%s20521_s7 + $0x1a0] ss:$16 sps:$4 sm:$0xff]  }
 0x6f7   : > { %9911 = vmatprep.subr.bf16.mxu0 %v14110_v12 }
 0x6f8   : > { %10078 = vmatpush1.bf16.msra.mxu1 %v14117_v11 }
 0x6f9   : > { %10079 = vmatprep.subr.bf16.mxu1 %v14125_v52  ;;  %v14143_v52 = vld [vmem:[%s20521_s7 + $0x1ec] ss:$16 sps:$4 sm:$0xff]  }
 0x6fa   : > { %v11245_v10 = vpop.f32.mrb[84].mxu1  ;;  %9912 = vmatpush1.bf16.msra.mxu0 %v14108_v34 }
 0x6fb   : > { %v11246_v58 = vpop.f32.mrb[85].mxu1  ;;  %9913 = vmatprep.subr.bf16.mxu0 %v14116_v51 }
 0x6fc   : > { %v11247_v40 = vadd.f32 %v11246_v58, %v11245_v10  ;;  %v11248_v26 = vpop.f32.mrb[86].mxu1  ;;  %10080 = vmatpush1.bf16.msra.mxu1 %v14123_v25 }
 0x6fd   : > { %v11249_v54 = vpop.f32.mrb[87].mxu1  ;;  %10081 = vmatprep.subr.bf16.mxu1 %v14131_v27 }
 0x6fe   : > { %v19625_v24 = vadd.f32 %v11247_v40, %v19527_v42  ;;  %v19627_v53 = vadd.f32 %v11249_v54, %v11248_v26  ;;  %9914 = vmatpush1.bf16.msra.mxu0 %v14114_v63 }
 0x6ff   : > { %9915 = vmatprep.subr.bf16.mxu0 %v14122_v39  ;;  %v14140_v39 = vld [vmem:[%s20521_s7 + $0x1e4] ss:$16 sps:$4 sm:$0xff]  }
 0x700   : > { %10082 = vmatpush1.bf16.msra.mxu1 %v14129_v36 }
 0x701   : > { %10083 = vmatprep.subr.bf16.mxu1 %v14137_v1 }
 0x702   : > { %v11251_v62 = vpop.f32.mrb[88].mxu1  ;;  %9916 = vmatpush1.bf16.msra.mxu0 %v14120_v31 }
 0x703   : > { %v11252_v20 = vpop.f32.mrb[89].mxu1  ;;  %9917 = vmatprep.subr.bf16.mxu0 %v14128_v5 }
 0x704   : > { %v11253_v41 = vadd.f32 %v11252_v20, %v11251_v62  ;;  %v11254_v49 = vpop.f32.mrb[90].mxu1  ;;  %10084 = vmatpush1.bf16.msra.mxu1 %v14135_v14 }
 0x705   : > { %v11255_v30 = vpop.f32.mrb[91].mxu1  ;;  %10085 = vmatprep.subr.bf16.mxu1 %v14143_v52 }
 0x706   : > { %v19654_v9 = vadd.f32 %v11253_v41, %v19527_v42  ;;  %v19656_v35 = vadd.f32 %v11255_v30, %v11254_v49  ;;  %9918 = vmatpush1.bf16.msra.mxu0 %v14126_v37  ;;  %v8024_v30 = vadd.f32 %v19564_v47, %v19527_v42  ;;  %v14141_v47 = vld [vmem:[%s20521_s7 + $0x1e8] ss:$16 sps:$4 sm:$0xff]  }
 0x707   : > { %9919 = vmatprep.subr.bf16.mxu0 %v14134_v4 }
 0x708   : > { %10086 = vmatpush1.bf16.msra.mxu1 %v14141_v47 }
 0x70a   : > { %v11257_v32 = vpop.f32.mrb[92].mxu1  ;;  %9920 = vmatpush1.bf16.msra.mxu0 %v14132_v33 }
 0x70b   : > { %v11258_v17 = vpop.f32.mrb[93].mxu1  ;;  %9921 = vmatprep.subr.bf16.mxu0 %v14140_v39 }
 0x70c   : > { %v11259_v60 = vadd.f32 %v11258_v17, %v11257_v32  ;;  %v11260_v8 = vpop.f32.mrb[94].mxu1  ;;  %v14138_v32 = vld [vmem:[%s20521_s7 + $0x1e0] ss:$16 sps:$4 sm:$0xff]  }
 0x70d   : > { %v11261_v28 = vpop.f32.mrb[95].mxu1 }
 0x70e   : > { %v19683_v6 = vadd.f32 %v11259_v60, %v19527_v42  ;;  %v19685_v45 = vadd.f32 %v11261_v28, %v11260_v8  ;;  %9922 = vmatpush1.bf16.msra.mxu0 %v14138_v32  ;;  %v14146_v60 = vld [vmem:[%s20521_s7 + $0x204] ss:$16 sps:$4 sm:$0xff]   ;;  %v14149_v8 = vld [vmem:[%s20521_s7 + $0x20c] ss:$16 sps:$4 sm:$0xff]  }
 0x70f   : > { %9932 = vmatprep.subr.bf16.mxu0 %v14146_v60  ;;  %10096 = vmatprep.subr.bf16.mxu1 %v14149_v8 }
 0x714   : > { %v11263_v10 = vpop.f32.mrb[96].mxu1 }
 0x715   : > { %v11264_v46 = vpop.f32.mrb[97].mxu1 }
 0x716   : > { %v11265_v16 = vadd.f32 %v11264_v46, %v11263_v10  ;;  %v11266_v58 = vpop.f32.mrb[98].mxu1 }
 0x717   : > { %v11267_v3 = vpop.f32.mrb[99].mxu1 }
 0x718   : > { %v19703_v40 = vadd.f32 %v11265_v16, %v19527_v42  ;;  %v11268_v26 = vadd.f32 %v11267_v3, %v11266_v58  ;;  %v8032_v16 = vadd.f32 %v19598_v13, %v19527_v42 }
 0x71a   : > { %v19706_v54 = vadd.f32 %v11268_v26, %v19527_v42 }
 0x71c   : > { %v11269_v19 = vpop.f32.mrb[100].mxu1 }
 0x71d   : > { %v11270_v22 = vpop.f32.mrb[101].mxu1  ;;  %v11297_v12 = vpop.f32.mrb[200].mxu0 }
 0x71e   : > { %v11271_v55 = vadd.f32 %v11270_v22, %v11269_v19  ;;  %v11272_v34 = vpop.f32.mrb[102].mxu1  ;;  %v11298_v62 = vpop.f32.mrb[201].mxu0 }
 0x71f   : > { %v11299_v15 = vadd.f32 %v11298_v62, %v11297_v12  ;;  %v11273_v51 = vpop.f32.mrb[103].mxu1  ;;  %v11300_v20 = vpop.f32.mrb[202].mxu0 }
 0x720   : > { %v19709_v7 = vadd.f32 %v11271_v55, %v19527_v42  ;;  %v11274_v41 = vadd.f32 %v11273_v51, %v11272_v34  ;;  %v11301_v49 = vpop.f32.mrb[203].mxu0 }
 0x721   : > { %v11302_v63 = vadd.f32 %v11301_v49, %v11300_v20  ;;  %v8118_v11 = vadd.f32 %v11299_v15, %v19562_v43 }
 0x722   : > { %v19721_v31 = vadd.f32 %v11274_v41, %v19527_v42 }
 0x723   : > { %v8121_v43 = vadd.f32 %v11302_v63, %v8024_v30 }
 0x724   : > { %v11609_v25 = vpop.f32.mrb[104].mxu1 }
 0x725   : > { %v19729_v5 = vadd.f32 %v11609_v25, %v8118_v11  ;;  %v11303_v17 = vpop.f32.mrb[204].mxu0  ;;  %v8206_v27 = vpop.f32.mrb[105].mxu1 }
 0x726   : > { %v19738_v28 = vadd.f32 %v8206_v27, %v19576_v18  ;;  %v11304_v37 = vpop.f32.mrb[205].mxu0  ;;  %v11610_v36 = vpop.f32.mrb[106].mxu1 }
 0x727   : > { %v11305_v4 = vadd.f32 %v11304_v37, %v11303_v17  ;;  %v8218_v1 = vadd.f32 %v11610_v36, %v8121_v43  ;;  %v11306_v33 = vpop.f32.mrb[206].mxu0  ;;  %v8209_v14 = vpop.f32.mrb[107].mxu1  ;;  %v8271_v48 = vmax.f32 %v19729_v5, 0.0  ;;  %v14152_v5 = vld [vmem:[%s20521_s7 + $0x224] ss:$16 sps:$4 sm:$0xff]  }
 0x728   : > { %v8210_v10 = vadd.f32 %v8209_v14, %v19581_v56  ;;  %v11307_v46 = vpop.f32.mrb[207].mxu0 }
 0x729   : > { %v8272_v58 = vmax.f32 %v8218_v1, 0.0  ;;  %v11308_v3 = vadd.f32 %v11307_v46, %v11306_v33  ;;  %v8126_v26 = vadd.f32 %v11305_v4, %v19596_v2  ;;  %v8040_v2 = vadd.f32 %v19627_v53, %v19527_v42 }
 0x72a   : > { %v8270_v18 = vmax.f32 %v8210_v10, 0.0  ;;  %v8048_v53 = vadd.f32 %v19656_v35, %v19527_v42 }
 0x72b   : > { %v8129_v19 = vadd.f32 %v11308_v3, %v8032_v16 }
 0x72c   : > { %v13956_v22 = vpack.i.bf16 %v8270_v18, %v8272_v58  ;;  %v11613_v12 = vpop.f32.mrb[108].mxu1 }
 0x72d   : > { %v11309_v55 = vpop.f32.mrb[208].mxu0  ;;  %v8222_v34 = vpop.f32.mrb[109].mxu1 }
 0x72e   : > { %v19744_v62 = vadd.f32 %v8222_v34, %v8126_v26  ;;  %v11310_v15 = vpop.f32.mrb[209].mxu0  ;;  %v11614_v51 = vpop.f32.mrb[110].mxu1  ;;  %13957 = vrot.lane.b32.xlu1 %v13956_v22, %s14694_s25 }
 0x72f   : > { %v11311_v56 = vadd.f32 %v11310_v15, %v11309_v55  ;;  %v11312_v20 = vpop.f32.mrb[210].mxu0  ;;  %v8225_v41 = vpop.f32.mrb[111].mxu1  ;;  %v11653_v55 = vadd.f32 %v19485_v38, %v19456_v61 }
 0x730   : > { %v8226_v13 = vadd.f32 %v8225_v41, %v8129_v19  ;;  %v11313_v49 = vpop.f32.mrb[211].mxu0  ;;  %v8056_v19 = vadd.f32 %v19685_v45, %v19527_v42 }
 0x731   : > { %v8134_v30 = vadd.f32 %v11311_v56, %v19625_v24  ;;  %v11314_v63 = vadd.f32 %v11313_v49, %v11312_v20  ;;  %v7445_v20 = vmax.f32 %v11653_v55, 0.0 }
 0x732   : > { %v8274_v27 = vmax.f32 %v8226_v13, 0.0 }
 0x733   : > { %v19750_v11 = vadd.f32 %v11613_v12, %v8134_v30  ;;  %v8137_v39 = vadd.f32 %v11314_v63, %v8040_v2 }
 0x734   : > { %v11617_v52 = vpop.f32.mrb[112].mxu1 }
 0x735   : > { %v8234_v32 = vadd.f32 %v11614_v51, %v8137_v39  ;;  %v11315_v47 = vpop.f32.mrb[212].mxu0  ;;  %v8238_v43 = vpop.f32.mrb[113].mxu1 }
 0x736   : > { %v11316_v25 = vpop.f32.mrb[213].mxu0  ;;  %v11618_v17 = vpop.f32.mrb[114].mxu1 }
 0x737   : > { %v8276_v60 = vmax.f32 %v8234_v32, 0.0  ;;  %v11317_v8 = vadd.f32 %v11316_v25, %v11315_v47  ;;  %v11318_v37 = vpop.f32.mrb[214].mxu0  ;;  %v8241_v36 = vpop.f32.mrb[115].mxu1 }
 0x738   : > { %v11319_v4 = vpop.f32.mrb[215].mxu0 }
 0x739   : > { %v13961_v24 = vpack.i.bf16 %v8274_v27, %v8276_v60  ;;  %v8142_v1 = vadd.f32 %v11317_v8, %v19654_v9  ;;  %v11320_v33 = vadd.f32 %v11319_v4, %v11318_v37  ;;  %v14153_v27 = vld [vmem:[%s20521_s7 + $0x228] ss:$16 sps:$4 sm:$0xff]   ;;  %v14158_v60 = vld [vmem:[%s20521_s7 + $0x244] ss:$16 sps:$4 sm:$0xff]   ;;  %v14161_v8 = vld [vmem:[%s20521_s7 + $0x24c] ss:$16 sps:$4 sm:$0xff]  }
 0x73a   : > { %v14156_v37 = vld [vmem:[%s20521_s7 + $0x240] ss:$16 sps:$4 sm:$0xff]  }
 0x73b   : > { %v19755_v14 = vadd.f32 %v8238_v43, %v8142_v1  ;;  %v8145_v10 = vadd.f32 %v11320_v33, %v8048_v53  ;;  %13962 = vrot.lane.b32.xlu0 %v13961_v24, %s14694_s25  ;;  %v14164_v53 = vld [vmem:[%s20521_s7 + $0x264] ss:$16 sps:$4 sm:$0xff]   ;;  %v14167_v24 = vld [vmem:[%s20521_s7 + $0x26c] ss:$16 sps:$4 sm:$0xff]   ;;  %v8275_v1 = vmax.f32 %v19750_v11, 0.0 }
 0x73c   : > { %v14170_v11 = vld [vmem:[%s20521_s7 + $0x284] ss:$16 sps:$4 sm:$0xff]  }
 0x73d   : > { %v8242_v46 = vadd.f32 %v8241_v36, %v8145_v10  ;;  %v11321_v16 = vpop.f32.mrb[216].mxu0  ;;  %v14159_v36 = vld [vmem:[%s20521_s7 + $0x248] ss:$16 sps:$4 sm:$0xff]   ;;  %v14162_v10 = vld [vmem:[%s20521_s7 + $0x260] ss:$16 sps:$4 sm:$0xff]  }
 0x73e   : > { %v11322_v58 = vpop.f32.mrb[217].mxu0 }
 0x73f   : > { %v11323_v3 = vadd.f32 %v11322_v58, %v11321_v16  ;;  %v11324_v26 = vpop.f32.mrb[218].mxu0  ;;  %v8278_v15 = vmax.f32 %v8242_v46, 0.0  ;;  %v14165_v46 = vld [vmem:[%s20521_s7 + $0x268] ss:$16 sps:$4 sm:$0xff]  }
 0x740   : > { %v11325_v18 = vpop.f32.mrb[219].mxu0 }
 0x741   : > { %v8150_v35 = vadd.f32 %v11323_v3, %v19683_v6  ;;  %v11326_v22 = vadd.f32 %v11325_v18, %v11324_v26  ;;  %v14173_v3 = vld [vmem:[%s20521_s7 + $0x28c] ss:$16 sps:$4 sm:$0xff]   ;;  %v14168_v26 = vld [vmem:[%s20521_s7 + $0x280] ss:$16 sps:$4 sm:$0xff]   ;;  %v14171_v18 = vld [vmem:[%s20521_s7 + $0x288] ss:$16 sps:$4 sm:$0xff]  }
 0x743   : > { %v19761_v12 = vadd.f32 %v11617_v52, %v8150_v35  ;;  %v8153_v9 = vadd.f32 %v11326_v22, %v8056_v19  ;;  %v14176_v19 = vld [vmem:[%s20521_s7 + $0x2a4] ss:$16 sps:$4 sm:$0xff]   ;;  %v14179_v35 = vld [vmem:[%s20521_s7 + $0x2ac] ss:$16 sps:$4 sm:$0xff]  }
 0x745   : > { %v8250_v34 = vadd.f32 %v11618_v17, %v8153_v9  ;;  %v14150_v17 = vld [vmem:[%s20521_s7 + $0x220] ss:$16 sps:$4 sm:$0xff]  }
 0x747   : > { %v8280_v51 = vmax.f32 %v8250_v34, 0.0  ;;  %v13948_v56 = vpop.permute.xlu0 %13947  ;;  %v14174_v34 = vld [vmem:[%s20521_s7 + $0x2a0] ss:$16 sps:$4 sm:$0xff]  }
 0x748   : > { %v13950_v41 = vunpack.i.h.bf16 %v13948_v56  ;;  %v13949_v13 = vunpack.i.l.bf16 %v13948_v56  ;;  %v14182_v56 = vld [vmem:[%s20521_s7 + $0x2c4] ss:$16 sps:$4 sm:$0xff]  }
 0x749   : > { %v13966_v49 = vpack.i.bf16 %v8278_v15, %v8280_v51  ;;  %v14177_v15 = vld [vmem:[%s20521_s7 + $0x2a8] ss:$16 sps:$4 sm:$0xff]  }
 0x74a   : > { %v7619_v2 = vsel %vm4257_vm3, %v7445_v20, %v13949_v13  ;;  %v7620_v42 = vsel %vm4257_vm3, %v7446_v59, %v13950_v41  ;;  %v14185_v20 = vld [vmem:[%s20521_s7 + $0x2cc] ss:$16 sps:$4 sm:$0xff]   ;;  %v14180_v41 = vld [vmem:[%s20521_s7 + $0x2c0] ss:$16 sps:$4 sm:$0xff]   ;;  %v14183_v13 = vld [vmem:[%s20521_s7 + $0x2c8] ss:$16 sps:$4 sm:$0xff]  }
 0x74b   : > { %13967 = vrot.lane.b32.xlu1 %v13966_v49, %s14694_s25  ;;  %v7653_v6 = vpack.c.bf16 %v7620_v42, %v7619_v2  ;;  %v7557_v61 = vpop.permute.xlu0 %7556  ;;  %v14188_v49 = vld [vmem:[%s20521_s7 + $0x2e4] ss:$16 sps:$4 sm:$0xff]   ;;  %v14191_v2 = vld [vmem:[%s20521_s7 + $0x2ec] ss:$16 sps:$4 sm:$0xff]   ;;  %v14186_v42 = vld [vmem:[%s20521_s7 + $0x2e0] ss:$16 sps:$4 sm:$0xff]  }
 0x74c   : > { %v7617_v63 = vsel %vm4257_vm3, %v19250_v21, %v7557_v61  ;;  %v14194_v61 = vld [vmem:[%s20521_s7 + $0x304] ss:$16 sps:$4 sm:$0xff]  }
 0x74d   : > { %8155 = vmatprep.mubr.bf16.mxu0 %v7653_v6  ;;  %v7656_v52 = vpack.c.bf16 %v7617_v63, %v19448_v57  ;;  %v14147_v57 = vld [vmem:[%s20521_s7 + $0x208] ss:$16 sps:$4 sm:$0xff]   ;;  %v14200_v63 = vld [vmem:[%s20521_s7 + $0x324] ss:$16 sps:$4 sm:$0xff]  }
 0x74e   : > { %8156 = vmatmul.mubr.bf16.gmra.mrb[220].mxu0 %v7652_v44  ;;  %v8269_v44 = vmax.f32 %v19738_v28, 0.0  ;;  %v14155_v28 = vld [vmem:[%s20521_s7 + $0x22c] ss:$16 sps:$4 sm:$0xff]   ;;  %v14189_v6 = vld [vmem:[%s20521_s7 + $0x2e8] ss:$16 sps:$4 sm:$0xff]  }
 0x753   : > { %v13953_v38 = vpop.permute.xlu1 %13952 }
 0x754   : > { %v13955_v45 = vunpack.i.h.bf16 %v13953_v38  ;;  %v13954_v30 = vunpack.i.l.bf16 %v13953_v38  ;;  %v14197_v38 = vld [vmem:[%s20521_s7 + $0x30c] ss:$16 sps:$4 sm:$0xff]  }
 0x756   : > { %v7621_v23 = vsel %vm4257_vm3, %v19463_v0, %v13954_v30  ;;  %v7622_v59 = vsel %vm4257_vm3, %v19469_v50, %v13955_v45  ;;  %v14144_v50 = vld [vmem:[%s20521_s7 + $0x200] ss:$16 sps:$4 sm:$0xff]   ;;  %v14195_v30 = vld [vmem:[%s20521_s7 + $0x308] ss:$16 sps:$4 sm:$0xff]  }
 0x757   : > { %v7657_v39 = vpack.c.bf16 %v7622_v59, %v7621_v23  ;;  %v14192_v45 = vld [vmem:[%s20521_s7 + $0x300] ss:$16 sps:$4 sm:$0xff]   ;;  %v14203_v23 = vld [vmem:[%s20521_s7 + $0x32c] ss:$16 sps:$4 sm:$0xff]  }
 0x758   : > { %v14198_v59 = vld [vmem:[%s20521_s7 + $0x320] ss:$16 sps:$4 sm:$0xff]  }
 0x759   : > { %8163 = vmatprep.mubr.bf16.mxu0 %v7657_v39  ;;  %v14201_v39 = vld [vmem:[%s20521_s7 + $0x328] ss:$16 sps:$4 sm:$0xff]  }
 0x75a   : > { %8164 = vmatmul.mubr.bf16.gmra.mrb[224].mxu0 %v7656_v52  ;;  %v14206_v52 = vld [vmem:[%s20521_s7 + $0x344] ss:$16 sps:$4 sm:$0xff]  }
 0x7a0   : > { %v13958_v29 = vpop.permute.xlu1 %13957 }
 0x7a1   : > { %v13960_v32 = vunpack.i.h.bf16 %v13958_v29  ;;  %v13959_v47 = vunpack.i.l.bf16 %v13958_v29  ;;  %v14209_v29 = vld [vmem:[%s20521_s7 + $0x34c] ss:$16 sps:$4 sm:$0xff]  }
 0x7a3   : > { %v8317_v21 = vsel %vm4257_vm3, %v8269_v44, %v13960_v32  ;;  %v8318_v43 = vsel %vm4257_vm3, %v8271_v48, %v13959_v47  ;;  %v14204_v48 = vld [vmem:[%s20521_s7 + $0x340] ss:$16 sps:$4 sm:$0xff]   ;;  %v14207_v44 = vld [vmem:[%s20521_s7 + $0x348] ss:$16 sps:$4 sm:$0xff]   ;;  %v14212_v32 = vld [vmem:[%s20521_s7 + $0x364] ss:$16 sps:$4 sm:$0xff]  }
 0x7a4   : > { %v8325_v0 = vpack.c.bf16 %v8317_v21, %v8317_v21  ;;  %v8326_v25 = vpack.c.bf16 %v8318_v43, %v8318_v43  ;;  %v14215_v47 = vld [vmem:[%s20521_s7 + $0x36c] ss:$16 sps:$4 sm:$0xff]   ;;  %v14210_v21 = vld [vmem:[%s20521_s7 + $0x360] ss:$16 sps:$4 sm:$0xff]   ;;  %v14213_v43 = vld [vmem:[%s20521_s7 + $0x368] ss:$16 sps:$4 sm:$0xff]  }
 0x7a6   : > { %9923 = vmatprep.mubr.bf16.mxu0 %v8326_v25  ;;  %10087 = vmatprep.mubr.bf16.mxu1 %v8326_v25  ;;  %v14221_v25 = vld [vmem:[%s20521_s7 + $0x38c] ss:$16 sps:$4 sm:$0xff]  }
 0x7a7   : > { %9924 = vmatmul.mubr.bf16.vlgmr.msra.gmra.mrb[228].mxu0 %v8325_v0  ;;  %10088 = vmatmul.mubr.bf16.vlgmr.msra.gmra.mrb[120].mxu1 %v8325_v0  ;;  %v14218_v0 = vld [vmem:[%s20521_s7 + $0x384] ss:$16 sps:$4 sm:$0xff]  }
 0x7a8   : > { %9933 = vmatpush1.bf16.msra.mxu0 %v14144_v50  ;;  %10097 = vmatpush1.bf16.msra.mxu1 %v14147_v57  ;;  %v14216_v50 = vld [vmem:[%s20521_s7 + $0x380] ss:$16 sps:$4 sm:$0xff]   ;;  %v14219_v57 = vld [vmem:[%s20521_s7 + $0x388] ss:$16 sps:$4 sm:$0xff]  }
 0x7a9   : > { %9934 = vmatprep.subr.bf16.mxu0 %v14152_v5  ;;  %10098 = vmatprep.subr.bf16.mxu1 %v14155_v28  ;;  %v14224_v5 = vld [vmem:[%s20521_s7 + $0x3a4] ss:$16 sps:$4 sm:$0xff]   ;;  %v14227_v28 = vld [vmem:[%s20521_s7 + $0x3ac] ss:$16 sps:$4 sm:$0xff]  }
 0x7ac   : > { %9935 = vmatpush1.bf16.msra.mxu0 %v14150_v17  ;;  %10099 = vmatpush1.bf16.msra.mxu1 %v14153_v27  ;;  %v14222_v17 = vld [vmem:[%s20521_s7 + $0x3a0] ss:$16 sps:$4 sm:$0xff]   ;;  %v14225_v27 = vld [vmem:[%s20521_s7 + $0x3a8] ss:$16 sps:$4 sm:$0xff]  }
 0x7ad   : > { %v19814_v4 = vpop.permute.xlu0 %13962  ;;  %9936 = vmatprep.subr.bf16.mxu0 %v14158_v60  ;;  %10100 = vmatprep.subr.bf16.mxu1 %v14161_v8  ;;  %v14230_v60 = vld [vmem:[%s20521_s7 + $0x3c4] ss:$16 sps:$4 sm:$0xff]   ;;  %v14233_v8 = vld [vmem:[%s20521_s7 + $0x3cc] ss:$16 sps:$4 sm:$0xff]  }
 0x7ae   : > { %v13964_v33 = vunpack.i.l.bf16 %v19814_v4 }
 0x7b0   : > { %9937 = vmatpush1.bf16.msra.mxu0 %v14156_v37  ;;  %10101 = vmatpush1.bf16.msra.mxu1 %v14159_v36  ;;  %v8320_v16 = vsel %vm4257_vm3, %v8275_v1, %v13964_v33  ;;  %v14228_v36 = vld [vmem:[%s20521_s7 + $0x3c0] ss:$16 sps:$4 sm:$0xff]   ;;  %v14239_v1 = vld [vmem:[%s20521_s7 + $0x3ec] ss:$16 sps:$4 sm:$0xff]   ;;  %v13965_v33 = vunpack.i.h.bf16 %v19814_v4  ;;  %v14242_v4 = vld [vmem:[%s20521_s7 + $0x404] ss:$16 sps:$4 sm:$0xff]  }
 0x7b1   : > { %9938 = vmatprep.subr.bf16.mxu0 %v14164_v53  ;;  %10102 = vmatprep.subr.bf16.mxu1 %v14167_v24  ;;  %v8328_v58 = vpack.c.bf16 %v8320_v16, %v8320_v16  ;;  %v14231_v53 = vld [vmem:[%s20521_s7 + $0x3c8] ss:$16 sps:$4 sm:$0xff]   ;;  %v14236_v24 = vld [vmem:[%s20521_s7 + $0x3e4] ss:$16 sps:$4 sm:$0xff]   ;;  %v14234_v16 = vld [vmem:[%s20521_s7 + $0x3e0] ss:$16 sps:$4 sm:$0xff]  }
 0x7b3   : > { %9964 = vmatprep.mubr.bf16.mxu0 %v8328_v58  ;;  %10128 = vmatprep.mubr.bf16.mxu1 %v8328_v58  ;;  %v14237_v58 = vld [vmem:[%s20521_s7 + $0x3e8] ss:$16 sps:$4 sm:$0xff]  }
 0x7b4   : > { %9939 = vmatpush1.bf16.msra.mxu0 %v14162_v10  ;;  %10103 = vmatpush1.bf16.msra.mxu1 %v14165_v46  ;;  %v8273_v46 = vmax.f32 %v19744_v62, 0.0  ;;  %v14245_v62 = vld [vmem:[%s20521_s7 + $0x40c] ss:$16 sps:$4 sm:$0xff]  }
 0x7b5   : > { %9940 = vmatprep.subr.bf16.mxu0 %v14170_v11  ;;  %10104 = vmatprep.subr.bf16.mxu1 %v14173_v3  ;;  %v8279_v11 = vmax.f32 %v19761_v12, 0.0  ;;  %v14240_v12 = vld [vmem:[%s20521_s7 + $0x400] ss:$16 sps:$4 sm:$0xff]  }
 0x7b6   : > { %v19849_v22 = vpop.f32.mrb[116].mxu1  ;;  %v8319_v3 = vsel %vm4257_vm3, %v8273_v46, %v13965_v33  ;;  %v14308_v33 = vld [vmem:[%s20521_s7 + $0x564] ss:$16 sps:$4 sm:$0xff]   ;;  %v14306_v46 = vld [vmem:[%s20521_s7 + $0x560] ss:$16 sps:$4 sm:$0xff]  }
 0x7b7   : > { %v19851_v9 = vpop.f32.mrb[117].mxu1 }
 0x7b8   : > { %9941 = vmatpush1.bf16.msra.mxu0 %v14168_v26  ;;  %10105 = vmatpush1.bf16.msra.mxu1 %v14171_v18  ;;  %v19853_v55 = vpop.f32.mrb[118].mxu1  ;;  %v8327_v18 = vpack.c.bf16 %v8319_v3, %v8319_v3  ;;  %v14320_v3 = vld [vmem:[%s20521_s7 + $0x5a4] ss:$16 sps:$4 sm:$0xff]  }
 0x7b9   : > { %v19861_v51 = vpop.f32.mrb[119].mxu1  ;;  %9942 = vmatprep.subr.bf16.mxu0 %v14176_v19  ;;  %10106 = vmatprep.subr.bf16.mxu1 %v14179_v35  ;;  %v14243_v19 = vld [vmem:[%s20521_s7 + $0x408] ss:$16 sps:$4 sm:$0xff]  }
 0x7bc   : > { %9943 = vmatpush1.bf16.msra.mxu0 %v14174_v34  ;;  %10107 = vmatpush1.bf16.msra.mxu1 %v14177_v15  ;;  %v14248_v34 = vld [vmem:[%s20521_s7 + $0x424] ss:$16 sps:$4 sm:$0xff]   ;;  %v14251_v15 = vld [vmem:[%s20521_s7 + $0x42c] ss:$16 sps:$4 sm:$0xff]  }
 0x7bd   : > { %9944 = vmatprep.subr.bf16.mxu0 %v14182_v56  ;;  %10108 = vmatprep.subr.bf16.mxu1 %v14185_v20  ;;  %v19965_v37 = vpop.permute.xlu1 %13967  ;;  %v14246_v56 = vld [vmem:[%s20521_s7 + $0x420] ss:$16 sps:$4 sm:$0xff]   ;;  %v14249_v20 = vld [vmem:[%s20521_s7 + $0x428] ss:$16 sps:$4 sm:$0xff]  }
 0x7be   : > { %v13969_v10 = vunpack.i.l.bf16 %v19965_v37 }
 0x7c0   : > { %9945 = vmatpush1.bf16.msra.mxu0 %v14180_v41  ;;  %10109 = vmatpush1.bf16.msra.mxu1 %v14183_v13  ;;  %v8322_v26 = vsel %vm4257_vm3, %v8279_v11, %v13969_v10  ;;  %v14254_v41 = vld [vmem:[%s20521_s7 + $0x444] ss:$16 sps:$4 sm:$0xff]   ;;  %v14257_v13 = vld [vmem:[%s20521_s7 + $0x44c] ss:$16 sps:$4 sm:$0xff]  }
 0x7c1   : > { %9946 = vmatprep.subr.bf16.mxu0 %v14188_v49  ;;  %10110 = vmatprep.subr.bf16.mxu1 %v14191_v2  ;;  %v8330_v35 = vpack.c.bf16 %v8322_v26, %v8322_v26  ;;  %v14252_v49 = vld [vmem:[%s20521_s7 + $0x440] ss:$16 sps:$4 sm:$0xff]   ;;  %v14255_v2 = vld [vmem:[%s20521_s7 + $0x448] ss:$16 sps:$4 sm:$0xff]   ;;  %v14311_v10 = vld [vmem:[%s20521_s7 + $0x56c] ss:$16 sps:$4 sm:$0xff]  }
 0x7c2   : > { %v14317_v11 = vld [vmem:[%s20521_s7 + $0x58c] ss:$16 sps:$4 sm:$0xff]  }
 0x7c3   : > { %v14323_v26 = vld [vmem:[%s20521_s7 + $0x5ac] ss:$16 sps:$4 sm:$0xff]  }
 0x7c4   : > { %9947 = vmatpush1.bf16.msra.mxu0 %v14186_v42  ;;  %10111 = vmatpush1.bf16.msra.mxu1 %v14189_v6  ;;  %v14260_v42 = vld [vmem:[%s20521_s7 + $0x464] ss:$16 sps:$4 sm:$0xff]   ;;  %v14263_v6 = vld [vmem:[%s20521_s7 + $0x46c] ss:$16 sps:$4 sm:$0xff]  }
 0x7c5   : > { %9948 = vmatprep.subr.bf16.mxu0 %v14194_v61  ;;  %10112 = vmatprep.subr.bf16.mxu1 %v14197_v38  ;;  %v14258_v61 = vld [vmem:[%s20521_s7 + $0x460] ss:$16 sps:$4 sm:$0xff]   ;;  %v14261_v38 = vld [vmem:[%s20521_s7 + $0x468] ss:$16 sps:$4 sm:$0xff]  }
 0x7c8   : > { %9949 = vmatpush1.bf16.msra.mxu0 %v14192_v45  ;;  %10113 = vmatpush1.bf16.msra.mxu1 %v14195_v30  ;;  %v14266_v45 = vld [vmem:[%s20521_s7 + $0x484] ss:$16 sps:$4 sm:$0xff]   ;;  %v14269_v30 = vld [vmem:[%s20521_s7 + $0x48c] ss:$16 sps:$4 sm:$0xff]  }
 0x7c9   : > { %9950 = vmatprep.subr.bf16.mxu0 %v14200_v63  ;;  %10114 = vmatprep.subr.bf16.mxu1 %v14203_v23  ;;  %v14264_v63 = vld [vmem:[%s20521_s7 + $0x480] ss:$16 sps:$4 sm:$0xff]   ;;  %v14267_v23 = vld [vmem:[%s20521_s7 + $0x488] ss:$16 sps:$4 sm:$0xff]  }
 0x7cc   : > { %9951 = vmatpush1.bf16.msra.mxu0 %v14198_v59  ;;  %10115 = vmatpush1.bf16.msra.mxu1 %v14201_v39  ;;  %v14272_v59 = vld [vmem:[%s20521_s7 + $0x4a4] ss:$16 sps:$4 sm:$0xff]   ;;  %v14275_v39 = vld [vmem:[%s20521_s7 + $0x4ac] ss:$16 sps:$4 sm:$0xff]  }
 0x7cd   : > { %9952 = vmatprep.subr.bf16.mxu0 %v14206_v52  ;;  %10116 = vmatprep.subr.bf16.mxu1 %v14209_v29  ;;  %v14270_v52 = vld [vmem:[%s20521_s7 + $0x4a0] ss:$16 sps:$4 sm:$0xff]   ;;  %v14273_v29 = vld [vmem:[%s20521_s7 + $0x4a8] ss:$16 sps:$4 sm:$0xff]  }
 0x7d0   : > { %9953 = vmatpush1.bf16.msra.mxu0 %v14204_v48  ;;  %10117 = vmatpush1.bf16.msra.mxu1 %v14207_v44  ;;  %v14278_v48 = vld [vmem:[%s20521_s7 + $0x4c4] ss:$16 sps:$4 sm:$0xff]   ;;  %v14281_v44 = vld [vmem:[%s20521_s7 + $0x4cc] ss:$16 sps:$4 sm:$0xff]  }
 0x7d1   : > { %9954 = vmatprep.subr.bf16.mxu0 %v14212_v32  ;;  %10118 = vmatprep.subr.bf16.mxu1 %v14215_v47  ;;  %v14276_v32 = vld [vmem:[%s20521_s7 + $0x4c0] ss:$16 sps:$4 sm:$0xff]   ;;  %v14279_v47 = vld [vmem:[%s20521_s7 + $0x4c8] ss:$16 sps:$4 sm:$0xff]  }
 0x7d4   : > { %9955 = vmatpush1.bf16.msra.mxu0 %v14210_v21  ;;  %10119 = vmatpush1.bf16.msra.mxu1 %v14213_v43  ;;  %v14284_v21 = vld [vmem:[%s20521_s7 + $0x4e4] ss:$16 sps:$4 sm:$0xff]   ;;  %v14287_v43 = vld [vmem:[%s20521_s7 + $0x4ec] ss:$16 sps:$4 sm:$0xff]  }
 0x7d5   : > { %9956 = vmatprep.subr.bf16.mxu0 %v14218_v0  ;;  %10120 = vmatprep.subr.bf16.mxu1 %v14221_v25  ;;  %v14282_v0 = vld [vmem:[%s20521_s7 + $0x4e0] ss:$16 sps:$4 sm:$0xff]   ;;  %v14285_v25 = vld [vmem:[%s20521_s7 + $0x4e8] ss:$16 sps:$4 sm:$0xff]  }
 0x7d8   : > { %9957 = vmatpush1.bf16.msra.mxu0 %v14216_v50  ;;  %10121 = vmatpush1.bf16.msra.mxu1 %v14219_v57  ;;  %v14290_v50 = vld [vmem:[%s20521_s7 + $0x504] ss:$16 sps:$4 sm:$0xff]   ;;  %v14293_v57 = vld [vmem:[%s20521_s7 + $0x50c] ss:$16 sps:$4 sm:$0xff]  }
 0x7d9   : > { %9958 = vmatprep.subr.bf16.mxu0 %v14224_v5  ;;  %10122 = vmatprep.subr.bf16.mxu1 %v14227_v28  ;;  %v14288_v5 = vld [vmem:[%s20521_s7 + $0x500] ss:$16 sps:$4 sm:$0xff]   ;;  %v14291_v28 = vld [vmem:[%s20521_s7 + $0x508] ss:$16 sps:$4 sm:$0xff]  }
 0x7dc   : > { %9959 = vmatpush1.bf16.msra.mxu0 %v14222_v17  ;;  %10123 = vmatpush1.bf16.msra.mxu1 %v14225_v27  ;;  %v14296_v17 = vld [vmem:[%s20521_s7 + $0x524] ss:$16 sps:$4 sm:$0xff]   ;;  %v14299_v27 = vld [vmem:[%s20521_s7 + $0x52c] ss:$16 sps:$4 sm:$0xff]  }
 0x7dd   : > { %9960 = vmatprep.subr.bf16.mxu0 %v14230_v60  ;;  %10124 = vmatprep.subr.bf16.mxu1 %v14233_v8  ;;  %v14294_v60 = vld [vmem:[%s20521_s7 + $0x520] ss:$16 sps:$4 sm:$0xff]   ;;  %v14297_v8 = vld [vmem:[%s20521_s7 + $0x528] ss:$16 sps:$4 sm:$0xff]  }
 0x7e0   : > { %9961 = vmatpush1.bf16.msra.mxu0 %v14228_v36  ;;  %10125 = vmatpush1.bf16.msra.mxu1 %v14231_v53  ;;  %v14302_v36 = vld [vmem:[%s20521_s7 + $0x544] ss:$16 sps:$4 sm:$0xff]   ;;  %v14305_v53 = vld [vmem:[%s20521_s7 + $0x54c] ss:$16 sps:$4 sm:$0xff]  }
 0x7e1   : > { %9962 = vmatprep.subr.bf16.mxu0 %v14236_v24  ;;  %10126 = vmatprep.subr.bf16.mxu1 %v14239_v1  ;;  %v14300_v24 = vld [vmem:[%s20521_s7 + $0x540] ss:$16 sps:$4 sm:$0xff]   ;;  %v14303_v1 = vld [vmem:[%s20521_s7 + $0x548] ss:$16 sps:$4 sm:$0xff]  }
 0x7e4   : > { %9963 = vmatpush1.bf16.msra.mxu0 %v14234_v16  ;;  %10127 = vmatpush1.bf16.msra.mxu1 %v14237_v58  ;;  %v14309_v16 = vld [vmem:[%s20521_s7 + $0x568] ss:$16 sps:$4 sm:$0xff]   ;;  %v14314_v58 = vld [vmem:[%s20521_s7 + $0x584] ss:$16 sps:$4 sm:$0xff]  }
 0x7e5   : > { %9973 = vmatprep.subr.bf16.mxu0 %v14242_v4  ;;  %10137 = vmatprep.subr.bf16.mxu1 %v14245_v62  ;;  %v14312_v4 = vld [vmem:[%s20521_s7 + $0x580] ss:$16 sps:$4 sm:$0xff]   ;;  %v14315_v62 = vld [vmem:[%s20521_s7 + $0x588] ss:$16 sps:$4 sm:$0xff]  }
 0x7e7   : > { %9965 = vmatmul.mubr.bf16.vlgmr.msra.gmra.mrb[228].mxu0 %v8327_v18  ;;  %10129 = vmatmul.mubr.bf16.vlgmr.msra.gmra.mrb[120].mxu1 %v8327_v18  ;;  %v14321_v18 = vld [vmem:[%s20521_s7 + $0x5a8] ss:$16 sps:$4 sm:$0xff]  }
 0x7e8   : > { %9974 = vmatpush1.bf16.msra.mxu0 %v14240_v12  ;;  %10005 = vmatprep.mubr.bf16.mxu0 %v8330_v35  ;;  %v14318_v12 = vld [vmem:[%s20521_s7 + $0x5a0] ss:$16 sps:$4 sm:$0xff]  }
 0x7e9   : > { %10138 = vmatpush1.bf16.msra.mxu1 %v14243_v19  ;;  %10169 = vmatprep.mubr.bf16.mxu1 %v8330_v35  ;;  %v14326_v19 = vld [vmem:[%s20521_s7 + $0x5c4] ss:$16 sps:$4 sm:$0xff]   ;;  %v14329_v35 = vld [vmem:[%s20521_s7 + $0x5cc] ss:$16 sps:$4 sm:$0xff]  }
 0x7ea   : > { %9975 = vmatprep.subr.bf16.mxu0 %v14248_v34  ;;  %10139 = vmatprep.subr.bf16.mxu1 %v14251_v15  ;;  %v14324_v34 = vld [vmem:[%s20521_s7 + $0x5c0] ss:$16 sps:$4 sm:$0xff]   ;;  %v14327_v15 = vld [vmem:[%s20521_s7 + $0x5c8] ss:$16 sps:$4 sm:$0xff]  }
 0x7ec   : > { %9976 = vmatpush1.bf16.msra.mxu0 %v14246_v56  ;;  %v14332_v56 = vld [vmem:[%s20521_s7 + $0x5e4] ss:$16 sps:$4 sm:$0xff]  }
 0x7ed   : > { %10140 = vmatpush1.bf16.msra.mxu1 %v14249_v20  ;;  %9977 = vmatprep.subr.bf16.mxu0 %v14254_v41  ;;  %v13970_v20 = vunpack.i.h.bf16 %v19965_v37  ;;  %v14335_v41 = vld [vmem:[%s20521_s7 + $0x5ec] ss:$16 sps:$4 sm:$0xff]   ;;  %v14338_v37 = vld [vmem:[%s20521_s7 + $0x604] ss:$16 sps:$4 sm:$0xff]  }
 0x7ee   : > { %10141 = vmatprep.subr.bf16.mxu1 %v14257_v13  ;;  %v8277_v13 = vmax.f32 %v19755_v14, 0.0  ;;  %v14341_v14 = vld [vmem:[%s20521_s7 + $0x60c] ss:$16 sps:$4 sm:$0xff]  }
 0x7f0   : > { %9978 = vmatpush1.bf16.msra.mxu0 %v14252_v49  ;;  %v14330_v49 = vld [vmem:[%s20521_s7 + $0x5e0] ss:$16 sps:$4 sm:$0xff]  }
 0x7f1   : > { %10142 = vmatpush1.bf16.msra.mxu1 %v14255_v2  ;;  %9979 = vmatprep.subr.bf16.mxu0 %v14260_v42  ;;  %v14333_v42 = vld [vmem:[%s20521_s7 + $0x5e8] ss:$16 sps:$4 sm:$0xff]  }
 0x7f2   : > { %10143 = vmatprep.subr.bf16.mxu1 %v14263_v6  ;;  %v8321_v6 = vsel %vm4257_vm3, %v8277_v13, %v13970_v20  ;;  %v14384_v20 = vld [vmem:[%s20521_s7 + $0x700] ss:$16 sps:$4 sm:$0xff]   ;;  %v14392_v13 = vld [vmem:[%s20521_s7 + $0x724] ss:$16 sps:$4 sm:$0xff]  }
 0x7f4   : > { %9980 = vmatpush1.bf16.msra.mxu0 %v14258_v61 }
 0x7f5   : > { %10144 = vmatpush1.bf16.msra.mxu1 %v14261_v38  ;;  %9981 = vmatprep.subr.bf16.mxu0 %v14266_v45 }
 0x7f6   : > { %10145 = vmatprep.subr.bf16.mxu1 %v14269_v30 }
 0x7f8   : > { %9982 = vmatpush1.bf16.msra.mxu0 %v14264_v63  ;;  %v14336_v63 = vld [vmem:[%s20521_s7 + $0x600] ss:$16 sps:$4 sm:$0xff]  }
 0x7f9   : > { %10146 = vmatpush1.bf16.msra.mxu1 %v14267_v23  ;;  %9983 = vmatprep.subr.bf16.mxu0 %v14272_v59  ;;  %v8329_v23 = vpack.c.bf16 %v8321_v6, %v8321_v6  ;;  %v14401_v6 = vld [vmem:[%s20521_s7 + $0x74c] ss:$16 sps:$4 sm:$0xff]  }
 0x7fa   : > { %10147 = vmatprep.subr.bf16.mxu1 %v14275_v39 }
 0x7fc   : > { %9984 = vmatpush1.bf16.msra.mxu0 %v14270_v52  ;;  %v14339_v52 = vld [vmem:[%s20521_s7 + $0x608] ss:$16 sps:$4 sm:$0xff]  }
 0x7fd   : > { %10148 = vmatpush1.bf16.msra.mxu1 %v14273_v29  ;;  %9985 = vmatprep.subr.bf16.mxu0 %v14278_v48  ;;  %v14344_v29 = vld [vmem:[%s20521_s7 + $0x624] ss:$16 sps:$4 sm:$0xff]   ;;  %v14347_v48 = vld [vmem:[%s20521_s7 + $0x62c] ss:$16 sps:$4 sm:$0xff]  }
 0x7fe   : > { %10149 = vmatprep.subr.bf16.mxu1 %v14281_v44 }
 0x800   : > { %9986 = vmatpush1.bf16.msra.mxu0 %v14276_v32  ;;  %v14342_v32 = vld [vmem:[%s20521_s7 + $0x620] ss:$16 sps:$4 sm:$0xff]  }
 0x801   : > { %10150 = vmatpush1.bf16.msra.mxu1 %v14279_v47  ;;  %9987 = vmatprep.subr.bf16.mxu0 %v14284_v21  ;;  %v14345_v21 = vld [vmem:[%s20521_s7 + $0x628] ss:$16 sps:$4 sm:$0xff]  }
 0x802   : > { %10151 = vmatprep.subr.bf16.mxu1 %v14287_v43 }
 0x804   : > { %9988 = vmatpush1.bf16.msra.mxu0 %v14282_v0  ;;  %v14351_v0 = vld [vmem:[%s20521_s7 + $0x648] ss:$16 sps:$4 sm:$0xff]  }
 0x805   : > { %10152 = vmatpush1.bf16.msra.mxu1 %v14285_v25  ;;  %9989 = vmatprep.subr.bf16.mxu0 %v14290_v50  ;;  %v14356_v25 = vld [vmem:[%s20521_s7 + $0x664] ss:$16 sps:$4 sm:$0xff]  }
 0x806   : > { %10153 = vmatprep.subr.bf16.mxu1 %v14293_v57  ;;  %v14359_v57 = vld [vmem:[%s20521_s7 + $0x66c] ss:$16 sps:$4 sm:$0xff]  }
 0x808   : > { %9990 = vmatpush1.bf16.msra.mxu0 %v14288_v5 }
 0x809   : > { %10154 = vmatpush1.bf16.msra.mxu1 %v14291_v28  ;;  %9991 = vmatprep.subr.bf16.mxu0 %v14296_v17 }
 0x80a   : > { %10155 = vmatprep.subr.bf16.mxu1 %v14299_v27  ;;  %v14354_v27 = vld [vmem:[%s20521_s7 + $0x660] ss:$16 sps:$4 sm:$0xff]  }
 0x80c   : > { %9992 = vmatpush1.bf16.msra.mxu0 %v14294_v60 }
 0x80d   : > { %10156 = vmatpush1.bf16.msra.mxu1 %v14297_v8  ;;  %9993 = vmatprep.subr.bf16.mxu0 %v14302_v36  ;;  %v14357_v36 = vld [vmem:[%s20521_s7 + $0x668] ss:$16 sps:$4 sm:$0xff]  }
 0x80e   : > { %10157 = vmatprep.subr.bf16.mxu1 %v14305_v53  ;;  %v14362_v53 = vld [vmem:[%s20521_s7 + $0x684] ss:$16 sps:$4 sm:$0xff]  }
 0x810   : > { %9994 = vmatpush1.bf16.msra.mxu0 %v14300_v24  ;;  %v14365_v24 = vld [vmem:[%s20521_s7 + $0x68c] ss:$16 sps:$4 sm:$0xff]  }
 0x811   : > { %10158 = vmatpush1.bf16.msra.mxu1 %v14303_v1  ;;  %9995 = vmatprep.subr.bf16.mxu0 %v14308_v33  ;;  %v14360_v33 = vld [vmem:[%s20521_s7 + $0x680] ss:$16 sps:$4 sm:$0xff]  }
 0x812   : > { %10159 = vmatprep.subr.bf16.mxu1 %v14311_v10 }
 0x814   : > { %9996 = vmatpush1.bf16.msra.mxu0 %v14306_v46  ;;  %v14363_v46 = vld [vmem:[%s20521_s7 + $0x688] ss:$16 sps:$4 sm:$0xff]  }
 0x815   : > { %10160 = vmatpush1.bf16.msra.mxu1 %v14309_v16  ;;  %9997 = vmatprep.subr.bf16.mxu0 %v14314_v58 }
 0x816   : > { %10161 = vmatprep.subr.bf16.mxu1 %v14317_v11 }
 0x818   : > { %9998 = vmatpush1.bf16.msra.mxu0 %v14312_v4  ;;  %v14369_v4 = vld [vmem:[%s20521_s7 + $0x6a8] ss:$16 sps:$4 sm:$0xff]  }
 0x819   : > { %10162 = vmatpush1.bf16.msra.mxu1 %v14315_v62  ;;  %9999 = vmatprep.subr.bf16.mxu0 %v14320_v3  ;;  %v14374_v62 = vld [vmem:[%s20521_s7 + $0x6c4] ss:$16 sps:$4 sm:$0xff]   ;;  %v14377_v3 = vld [vmem:[%s20521_s7 + $0x6cc] ss:$16 sps:$4 sm:$0xff]  }
 0x81a   : > { %10163 = vmatprep.subr.bf16.mxu1 %v14323_v26  ;;  %v14372_v26 = vld [vmem:[%s20521_s7 + $0x6c0] ss:$16 sps:$4 sm:$0xff]  }
 0x81c   : > { %10000 = vmatpush1.bf16.msra.mxu0 %v14318_v12  ;;  %v14375_v12 = vld [vmem:[%s20521_s7 + $0x6c8] ss:$16 sps:$4 sm:$0xff]  }
 0x81d   : > { %10164 = vmatpush1.bf16.msra.mxu1 %v14321_v18  ;;  %10001 = vmatprep.subr.bf16.mxu0 %v14326_v19  ;;  %v14380_v18 = vld [vmem:[%s20521_s7 + $0x6e4] ss:$16 sps:$4 sm:$0xff]   ;;  %v14383_v19 = vld [vmem:[%s20521_s7 + $0x6ec] ss:$16 sps:$4 sm:$0xff]  }
 0x81e   : > { %10165 = vmatprep.subr.bf16.mxu1 %v14329_v35  ;;  %v14378_v35 = vld [vmem:[%s20521_s7 + $0x6e0] ss:$16 sps:$4 sm:$0xff]  }
 0x820   : > { %10002 = vmatpush1.bf16.msra.mxu0 %v14324_v34  ;;  %v14381_v34 = vld [vmem:[%s20521_s7 + $0x6e8] ss:$16 sps:$4 sm:$0xff]  }
 0x821   : > { %10166 = vmatpush1.bf16.msra.mxu1 %v14327_v15  ;;  %v11327_v2 = vpop.f32.mrb[220].mxu0  ;;  %10003 = vmatprep.subr.bf16.mxu0 %v14332_v56  ;;  %v14386_v15 = vld [vmem:[%s20521_s7 + $0x704] ss:$16 sps:$4 sm:$0xff]   ;;  %v14389_v56 = vld [vmem:[%s20521_s7 + $0x70c] ss:$16 sps:$4 sm:$0xff]  }
 0x822   : > { %v11328_v61 = vpop.f32.mrb[221].mxu0  ;;  %10167 = vmatprep.subr.bf16.mxu1 %v14335_v41  ;;  %v14387_v41 = vld [vmem:[%s20521_s7 + $0x708] ss:$16 sps:$4 sm:$0xff]  }
 0x823   : > { %v11329_v38 = vadd.f32 %v11328_v61, %v11327_v2  ;;  %v11330_v45 = vpop.f32.mrb[222].mxu0  ;;  %v14390_v2 = vld [vmem:[%s20521_s7 + $0x720] ss:$16 sps:$4 sm:$0xff]  }
 0x824   : > { %10004 = vmatpush1.bf16.msra.mxu0 %v14330_v49  ;;  %v11331_v30 = vpop.f32.mrb[223].mxu0  ;;  %v14395_v49 = vld [vmem:[%s20521_s7 + $0x72c] ss:$16 sps:$4 sm:$0xff]   ;;  %v14396_v61 = vld [vmem:[%s20521_s7 + $0x740] ss:$16 sps:$4 sm:$0xff]  }
 0x825   : > { %v8158_v59 = vadd.f32 %v11329_v38, %v19703_v40  ;;  %10168 = vmatpush1.bf16.msra.mxu1 %v14333_v42  ;;  %v11332_v39 = vadd.f32 %v11331_v30, %v11330_v45  ;;  %10014 = vmatprep.subr.bf16.mxu0 %v14338_v37  ;;  %v14393_v42 = vld [vmem:[%s20521_s7 + $0x728] ss:$16 sps:$4 sm:$0xff]   ;;  %v14398_v37 = vld [vmem:[%s20521_s7 + $0x744] ss:$16 sps:$4 sm:$0xff]   ;;  %v14407_v45 = vld [vmem:[%s20521_s7 + $0x76c] ss:$16 sps:$4 sm:$0xff]  }
 0x826   : > { %10178 = vmatprep.subr.bf16.mxu1 %v14341_v14  ;;  %v14399_v14 = vld [vmem:[%s20521_s7 + $0x748] ss:$16 sps:$4 sm:$0xff]   ;;  %v14404_v38 = vld [vmem:[%s20521_s7 + $0x764] ss:$16 sps:$4 sm:$0xff]   ;;  %v14402_v30 = vld [vmem:[%s20521_s7 + $0x760] ss:$16 sps:$4 sm:$0xff]  }
 0x827   : > { %v20206_v44 = vadd.f32 %v19851_v9, %v8158_v59  ;;  %v8161_v40 = vadd.f32 %v11332_v39, %v19706_v54  ;;  %10006 = vmatmul.mubr.bf16.vlgmr.msra.gmra.mrb[228].mxu0 %v8329_v23  ;;  %v14350_v9 = vld [vmem:[%s20521_s7 + $0x644] ss:$16 sps:$4 sm:$0xff]   ;;  %v14353_v54 = vld [vmem:[%s20521_s7 + $0x64c] ss:$16 sps:$4 sm:$0xff]   ;;  %v14408_v39 = vld [vmem:[%s20521_s7 + $0x780] ss:$16 sps:$4 sm:$0xff]  }
 0x828   : > { %10170 = vmatmul.mubr.bf16.vlgmr.msra.gmra.mrb[120].mxu1 %v8329_v23  ;;  %10015 = vmatpush1.bf16.msra.mxu0 %v14336_v63  ;;  %v14405_v63 = vld [vmem:[%s20521_s7 + $0x768] ss:$16 sps:$4 sm:$0xff]   ;;  %v14410_v23 = vld [vmem:[%s20521_s7 + $0x784] ss:$16 sps:$4 sm:$0xff]   ;;  %v14413_v59 = vld [vmem:[%s20521_s7 + $0x78c] ss:$16 sps:$4 sm:$0xff]  }
 0x829   : > { %v8258_v47 = vadd.f32 %v19861_v51, %v8161_v40  ;;  %10179 = vmatpush1.bf16.msra.mxu1 %v14339_v52  ;;  %10016 = vmatprep.subr.bf16.mxu0 %v14344_v29  ;;  %v14348_v51 = vld [vmem:[%s20521_s7 + $0x640] ss:$16 sps:$4 sm:$0xff]   ;;  %v14411_v52 = vld [vmem:[%s20521_s7 + $0x788] ss:$16 sps:$4 sm:$0xff]   ;;  %v14416_v29 = vld [vmem:[%s20521_s7 + $0x7a4] ss:$16 sps:$4 sm:$0xff]  }
 0x82a   : > { %10180 = vmatprep.subr.bf16.mxu1 %v14347_v48  ;;  %v14419_v48 = vld [vmem:[%s20521_s7 + $0x7ac] ss:$16 sps:$4 sm:$0xff]   ;;  %v14414_v40 = vld [vmem:[%s20521_s7 + $0x7a0] ss:$16 sps:$4 sm:$0xff]  }
 0x82b   : > { %v8282_v16 = vmax.f32 %v8258_v47, 0.0  ;;  %v14422_v47 = vld [vmem:[%s20521_s7 + $0x7c4] ss:$16 sps:$4 sm:$0xff]  }
 0x82c   : > { %10017 = vmatpush1.bf16.msra.mxu0 %v14342_v32  ;;  %v14417_v32 = vld [vmem:[%s20521_s7 + $0x7a8] ss:$16 sps:$4 sm:$0xff]  }
 0x82d   : > { %v11333_v43 = vpop.f32.mrb[224].mxu0  ;;  %10181 = vmatpush1.bf16.msra.mxu1 %v14345_v21  ;;  %10018 = vmatprep.subr.bf16.mxu0 %v14350_v9  ;;  %v14425_v21 = vld [vmem:[%s20521_s7 + $0x7cc] ss:$16 sps:$4 sm:$0xff]   ;;  %v14420_v9 = vld [vmem:[%s20521_s7 + $0x7c0] ss:$16 sps:$4 sm:$0xff]  }
 0x82e   : > { %v11334_v50 = vpop.f32.mrb[225].mxu0  ;;  %10182 = vmatprep.subr.bf16.mxu1 %v14353_v54  ;;  %v14423_v54 = vld [vmem:[%s20521_s7 + $0x7c8] ss:$16 sps:$4 sm:$0xff]  }
 0x82f   : > { %v11335_v5 = vadd.f32 %v11334_v50, %v11333_v43  ;;  %v11336_v28 = vpop.f32.mrb[226].mxu0  ;;  %v14431_v43 = vld [vmem:[%s20521_s7 + $0x7ec] ss:$16 sps:$4 sm:$0xff]   ;;  %v14432_v50 = vld [vmem:[%s20523_s9 + $0x40] sm:$0xff]  }
 0x830   : > { %v11337_v17 = vpop.f32.mrb[227].mxu0  ;;  %10019 = vmatpush1.bf16.msra.mxu0 %v14348_v51  ;;  %v14428_v51 = vld [vmem:[%s20521_s7 + $0x7e4] ss:$16 sps:$4 sm:$0xff]  }
 0x831   : > { %v8166_v60 = vadd.f32 %v11335_v5, %v19709_v7  ;;  %v11338_v8 = vadd.f32 %v11337_v17, %v11336_v28  ;;  %10183 = vmatpush1.bf16.msra.mxu1 %v14351_v0  ;;  %10020 = vmatprep.subr.bf16.mxu0 %v14356_v25  ;;  %v14426_v0 = vld [vmem:[%s20521_s7 + $0x7e0] ss:$16 sps:$4 sm:$0xff]   ;;  %v14429_v25 = vld [vmem:[%s20521_s7 + $0x7e8] ss:$16 sps:$4 sm:$0xff]   ;;  %v8281_v28 = vmax.f32 %v20206_v44, 0.0 }
 0x832   : > { %10184 = vmatprep.subr.bf16.mxu1 %v14359_v57  ;;  %v14433_v57 = vld [vmem:[%s20523_s9 + $0xc0] sm:$0xff]   ;;  %v14436_v44 = vld [vmem:[%s20523_s9 + $0x48] sm:$0xff]  }
 0x833   : > { %v20248_v1 = vadd.f32 %v19849_v22, %v8166_v60  ;;  %v8169_v7 = vadd.f32 %v11338_v8, %v19721_v31  ;;  %v14368_v22 = vld [vmem:[%s20521_s7 + $0x6a4] ss:$16 sps:$4 sm:$0xff]   ;;  %v14371_v31 = vld [vmem:[%s20521_s7 + $0x6ac] ss:$16 sps:$4 sm:$0xff]  }
 0x834   : > { %10021 = vmatpush1.bf16.msra.mxu0 %v14354_v27 }
 0x835   : > { %v8266_v10 = vadd.f32 %v19853_v55, %v8169_v7  ;;  %10185 = vmatpush1.bf16.msra.mxu1 %v14357_v36  ;;  %10022 = vmatprep.subr.bf16.mxu0 %v14362_v53  ;;  %v14366_v55 = vld [vmem:[%s20521_s7 + $0x6a0] ss:$16 sps:$4 sm:$0xff]   ;;  %v8283_v17 = vmax.f32 %v20248_v1, 0.0  ;;  %v14437_v1 = vld [vmem:[%s20523_s9 + $0xc8] sm:$0xff]  }
 0x836   : > { %10186 = vmatprep.subr.bf16.mxu1 %v14365_v24  ;;  %v14434_v7 = vld [vmem:[%s20523_s9] sm:$0xff]  }
 0x837   : > { %v8284_v58 = vmax.f32 %v8266_v10, 0.0  ;;  %v14438_v10 = vld [vmem:[%s20523_s9 + $0x8] sm:$0xff]  }
 0x838   : > { %10023 = vmatpush1.bf16.msra.mxu0 %v14360_v33  ;;  %v14435_v33 = vld [vmem:[%s20523_s9 + $0x80] sm:$0xff]  }
 0x839   : > { %v13971_v11 = vpack.i.bf16 %v8282_v16, %v8284_v58  ;;  %10187 = vmatpush1.bf16.msra.mxu1 %v14363_v46  ;;  %10024 = vmatprep.subr.bf16.mxu0 %v14368_v22  ;;  %v14439_v46 = vld [vmem:[%s20523_s9 + $0x88] sm:$0xff]   ;;  %v14440_v22 = vld [vmem:[%s20523_s9 + $0x50] sm:$0xff]  }
 0x83a   : > { %10188 = vmatprep.subr.bf16.mxu1 %v14371_v31  ;;  %v14441_v31 = vld [vmem:[%s20523_s9 + $0xd0] sm:$0xff]  }
 0x83b   : > { %13972 = vrot.lane.b32.xlu0 %v13971_v11, %s14694_s25  ;;  %v14442_v16 = vld [vmem:[%s20523_s9 + $0x10] sm:$0xff]   ;;  %v14445_v11 = vld [vmem:[%s20523_s9 + $0xd8] sm:$0xff]  }
 0x83c   : > { %10025 = vmatpush1.bf16.msra.mxu0 %v14366_v55  ;;  %v14443_v58 = vld [vmem:[%s20523_s9 + $0x90] sm:$0xff]   ;;  %v14444_v55 = vld [vmem:[%s20523_s9 + $0x58] sm:$0xff]  }
 0x83d   : > { %10189 = vmatpush1.bf16.msra.mxu1 %v14369_v4  ;;  %10026 = vmatprep.subr.bf16.mxu0 %v14374_v62  ;;  %v14446_v4 = vld [vmem:[%s20523_s9 + $0x18] sm:$0xff]  }
 0x83e   : > { %10190 = vmatprep.subr.bf16.mxu1 %v14377_v3  ;;  %v14447_v62 = vld [vmem:[%s20523_s9 + $0x98] sm:$0xff]   ;;  %v14448_v3 = vld [vmem:[%s20523_s9 + $0x60] sm:$0xff]  }
 0x840   : > { %10027 = vmatpush1.bf16.msra.mxu0 %v14372_v26  ;;  %v14449_v26 = vld [vmem:[%s20523_s9 + $0xe0] sm:$0xff]  }
 0x841   : > { %10191 = vmatpush1.bf16.msra.mxu1 %v14375_v12  ;;  %10028 = vmatprep.subr.bf16.mxu0 %v14380_v18  ;;  %v14450_v12 = vld [vmem:[%s20523_s9 + $0x20] sm:$0xff]  }
 0x842   : > { %10192 = vmatprep.subr.bf16.mxu1 %v14383_v19  ;;  %v14451_v18 = vld [vmem:[%s20523_s9 + $0xa0] sm:$0xff]   ;;  %v14452_v19 = vld [vmem:[%s20523_s9 + $0x68] sm:$0xff]  }
 0x844   : > { %10029 = vmatpush1.bf16.msra.mxu0 %v14378_v35  ;;  %v14453_v35 = vld [vmem:[%s20523_s9 + $0xe8] sm:$0xff]  }
 0x845   : > { %10193 = vmatpush1.bf16.msra.mxu1 %v14381_v34  ;;  %10030 = vmatprep.subr.bf16.mxu0 %v14386_v15  ;;  %v14454_v34 = vld [vmem:[%s20523_s9 + $0x28] sm:$0xff]  }
 0x846   : > { %10194 = vmatprep.subr.bf16.mxu1 %v14389_v56  ;;  %v14455_v15 = vld [vmem:[%s20523_s9 + $0xa8] sm:$0xff]   ;;  %v14456_v56 = vld [vmem:[%s20523_s9 + $0x70] sm:$0xff]  }
 0x848   : > { %10031 = vmatpush1.bf16.msra.mxu0 %v14384_v20  ;;  %v14457_v20 = vld [vmem:[%s20523_s9 + $0xf0] sm:$0xff]  }
 0x849   : > { %10195 = vmatpush1.bf16.msra.mxu1 %v14387_v41  ;;  %10032 = vmatprep.subr.bf16.mxu0 %v14392_v13  ;;  %v14458_v41 = vld [vmem:[%s20523_s9 + $0x30] sm:$0xff]  }
 0x84a   : > { %10196 = vmatprep.subr.bf16.mxu1 %v14395_v49  ;;  %v14459_v13 = vld [vmem:[%s20523_s9 + $0xb0] sm:$0xff]   ;;  %v14460_v49 = vld [vmem:[%s20523_s9 + $0x78] sm:$0xff]  }
 0x84c   : > { %10033 = vmatpush1.bf16.msra.mxu0 %v14390_v2  ;;  %v14461_v2 = vld [vmem:[%s20523_s9 + $0xf8] sm:$0xff]  }
 0x84d   : > { %10197 = vmatpush1.bf16.msra.mxu1 %v14393_v42  ;;  %10034 = vmatprep.subr.bf16.mxu0 %v14398_v37  ;;  %v14462_v42 = vld [vmem:[%s20523_s9 + $0x38] sm:$0xff]  }
 0x84e   : > { %10198 = vmatprep.subr.bf16.mxu1 %v14401_v6  ;;  %v14463_v37 = vld [vmem:[%s20523_s9 + $0xb8] sm:$0xff]   ;;  %v8591_v6 = vlaneseq }
 0x850   : > { %10035 = vmatpush1.bf16.msra.mxu0 %v14396_v61  ;;  %v8592_v61 = vshrl.u32 %v8591_v6, 7 }
 0x851   : > { %10199 = vmatpush1.bf16.msra.mxu1 %v14399_v14  ;;  %10036 = vmatprep.subr.bf16.mxu0 %v14404_v38 }
 0x852   : > { %10200 = vmatprep.subr.bf16.mxu1 %v14407_v45  ;;  %v8593_v14 = vsub.s32 0, %v8592_v61  ;;  %v8601_v38 = vsub.s32 2, %v8592_v61  ;;  %v8589_v45 = vld [vmem:[%s20522_s8] sm:$0xf] }
 0x854   : > { %10037 = vmatpush1.bf16.msra.mxu0 %v14402_v30  ;;  %v8597_v30 = vsub.s32 1, %v8592_v61 }
 0x855   : > { %10201 = vmatpush1.bf16.msra.mxu1 %v14405_v63  ;;  %10038 = vmatprep.subr.bf16.mxu0 %v14410_v23  ;;  %v8605_v63 = vsub.s32 3, %v8592_v61  ;;  %v8594_v23 = vrot.slane %v8589_v45, %v8593_v14 }
 0x856   : > { %10202 = vmatprep.subr.bf16.mxu1 %v14413_v59  ;;  %v8602_v59 = vrot.slane %v8589_v45, %v8601_v38 }
 0x858   : > { %10039 = vmatpush1.bf16.msra.mxu0 %v14408_v39  ;;  %v8598_v39 = vrot.slane %v8589_v45, %v8597_v30 }
 0x859   : > { %10203 = vmatpush1.bf16.msra.mxu1 %v14411_v52  ;;  %10040 = vmatprep.subr.bf16.mxu0 %v14416_v29  ;;  %v8606_v52 = vrot.slane %v8589_v45, %v8605_v63 }
 0x85a   : > { %10204 = vmatprep.subr.bf16.mxu1 %v14419_v48 }
 0x85c   : > { %10041 = vmatpush1.bf16.msra.mxu0 %v14414_v40 }
 0x85d   : > { %10205 = vmatpush1.bf16.msra.mxu1 %v14417_v32  ;;  %10042 = vmatprep.subr.bf16.mxu0 %v14422_v47 }
 0x85e   : > { %10206 = vmatprep.subr.bf16.mxu1 %v14425_v21 }
 0x860   : > { %10043 = vmatpush1.bf16.msra.mxu0 %v14420_v9 }
 0x861   : > { %10207 = vmatpush1.bf16.msra.mxu1 %v14423_v54  ;;  %10044 = vmatprep.subr.bf16.mxu0 %v14428_v51 }
 0x862   : > { %10208 = vmatprep.subr.bf16.mxu1 %v14431_v43 }
 0x864   : > { %10045 = vmatpush1.bf16.msra.mxu0 %v14426_v0 }
 0x865   : > { %10209 = vmatpush1.bf16.msra.mxu1 %v14429_v25  ;;  %11351 = vmatprep.subr.bf16.mxu0 %v14432_v50 }
 0x866   : > { %11373 = vmatprep.subr.bf16.mxu1 %v14433_v57 }
 0x8ad   : > { %v13973_v5 = vpop.permute.xlu0 %13972 }
 0x8ae   : > { %v13975_v27 = vunpack.i.h.bf16 %v13973_v5  ;;  %v13974_v60 = vunpack.i.l.bf16 %v13973_v5 }
 0x8b0   : > { %v8323_v8 = vsel %vm4257_vm3, %v8281_v28, %v13975_v27  ;;  %v8324_v36 = vsel %vm4257_vm3, %v8283_v17, %v13974_v60 }
 0x8b1   : > { %v8331_v53 = vpack.c.bf16 %v8323_v8, %v8323_v8  ;;  %v8332_v24 = vpack.c.bf16 %v8324_v36, %v8324_v36 }
 0x8b3   : > { %10046 = vmatprep.mubr.bf16.mxu0 %v8332_v24  ;;  %10210 = vmatprep.mubr.bf16.mxu1 %v8332_v24  ;;  %v11074_v24 = vld [vmem:[%s20524_s10] ss:$0 sm:$0xff] }
 0x8b4   : > { %10047 = vmatmul.mubr.bf16.vlgmr.msra.gmra.mrb[228].mxu0 %v8331_v53  ;;  %10211 = vmatmul.mubr.bf16.vlgmr.msra.gmra.mrb[120].mxu1 %v8331_v53 }
 0x8b5   : > { %11352 = vmatpush3.bf16.msra.mxu0 %v14434_v7  ;;  %11374 = vmatpush3.bf16.msra.mxu1 %v14435_v33 }
 0x8b6   : > { %11353 = vmatprep.subr.bf16.mxu0 %v14436_v44  ;;  %11375 = vmatprep.subr.bf16.mxu1 %v14437_v1 }
 0x8b9   : > { %11354 = vmatpush3.bf16.msra.mxu0 %v14438_v10  ;;  %11376 = vmatpush3.bf16.msra.mxu1 %v14439_v46 }
 0x8ba   : > { %11355 = vmatprep.subr.bf16.mxu0 %v14440_v22  ;;  %11377 = vmatprep.subr.bf16.mxu1 %v14441_v31 }
 0x8bd   : > { %11356 = vmatpush3.bf16.msra.mxu0 %v14442_v16  ;;  %11378 = vmatpush3.bf16.msra.mxu1 %v14443_v58 }
 0x8be   : > { %11357 = vmatprep.subr.bf16.mxu0 %v14444_v55  ;;  %11379 = vmatprep.subr.bf16.mxu1 %v14445_v11 }
 0x8c1   : > { %11358 = vmatpush3.bf16.msra.mxu0 %v14446_v4  ;;  %11380 = vmatpush3.bf16.msra.mxu1 %v14447_v62 }
 0x8c2   : > { %11359 = vmatprep.subr.bf16.mxu0 %v14448_v3  ;;  %11381 = vmatprep.subr.bf16.mxu1 %v14449_v26 }
 0x8c5   : > { %11360 = vmatpush3.bf16.msra.mxu0 %v14450_v12  ;;  %11382 = vmatpush3.bf16.msra.mxu1 %v14451_v18 }
 0x8c6   : > { %11361 = vmatprep.subr.bf16.mxu0 %v14452_v19  ;;  %11383 = vmatprep.subr.bf16.mxu1 %v14453_v35 }
 0x8c9   : > { %11362 = vmatpush3.bf16.msra.mxu0 %v14454_v34  ;;  %11384 = vmatpush3.bf16.msra.mxu1 %v14455_v15 }
 0x8ca   : > { %11363 = vmatprep.subr.bf16.mxu0 %v14456_v56  ;;  %11385 = vmatprep.subr.bf16.mxu1 %v14457_v20 }
 0x8cd   : > { %11364 = vmatpush3.bf16.msra.mxu0 %v14458_v41  ;;  %11386 = vmatpush3.bf16.msra.mxu1 %v14459_v13 }
 0x8ce   : > { %11365 = vmatprep.subr.bf16.mxu0 %v14460_v49  ;;  %11387 = vmatprep.subr.bf16.mxu1 %v14461_v2 }
 0x8d1   : > { %11366 = vmatpush3.bf16.msra.mxu0 %v14462_v42  ;;  %11388 = vmatpush3.bf16.msra.mxu1 %v14463_v37 }
 0x987   : > { %v10048_v29 = vpop.f32.mrb[228].mxu0  ;;  %v10212_v48 = vpop.f32.mrb[120].mxu1 }
 0x988   : > { %v11659_v40 = vadd.f32 %v10048_v29, %v8594_v23  ;;  %v11661_v32 = vadd.f32 %v10212_v48, %v8602_v59  ;;  %v10050_v47 = vpop.f32.mrb[229].mxu0  ;;  %v10214_v21 = vpop.f32.mrb[121].mxu1 }
 0x989   : > { %v11660_v9 = vadd.f32 %v10050_v47, %v8598_v39  ;;  %v11662_v54 = vadd.f32 %v10214_v21, %v8606_v52  ;;  %v10052_v51 = vpop.f32.mrb[230].mxu0  ;;  %v10216_v43 = vpop.f32.mrb[122].mxu1 }
 0x98a   : > { %v10219_v0 = vmax.f32 %v11659_v40, 0.0  ;;  %v10221_v25 = vmax.f32 %v11661_v32, 0.0  ;;  %v10053_v50 = vpop.f32.mrb[231].mxu0  ;;  %v10217_v57 = vpop.f32.mrb[123].mxu1 }
 0x98b   : > { %v10220_v5 = vmax.f32 %v11660_v9, 0.0  ;;  %v10222_v28 = vmax.f32 %v11662_v54, 0.0 }
 0x98c   : > { %v10223_v60 = vpack.c.bf16 %v10219_v0, %v10219_v0  ;;  %v10225_v8 = vpack.c.bf16 %v10221_v25, %v10221_v25 }
 0x98d   : > { %v10224_v17 = vpack.c.bf16 %v10220_v5, %v10220_v5  ;;  %v10226_v27 = vpack.c.bf16 %v10222_v28, %v10222_v28 }
 0x98f   : > { %10522 = vmatprep.mubr.bf16.mxu0 %v10224_v17  ;;  %10562 = vmatprep.mubr.bf16.mxu1 %v10226_v27 }
 0x990   : > { %10523 = vmatmul.mubr.bf16.vlgmr.msra.gmra.mrb[232].mxu0 %v10223_v60  ;;  %10563 = vmatmul.mubr.bf16.vlgmr.msra.gmra.mrb[124].mxu1 %v10225_v8 }
 0xa63   : > { %v11367_v36 = vpop.f32.mrb[232].mxu0  ;;  %v11389_v53 = vpop.f32.mrb[124].mxu1 }
 0xa64   : > { %v11368_v7 = vpop.f32.mrb[233].mxu0  ;;  %v11390_v33 = vpop.f32.mrb[125].mxu1 }
 0xa65   : > { %v11369_v44 = vadd.f32 %v11368_v7, %v11367_v36  ;;  %v11391_v1 = vadd.f32 %v11390_v33, %v11389_v53  ;;  %v11370_v10 = vpop.f32.mrb[234].mxu0  ;;  %v11392_v46 = vpop.f32.mrb[126].mxu1 }
 0xa66   : > { %v11371_v22 = vpop.f32.mrb[235].mxu0  ;;  %v11393_v31 = vpop.f32.mrb[127].mxu1 }
 0xa67   : > { %v10525_v16 = vadd.f32 %v11369_v44, %v11074_v24 }
 0xa69   : > { %v10565_v58 = vadd.f32 %v11391_v1, %v10525_v16 }
 0xa6b   : > { %10570 = vst [vmem:[%s1314_s19] sm:$0xff] %v10565_v58 }
 0xa6c PF: > { %p18_p9 = scmp.ge.s32.totalorder %s14773_s21, 4   ;;  %s20817_s17 = smov %s14684_s18 }
 0xa6d   : > { %s20818_s18 = smov %s14782_s24  ;;  %s20819_s19 = smov %s14773_s21 }
 0xa6e   :  { %20 = sbr.rel (!%p18_p9) target bundleno = 2 (0x2), region = 137 }

</bundles_post_ra>
